<compile_context>
chip_gen: v7x
topology: tpu7x:2x2x1
jax: 0.10.0
libtpu: 0.0.40
codegen_flags: <defaults>
</compile_context>

<pallas_src>
import jax
import jax.numpy as jnp
from jax.experimental import pallas as pl
from jax.experimental.pallas import tpu as pltpu

CFG_VGG11 = [64, 'M', 128, 'M', 256, 256, 'M', 512, 512, 'M', 512, 512, 'M']

_PAD_L = 8            # left halo width -> sublane-aligned interior scratch write
_COUT_TILE_MAX = 256  # MXU-friendly output tile; Cout=512 layers -> 2 parallel steps


# ----------------------------------------------------------------------------
# Fused Conv3x3(pad=1) + folded-BN + ReLU (+ fused MaxPool 2x2/2) kernel.
# ----------------------------------------------------------------------------
def _make_conv_kernel(N, H, W, Cin, ct, pool, patch_input):
    M = N * H * W
    Ho, Wo = (H // 2, W // 2) if pool else (H, W)

    def kernel(*refs):
        if patch_input:
            patch_ref, w_ref, scale_ref, shift_ref, o_ref = refs
            patch = patch_ref[...]                       # (M, 9*Cin) f32
        else:
            x_ref, w_ref, scale_ref, shift_ref, o_ref, xp_ref = refs
            # In-kernel halo: zero the padded VMEM scratch, write the interior
            # at column offset _PAD_L (multiple of 8 -> aligned sublane store).
            xp_ref[...] = jnp.zeros(xp_ref.shape, xp_ref.dtype)
            xp_ref[:, 1:H + 1, _PAD_L:_PAD_L + W, :] = x_ref[...]
            # im2col: 9 shifted windows concatenated along channels.
            pieces = []
            for dy in range(3):
                for dx in range(3):
                    c0 = _PAD_L - 1 + dx
                    pieces.append(
                        xp_ref[:, dy:dy + H, c0:c0 + W, :].reshape(M, Cin))
            patch = jnp.concatenate(pieces, axis=-1)     # (M, 9*Cin) f32

        # One MXU matmul: bf16 operands, f32 accumulation.
        acc = jnp.dot(patch.astype(jnp.bfloat16), w_ref[...],
                      preferred_element_type=jnp.float32)   # (M, ct) f32

        # Folded eval-mode BatchNorm + ReLU (f32 epilogue).
        y = jnp.maximum(acc * scale_ref[...] + shift_ref[...], 0.0)

        if pool:
            # Fused MaxPool2d(2, 2): pair-max along H, then along W.
            y = y.reshape(N, Ho, 2, W, ct)
            y = jnp.maximum(y[:, :, 0, :, :], y[:, :, 1, :, :])
            y = y.reshape(N, Ho, Wo, 2, ct)
            y = jnp.maximum(y[:, :, :, 0, :], y[:, :, :, 1, :])
            o_ref[...] = y
        else:
            o_ref[...] = y.reshape(N, H, W, ct)

    return kernel


def conv_bn_relu_pool(x, w2, scale, shift, *, nhwc, pool, patch_input=False):
    """One fused VGG block over the whole batch.

    x:     (N, H, W, Cin) f32 activations, or the pre-built f32 im2col patch of
           shape (N*H*W, 9*Cin) when patch_input=True (first layer, Cin=3).
    w2:    (9*Cin, Cout) bf16 conv weights (HWIO flattened over the 9 taps).
    scale: (1, Cout) f32 folded BN scale ; shift: (1, Cout) f32 folded BN shift.
    """
    N, H, W, Cin = nhwc
    assert (not pool) or (H % 2 == 0 and W % 2 == 0)
    Cout = w2.shape[1]
    Ho, Wo = (H // 2, W // 2) if pool else (H, W)
    ct = Cout if Cout <= _COUT_TILE_MAX else _COUT_TILE_MAX
    n_ct = Cout // ct

    kernel = _make_conv_kernel(N, H, W, Cin, ct, pool, patch_input)

    if patch_input:
        x_spec = pl.BlockSpec((N * H * W, 9 * Cin), lambda j: (0, 0))
        scratch_shapes = []
    else:
        x_spec = pl.BlockSpec((N, H, W, Cin), lambda j: (0, 0, 0, 0))
        scratch_shapes = [
            pltpu.VMEM((N, H + 2, W + _PAD_L + 1, Cin), jnp.float32)]

    return pl.pallas_call(
        kernel,
        out_shape=jax.ShapeDtypeStruct((N, Ho, Wo, Cout), jnp.float32),
        grid=(n_ct,),
        in_specs=[
            x_spec,
            pl.BlockSpec((9 * Cin, ct), lambda j: (0, j)),
            pl.BlockSpec((1, ct), lambda j: (0, j)),
            pl.BlockSpec((1, ct), lambda j: (0, j)),
        ],
        out_specs=pl.BlockSpec((N, Ho, Wo, ct), lambda j: (0, 0, 0, j)),
        scratch_shapes=scratch_shapes,
        compiler_params=pltpu.CompilerParams(
            dimension_semantics=("parallel",),  # Cout tiles -> both TCs on v7x
            vmem_limit_bytes=32 * 1024 * 1024,
        ),
    )(x, w2, scale, shift)


# ----------------------------------------------------------------------------
# First-layer (Cin=3) im2col done with XLA: the patch is ~221 KB and lane
# width 3 is awkward for in-kernel concatenation; the kernel then runs a
# single K=27 matmul instead of nine K=3 matmuls.
# ----------------------------------------------------------------------------
def _im2col_3x3(x):
    # x: (N, H, W, C) -> (N*H*W, 9*C); tap order (dy, dx) row-major matches
    # w.reshape(9*C, Cout).
    N, H, W, C = x.shape
    xp = jnp.pad(x, ((0, 0), (1, 1), (1, 1), (0, 0)))
    cols = [xp[:, dy:dy + H, dx:dx + W, :]
            for dy in range(3) for dx in range(3)]
    return jnp.concatenate(cols, axis=-1).reshape(N * H * W, 9 * C)


# ----------------------------------------------------------------------------
# Classifier: Linear(512 -> 10)
# ----------------------------------------------------------------------------
def _linear_kernel(x_ref, w_ref, b_ref, o_ref):
    o_ref[...] = (jnp.dot(x_ref[...].astype(jnp.bfloat16), w_ref[...],
                          preferred_element_type=jnp.float32) + b_ref[...])


def linear(x, w, b):
    # x: (N, 512) f32, w: (512, 10) bf16, b: (1, 10) f32
    vmem = pl.BlockSpec(memory_space=pltpu.MemorySpace.VMEM)
    return pl.pallas_call(
        _linear_kernel,
        out_shape=jax.ShapeDtypeStruct((x.shape[0], w.shape[1]), jnp.float32),
        in_specs=[vmem, vmem, vmem],
        out_specs=vmem,
    )(x, w, b)


# ----------------------------------------------------------------------------
# Parameter init (deterministic, synthetic).  Each entry: (w2, scale, shift,
# pool) where w2 is (9*Cin, Cout) bf16 and pool marks a fused MaxPool2d(2, 2).
# ----------------------------------------------------------------------------
def init_vgg_params(key, cfg_list):
    blocks = []
    in_c = 3
    eps = 1e-5
    i = 0
    while i < len(cfg_list):
        v = cfg_list[i]
        assert v != 'M'
        pool = (i + 1 < len(cfg_list)) and (cfg_list[i + 1] == 'M')
        key, k1, k2, k3, k4, k5 = jax.random.split(key, 6)
        fan_in = 9 * in_c
        w = (jax.random.normal(k1, (3, 3, in_c, v), jnp.float32)
             * jnp.sqrt(2.0 / fan_in))
        gamma = 1.0 + 0.1 * jax.random.normal(k2, (v,), jnp.float32)
        beta = 0.1 * jax.random.normal(k3, (v,), jnp.float32)
        rmean = 0.1 * jax.random.normal(k4, (v,), jnp.float32)
        rvar = 1.0 + 0.1 * jnp.abs(jax.random.normal(k5, (v,), jnp.float32))
        scale = gamma / jnp.sqrt(rvar + eps)
        shift = beta - rmean * scale
        blocks.append((w.reshape(9 * in_c, v).astype(jnp.bfloat16),
                       scale.reshape(1, v).astype(jnp.float32),
                       shift.reshape(1, v).astype(jnp.float32),
                       pool))
        in_c = v
        i += 2 if pool else 1
    key, kw, kb = jax.random.split(key, 3)
    w_fc = (jax.random.normal(kw, (512, 10), jnp.float32)
            * (1.0 / jnp.sqrt(512.0))).astype(jnp.bfloat16)
    b_fc = 0.01 * jax.random.normal(kb, (1, 10), jnp.float32)
    return blocks, (w_fc, b_fc)


# ----------------------------------------------------------------------------
# Full forward pass
# ----------------------------------------------------------------------------
def vgg_forward(x_nchw, blocks, fc):
    x = jnp.transpose(x_nchw, (0, 2, 3, 1)).astype(jnp.float32)  # NCHW -> NHWC
    for idx, (w2, scale, shift, pool) in enumerate(blocks):
        nhwc = x.shape
        if idx == 0:
            patch = _im2col_3x3(x)
            x = conv_bn_relu_pool(patch, w2, scale, shift, nhwc=nhwc,
                                  pool=pool, patch_input=True)
        else:
            x = conv_bn_relu_pool(x, w2, scale, shift, nhwc=nhwc, pool=pool)
    # AvgPool2d(kernel_size=1, stride=1) is the identity -> skip.
    x = x.reshape(x.shape[0], -1)  # (N, 1, 1, 512) -> (N, 512)
    w_fc, b_fc = fc
    return linear(x, w_fc, b_fc)


if __name__ == "__main__":
    key = jax.random.PRNGKey(0)
    key, kx, kp = jax.random.split(key, 3)

    # CIFAR-style input (NCHW, like the PyTorch module): batch=2, 3x32x32.
    x = jax.random.normal(kx, (2, 3, 32, 32), jnp.float32)

    blocks, fc = init_vgg_params(kp, CFG_VGG11)

    out = vgg_forward(x, blocks, fc)
    out = jax.block_until_ready(out)

    assert out.shape == (2, 10), out.shape
    assert bool(jnp.all(jnp.isfinite(out)))
    print("KERNEL_OK")
</pallas_src>

<mosaic_0001>
module attributes {stable_mosaic.version = 11 : i64} {
  func.func @kernel(%arg0: i32, %arg1: memref<2048x27xf32, #tpu.memory_space<vmem>>, %arg2: memref<27x64xbf16, #tpu.memory_space<vmem>>, %arg3: memref<1x64xf32, #tpu.memory_space<vmem>>, %arg4: memref<1x64xf32, #tpu.memory_space<vmem>>, %arg5: memref<2x16x16x64xf32, #tpu.memory_space<vmem>>) attributes {dimension_semantics = [#tpu.dimension_semantics<parallel>], iteration_bounds = array<i64: 1>, scalar_prefetch = 0 : i64, scratch_operands = 0 : i64, tpu.core_type = #tpu.core_type<tc>, window_params = [{pipeline_mode = #tpu.pipeline_mode<synchronous>, transform_indices = @transform_0, window_bounds = array<i64: 2048, 27>}, {transform_indices = @transform_1, window_bounds = array<i64: 27, 64>}, {transform_indices = @transform_2, window_bounds = array<i64: 1, 64>}, {transform_indices = @transform_3, window_bounds = array<i64: 1, 64>}, {transform_indices = @transform_4, window_bounds = array<i64: 2, 16, 16, 64>}]} {
    %c0 = arith.constant 0 : index
    %c0_0 = arith.constant 0 : index
    %0 = vector.load %arg1[%c0, %c0_0] : memref<2048x27xf32, #tpu.memory_space<vmem>>, vector<2048x27xf32>
    %1 = arith.truncf %0 : vector<2048x27xf32> to vector<2048x27xbf16>
    %c0_1 = arith.constant 0 : index
    %c0_2 = arith.constant 0 : index
    %2 = vector.load %arg2[%c0_1, %c0_2] : memref<27x64xbf16, #tpu.memory_space<vmem>>, vector<27x64xbf16>
    %cst = arith.constant dense<0.000000e+00> : vector<2048x64xf32>
    %3 = tpu.matmul %1, %2, %cst {dimension_numbers = #tpu.dot_dimension_numbers<[1], [0], [0], [1], [0, 0, 1, 1], [], []>} : vector<2048x27xbf16>, vector<27x64xbf16>, vector<2048x64xf32> -> vector<2048x64xf32>
    %c0_3 = arith.constant 0 : index
    %c0_4 = arith.constant 0 : index
    %4 = vector.load %arg3[%c0_3, %c0_4] : memref<1x64xf32, #tpu.memory_space<vmem>>, vector<1x64xf32>
    %5 = vector.broadcast %4 : vector<1x64xf32> to vector<2048x64xf32>
    %6 = arith.mulf %3, %5 : vector<2048x64xf32>
    %c0_5 = arith.constant 0 : index
    %c0_6 = arith.constant 0 : index
    %7 = vector.load %arg4[%c0_5, %c0_6] : memref<1x64xf32, #tpu.memory_space<vmem>>, vector<1x64xf32>
    %8 = vector.broadcast %7 : vector<1x64xf32> to vector<2048x64xf32>
    %9 = arith.addf %6, %8 : vector<2048x64xf32>
    %cst_7 = arith.constant 0.000000e+00 : f32
    %10 = vector.broadcast %cst_7 : f32 to vector<2048x64xf32>
    %11 = arith.maximumf %9, %10 : vector<2048x64xf32>
    %12 = vector.shape_cast %11 : vector<2048x64xf32> to vector<2x16x2x32x64xf32>
    %13 = vector.extract_strided_slice %12 {offsets = [0, 0, 0, 0, 0], sizes = [2, 16, 1, 32, 64], strides = [1, 1, 1, 1, 1]} : vector<2x16x2x32x64xf32> to vector<2x16x1x32x64xf32>
    %14 = vector.shape_cast %13 : vector<2x16x1x32x64xf32> to vector<2x16x32x64xf32>
    %15 = vector.extract_strided_slice %12 {offsets = [0, 0, 1, 0, 0], sizes = [2, 16, 1, 32, 64], strides = [1, 1, 1, 1, 1]} : vector<2x16x2x32x64xf32> to vector<2x16x1x32x64xf32>
    %16 = vector.shape_cast %15 : vector<2x16x1x32x64xf32> to vector<2x16x32x64xf32>
    %17 = arith.maximumf %14, %16 : vector<2x16x32x64xf32>
    %18 = vector.shape_cast %17 : vector<2x16x32x64xf32> to vector<2x16x16x2x64xf32>
    %19 = vector.extract_strided_slice %18 {offsets = [0, 0, 0, 0, 0], sizes = [2, 16, 16, 1, 64], strides = [1, 1, 1, 1, 1]} : vector<2x16x16x2x64xf32> to vector<2x16x16x1x64xf32>
    %20 = vector.shape_cast %19 : vector<2x16x16x1x64xf32> to vector<2x16x16x64xf32>
    %21 = vector.extract_strided_slice %18 {offsets = [0, 0, 0, 1, 0], sizes = [2, 16, 16, 1, 64], strides = [1, 1, 1, 1, 1]} : vector<2x16x16x2x64xf32> to vector<2x16x16x1x64xf32>
    %22 = vector.shape_cast %21 : vector<2x16x16x1x64xf32> to vector<2x16x16x64xf32>
    %23 = arith.maximumf %20, %22 : vector<2x16x16x64xf32>
    %c0_8 = arith.constant 0 : index
    %c0_9 = arith.constant 0 : index
    %c0_10 = arith.constant 0 : index
    %c0_11 = arith.constant 0 : index
    %24 = vector.load %arg5[%c0_8, %c0_9, %c0_10, %c0_11] : memref<2x16x16x64xf32, #tpu.memory_space<vmem>>, vector<2x16x16x64xf32>
    tpu.vector_store %arg5[%c0_8, %c0_9, %c0_10, %c0_11], %23 {strides = array<i32>} : memref<2x16x16x64xf32, #tpu.memory_space<vmem>>, vector<2x16x16x64xf32>,
    return
  }
  func.func @transform_0(%arg0: i32) -> (i32, i32) {
    %c0_i32 = arith.constant 0 : i32
    %c0_i32_0 = arith.constant 0 : i32
    %c0_i32_1 = arith.constant 0 : i32
    return %c0_i32, %c0_i32_0 : i32, i32
  }
  func.func @transform_1(%arg0: i32) -> (i32, i32) {
    %c0_i32 = arith.constant 0 : i32
    %c0_i32_0 = arith.constant 0 : i32
    return %c0_i32, %arg0 : i32, i32
  }
  func.func @transform_2(%arg0: i32) -> (i32, i32) {
    %c0_i32 = arith.constant 0 : i32
    %c0_i32_0 = arith.constant 0 : i32
    return %c0_i32, %arg0 : i32, i32
  }
  func.func @transform_3(%arg0: i32) -> (i32, i32) {
    %c0_i32 = arith.constant 0 : i32
    %c0_i32_0 = arith.constant 0 : i32
    return %c0_i32, %arg0 : i32, i32
  }
  func.func @transform_4(%arg0: i32) -> (i32, i32, i32, i32) {
    %c0_i32 = arith.constant 0 : i32
    %c0_i32_0 = arith.constant 0 : i32
    %c0_i32_1 = arith.constant 0 : i32
    %c0_i32_2 = arith.constant 0 : i32
    return %c0_i32, %c0_i32_0, %c0_i32_1, %arg0 : i32, i32, i32, i32
  }
}

</mosaic_0001>

<bundles_post_ra>
// kernel: tpu_custom_call.1
= control target key start
LH: loop header
LB: loop body
LE: loop exit
PB: predicated region body
PF: predicated region fallthrough
CT: control target
= control target key end

     0   :  { %vm803_vm0 = vcmask 1044480   ;;  %vm804_vm1 = vcmask 1045504   ;;  %vm418_vm2 = vcmask 220160   ;;  %v11883_v5 = vmov 65535   ;;  %s16353_s0 = inlined_call_operand.vmem [shape: f32[2048,27], index: 0, kind: input, shape index: {}]   ;;  %s16354_s1 = inlined_call_operand.vmem [shape: bf16[27,64], index: 1, kind: input, shape index: {}]   ;;  %s16355_s2 = inlined_call_operand.vmem [shape: f32[1,64], index: 2, kind: input, shape index: {}]   ;;  %s16356_s3 = inlined_call_operand.vmem [shape: f32[1,64], index: 3, kind: input, shape index: {}]   ;;  %s16357_s4 = inlined_call_operand.hbm [shape: f32[2,16,16,64], index: 4, kind: output, shape index: {}]  }
   0x1   :  { %v11844_v0 = vld [vmem:[%s16354_s1] sm:$0xff]   ;;  %v11845_v1 = vld [vmem:[%s16354_s1 + $0x8] sm:$0x3f]   ;;  %v805_v6 = vsel %vm803_vm0, 4294967295, %v11883_v5  ;;  %v21_v9 = vld [vmem:[%s16353_s0 + $0x10] sm:$0xff] }
   0x2   :  { %11575 = vmatprep.subr.bf16.mxu0 %v11844_v0  ;;  %11835 = vmatprep.subr.bf16.mxu1 %v11844_v0  ;;  %v19_v2 = vld [vmem:[%s16353_s0] sm:$0xff]  ;;  %v20_v3 = vld [vmem:[%s16353_s0 + $0x8] sm:$0xff]  ;;  %v22_v10 = vld [vmem:[%s16353_s0 + $0x18] sm:$0xff]  ;;  %v806_v11 = vsel %vm804_vm1, %v805_v6, 0 }
   0x3   :  { %v147_v4 = vld [vmem:[%s16353_s0 + $0x400] sm:$0xff]  ;;  %11576 = vmatpush3.bf16.msra.mxu0 %v11844_v0  ;;  %11837 = vmatpush3.bf16.msra.mxu1 %v11844_v0  ;;  %v275_v7 = vpack.c.bf16 %v20_v3, %v19_v2  ;;  %v148_v8 = vld [vmem:[%s16353_s0 + $0x408] sm:$0xff]  ;;  %v149_v13 = vld [vmem:[%s16353_s0 + $0x410] sm:$0xff]  ;;  %v808_v16 = vand.u32 %v11845_v1, %v806_v11  ;;  %v276_v20 = vpack.c.bf16 %v22_v10, %v21_v9 }
   0x4   :  { %v339_v12 = vpack.c.bf16 %v148_v8, %v147_v4  ;;  %v150_v14 = vld [vmem:[%s16353_s0 + $0x418] sm:$0xff]  ;;  %v23_v15 = vld [vmem:[%s16353_s0 + $0x20] sm:$0xff]  ;;  %v24_v17 = vld [vmem:[%s16353_s0 + $0x28] sm:$0xff] }
   0x5   :  { %11579 = vmatprep.mubr.msk.bf16.mxu0 %vm418_vm2, %v275_v7  ;;  %v151_v18 = vld [vmem:[%s16353_s0 + $0x420] sm:$0xff]  ;;  %v152_v19 = vld [vmem:[%s16353_s0 + $0x428] sm:$0xff]  ;;  %11577 = vmatprep.subr.bf16.mxu0 %v808_v16  ;;  %v340_v21 = vpack.c.bf16 %v150_v14, %v149_v13  ;;  %v277_v22 = vpack.c.bf16 %v24_v17, %v23_v15  ;;  %v25_v24 = vld [vmem:[%s16353_s0 + $0x30] sm:$0xff] }
   0x6   :  { %11707 = vmatprep.mubr.msk.bf16.mxu1 %vm418_vm2, %v339_v12  ;;  %11836 = vmatprep.subr.bf16.mxu1 %v808_v16  ;;  %v341_v23 = vpack.c.bf16 %v152_v19, %v151_v18  ;;  %v26_v25 = vld [vmem:[%s16353_s0 + $0x38] sm:$0xff]  ;;  %v153_v26 = vld [vmem:[%s16353_s0 + $0x430] sm:$0xff]  ;;  %v27_v28 = vld [vmem:[%s16353_s0 + $0x40] sm:$0xff] }
   0x7   :  { %11578 = vmatpush3.bf16.msra.mxu0 %v808_v16  ;;  %11838 = vmatpush3.bf16.msra.mxu1 %v808_v16  ;;  %v154_v27 = vld [vmem:[%s16353_s0 + $0x438] sm:$0xff]  ;;  %v28_v29 = vld [vmem:[%s16353_s0 + $0x48] sm:$0xff]  ;;  %v155_v30 = vld [vmem:[%s16353_s0 + $0x440] sm:$0xff]  ;;  %v278_v32 = vpack.c.bf16 %v26_v25, %v25_v24 }
   0x8   :  { %v156_v31 = vld [vmem:[%s16353_s0 + $0x448] sm:$0xff]  ;;  %v342_v33 = vpack.c.bf16 %v154_v27, %v153_v26  ;;  %v279_v34 = vpack.c.bf16 %v28_v29, %v27_v28  ;;  %v29_v36 = vld [vmem:[%s16353_s0 + $0x50] sm:$0xff]  ;;  %v30_v37 = vld [vmem:[%s16353_s0 + $0x58] sm:$0xff] }
   0x9   :  { %v343_v35 = vpack.c.bf16 %v156_v31, %v155_v30  ;;  %v157_v38 = vld [vmem:[%s16353_s0 + $0x450] sm:$0xff]  ;;  %v158_v39 = vld [vmem:[%s16353_s0 + $0x458] sm:$0xff]  ;;  %v31_v40 = vld [vmem:[%s16353_s0 + $0x60] sm:$0xff]  ;;  %v280_v44 = vpack.c.bf16 %v30_v37, %v29_v36 }
   0xa   :  { %11580 = vmatmul.mubr.msk.bf16.vlgmr.msra.gmra.mrb[0].mxu0 %vm418_vm2, %v276_v20  ;;  %11708 = vmatmul.mubr.msk.bf16.vlgmr.msra.gmra.mrb[0].mxu1 %vm418_vm2, %v340_v21  ;;  %v32_v41 = vld [vmem:[%s16353_s0 + $0x68] sm:$0xff]  ;;  %v159_v42 = vld [vmem:[%s16353_s0 + $0x460] sm:$0xff]  ;;  %v344_v45 = vpack.c.bf16 %v158_v39, %v157_v38  ;;  %v33_v48 = vld [vmem:[%s16353_s0 + $0x70] sm:$0xff] }
   0xb   :  { %11583 = vmatprep.mubr.msk.bf16.mxu0 %vm418_vm2, %v277_v22  ;;  %11711 = vmatprep.mubr.msk.bf16.mxu1 %vm418_vm2, %v341_v23  ;;  %v160_v43 = vld [vmem:[%s16353_s0 + $0x468] sm:$0xff]  ;;  %v281_v46 = vpack.c.bf16 %v32_v41, %v31_v40  ;;  %v34_v49 = vld [vmem:[%s16353_s0 + $0x78] sm:$0xff]  ;;  %v161_v50 = vld [vmem:[%s16353_s0 + $0x470] sm:$0xff] }
   0xc   :  { %v345_v47 = vpack.c.bf16 %v160_v43, %v159_v42  ;;  %v162_v51 = vld [vmem:[%s16353_s0 + $0x478] sm:$0xff]  ;;  %v35_v52 = vld [vmem:[%s16353_s0 + $0x80] sm:$0xff]  ;;  %v36_v53 = vld [vmem:[%s16353_s0 + $0x88] sm:$0xff]  ;;  %v282_v56 = vpack.c.bf16 %v34_v49, %v33_v48 }
   0xd   :  { %v163_v54 = vld [vmem:[%s16353_s0 + $0x480] sm:$0xff]  ;;  %v164_v55 = vld [vmem:[%s16353_s0 + $0x488] sm:$0xff]  ;;  %v346_v57 = vpack.c.bf16 %v162_v51, %v161_v50  ;;  %v283_v58 = vpack.c.bf16 %v36_v53, %v35_v52  ;;  %v37_v60 = vld [vmem:[%s16353_s0 + $0x90] sm:$0xff] }
   0xe   :  { %v347_v59 = vpack.c.bf16 %v164_v55, %v163_v54  ;;  %v38_v61 = vld [vmem:[%s16353_s0 + $0x98] sm:$0xff]  ;;  %v165_v62 = vld [vmem:[%s16353_s0 + $0x490] sm:$0xff]  ;;  %v39_v0 = vld [vmem:[%s16353_s0 + $0xa0] sm:$0xff] }
   0xf   :  { %v166_v63 = vld [vmem:[%s16353_s0 + $0x498] sm:$0xff]  ;;  %v40_v1 = vld [vmem:[%s16353_s0 + $0xa8] sm:$0xff]  ;;  %v167_v2 = vld [vmem:[%s16353_s0 + $0x4a0] sm:$0xff]  ;;  %v284_v4 = vpack.c.bf16 %v38_v61, %v37_v60 }
  0x10   :  { %v168_v3 = vld [vmem:[%s16353_s0 + $0x4a8] sm:$0xff]  ;;  %v348_v5 = vpack.c.bf16 %v166_v63, %v165_v62  ;;  %v285_v6 = vpack.c.bf16 %v40_v1, %v39_v0  ;;  %v41_v8 = vld [vmem:[%s16353_s0 + $0xb0] sm:$0xff]  ;;  %v42_v9 = vld [vmem:[%s16353_s0 + $0xb8] sm:$0xff] }
  0x11   :  { %v349_v7 = vpack.c.bf16 %v168_v3, %v167_v2  ;;  %v169_v10 = vld [vmem:[%s16353_s0 + $0x4b0] sm:$0xff]  ;;  %v170_v11 = vld [vmem:[%s16353_s0 + $0x4b8] sm:$0xff]  ;;  %v43_v12 = vld [vmem:[%s16353_s0 + $0xc0] sm:$0xff]  ;;  %v286_v16 = vpack.c.bf16 %v42_v9, %v41_v8 }
  0x12   :  { %11584 = vmatmul.mubr.msk.bf16.gmra.mrb[4].mxu0 %vm418_vm2, %v278_v32  ;;  %11712 = vmatmul.mubr.msk.bf16.gmra.mrb[4].mxu1 %vm418_vm2, %v342_v33  ;;  %v44_v13 = vld [vmem:[%s16353_s0 + $0xc8] sm:$0xff]  ;;  %v171_v14 = vld [vmem:[%s16353_s0 + $0x4c0] sm:$0xff]  ;;  %v350_v17 = vpack.c.bf16 %v170_v11, %v169_v10  ;;  %v45_v20 = vld [vmem:[%s16353_s0 + $0xd0] sm:$0xff] }
  0x13   :  { %11587 = vmatprep.mubr.msk.bf16.mxu0 %vm418_vm2, %v279_v34  ;;  %11715 = vmatprep.mubr.msk.bf16.mxu1 %vm418_vm2, %v343_v35  ;;  %v172_v15 = vld [vmem:[%s16353_s0 + $0x4c8] sm:$0xff]  ;;  %v287_v18 = vpack.c.bf16 %v44_v13, %v43_v12  ;;  %v46_v21 = vld [vmem:[%s16353_s0 + $0xd8] sm:$0xff]  ;;  %v173_v22 = vld [vmem:[%s16353_s0 + $0x4d0] sm:$0xff] }
  0x14   :  { %v351_v19 = vpack.c.bf16 %v172_v15, %v171_v14  ;;  %v174_v23 = vld [vmem:[%s16353_s0 + $0x4d8] sm:$0xff]  ;;  %v47_v24 = vld [vmem:[%s16353_s0 + $0xe0] sm:$0xff]  ;;  %v48_v25 = vld [vmem:[%s16353_s0 + $0xe8] sm:$0xff]  ;;  %v288_v28 = vpack.c.bf16 %v46_v21, %v45_v20 }
  0x15   :  { %v175_v26 = vld [vmem:[%s16353_s0 + $0x4e0] sm:$0xff]  ;;  %v176_v27 = vld [vmem:[%s16353_s0 + $0x4e8] sm:$0xff]  ;;  %v352_v29 = vpack.c.bf16 %v174_v23, %v173_v22  ;;  %v289_v30 = vpack.c.bf16 %v48_v25, %v47_v24  ;;  %v49_v32 = vld [vmem:[%s16353_s0 + $0xf0] sm:$0xff] }
  0x16   :  { %v353_v31 = vpack.c.bf16 %v176_v27, %v175_v26  ;;  %v50_v33 = vld [vmem:[%s16353_s0 + $0xf8] sm:$0xff]  ;;  %v177_v34 = vld [vmem:[%s16353_s0 + $0x4f0] sm:$0xff]  ;;  %v51_v36 = vld [vmem:[%s16353_s0 + $0x100] sm:$0xff] }
  0x17   :  { %v178_v35 = vld [vmem:[%s16353_s0 + $0x4f8] sm:$0xff]  ;;  %v52_v37 = vld [vmem:[%s16353_s0 + $0x108] sm:$0xff]  ;;  %v179_v38 = vld [vmem:[%s16353_s0 + $0x500] sm:$0xff]  ;;  %v290_v40 = vpack.c.bf16 %v50_v33, %v49_v32 }
  0x18   :  { %v180_v39 = vld [vmem:[%s16353_s0 + $0x508] sm:$0xff]  ;;  %v354_v41 = vpack.c.bf16 %v178_v35, %v177_v34  ;;  %v291_v42 = vpack.c.bf16 %v52_v37, %v51_v36 }
  0x19   :  { %v355_v43 = vpack.c.bf16 %v180_v39, %v179_v38 }
  0x1a   :  { %11588 = vmatmul.mubr.msk.bf16.gmra.mrb[8].mxu0 %vm418_vm2, %v280_v44  ;;  %11716 = vmatmul.mubr.msk.bf16.gmra.mrb[8].mxu1 %vm418_vm2, %v344_v45 }
  0x1b   :  { %11591 = vmatprep.mubr.msk.bf16.mxu0 %vm418_vm2, %v281_v46  ;;  %11719 = vmatprep.mubr.msk.bf16.mxu1 %vm418_vm2, %v345_v47 }
  0x22   :  { %11592 = vmatmul.mubr.msk.bf16.gmra.mrb[12].mxu0 %vm418_vm2, %v282_v56  ;;  %11720 = vmatmul.mubr.msk.bf16.gmra.mrb[12].mxu1 %vm418_vm2, %v346_v57 }
  0x23   :  { %11595 = vmatprep.mubr.msk.bf16.mxu0 %vm418_vm2, %v283_v58  ;;  %11723 = vmatprep.mubr.msk.bf16.mxu1 %vm418_vm2, %v347_v59 }
  0x2a   :  { %11596 = vmatmul.mubr.msk.bf16.gmra.mrb[16].mxu0 %vm418_vm2, %v284_v4  ;;  %11724 = vmatmul.mubr.msk.bf16.gmra.mrb[16].mxu1 %vm418_vm2, %v348_v5 }
  0x2b   :  { %11599 = vmatprep.mubr.msk.bf16.mxu0 %vm418_vm2, %v285_v6  ;;  %11727 = vmatprep.mubr.msk.bf16.mxu1 %vm418_vm2, %v349_v7 }
  0x32   :  { %11600 = vmatmul.mubr.msk.bf16.gmra.mrb[20].mxu0 %vm418_vm2, %v286_v16  ;;  %11728 = vmatmul.mubr.msk.bf16.gmra.mrb[20].mxu1 %vm418_vm2, %v350_v17 }
  0x33   :  { %11603 = vmatprep.mubr.msk.bf16.mxu0 %vm418_vm2, %v287_v18  ;;  %11731 = vmatprep.mubr.msk.bf16.mxu1 %vm418_vm2, %v351_v19 }
  0x3a   :  { %11604 = vmatmul.mubr.msk.bf16.gmra.mrb[24].mxu0 %vm418_vm2, %v288_v28  ;;  %11732 = vmatmul.mubr.msk.bf16.gmra.mrb[24].mxu1 %vm418_vm2, %v352_v29 }
  0x3b   :  { %11607 = vmatprep.mubr.msk.bf16.mxu0 %vm418_vm2, %v289_v30  ;;  %11735 = vmatprep.mubr.msk.bf16.mxu1 %vm418_vm2, %v353_v31 }
  0x3c   :  { %9 = vsyncpa [#allocation3], 0  ;;  %v53_v44 = vld [vmem:[%s16353_s0 + $0x110] sm:$0xff]  ;;  %v54_v45 = vld [vmem:[%s16353_s0 + $0x118] sm:$0xff]  ;;  %vm10201_vm3 = vcmask 1041409   ;;  %vm10203_vm4 = vcmask 1042434  }
  0x3d   :  { %v181_v46 = vld [vmem:[%s16353_s0 + $0x510] sm:$0xff]  ;;  %v182_v47 = vld [vmem:[%s16353_s0 + $0x518] sm:$0xff]  ;;  %v55_v48 = vld [vmem:[%s16353_s0 + $0x120] sm:$0xff]  ;;  %v292_v52 = vpack.c.bf16 %v54_v45, %v53_v44  ;;  %vm10205_vm5 = vcmask 1043459   ;;  %vm10207_vm6 = vcmask 1044484   ;;  %vm10209_vm7 = vcmask 1045509  }
  0x3e   :  { %v56_v49 = vld [vmem:[%s16353_s0 + $0x128] sm:$0xff]  ;;  %v183_v50 = vld [vmem:[%s16353_s0 + $0x520] sm:$0xff]  ;;  %v356_v53 = vpack.c.bf16 %v182_v47, %v181_v46  ;;  %v57_v56 = vld [vmem:[%s16353_s0 + $0x130] sm:$0xff]  ;;  %vm10211_vm8 = vcmask 1046534   ;;  %vm10213_vm9 = vcmask 1047559   ;;  %vm10720_vm10 = vcmask 523264  }
  0x3f   :  { %v184_v51 = vld [vmem:[%s16353_s0 + $0x528] sm:$0xff]  ;;  %v293_v54 = vpack.c.bf16 %v56_v49, %v55_v48  ;;  %v58_v57 = vld [vmem:[%s16353_s0 + $0x138] sm:$0xff]  ;;  %v185_v58 = vld [vmem:[%s16353_s0 + $0x530] sm:$0xff] }
  0x40   :  { %v357_v55 = vpack.c.bf16 %v184_v51, %v183_v50  ;;  %v186_v59 = vld [vmem:[%s16353_s0 + $0x538] sm:$0xff]  ;;  %v59_v60 = vld [vmem:[%s16353_s0 + $0x140] sm:$0xff]  ;;  %v60_v61 = vld [vmem:[%s16353_s0 + $0x148] sm:$0xff]  ;;  %v294_v0 = vpack.c.bf16 %v58_v57, %v57_v56 }
  0x41   :  { %v187_v62 = vld [vmem:[%s16353_s0 + $0x540] sm:$0xff]  ;;  %v188_v63 = vld [vmem:[%s16353_s0 + $0x548] sm:$0xff]  ;;  %v358_v1 = vpack.c.bf16 %v186_v59, %v185_v58  ;;  %v295_v2 = vpack.c.bf16 %v60_v61, %v59_v60  ;;  %v61_v4 = vld [vmem:[%s16353_s0 + $0x150] sm:$0xff] }
  0x42   :  { %11608 = vmatmul.mubr.msk.bf16.gmra.mrb[28].mxu0 %vm418_vm2, %v290_v40  ;;  %11736 = vmatmul.mubr.msk.bf16.gmra.mrb[28].mxu1 %vm418_vm2, %v354_v41  ;;  %v359_v3 = vpack.c.bf16 %v188_v63, %v187_v62  ;;  %v62_v5 = vld [vmem:[%s16353_s0 + $0x158] sm:$0xff]  ;;  %v189_v6 = vld [vmem:[%s16353_s0 + $0x550] sm:$0xff]  ;;  %v63_v8 = vld [vmem:[%s16353_s0 + $0x160] sm:$0xff] }
  0x43   :  { %11611 = vmatprep.mubr.msk.bf16.mxu0 %vm418_vm2, %v291_v42  ;;  %11739 = vmatprep.mubr.msk.bf16.mxu1 %vm418_vm2, %v355_v43  ;;  %v190_v7 = vld [vmem:[%s16353_s0 + $0x558] sm:$0xff]  ;;  %v64_v9 = vld [vmem:[%s16353_s0 + $0x168] sm:$0xff]  ;;  %v191_v10 = vld [vmem:[%s16353_s0 + $0x560] sm:$0xff]  ;;  %v296_v12 = vpack.c.bf16 %v62_v5, %v61_v4 }
  0x44   :  { %v192_v11 = vld [vmem:[%s16353_s0 + $0x568] sm:$0xff]  ;;  %v360_v13 = vpack.c.bf16 %v190_v7, %v189_v6  ;;  %v297_v14 = vpack.c.bf16 %v64_v9, %v63_v8  ;;  %v65_v16 = vld [vmem:[%s16353_s0 + $0x170] sm:$0xff]  ;;  %v66_v17 = vld [vmem:[%s16353_s0 + $0x178] sm:$0xff] }
  0x45   :  { %v361_v15 = vpack.c.bf16 %v192_v11, %v191_v10  ;;  %v193_v18 = vld [vmem:[%s16353_s0 + $0x570] sm:$0xff]  ;;  %v194_v19 = vld [vmem:[%s16353_s0 + $0x578] sm:$0xff]  ;;  %v67_v20 = vld [vmem:[%s16353_s0 + $0x180] sm:$0xff]  ;;  %v298_v24 = vpack.c.bf16 %v66_v17, %v65_v16 }
  0x46   :  { %v68_v21 = vld [vmem:[%s16353_s0 + $0x188] sm:$0xff]  ;;  %v195_v22 = vld [vmem:[%s16353_s0 + $0x580] sm:$0xff]  ;;  %v362_v25 = vpack.c.bf16 %v194_v19, %v193_v18  ;;  %v69_v28 = vld [vmem:[%s16353_s0 + $0x190] sm:$0xff] }
  0x47   :  { %v196_v23 = vld [vmem:[%s16353_s0 + $0x588] sm:$0xff]  ;;  %v299_v26 = vpack.c.bf16 %v68_v21, %v67_v20  ;;  %v70_v29 = vld [vmem:[%s16353_s0 + $0x198] sm:$0xff]  ;;  %v197_v30 = vld [vmem:[%s16353_s0 + $0x590] sm:$0xff] }
  0x48   :  { %v363_v27 = vpack.c.bf16 %v196_v23, %v195_v22  ;;  %v198_v31 = vld [vmem:[%s16353_s0 + $0x598] sm:$0xff]  ;;  %v71_v32 = vld [vmem:[%s16353_s0 + $0x1a0] sm:$0xff]  ;;  %v72_v33 = vld [vmem:[%s16353_s0 + $0x1a8] sm:$0xff]  ;;  %v300_v36 = vpack.c.bf16 %v70_v29, %v69_v28 }
  0x49   :  { %v199_v34 = vld [vmem:[%s16353_s0 + $0x5a0] sm:$0xff]  ;;  %v200_v35 = vld [vmem:[%s16353_s0 + $0x5a8] sm:$0xff]  ;;  %v364_v37 = vpack.c.bf16 %v198_v31, %v197_v30  ;;  %v301_v38 = vpack.c.bf16 %v72_v33, %v71_v32  ;;  %v73_v40 = vld [vmem:[%s16353_s0 + $0x1b0] sm:$0xff] }
  0x4a   :  { %11612 = vmatmul.mubr.msk.bf16.gmra.mrb[32].mxu0 %vm418_vm2, %v292_v52  ;;  %11740 = vmatmul.mubr.msk.bf16.gmra.mrb[32].mxu1 %vm418_vm2, %v356_v53  ;;  %v365_v39 = vpack.c.bf16 %v200_v35, %v199_v34  ;;  %v74_v41 = vld [vmem:[%s16353_s0 + $0x1b8] sm:$0xff]  ;;  %v201_v42 = vld [vmem:[%s16353_s0 + $0x5b0] sm:$0xff]  ;;  %v75_v44 = vld [vmem:[%s16353_s0 + $0x1c0] sm:$0xff] }
  0x4b   :  { %11615 = vmatprep.mubr.msk.bf16.mxu0 %vm418_vm2, %v293_v54  ;;  %11743 = vmatprep.mubr.msk.bf16.mxu1 %vm418_vm2, %v357_v55  ;;  %v202_v43 = vld [vmem:[%s16353_s0 + $0x5b8] sm:$0xff]  ;;  %v76_v45 = vld [vmem:[%s16353_s0 + $0x1c8] sm:$0xff]  ;;  %v203_v46 = vld [vmem:[%s16353_s0 + $0x5c0] sm:$0xff]  ;;  %v302_v48 = vpack.c.bf16 %v74_v41, %v73_v40 }
  0x4c   :  { %v204_v47 = vld [vmem:[%s16353_s0 + $0x5c8] sm:$0xff]  ;;  %v366_v49 = vpack.c.bf16 %v202_v43, %v201_v42  ;;  %v303_v50 = vpack.c.bf16 %v76_v45, %v75_v44  ;;  %v77_v52 = vld [vmem:[%s16353_s0 + $0x1d0] sm:$0xff]  ;;  %v78_v53 = vld [vmem:[%s16353_s0 + $0x1d8] sm:$0xff] }
  0x4d   :  { %v367_v51 = vpack.c.bf16 %v204_v47, %v203_v46  ;;  %v205_v54 = vld [vmem:[%s16353_s0 + $0x5d0] sm:$0xff]  ;;  %v206_v55 = vld [vmem:[%s16353_s0 + $0x5d8] sm:$0xff]  ;;  %v79_v56 = vld [vmem:[%s16353_s0 + $0x1e0] sm:$0xff]  ;;  %v304_v60 = vpack.c.bf16 %v78_v53, %v77_v52 }
  0x4e   :  { %v80_v57 = vld [vmem:[%s16353_s0 + $0x1e8] sm:$0xff]  ;;  %v207_v58 = vld [vmem:[%s16353_s0 + $0x5e0] sm:$0xff]  ;;  %v368_v61 = vpack.c.bf16 %v206_v55, %v205_v54 }
  0x4f   :  { %v208_v59 = vld [vmem:[%s16353_s0 + $0x5e8] sm:$0xff]  ;;  %v305_v62 = vpack.c.bf16 %v80_v57, %v79_v56  ;;  %v83_v4 = vld [vmem:[%s16353_s0 + $0x200] sm:$0xff] }
  0x50   :  { %v369_v63 = vpack.c.bf16 %v208_v59, %v207_v58  ;;  %v84_v5 = vld [vmem:[%s16353_s0 + $0x208] sm:$0xff]  ;;  %v211_v6 = vld [vmem:[%s16353_s0 + $0x600] sm:$0xff] }
  0x51   :  { %v212_v7 = vld [vmem:[%s16353_s0 + $0x608] sm:$0xff]  ;;  %v307_v10 = vpack.c.bf16 %v84_v5, %v83_v4  ;;  %v87_v16 = vld [vmem:[%s16353_s0 + $0x220] sm:$0xff] }
  0x52   :  { %11616 = vmatmul.mubr.msk.bf16.gmra.mrb[36].mxu0 %vm418_vm2, %v294_v0  ;;  %11744 = vmatmul.mubr.msk.bf16.gmra.mrb[36].mxu1 %vm418_vm2, %v358_v1  ;;  %v81_v0 = vld [vmem:[%s16353_s0 + $0x1f0] sm:$0xff]  ;;  %v82_v1 = vld [vmem:[%s16353_s0 + $0x1f8] sm:$0xff]  ;;  %v371_v11 = vpack.c.bf16 %v212_v7, %v211_v6  ;;  %v88_v17 = vld [vmem:[%s16353_s0 + $0x228] sm:$0xff] }
  0x53   :  { %11619 = vmatprep.mubr.msk.bf16.mxu0 %vm418_vm2, %v295_v2  ;;  %11747 = vmatprep.mubr.msk.bf16.mxu1 %vm418_vm2, %v359_v3  ;;  %v209_v2 = vld [vmem:[%s16353_s0 + $0x5f0] sm:$0xff]  ;;  %v210_v3 = vld [vmem:[%s16353_s0 + $0x5f8] sm:$0xff]  ;;  %v306_v8 = vpack.c.bf16 %v82_v1, %v81_v0  ;;  %v215_v18 = vld [vmem:[%s16353_s0 + $0x620] sm:$0xff]  ;;  %v309_v22 = vpack.c.bf16 %v88_v17, %v87_v16 }
  0x54   :  { %v370_v9 = vpack.c.bf16 %v210_v3, %v209_v2  ;;  %v216_v19 = vld [vmem:[%s16353_s0 + $0x628] sm:$0xff]  ;;  %v91_v28 = vld [vmem:[%s16353_s0 + $0x240] sm:$0xff] }
  0x55   :  { %v373_v23 = vpack.c.bf16 %v216_v19, %v215_v18  ;;  %v92_v29 = vld [vmem:[%s16353_s0 + $0x248] sm:$0xff]  ;;  %v219_v30 = vld [vmem:[%s16353_s0 + $0x640] sm:$0xff] }
  0x56   :  { %v220_v31 = vld [vmem:[%s16353_s0 + $0x648] sm:$0xff]  ;;  %v311_v34 = vpack.c.bf16 %v92_v29, %v91_v28  ;;  %v95_v40 = vld [vmem:[%s16353_s0 + $0x260] sm:$0xff] }
  0x57   :  { %v375_v35 = vpack.c.bf16 %v220_v31, %v219_v30  ;;  %v96_v41 = vld [vmem:[%s16353_s0 + $0x268] sm:$0xff]  ;;  %v223_v42 = vld [vmem:[%s16353_s0 + $0x660] sm:$0xff] }
  0x58   :  { %v224_v43 = vld [vmem:[%s16353_s0 + $0x668] sm:$0xff]  ;;  %v313_v46 = vpack.c.bf16 %v96_v41, %v95_v40  ;;  %v99_v52 = vld [vmem:[%s16353_s0 + $0x280] sm:$0xff] }
  0x59   :  { %v377_v47 = vpack.c.bf16 %v224_v43, %v223_v42  ;;  %v100_v53 = vld [vmem:[%s16353_s0 + $0x288] sm:$0xff]  ;;  %v227_v54 = vld [vmem:[%s16353_s0 + $0x680] sm:$0xff] }
  0x5a   :  { %11620 = vmatmul.mubr.msk.bf16.gmra.mrb[40].mxu0 %vm418_vm2, %v296_v12  ;;  %11748 = vmatmul.mubr.msk.bf16.gmra.mrb[40].mxu1 %vm418_vm2, %v360_v13  ;;  %v85_v12 = vld [vmem:[%s16353_s0 + $0x210] sm:$0xff]  ;;  %v86_v13 = vld [vmem:[%s16353_s0 + $0x218] sm:$0xff]  ;;  %v228_v55 = vld [vmem:[%s16353_s0 + $0x688] sm:$0xff]  ;;  %v315_v58 = vpack.c.bf16 %v100_v53, %v99_v52 }
  0x5b   :  { %11623 = vmatprep.mubr.msk.bf16.mxu0 %vm418_vm2, %v297_v14  ;;  %11751 = vmatprep.mubr.msk.bf16.mxu1 %vm418_vm2, %v361_v15  ;;  %v213_v14 = vld [vmem:[%s16353_s0 + $0x610] sm:$0xff]  ;;  %v214_v15 = vld [vmem:[%s16353_s0 + $0x618] sm:$0xff]  ;;  %v308_v20 = vpack.c.bf16 %v86_v13, %v85_v12  ;;  %v379_v59 = vpack.c.bf16 %v228_v55, %v227_v54  ;;  %v103_v0 = vld [vmem:[%s16353_s0 + $0x2a0] sm:$0xff] }
  0x5c   :  { %v372_v21 = vpack.c.bf16 %v214_v15, %v213_v14  ;;  %v104_v1 = vld [vmem:[%s16353_s0 + $0x2a8] sm:$0xff]  ;;  %v231_v2 = vld [vmem:[%s16353_s0 + $0x6a0] sm:$0xff] }
  0x5d   :  { %v232_v3 = vld [vmem:[%s16353_s0 + $0x6a8] sm:$0xff]  ;;  %v317_v6 = vpack.c.bf16 %v104_v1, %v103_v0  ;;  %v107_v12 = vld [vmem:[%s16353_s0 + $0x2c0] sm:$0xff] }
  0x5e   :  { %v381_v7 = vpack.c.bf16 %v232_v3, %v231_v2  ;;  %v108_v13 = vld [vmem:[%s16353_s0 + $0x2c8] sm:$0xff]  ;;  %v235_v14 = vld [vmem:[%s16353_s0 + $0x6c0] sm:$0xff] }
  0x5f   :  { %v236_v15 = vld [vmem:[%s16353_s0 + $0x6c8] sm:$0xff]  ;;  %v319_v18 = vpack.c.bf16 %v108_v13, %v107_v12  ;;  %v11884_v12 = vmov 1983009808  }
  0x60   :  { %v383_v19 = vpack.c.bf16 %v236_v15, %v235_v14  ;;  %v2907_v13 = vunpack.c.l.s4 %v11884_v12  ;;  %v2909_v14 = vlaneseq }
  0x62   :  { %11624 = vmatmul.mubr.msk.bf16.gmra.mrb[44].mxu0 %vm418_vm2, %v298_v24  ;;  %11752 = vmatmul.mubr.msk.bf16.gmra.mrb[44].mxu1 %vm418_vm2, %v362_v25  ;;  %v89_v24 = vld [vmem:[%s16353_s0 + $0x230] sm:$0xff]  ;;  %v90_v25 = vld [vmem:[%s16353_s0 + $0x238] sm:$0xff] }
  0x63   :  { %11627 = vmatprep.mubr.msk.bf16.mxu0 %vm418_vm2, %v299_v26  ;;  %11755 = vmatprep.mubr.msk.bf16.mxu1 %vm418_vm2, %v363_v27  ;;  %v217_v26 = vld [vmem:[%s16353_s0 + $0x630] sm:$0xff]  ;;  %v218_v27 = vld [vmem:[%s16353_s0 + $0x638] sm:$0xff]  ;;  %v310_v32 = vpack.c.bf16 %v90_v25, %v89_v24  ;;  %v111_v24 = vld [vmem:[%s16353_s0 + $0x2e0] sm:$0xff] }
  0x64   :  { %v374_v33 = vpack.c.bf16 %v218_v27, %v217_v26  ;;  %v112_v25 = vld [vmem:[%s16353_s0 + $0x2e8] sm:$0xff]  ;;  %v239_v26 = vld [vmem:[%s16353_s0 + $0x6e0] sm:$0xff] }
  0x65   :  { %v240_v27 = vld [vmem:[%s16353_s0 + $0x6e8] sm:$0xff]  ;;  %v321_v30 = vpack.c.bf16 %v112_v25, %v111_v24  ;;  %v2908_v25 = vunpack.c.0.s8 %v2907_v13 }
  0x66   :  { %v385_v31 = vpack.c.bf16 %v240_v27, %v239_v26  ;;  %v12713_v24 = vld [vmem:[%s16353_s0 + $0x388] sm:$0xff]  ;;  %v12715_v26 = vshrl.u32 %v2909_v14, 7  ;;  %v12720_v27 = vld [vmem:[%s16353_s0 + $0x780] sm:$0xff] }
  0x6a   :  { %11628 = vmatmul.mubr.msk.bf16.gmra.mrb[48].mxu0 %vm418_vm2, %v300_v36  ;;  %11756 = vmatmul.mubr.msk.bf16.gmra.mrb[48].mxu1 %vm418_vm2, %v364_v37  ;;  %v93_v36 = vld [vmem:[%s16353_s0 + $0x250] sm:$0xff]  ;;  %v94_v37 = vld [vmem:[%s16353_s0 + $0x258] sm:$0xff] }
  0x6b   :  { %11631 = vmatprep.mubr.msk.bf16.mxu0 %vm418_vm2, %v301_v38  ;;  %11759 = vmatprep.mubr.msk.bf16.mxu1 %vm418_vm2, %v365_v39  ;;  %v221_v38 = vld [vmem:[%s16353_s0 + $0x650] sm:$0xff]  ;;  %v222_v39 = vld [vmem:[%s16353_s0 + $0x658] sm:$0xff]  ;;  %v312_v44 = vpack.c.bf16 %v94_v37, %v93_v36  ;;  %v115_v36 = vld [vmem:[%s16353_s0 + $0x300] sm:$0xff] }
  0x6c   :  { %v376_v45 = vpack.c.bf16 %v222_v39, %v221_v38  ;;  %v116_v37 = vld [vmem:[%s16353_s0 + $0x308] sm:$0xff]  ;;  %v243_v38 = vld [vmem:[%s16353_s0 + $0x700] sm:$0xff] }
  0x6d   :  { %v244_v39 = vld [vmem:[%s16353_s0 + $0x708] sm:$0xff]  ;;  %v323_v42 = vpack.c.bf16 %v116_v37, %v115_v36  ;;  %v12767_v36 = vld [vmem:[%s16353_s0 + $0x7a0] sm:$0xff] }
  0x6e   :  { %v387_v43 = vpack.c.bf16 %v244_v39, %v243_v38  ;;  %v12772_v37 = vld [vmem:[%s16353_s0 + $0x7a8] sm:$0xff]  ;;  %v12779_v38 = vld [vmem:[%s16353_s0 + $0x3b0] sm:$0xff]  ;;  %v12784_v39 = vld [vmem:[%s16353_s0 + $0x3b8] sm:$0xff] }
  0x72   :  { %11632 = vmatmul.mubr.msk.bf16.gmra.mrb[52].mxu0 %vm418_vm2, %v302_v48  ;;  %11760 = vmatmul.mubr.msk.bf16.gmra.mrb[52].mxu1 %vm418_vm2, %v366_v49  ;;  %v97_v48 = vld [vmem:[%s16353_s0 + $0x270] sm:$0xff]  ;;  %v98_v49 = vld [vmem:[%s16353_s0 + $0x278] sm:$0xff] }
  0x73   :  { %11635 = vmatprep.mubr.msk.bf16.mxu0 %vm418_vm2, %v303_v50  ;;  %11763 = vmatprep.mubr.msk.bf16.mxu1 %vm418_vm2, %v367_v51  ;;  %v225_v50 = vld [vmem:[%s16353_s0 + $0x670] sm:$0xff]  ;;  %v226_v51 = vld [vmem:[%s16353_s0 + $0x678] sm:$0xff]  ;;  %v314_v56 = vpack.c.bf16 %v98_v49, %v97_v48  ;;  %v119_v48 = vld [vmem:[%s16353_s0 + $0x320] sm:$0xff] }
  0x74   :  { %v378_v57 = vpack.c.bf16 %v226_v51, %v225_v50  ;;  %v120_v49 = vld [vmem:[%s16353_s0 + $0x328] sm:$0xff]  ;;  %v247_v50 = vld [vmem:[%s16353_s0 + $0x720] sm:$0xff] }
  0x75   :  { %v248_v51 = vld [vmem:[%s16353_s0 + $0x728] sm:$0xff]  ;;  %v325_v54 = vpack.c.bf16 %v120_v49, %v119_v48  ;;  %v12818_v49 = vld [vmem:[%s16356_s3] ss:$0 sm:$0xff] }
  0x76   :  { %v389_v55 = vpack.c.bf16 %v248_v51, %v247_v50 }
  0x7a   :  { %11636 = vmatmul.mubr.msk.bf16.gmra.mrb[56].mxu0 %vm418_vm2, %v304_v60  ;;  %11764 = vmatmul.mubr.msk.bf16.gmra.mrb[56].mxu1 %vm418_vm2, %v368_v61  ;;  %v101_v60 = vld [vmem:[%s16353_s0 + $0x290] sm:$0xff]  ;;  %v102_v61 = vld [vmem:[%s16353_s0 + $0x298] sm:$0xff] }
  0x7b   :  { %11639 = vmatprep.mubr.msk.bf16.mxu0 %vm418_vm2, %v305_v62  ;;  %11767 = vmatprep.mubr.msk.bf16.mxu1 %vm418_vm2, %v369_v63  ;;  %v229_v62 = vld [vmem:[%s16353_s0 + $0x690] sm:$0xff]  ;;  %v230_v63 = vld [vmem:[%s16353_s0 + $0x698] sm:$0xff]  ;;  %v316_v4 = vpack.c.bf16 %v102_v61, %v101_v60  ;;  %v123_v60 = vld [vmem:[%s16353_s0 + $0x340] sm:$0xff] }
  0x7c   :  { %v380_v5 = vpack.c.bf16 %v230_v63, %v229_v62  ;;  %v124_v61 = vld [vmem:[%s16353_s0 + $0x348] sm:$0xff]  ;;  %v251_v62 = vld [vmem:[%s16353_s0 + $0x740] sm:$0xff] }
  0x7d   :  { %v252_v63 = vld [vmem:[%s16353_s0 + $0x748] sm:$0xff]  ;;  %v327_v2 = vpack.c.bf16 %v124_v61, %v123_v60  ;;  %v397_v61 = vpack.c.bf16 %v12772_v37, %v12767_v36 }
  0x7e   :  { %v391_v3 = vpack.c.bf16 %v252_v63, %v251_v62  ;;  %v334_v62 = vpack.c.bf16 %v12784_v39, %v12779_v38  ;;  %v12847_v63 = vld [vmem:[%s16353_s0 + $0x3d0] sm:$0xff] }
  0x82   :  { %11640 = vmatmul.mubr.msk.bf16.gmra.mrb[60].mxu0 %vm418_vm2, %v306_v8  ;;  %11768 = vmatmul.mubr.msk.bf16.gmra.mrb[60].mxu1 %vm418_vm2, %v370_v9  ;;  %v105_v8 = vld [vmem:[%s16353_s0 + $0x2b0] sm:$0xff]  ;;  %v106_v9 = vld [vmem:[%s16353_s0 + $0x2b8] sm:$0xff] }
  0x83   :  { %11643 = vmatprep.mubr.msk.bf16.mxu0 %vm418_vm2, %v307_v10  ;;  %11771 = vmatprep.mubr.msk.bf16.mxu1 %vm418_vm2, %v371_v11  ;;  %v233_v10 = vld [vmem:[%s16353_s0 + $0x6b0] sm:$0xff]  ;;  %v234_v11 = vld [vmem:[%s16353_s0 + $0x6b8] sm:$0xff]  ;;  %v318_v16 = vpack.c.bf16 %v106_v9, %v105_v8  ;;  %v127_v8 = vld [vmem:[%s16353_s0 + $0x360] sm:$0xff] }
  0x84   :  { %v382_v17 = vpack.c.bf16 %v234_v11, %v233_v10  ;;  %v128_v9 = vld [vmem:[%s16353_s0 + $0x368] sm:$0xff]  ;;  %v255_v10 = vld [vmem:[%s16353_s0 + $0x760] sm:$0xff] }
  0x85   :  { %v256_v11 = vld [vmem:[%s16353_s0 + $0x768] sm:$0xff] }
  0x8a   :  { %11644 = vmatmul.mubr.msk.bf16.gmra.mrb[64].mxu0 %vm418_vm2, %v308_v20  ;;  %11772 = vmatmul.mubr.msk.bf16.gmra.mrb[64].mxu1 %vm418_vm2, %v372_v21  ;;  %v109_v20 = vld [vmem:[%s16353_s0 + $0x2d0] sm:$0xff]  ;;  %v110_v21 = vld [vmem:[%s16353_s0 + $0x2d8] sm:$0xff] }
  0x8b   :  { %11647 = vmatprep.mubr.msk.bf16.mxu0 %vm418_vm2, %v309_v22  ;;  %11775 = vmatprep.mubr.msk.bf16.mxu1 %vm418_vm2, %v373_v23  ;;  %v237_v22 = vld [vmem:[%s16353_s0 + $0x6d0] sm:$0xff]  ;;  %v238_v23 = vld [vmem:[%s16353_s0 + $0x6d8] sm:$0xff]  ;;  %v320_v28 = vpack.c.bf16 %v110_v21, %v109_v20 }
  0x8c   :  { %v384_v29 = vpack.c.bf16 %v238_v23, %v237_v22  ;;  %v12693_v20 = vld [vmem:[%s16353_s0 + $0x378] sm:$0xff]  ;;  %v12698_v21 = vld [vmem:[%s16353_s0 + $0x770] sm:$0xff]  ;;  %v12708_v23 = vld [vmem:[%s16353_s0 + $0x380] sm:$0xff] }
  0x8d   :  { %v12703_v22 = vld [vmem:[%s16353_s0 + $0x778] sm:$0xff] }
  0x92   :  { %11648 = vmatmul.mubr.msk.bf16.gmra.mrb[68].mxu0 %vm418_vm2, %v310_v32  ;;  %11776 = vmatmul.mubr.msk.bf16.gmra.mrb[68].mxu1 %vm418_vm2, %v374_v33  ;;  %v113_v32 = vld [vmem:[%s16353_s0 + $0x2f0] sm:$0xff]  ;;  %v114_v33 = vld [vmem:[%s16353_s0 + $0x2f8] sm:$0xff] }
  0x93   :  { %11651 = vmatprep.mubr.msk.bf16.mxu0 %vm418_vm2, %v311_v34  ;;  %11779 = vmatprep.mubr.msk.bf16.mxu1 %vm418_vm2, %v375_v35  ;;  %v241_v34 = vld [vmem:[%s16353_s0 + $0x6f0] sm:$0xff]  ;;  %v242_v35 = vld [vmem:[%s16353_s0 + $0x6f8] sm:$0xff]  ;;  %v322_v40 = vpack.c.bf16 %v114_v33, %v113_v32 }
  0x94   :  { %v386_v41 = vpack.c.bf16 %v242_v35, %v241_v34  ;;  %v12745_v32 = vld [vmem:[%s16353_s0 + $0x790] sm:$0xff]  ;;  %v12750_v33 = vld [vmem:[%s16353_s0 + $0x798] sm:$0xff]  ;;  %v12755_v34 = vld [vmem:[%s16353_s0 + $0x3a0] sm:$0xff] }
  0x95   :  { %v12762_v35 = vld [vmem:[%s16353_s0 + $0x3a8] sm:$0xff] }
  0x9a   :  { %11652 = vmatmul.mubr.msk.bf16.gmra.mrb[72].mxu0 %vm418_vm2, %v312_v44  ;;  %11780 = vmatmul.mubr.msk.bf16.gmra.mrb[72].mxu1 %vm418_vm2, %v376_v45  ;;  %v117_v44 = vld [vmem:[%s16353_s0 + $0x310] sm:$0xff]  ;;  %v118_v45 = vld [vmem:[%s16353_s0 + $0x318] sm:$0xff] }
  0x9b   :  { %11655 = vmatprep.mubr.msk.bf16.mxu0 %vm418_vm2, %v313_v46  ;;  %11783 = vmatprep.mubr.msk.bf16.mxu1 %vm418_vm2, %v377_v47  ;;  %v245_v46 = vld [vmem:[%s16353_s0 + $0x710] sm:$0xff]  ;;  %v246_v47 = vld [vmem:[%s16353_s0 + $0x718] sm:$0xff]  ;;  %v324_v52 = vpack.c.bf16 %v118_v45, %v117_v44  ;;  %v331_v44 = vpack.c.bf16 %v12713_v24, %v12708_v23 }
  0x9c   :  { %v388_v53 = vpack.c.bf16 %v246_v47, %v245_v46  ;;  %v12803_v45 = vld [vmem:[%s16353_s0 + $0x7b8] sm:$0xff]  ;;  %v12808_v46 = vld [vmem:[%s16353_s0 + $0x3c0] sm:$0xff]  ;;  %v12813_v47 = vld [vmem:[%s16353_s0 + $0x3c8] sm:$0xff] }
  0x9d   :  { %v12915_v24 = vld [vmem:[%s16353_s0 + $0x3f8] sm:$0xff] }
  0xa2   :  { %11656 = vmatmul.mubr.msk.bf16.gmra.mrb[76].mxu0 %vm418_vm2, %v314_v56  ;;  %11784 = vmatmul.mubr.msk.bf16.gmra.mrb[76].mxu1 %vm418_vm2, %v378_v57  ;;  %v121_v56 = vld [vmem:[%s16353_s0 + $0x330] sm:$0xff]  ;;  %v122_v57 = vld [vmem:[%s16353_s0 + $0x338] sm:$0xff] }
  0xa3   :  { %11659 = vmatprep.mubr.msk.bf16.mxu0 %vm418_vm2, %v315_v58  ;;  %11787 = vmatprep.mubr.msk.bf16.mxu1 %vm418_vm2, %v379_v59  ;;  %v249_v58 = vld [vmem:[%s16353_s0 + $0x730] sm:$0xff]  ;;  %v250_v59 = vld [vmem:[%s16353_s0 + $0x738] sm:$0xff]  ;;  %v326_v0 = vpack.c.bf16 %v122_v57, %v121_v56  ;;  %v12836_v56 = vld [vmem:[%s16353_s0 + $0x7c8] sm:$0xff] }
  0xa4   :  { %v390_v1 = vpack.c.bf16 %v250_v59, %v249_v58 }
  0xaa   :  { %11660 = vmatmul.mubr.msk.bf16.gmra.mrb[80].mxu0 %vm418_vm2, %v316_v4  ;;  %11788 = vmatmul.mubr.msk.bf16.gmra.mrb[80].mxu1 %vm418_vm2, %v380_v5  ;;  %v125_v4 = vld [vmem:[%s16353_s0 + $0x350] sm:$0xff]  ;;  %v126_v5 = vld [vmem:[%s16353_s0 + $0x358] sm:$0xff] }
  0xab   :  { %11663 = vmatprep.mubr.msk.bf16.mxu0 %vm418_vm2, %v317_v6  ;;  %11791 = vmatprep.mubr.msk.bf16.mxu1 %vm418_vm2, %v381_v7  ;;  %v253_v6 = vld [vmem:[%s16353_s0 + $0x750] sm:$0xff]  ;;  %v254_v7 = vld [vmem:[%s16353_s0 + $0x758] sm:$0xff]  ;;  %v328_v15 = vpack.c.bf16 %v126_v5, %v125_v4 }
  0xb2   :  { %11664 = vmatmul.mubr.msk.bf16.gmra.mrb[84].mxu0 %vm418_vm2, %v318_v16  ;;  %11792 = vmatmul.mubr.msk.bf16.gmra.mrb[84].mxu1 %vm418_vm2, %v382_v17  ;;  %v392_v16 = vpack.c.bf16 %v254_v7, %v253_v6  ;;  %v329_v17 = vpack.c.bf16 %v128_v9, %v127_v8  ;;  %v12868_v8 = vld [vmem:[%s16353_s0 + $0x7d8] sm:$0xff]  ;;  %v12873_v9 = vld [vmem:[%s16353_s0 + $0x3e0] sm:$0xff] }
  0xb3   :  { %11667 = vmatprep.mubr.msk.bf16.mxu0 %vm418_vm2, %v319_v18  ;;  %11795 = vmatprep.mubr.msk.bf16.mxu1 %vm418_vm2, %v383_v19  ;;  %v393_v18 = vpack.c.bf16 %v256_v11, %v255_v10  ;;  %v12688_v19 = vld [vmem:[%s16353_s0 + $0x370] sm:$0xff]  ;;  %v12878_v10 = vld [vmem:[%s16353_s0 + $0x3e8] sm:$0xff] }
  0xba   :  { %11668 = vmatmul.mubr.msk.bf16.gmra.mrb[88].mxu0 %vm418_vm2, %v320_v28  ;;  %11796 = vmatmul.mubr.msk.bf16.gmra.mrb[88].mxu1 %vm418_vm2, %v384_v29  ;;  %v12725_v28 = vld [vmem:[%s16353_s0 + $0x788] sm:$0xff]  ;;  %v12730_v29 = vld [vmem:[%s16353_s0 + $0x390] sm:$0xff] }
  0xbb   :  { %11671 = vmatprep.mubr.msk.bf16.mxu0 %vm418_vm2, %v321_v30  ;;  %11799 = vmatprep.mubr.msk.bf16.mxu1 %vm418_vm2, %v385_v31  ;;  %v12735_v30 = vld [vmem:[%s16353_s0 + $0x398] sm:$0xff]  ;;  %v12740_v31 = vld [vmem:[%s16355_s2] ss:$0 sm:$0xff]  ;;  %v395_v51 = vpack.c.bf16 %v12725_v28, %v12720_v27 }
  0xbc   :  { %v12925_v27 = vld [vmem:[%s16353_s0 + $0x7f8] sm:$0xff] }
  0xc2   :  { %11672 = vmatmul.mubr.msk.bf16.gmra.mrb[92].mxu0 %vm418_vm2, %v322_v40  ;;  %11800 = vmatmul.mubr.msk.bf16.gmra.mrb[92].mxu1 %vm418_vm2, %v386_v41  ;;  %v12789_v40 = vld [vmem:[%s16353_s0 + $0x7b0] sm:$0xff]  ;;  %v330_v41 = vpack.c.bf16 %v12693_v20, %v12688_v19 }
  0xc3   :  { %11675 = vmatprep.mubr.msk.bf16.mxu0 %vm418_vm2, %v323_v42  ;;  %11803 = vmatprep.mubr.msk.bf16.mxu1 %vm418_vm2, %v387_v43  ;;  %v394_v42 = vpack.c.bf16 %v12703_v22, %v12698_v21  ;;  %v12796_v43 = vsub.s32 %v2908_v25, %v12715_v26  ;;  %v398_v6 = vpack.c.bf16 %v12803_v45, %v12789_v40  ;;  %v12900_v19 = vld [vmem:[%s16353_s0 + $0x3f0] sm:$0xff] }
  0xc4   :  { %v12920_v25 = vld [vmem:[%s16353_s0 + $0x7f0] sm:$0xff] }
  0xca   :  { %11676 = vmatmul.mubr.msk.bf16.gmra.mrb[96].mxu0 %vm418_vm2, %v324_v52  ;;  %11804 = vmatmul.mubr.msk.bf16.gmra.mrb[96].mxu1 %vm418_vm2, %v388_v53  ;;  %v332_v52 = vpack.c.bf16 %v12735_v30, %v12730_v29  ;;  %v396_v53 = vpack.c.bf16 %v12750_v33, %v12745_v32  ;;  %v16358_v33 = vpack.c.bf16 %v12813_v47, %v12808_v46 }
  0xcb   :  { %11679 = vmatprep.mubr.msk.bf16.mxu0 %vm418_vm2, %v325_v54  ;;  %11807 = vmatprep.mubr.msk.bf16.mxu1 %vm418_vm2, %v389_v55  ;;  %v333_v54 = vpack.c.bf16 %v12762_v35, %v12755_v34  ;;  %v12831_v55 = vld [vmem:[%s16353_s0 + $0x7c0] sm:$0xff] }
  0xd2   :  { %11680 = vmatmul.mubr.msk.bf16.gmra.mrb[100].mxu0 %vm418_vm2, %v326_v0  ;;  %11808 = vmatmul.mubr.msk.bf16.gmra.mrb[100].mxu1 %vm418_vm2, %v390_v1  ;;  %v12852_v0 = vld [vmem:[%s16353_s0 + $0x3d8] sm:$0xff]  ;;  %v12857_v1 = vld [vmem:[%s16353_s0 + $0x7d0] sm:$0xff] }
  0xd3   :  { %11683 = vmatprep.mubr.msk.bf16.mxu0 %vm418_vm2, %v327_v2  ;;  %11811 = vmatprep.mubr.msk.bf16.mxu1 %vm418_vm2, %v391_v3 }
  0xda   :  { %11684 = vmatmul.mubr.msk.bf16.gmra.mrb[104].mxu0 %vm418_vm2, %v328_v15  ;;  %11812 = vmatmul.mubr.msk.bf16.gmra.mrb[104].mxu1 %vm418_vm2, %v392_v16 }
  0xdb   :  { %11687 = vmatprep.mubr.msk.bf16.mxu0 %vm418_vm2, %v329_v17  ;;  %11815 = vmatprep.mubr.msk.bf16.mxu1 %vm418_vm2, %v393_v18  ;;  %v12890_v17 = vld [vmem:[%s16353_s0 + $0x7e0] sm:$0xff]  ;;  %v12895_v18 = vld [vmem:[%s16353_s0 + $0x7e8] sm:$0xff] }
  0xdd   :  { %v11581_v48 = vpop.f32.mrb[0].mxu0  ;;  %v11709_v50 = vpop.f32.mrb[0].mxu1 }
  0xde   :  { %v1876_v57 = vmul.f32 %v11581_v48, %v12740_v31  ;;  %v2004_v58 = vmul.f32 %v11709_v50, %v12740_v31  ;;  %v844_v59 = vpop.f32.mrb[1].mxu0  ;;  %v1356_v60 = vpop.f32.mrb[1].mxu1 }
  0xdf   :  { %v1874_v2 = vmul.f32 %v12740_v31, %v844_v59  ;;  %v2002_v3 = vmul.f32 %v12740_v31, %v1356_v60  ;;  %v11582_v4 = vpop.f32.mrb[2].mxu0  ;;  %v11710_v5 = vpop.f32.mrb[2].mxu1  ;;  %v12942_v59 = vsub.s32 0, %v12715_v26 }
  0xe0   :  { %v12881_v11 = vadd.f32 %v12818_v49, %v1876_v57  ;;  %v1877_v12 = vmul.f32 %v11582_v4, %v12740_v31  ;;  %v2005_v13 = vmul.f32 %v11710_v5, %v12740_v31  ;;  %v847_v14 = vpop.f32.mrb[3].mxu0  ;;  %v1359_v15 = vpop.f32.mrb[3].mxu1  ;;  %v12903_v20 = vadd.f32 %v12818_v49, %v2004_v58 }
  0xe1   :  { %v12906_v21 = vadd.f32 %v12818_v49, %v1874_v2  ;;  %v12909_v22 = vadd.f32 %v12818_v49, %v2002_v3  ;;  %v1875_v23 = vmul.f32 %v12740_v31, %v847_v14  ;;  %v2003_v48 = vmul.f32 %v12740_v31, %v1359_v15 }
  0xe2   :  { %v12928_v28 = vadd.f32 %v12818_v49, %v1877_v12  ;;  %11688 = vmatmul.mubr.msk.bf16.gmra.mrb[108].mxu0 %vm418_vm2, %v330_v41  ;;  %11816 = vmatmul.mubr.msk.bf16.gmra.mrb[108].mxu1 %vm418_vm2, %v394_v42  ;;  %v12936_v57 = vadd.f32 %v12818_v49, %v2005_v13  ;;  %v2395_v3 = vmax.f32 %v12881_v11, 0.0 }
  0xe3   :  { %v12939_v58 = vadd.f32 %v12818_v49, %v1875_v23  ;;  %11691 = vmatprep.mubr.msk.bf16.mxu0 %vm418_vm2, %v331_v44  ;;  %11819 = vmatprep.mubr.msk.bf16.mxu1 %vm418_vm2, %v395_v51  ;;  %v2523_v44 = vmax.f32 %v12903_v20, 0.0  ;;  %v2393_v51 = vmax.f32 %v12906_v21, 0.0  ;;  %v2521_v4 = vmax.f32 %v12909_v22, 0.0 }
  0xe4   :  { %v12962_v14 = vadd.f32 %v12818_v49, %v2003_v48 }
  0xe5   :  { %v11585_v5 = vpop.f32.mrb[4].mxu0  ;;  %v11713_v12 = vpop.f32.mrb[4].mxu1 }
  0xe6   :  { %v1880_v15 = vmul.f32 %v11585_v5, %v12740_v31  ;;  %v2008_v23 = vmul.f32 %v11713_v12, %v12740_v31  ;;  %v860_v26 = vpop.f32.mrb[5].mxu0  ;;  %v1372_v2 = vpop.f32.mrb[5].mxu1 }
  0xe7   :  { %v1878_v21 = vmul.f32 %v12740_v31, %v860_v26  ;;  %v2006_v22 = vmul.f32 %v12740_v31, %v1372_v2  ;;  %v11586_v60 = vpop.f32.mrb[6].mxu0  ;;  %v11714_v42 = vpop.f32.mrb[6].mxu1 }
  0xe8   :  { %v2143_v13 = vadd.f32 %v12818_v49, %v1880_v15  ;;  %v2271_v48 = vadd.f32 %v12818_v49, %v2008_v23  ;;  %v1881_v5 = vmul.f32 %v11586_v60, %v12740_v31  ;;  %v2009_v12 = vmul.f32 %v11714_v42, %v12740_v31  ;;  %v863_v41 = vpop.f32.mrb[7].mxu0  ;;  %v1375_v50 = vpop.f32.mrb[7].mxu1 }
  0xe9   :  { %v2141_v11 = vadd.f32 %v12818_v49, %v1878_v21  ;;  %v2269_v20 = vadd.f32 %v12818_v49, %v2006_v22  ;;  %v1879_v26 = vmul.f32 %v12740_v31, %v863_v41  ;;  %v2007_v2 = vmul.f32 %v12740_v31, %v1375_v50 }
  0xea   :  { %v2399_v16 = vmax.f32 %v2143_v13, 0.0  ;;  %v2527_v7 = vmax.f32 %v2271_v48, 0.0  ;;  %v12979_v15 = vadd.f32 %v12818_v49, %v1881_v5  ;;  %v12982_v23 = vadd.f32 %v12818_v49, %v2009_v12  ;;  %11692 = vmatmul.mubr.msk.bf16.gmra.mrb[112].mxu0 %vm418_vm2, %v332_v52  ;;  %11820 = vmatmul.mubr.msk.bf16.gmra.mrb[112].mxu1 %vm418_vm2, %v396_v53 }
  0xeb   :  { %v2397_v41 = vmax.f32 %v2141_v11, 0.0  ;;  %v2525_v50 = vmax.f32 %v2269_v20, 0.0  ;;  %v12993_v42 = vadd.f32 %v12818_v49, %v1879_v26  ;;  %v12996_v60 = vadd.f32 %v12818_v49, %v2007_v2  ;;  %11695 = vmatprep.mubr.msk.bf16.mxu0 %vm418_vm2, %v333_v54  ;;  %11823 = vmatprep.mubr.msk.bf16.mxu1 %vm418_vm2, %v397_v61 }
  0xec   :  { %v2651_v30 = vmax.f32 %v2395_v3, %v2399_v16  ;;  %v2715_v32 = vmax.f32 %v2523_v44, %v2527_v7 }
  0xed   :  { %v2649_v52 = vmax.f32 %v2393_v51, %v2397_v41  ;;  %v13008_v53 = vmax.f32 %v2521_v4, %v2525_v50  ;;  %v13012_v35 = vpop.f32.mrb[8].mxu0  ;;  %v13014_v54 = vpop.f32.mrb[8].mxu1 }
  0xee   :  { %v2939_v36 = vcombine.high %v2651_v30, %v2651_v30  ;;  %v2946_v37 = vrot.slane %v2651_v30, %v12796_v43  ;;  %v4027_v61 = vcombine.high %v2715_v32, %v2715_v32  ;;  %v4034_v7 = vrot.slane %v2715_v32, %v12796_v43  ;;  %v13018_v16 = vpop.f32.mrb[9].mxu0  ;;  %v13020_v3 = vpop.f32.mrb[9].mxu1 }
  0xef   :  { %v2905_v44 = vcombine.high %v2649_v52, %v2649_v52  ;;  %v2912_v51 = vrot.slane %v2649_v52, %v12796_v43  ;;  %v13026_v20 = vpop.f32.mrb[10].mxu0  ;;  %v13028_v21 = vpop.f32.mrb[10].mxu1  ;;  %v13039_v32 = vrot.slane %v13008_v53, %v12796_v43 }
  0xf0   :  { %v2953_v22 = vrot.slane %v2939_v36, %v12796_v43  ;;  %v2954_v48 = vcombine.high %v2946_v37, %v2946_v37  ;;  %v10941_v5 = vrot.slane %v2946_v37, 9  ;;  %v4041_v12 = vrot.slane %v4027_v61, %v12796_v43  ;;  %v13032_v26 = vpop.f32.mrb[11].mxu0  ;;  %v13034_v2 = vpop.f32.mrb[11].mxu1 }
  0xf1   :  { %v4042_v41 = vcombine.high %v4034_v7, %v4034_v7  ;;  %v11197_v50 = vrot.slane %v4034_v7, 9  ;;  %v2919_v30 = vrot.slane %v2905_v44, %v12796_v43  ;;  %v2920_v40 = vcombine.high %v2912_v51, %v2912_v51 }
  0xf2   :  { %v2955_v52 = vcombine.high %v2953_v22, %v2953_v22  ;;  %v10942_v29 = vrot.slane %v2954_v48, 9  ;;  %v10943_v11 = vrot.slane %v2953_v22, 9  ;;  %v7137_v36 = vmax.f32 %v2946_v37, %v10941_v5  ;;  %11696 = vmatmul.mubr.msk.bf16.gmra.mrb[116].mxu0 %vm418_vm2, %v334_v62  ;;  %11824 = vmatmul.mubr.msk.bf16.gmra.mrb[116].mxu1 %vm418_vm2, %v398_v6 }
  0xf3   :  { %v4043_v61 = vcombine.high %v4041_v12, %v4041_v12  ;;  %v11198_v44 = vrot.slane %v4042_v41, 9  ;;  %v11199_v34 = vrot.slane %v4041_v12, 9  ;;  %v7393_v13 = vmax.f32 %v4034_v7, %v11197_v50  ;;  %11699 = vmatprep.mubr.msk.bf16.mxu0 %vm418_vm2, %v16358_v33 }
  0xf4   :  { %v16359_v37 = vpack.c.bf16 %v12836_v56, %v12831_v55  ;;  %v10944_v38 = vrot.slane %v2955_v52, 9  ;;  %v7138_v39 = vmax.f32 %v2954_v48, %v10942_v29  ;;  %v7139_v62 = vmax.f32 %v2953_v22, %v10943_v11 }
  0xf5   :  { %v8188_v45 = vrot.slane %v7137_v36, %v12942_v59  ;;  %v11200_v6 = vrot.slane %v4043_v61, 9  ;;  %v7394_v5 = vmax.f32 %v4042_v41, %v11198_v44  ;;  %v7395_v4 = vmax.f32 %v4041_v12, %v11199_v34  ;;  %v13058_v7 = vpop.f32.mrb[12].mxu0  ;;  %v13060_v50 = vpop.f32.mrb[12].mxu1 }
  0xf6   :  { %11827 = vmatprep.mubr.msk.bf16.mxu1 %vm418_vm2, %v16359_v37  ;;  %v13062_v46 = vmax.f32 %v2955_v52, %v10944_v38  ;;  %v8192_v47 = vrot.slane %v7138_v39, %v12942_v59  ;;  %v8196_v55 = vrot.slane %v7139_v62, %v12942_v59  ;;  %v2921_v56 = vcombine.high %v2919_v30, %v2919_v30  ;;  %v13066_v33 = vpop.f32.mrb[13].mxu0  ;;  %v13068_v29 = vpop.f32.mrb[13].mxu1 }
  0xf7   :  { %v13070_v11 = vmax.f32 %v4043_v61, %v11200_v6  ;;  %v9212_v22 = vrot.slane %v7393_v13, %v12942_v59  ;;  %v9216_v34 = vrot.slane %v7394_v5, %v12942_v59  ;;  %v10933_v48 = vrot.slane %v2912_v51, 9  ;;  %v13074_v12 = vpop.f32.mrb[14].mxu0  ;;  %v13076_v41 = vpop.f32.mrb[14].mxu1 }
  0xf8   :  { %16360 = vst [vmem:[#allocation5_spill] sm:$0xff] %v13076_v41  ;;  %v10215_v52 = vsel %vm10201_vm3, %v8192_v47, %v8188_v45  ;;  %v9220_v36 = vrot.slane %v7395_v4, %v12942_v59  ;;  %v10934_v44 = vrot.slane %v2920_v40, 9  ;;  %v10935_v37 = vrot.slane %v2919_v30, 9  ;;  %v13080_v38 = vpop.f32.mrb[15].mxu0  ;;  %v13082_v61 = vpop.f32.mrb[15].mxu1 }
  0xf9   :  { %16361 = vst [vmem:[#allocation6_spill] sm:$0xff] %v13082_v61  ;;  %v8200_v13 = vrot.slane %v13062_v46, %v12942_v59  ;;  %v10216_v39 = vsel %vm10203_vm4, %v8196_v55, %v10215_v52  ;;  %v9224_v62 = vrot.slane %v13070_v11, %v12942_v59  ;;  %v10936_v6 = vrot.slane %v2921_v56, 9 }
  0xfa   :  { %v10439_v45 = vsel %vm10201_vm3, %v9216_v34, %v9212_v22  ;;  %v7129_v5 = vmax.f32 %v2912_v51, %v10933_v48  ;;  %v7130_v4 = vmax.f32 %v2920_v40, %v10934_v44  ;;  %v7131_v47 = vmax.f32 %v2919_v30, %v10935_v37 }
  0xfb   :  { %v16362_v41 = vpack.c.bf16 %v12852_v0, %v12847_v63  ;;  %v13094_v61 = vmax.f32 %v2921_v56, %v10936_v6  ;;  %v16363_v46 = vcombine.high %v13008_v53, %v13008_v53  ;;  %v4008_v52 = vcombine.high %v13039_v32, %v13039_v32 }
  0xfc   :  { %v11189_v22 = vrot.slane %v13039_v32, 9  ;;  %v16364_v51 = vpack.c.bf16 %v12868_v8, %v12857_v1  ;;  %v16365_v63 = vpack.c.bf16 %v12878_v10, %v12873_v9  ;;  %v8156_v0 = vrot.slane %v7129_v5, %v12942_v59 }
  0xfd   :  { %11700 = vmatmul.mubr.msk.bf16.gmra.mrb[120].mxu0 %vm418_vm2, %v16362_v41  ;;  %v4007_v55 = vrot.slane %v16363_v46, %v12796_v43  ;;  %v8160_v53 = vrot.slane %v7130_v4, %v12942_v59  ;;  %v8164_v30 = vrot.slane %v7131_v47, %v12942_v59  ;;  %v16366_v40 = vmax.f32 %v12979_v15, 0.0  ;;  %v13123_v41 = vpop.f32.mrb[16].mxu0  ;;  %v13125_v44 = vpop.f32.mrb[16].mxu1 }
  0xfe   :  { %11828 = vmatmul.mubr.msk.bf16.gmra.mrb[120].mxu1 %vm418_vm2, %v16364_v51  ;;  %11703 = vmatprep.mubr.msk.bf16.mxu0 %vm418_vm2, %v16365_v63  ;;  %v16367_v56 = vmax.f32 %v12928_v28, 0.0  ;;  %v16368_v1 = vpack.c.bf16 %v12895_v18, %v12890_v17  ;;  %v10440_v8 = vsel %vm10203_vm4, %v9220_v36, %v10439_v45  ;;  %v11190_v10 = vrot.slane %v4008_v52, 9  ;;  %v13130_v17 = vpop.f32.mrb[17].mxu0  ;;  %v13132_v18 = vpop.f32.mrb[17].mxu1 }
  0xff   :  { %v4009_v9 = vcombine.high %v4007_v55, %v4007_v55  ;;  %v11191_v48 = vrot.slane %v4007_v55, 9  ;;  %v10202_v15 = vsel %vm10201_vm3, %v8160_v53, %v8156_v0  ;;  %v7385_v28 = vmax.f32 %v13039_v32, %v11189_v22  ;;  %v13138_v47 = vpop.f32.mrb[18].mxu0  ;;  %v13140_v46 = vpop.f32.mrb[18].mxu1 }
 0x100   :  { %v2652_v34 = vmax.f32 %v16367_v56, %v16366_v40  ;;  %11831 = vmatprep.mubr.msk.bf16.mxu1 %vm418_vm2, %v16368_v1  ;;  %v8168_v36 = vrot.slane %v13094_v61, %v12942_v59  ;;  %v7386_v5 = vmax.f32 %v4008_v52, %v11190_v10  ;;  %v10204_v32 = vsel %vm10203_vm4, %v8164_v30, %v10202_v15  ;;  %v13144_v0 = vpop.f32.mrb[19].mxu0  ;;  %v13146_v53 = vpop.f32.mrb[19].mxu1 }
 0x101   :  { %v11192_v45 = vrot.slane %v4009_v9, 9  ;;  %v13136_v4 = vmax.f32 %v4007_v55, %v11191_v48  ;;  %v9180_v55 = vrot.slane %v7385_v28, %v12942_v59  ;;  %v16369_v10 = vpack.c.bf16 %v12915_v24, %v12900_v19 }
 0x102   :  { %v2956_v37 = vcombine.high %v2652_v34, %v2652_v34  ;;  %v2963_v6 = vrot.slane %v2652_v34, %v12796_v43  ;;  %v9184_v52 = vrot.slane %v7386_v5, %v12942_v59  ;;  %v10217_v15 = vsel %vm10205_vm5, %v8200_v13, %v10216_v39 }
 0x103   :  { %v13148_v61 = vmax.f32 %v4009_v9, %v11192_v45  ;;  %v16370_v28 = vmax.f32 %v12982_v23, 0.0 }
 0x104   :  { %v2970_v22 = vrot.slane %v2956_v37, %v12796_v43  ;;  %v2971_v51 = vcombine.high %v2963_v6, %v2963_v6  ;;  %v10945_v63 = vrot.slane %v2963_v6, 9  ;;  %v13161_v48 = vsel %vm10201_vm3, %v9184_v52, %v9180_v55 }
 0x105   :  { %11704 = vmatmul.mubr.msk.bf16.gmra.mrb[124].mxu0 %vm418_vm2, %v16369_v10  ;;  %v16371_v37 = vmax.f32 %v12936_v57, 0.0  ;;  %v16373_v57 = vmax.f32 %v12993_v42, 0.0  ;;  %v16374_v55 = vmax.f32 %v12939_v58, 0.0  ;;  %v13184_v52 = vpop.f32.mrb[20].mxu1 }
 0x106   :  { %v2972_v56 = vcombine.high %v2970_v22, %v2970_v22  ;;  %v10946_v30 = vrot.slane %v2971_v51, 9  ;;  %v10947_v34 = vrot.slane %v2970_v22, 9  ;;  %v7141_v1 = vmax.f32 %v2963_v6, %v10945_v63 }
 0x107   :  { %v2716_v45 = vmax.f32 %v16371_v37, %v16370_v28  ;;  %v16372_v6 = vpack.c.bf16 %v12925_v27, %v12920_v25  ;;  %v10441_v63 = vsel %vm10205_vm5, %v9224_v62, %v10440_v8  ;;  %v2650_v25 = vmax.f32 %v16374_v55, %v16373_v57  ;;  %v13182_v27 = vpop.f32.mrb[20].mxu0 }
 0x108   :  { %v10948_v19 = vrot.slane %v2972_v56, 9  ;;  %v7142_v24 = vmax.f32 %v2971_v51, %v10946_v30  ;;  %v7143_v5 = vmax.f32 %v2970_v22, %v10947_v34  ;;  %v8204_v13 = vrot.slane %v7141_v1, %v12942_v59  ;;  %v13189_v8 = vpop.f32.mrb[21].mxu0  ;;  %v13191_v30 = vpop.f32.mrb[21].mxu1 }
 0x109   :  { %11832 = vmatmul.mubr.msk.bf16.gmra.mrb[124].mxu1 %vm418_vm2, %v16372_v6  ;;  %v4044_v39 = vcombine.high %v2716_v45, %v2716_v45  ;;  %v4051_v23 = vrot.slane %v2716_v45, %v12796_v43  ;;  %v10206_v62 = vsel %vm10205_vm5, %v8168_v36, %v10204_v32  ;;  %v13195_v10 = vpop.f32.mrb[22].mxu0  ;;  %v13197_v28 = vpop.f32.mrb[22].mxu1  ;;  %v2922_v45 = vcombine.high %v2650_v25, %v2650_v25 }
 0x10a   :  { %v7144_v22 = vmax.f32 %v2972_v56, %v10948_v19  ;;  %v8208_v51 = vrot.slane %v7142_v24, %v12942_v59  ;;  %v8212_v11 = vrot.slane %v7143_v5, %v12942_v59  ;;  %v10218_v42 = vsel %vm10207_vm6, %v8204_v13, %v10217_v15  ;;  %v13202_v32 = vpop.f32.mrb[23].mxu0  ;;  %v13204_v6 = vpop.f32.mrb[23].mxu1 }
 0x10b   :  { %v4058_v58 = vrot.slane %v4044_v39, %v12796_v43  ;;  %v4059_v34 = vcombine.high %v4051_v23, %v4051_v23  ;;  %v11201_v1 = vrot.slane %v4051_v23, 9  ;;  %v2929_v36 = vrot.slane %v2650_v25, %v12796_v43  ;;  %16375 = vst [vmem:[#allocation7_spill] sm:$0xff] %v13202_v32  ;;  %16376 = vst [vmem:[#allocation8_spill] sm:$0xff] %v13204_v6 }
 0x10c   :  { %v8216_v56 = vrot.slane %v7144_v22, %v12942_v59  ;;  %v10219_v37 = vsel %vm10209_vm7, %v8208_v51, %v10218_v42  ;;  %v2936_v57 = vrot.slane %v2922_v45, %v12796_v43 }
 0x10d   :  { %v10220_v15 = vsel %vm10211_vm8, %v8212_v11, %v10219_v37  ;;  %v4060_v19 = vcombine.high %v4058_v58, %v4058_v58  ;;  %v11202_v24 = vrot.slane %v4059_v34, 9  ;;  %v11203_v5 = vrot.slane %v4058_v58, 9  ;;  %v13215_v45 = vpop.f32.mrb[24].mxu1 }
 0x10e   :  { %v10221_v13 = vsel %vm10213_vm9, %v8216_v56, %v10220_v15  ;;  %v7397_v39 = vmax.f32 %v4051_v23, %v11201_v1  ;;  %v2937_v55 = vcombine.high %v2929_v36, %v2929_v36  ;;  %v10937_v42 = vrot.slane %v2929_v36, 9  ;;  %v13213_v1 = vpop.f32.mrb[24].mxu0 }
 0x10f   :  { %10722 = vst.msk [vmem:[#allocation2 + $0x8] sm:$0xff] %vm10720_vm10, %v10221_v13  ;;  %v11204_v22 = vrot.slane %v4060_v19, 9  ;;  %v7398_v51 = vmax.f32 %v4059_v34, %v11202_v24  ;;  %v7399_v25 = vmax.f32 %v4058_v58, %v11203_v5  ;;  %v2938_v40 = vcombine.high %v2936_v57, %v2936_v57  ;;  %v13218_v5 = vpop.f32.mrb[25].mxu0  ;;  %v13220_v13 = vpop.f32.mrb[25].mxu1 }
 0x110   :  { %v9228_v9 = vrot.slane %v7397_v39, %v12942_v59  ;;  %v10938_v6 = vrot.slane %v2937_v55, 9  ;;  %v10939_v11 = vrot.slane %v2936_v57, 9  ;;  %v7133_v23 = vmax.f32 %v2929_v36, %v10937_v42  ;;  %v13229_v42 = vpop.f32.mrb[26].mxu0 }
 0x111   :  { %v7400_v37 = vmax.f32 %v4060_v19, %v11204_v22  ;;  %v9232_v32 = vrot.slane %v7398_v51, %v12942_v59  ;;  %v9236_v56 = vrot.slane %v7399_v25, %v12942_v59  ;;  %v10940_v34 = vrot.slane %v2938_v40, 9 }
 0x112   :  { %v10442_v15 = vsel %vm10207_vm6, %v9228_v9, %v10441_v63  ;;  %v7134_v58 = vmax.f32 %v2937_v55, %v10938_v6  ;;  %v7135_v24 = vmax.f32 %v2936_v57, %v10939_v11  ;;  %v8172_v22 = vrot.slane %v7133_v23, %v12942_v59  ;;  %v13231_v9 = vpop.f32.mrb[26].mxu1  ;;  %v13236_v11 = vpop.f32.mrb[27].mxu0 }
 0x113   :  { %v9240_v19 = vrot.slane %v7400_v37, %v12942_v59  ;;  %v10443_v39 = vsel %vm10209_vm7, %v9232_v32, %v10442_v15  ;;  %v16377_v36 = vmax.f32 %v12996_v60, 0.0  ;;  %v16378_v51 = vmax.f32 %v12962_v14, 0.0  ;;  %v13238_v32 = vpop.f32.mrb[27].mxu1 }
 0x114   :  { %v10444_v63 = vsel %vm10211_vm8, %v9236_v56, %v10443_v39  ;;  %v7136_v6 = vmax.f32 %v2938_v40, %v10940_v34  ;;  %v8176_v57 = vrot.slane %v7134_v58, %v12942_v59  ;;  %v8180_v55 = vrot.slane %v7135_v24, %v12942_v59 }
 0x115   :  { %v2714_v25 = vmax.f32 %v16378_v51, %v16377_v36  ;;  %v10445_v60 = vsel %vm10213_vm9, %v9240_v19, %v10444_v63  ;;  %v10208_v14 = vsel %vm10207_vm6, %v8172_v22, %v10206_v62  ;;  %v16379_v56 = vrot.slane %v13136_v4, %v12942_v59 }
 0x116   :  { %10754 = vst.msk [vmem:[#allocation2 + $0x108] sm:$0xff] %vm10720_vm10, %v10445_v60  ;;  %v8184_v15 = vrot.slane %v7136_v6, %v12942_v59  ;;  %v10210_v34 = vsel %vm10209_vm7, %v8176_v57, %v10208_v14  ;;  %v1884_v58 = vmul.f32 %v13012_v35, %v12740_v31  ;;  %v1882_v36 = vmul.f32 %v12740_v31, %v13018_v16  ;;  %v13262_v6 = vpop.f32.mrb[28].mxu0  ;;  %v13264_v57 = vpop.f32.mrb[28].mxu1 }
 0x117   :  { %v4010_v37 = vcombine.high %v2714_v25, %v2714_v25  ;;  %v4017_v23 = vrot.slane %v2714_v25, %v12796_v43  ;;  %v10433_v40 = vsel %vm10203_vm4, %v16379_v56, %v13161_v48  ;;  %v10212_v62 = vsel %vm10211_vm8, %v8180_v55, %v10210_v34  ;;  %v13276_v56 = vpop.f32.mrb[29].mxu1 }
 0x118   :  { %v10214_v22 = vsel %vm10213_vm9, %v8184_v15, %v10212_v62  ;;  %v2147_v4 = vadd.f32 %v12818_v49, %v1884_v58  ;;  %v2012_v48 = vmul.f32 %v13014_v54, %v12740_v31  ;;  %v16380_v55 = vrot.slane %v13148_v61, %v12942_v59  ;;  %16382 = vst [vmem:[#allocation10_spill] sm:$0xff] %v13276_v56 }
 0x119   :  { %v4024_v24 = vrot.slane %v4010_v37, %v12796_v43  ;;  %v4025_v19 = vcombine.high %v4017_v23, %v4017_v23  ;;  %v11193_v39 = vrot.slane %v4017_v23, 9  ;;  %10721 = vst.msk [vmem:[#allocation2] sm:$0xff] %vm10720_vm10, %v10214_v22  ;;  %v2145_v14 = vadd.f32 %v12818_v49, %v1882_v36  ;;  %v13274_v37 = vpop.f32.mrb[29].mxu0 }
 0x11a   :  { %v10434_v60 = vsel %vm10205_vm5, %v16380_v55, %v10433_v40  ;;  %v2275_v54 = vadd.f32 %v12818_v49, %v2012_v48  ;;  %v2010_v16 = vmul.f32 %v12740_v31, %v13020_v3  ;;  %16381 = vst [vmem:[#allocation9_spill] sm:$0xff] %v13274_v37  ;;  %v13279_v62 = vpop.f32.mrb[30].mxu0  ;;  %v2403_v61 = vmax.f32 %v2147_v4, 0.0 }
 0x11b   :  { %v4026_v51 = vcombine.high %v4024_v24, %v4024_v24  ;;  %v11194_v35 = vrot.slane %v4025_v19, 9  ;;  %v11195_v25 = vrot.slane %v4024_v24, 9  ;;  %v7389_v63 = vmax.f32 %v4017_v23, %v11193_v39  ;;  %16383 = vst [vmem:[#allocation11_spill] sm:$0xff] %v13279_v62 }
 0x11c   :  { %v2531_v40 = vmax.f32 %v2275_v54, 0.0  ;;  %v2273_v39 = vadd.f32 %v12818_v49, %v2010_v16  ;;  %v1885_v22 = vmul.f32 %v13026_v20, %v12740_v31  ;;  %v2401_v55 = vmax.f32 %v2145_v14, 0.0 }
 0x11d   :  { %v11196_v23 = vrot.slane %v4026_v51, 9  ;;  %v7390_v15 = vmax.f32 %v4025_v19, %v11194_v35  ;;  %v7391_v34 = vmax.f32 %v4024_v24, %v11195_v25  ;;  %v9196_v58 = vrot.slane %v7389_v63, %v12942_v59  ;;  %v13294_v25 = vpop.f32.mrb[30].mxu1 }
 0x11e   :  { %v13288_v24 = vadd.f32 %v12818_v49, %v1885_v22  ;;  %v2013_v4 = vmul.f32 %v13028_v21, %v12740_v31  ;;  %v1883_v35 = vmul.f32 %v12740_v31, %v13032_v26  ;;  %16384 = vst [vmem:[#allocation12_spill] sm:$0xff] %v13294_v25  ;;  %v2011_v63 = vmul.f32 %v12740_v31, %v13034_v2 }
 0x11f   :  { %v7392_v48 = vmax.f32 %v4026_v51, %v11196_v23  ;;  %v9200_v3 = vrot.slane %v7390_v15, %v12942_v59  ;;  %v10435_v36 = vsel %vm10207_vm6, %v9196_v58, %v10434_v60  ;;  %v9204_v19 = vrot.slane %v7391_v34, %v12942_v59 }
 0x120   :  { %v1888_v60 = vmul.f32 %v13058_v7, %v12740_v31  ;;  %v2529_v14 = vmax.f32 %v2273_v39, 0.0  ;;  %v13304_v21 = vadd.f32 %v12818_v49, %v2013_v4  ;;  %v13307_v26 = vadd.f32 %v12818_v49, %v1883_v35  ;;  %v16385_v4 = vld [vmem:[#allocation5_spill] sm:$0xff] }
 0x121   :  { %v9208_v20 = vrot.slane %v7392_v48, %v12942_v59  ;;  %v10436_v51 = vsel %vm10209_vm7, %v9200_v3, %v10435_v36  ;;  %v13311_v23 = vadd.f32 %v12818_v49, %v2011_v63  ;;  %v2016_v2 = vmul.f32 %v13060_v50, %v12740_v31 }
 0x122   :  { %v10437_v54 = vsel %vm10211_vm8, %v9204_v19, %v10436_v51  ;;  %v2151_v15 = vadd.f32 %v12818_v49, %v1888_v60  ;;  %v1886_v58 = vmul.f32 %v12740_v31, %v13066_v33  ;;  %v2014_v39 = vmul.f32 %v12740_v31, %v13068_v29 }
 0x123   :  { %v10438_v16 = vsel %vm10213_vm9, %v9208_v20, %v10437_v54  ;;  %v2279_v3 = vadd.f32 %v12818_v49, %v2016_v2  ;;  %v1889_v50 = vmul.f32 %v13074_v12, %v12740_v31  ;;  %v2017_v35 = vmul.f32 %v16385_v4, %v12740_v31 }
 0x124   :  { %10753 = vst.msk [vmem:[#allocation2 + $0x100] sm:$0xff] %vm10720_vm10, %v10438_v16  ;;  %v2407_v48 = vmax.f32 %v2151_v15, 0.0  ;;  %v2149_v36 = vadd.f32 %v12818_v49, %v1886_v58  ;;  %v2277_v19 = vadd.f32 %v12818_v49, %v2014_v39  ;;  %v1887_v33 = vmul.f32 %v12740_v31, %v13080_v38  ;;  %v16386_v38 = vld [vmem:[#allocation6_spill] sm:$0xff] }
 0x125   :  { %v2535_v51 = vmax.f32 %v2279_v3, 0.0  ;;  %v13335_v63 = vadd.f32 %v12818_v49, %v1889_v50  ;;  %v13338_v12 = vadd.f32 %v12818_v49, %v2017_v35  ;;  %v13346_v39 = vmul.f32 %v12740_v31, %v16386_v38 }
 0x126   :  { %v2655_v20 = vmax.f32 %v2403_v61, %v2407_v48  ;;  %v2405_v60 = vmax.f32 %v2149_v36, 0.0  ;;  %v2533_v54 = vmax.f32 %v2277_v19, 0.0  ;;  %v13341_v16 = vadd.f32 %v12818_v49, %v1887_v33  ;;  %v13348_v61 = vpop.f32.mrb[31].mxu0 }
 0x127   :  { %v2719_v58 = vmax.f32 %v2531_v40, %v2535_v51  ;;  %16387 = vst [vmem:[#allocation5_spill] sm:$0xff] %v13348_v61 }
 0x128   :  { %v3007_v15 = vcombine.high %v2655_v20, %v2655_v20  ;;  %v3014_v2 = vrot.slane %v2655_v20, %v12796_v43  ;;  %v2653_v48 = vmax.f32 %v2401_v55, %v2405_v60  ;;  %v2717_v3 = vmax.f32 %v2529_v14, %v2533_v54  ;;  %v13356_v60 = vpop.f32.mrb[31].mxu1 }
 0x129   :  { %v4095_v35 = vcombine.high %v2719_v58, %v2719_v58  ;;  %v4102_v33 = vrot.slane %v2719_v58, %v12796_v43  ;;  %16388 = vst [vmem:[#allocation6_spill] sm:$0xff] %v13356_v60 }
 0x12a   :  { %v3021_v19 = vrot.slane %v3007_v15, %v12796_v43  ;;  %v3022_v49 = vcombine.high %v3014_v2, %v3014_v2  ;;  %v10957_v4 = vrot.slane %v3014_v2, 9  ;;  %v2973_v40 = vcombine.high %v2653_v48, %v2653_v48 }
 0x12b   :  { %v2980_v20 = vrot.slane %v2653_v48, %v12796_v43  ;;  %v4109_v54 = vrot.slane %v4095_v35, %v12796_v43  ;;  %v4110_v29 = vcombine.high %v4102_v33, %v4102_v33  ;;  %v11213_v15 = vrot.slane %v4102_v33, 9 }
 0x12c   :  { %v3023_v51 = vcombine.high %v3021_v19, %v3021_v19  ;;  %v10958_v38 = vrot.slane %v3022_v49, 9  ;;  %v10959_v55 = vrot.slane %v3021_v19, 9  ;;  %v7153_v14 = vmax.f32 %v3014_v2, %v10957_v4 }
 0x12d   :  { %v4061_v22 = vcombine.high %v2717_v3, %v2717_v3  ;;  %v2987_v58 = vrot.slane %v2973_v40, %v12796_v43  ;;  %v4111_v50 = vcombine.high %v4109_v54, %v4109_v54  ;;  %v11214_v48 = vrot.slane %v4110_v29, 9 }
 0x12e   :  { %v10960_v34 = vrot.slane %v3023_v51, 9  ;;  %v7154_v36 = vmax.f32 %v3022_v49, %v10958_v38  ;;  %v7155_v7 = vmax.f32 %v3021_v19, %v10959_v55  ;;  %v11215_v61 = vrot.slane %v4109_v54, 9 }
 0x12f   :  { %v7409_v31 = vmax.f32 %v4102_v33, %v11213_v15  ;;  %v8252_v62 = vrot.slane %v7153_v14, %v12942_v59  ;;  %v2988_v4 = vcombine.high %v2980_v20, %v2980_v20  ;;  %v11216_v60 = vrot.slane %v4111_v50, 9 }
 0x130   :  { %v7156_v25 = vmax.f32 %v3023_v51, %v10960_v34  ;;  %v8256_v2 = vrot.slane %v7154_v36, %v12942_v59  ;;  %v8260_v35 = vrot.slane %v7155_v7, %v12942_v59  ;;  %v7410_v56 = vmax.f32 %v4110_v29, %v11214_v48 }
 0x131   :  { %v7411_v37 = vmax.f32 %v4109_v54, %v11215_v61  ;;  %v9276_v19 = vrot.slane %v7409_v31, %v12942_v59  ;;  %v2989_v40 = vcombine.high %v2987_v58, %v2987_v58  ;;  %v10949_v38 = vrot.slane %v2980_v20, 9 }
 0x132   :  { %v10229_v49 = vsel %vm10201_vm3, %v8256_v2, %v8252_v62  ;;  %v8264_v55 = vrot.slane %v7156_v25, %v12942_v59  ;;  %v7412_v33 = vmax.f32 %v4111_v50, %v11216_v60  ;;  %v9280_v34 = vrot.slane %v7410_v56, %v12942_v59  ;;  %v13375_v56 = vpop.f32.mrb[32].mxu0 }
 0x133   :  { %v9284_v51 = vrot.slane %v7411_v37, %v12942_v59  ;;  %v10950_v36 = vrot.slane %v2988_v4, 9  ;;  %v10951_v14 = vrot.slane %v2987_v58, 9  ;;  %v10952_v15 = vrot.slane %v2989_v40, 9 }
 0x134   :  { %v7145_v7 = vmax.f32 %v2980_v20, %v10949_v38  ;;  %v10230_v29 = vsel %vm10203_vm4, %v8260_v35, %v10229_v49  ;;  %v10453_v61 = vsel %vm10201_vm3, %v9280_v34, %v9276_v19  ;;  %v4068_v62 = vrot.slane %v2717_v3, %v12796_v43 }
 0x135   :  { %v4075_v31 = vrot.slane %v4061_v22, %v12796_v43  ;;  %v9288_v54 = vrot.slane %v7412_v33, %v12942_v59  ;;  %v7146_v25 = vmax.f32 %v2988_v4, %v10950_v36  ;;  %v7147_v50 = vmax.f32 %v2987_v58, %v10951_v14 }
 0x136   :  { %v13373_v60 = vmax.f32 %v2989_v40, %v10952_v15  ;;  %v10454_v37 = vsel %vm10203_vm4, %v9284_v51, %v10453_v61  ;;  %v4076_v48 = vcombine.high %v4068_v62, %v4068_v62  ;;  %v11205_v2 = vrot.slane %v4068_v62, 9 }
 0x137   :  { %v4077_v20 = vcombine.high %v4075_v31, %v4075_v31  ;;  %v8220_v35 = vrot.slane %v7145_v7, %v12942_v59  ;;  %v8224_v49 = vrot.slane %v7146_v25, %v12942_v59  ;;  %v8228_v3 = vrot.slane %v7147_v50, %v12942_v59  ;;  %v13400_v25 = vpop.f32.mrb[32].mxu1 }
 0x138   :  { %v11207_v22 = vrot.slane %v4075_v31, 9  ;;  %v11206_v19 = vrot.slane %v4076_v48, 9  ;;  %v7401_v4 = vmax.f32 %v4068_v62, %v11205_v2  ;;  %v16389_v58 = vmax.f32 %v13335_v63, 0.0  ;;  %16393 = vst [vmem:[#allocation13_spill] sm:$0xff] %v13400_v25 }
 0x139   :  { %v11208_v38 = vrot.slane %v4077_v20, 9  ;;  %v16390_v40 = vmax.f32 %v13288_v24, 0.0  ;;  %v10222_v51 = vsel %vm10201_vm3, %v8224_v49, %v8220_v35  ;;  %v16391_v14 = vmax.f32 %v13338_v12, 0.0 }
 0x13a   :  { %v13388_v36 = vmax.f32 %v4075_v31, %v11207_v22  ;;  %v16392_v15 = vmax.f32 %v13304_v21, 0.0  ;;  %v13395_v61 = vsel %vm10203_vm4, %v8228_v3, %v10222_v51  ;;  %v7402_v62 = vmax.f32 %v4076_v48, %v11206_v19 }
 0x13b   :  { %v2656_v33 = vmax.f32 %v16390_v40, %v16389_v58  ;;  %v13397_v63 = vmax.f32 %v4077_v20, %v11208_v38  ;;  %v10231_v24 = vsel %vm10205_vm5, %v8264_v55, %v10230_v29  ;;  %v9244_v50 = vrot.slane %v7401_v4, %v12942_v59 }
 0x13c   :  { %v2720_v7 = vmax.f32 %v16392_v15, %v16391_v14  ;;  %v9248_v12 = vrot.slane %v7402_v62, %v12942_v59  ;;  %v9252_v21 = vrot.slane %v13388_v36, %v12942_v59  ;;  %v10455_v38 = vsel %vm10205_vm5, %v9288_v54, %v10454_v37  ;;  %v13418_v15 = vpop.f32.mrb[33].mxu0 }
 0x13d   :  { %v3024_v2 = vcombine.high %v2656_v33, %v2656_v33  ;;  %v3031_v31 = vrot.slane %v2656_v33, %v12796_v43  ;;  %v16394_v4 = vmax.f32 %v13341_v16, 0.0  ;;  %v16395_v58 = vmax.f32 %v13307_v26, 0.0  ;;  %16396 = vst [vmem:[#allocation14_spill] sm:$0xff] %v13418_v15  ;;  %v13422_v25 = vpop.f32.mrb[34].mxu0 }
 0x13e   :  { %v4112_v35 = vcombine.high %v2720_v7, %v2720_v7  ;;  %v4119_v20 = vrot.slane %v2720_v7, %v12796_v43  ;;  %v10446_v33 = vsel %vm10201_vm3, %v9248_v12, %v9244_v50  ;;  %v13420_v7 = vpop.f32.mrb[33].mxu1  ;;  %v13427_v15 = vpop.f32.mrb[35].mxu0 }
 0x13f   :  { %v3038_v55 = vrot.slane %v3024_v2, %v12796_v43  ;;  %v3039_v29 = vcombine.high %v3031_v31, %v3031_v31  ;;  %v10961_v49 = vrot.slane %v3031_v31, 9  ;;  %v2654_v40 = vmax.f32 %v16395_v58, %v16394_v4  ;;  %16397 = vst [vmem:[#allocation15_spill] sm:$0xff] %v13420_v7  ;;  %v13424_v26 = vpop.f32.mrb[34].mxu1 }
 0x140   :  { %v4126_v3 = vrot.slane %v4112_v35, %v12796_v43  ;;  %v4127_v22 = vcombine.high %v4119_v20, %v4119_v20  ;;  %v11217_v19 = vrot.slane %v4119_v20, 9 }
 0x141   :  { %v3040_v51 = vcombine.high %v3038_v55, %v3038_v55  ;;  %v10962_v36 = vrot.slane %v3039_v29, 9  ;;  %v10963_v14 = vrot.slane %v3038_v55, 9  ;;  %v7157_v62 = vmax.f32 %v3031_v31, %v10961_v49 }
 0x142   :  { %v4128_v2 = vcombine.high %v4126_v3, %v4126_v3  ;;  %v11218_v35 = vrot.slane %v4127_v22, 9  ;;  %v11219_v48 = vrot.slane %v4126_v3, 9  ;;  %v7413_v16 = vmax.f32 %v4119_v20, %v11217_v19 }
 0x143   :  { %v10964_v34 = vrot.slane %v3040_v51, 9  ;;  %v7158_v54 = vmax.f32 %v3039_v29, %v10962_v36  ;;  %v7159_v37 = vmax.f32 %v3038_v55, %v10963_v14  ;;  %v8268_v50 = vrot.slane %v7157_v62, %v12942_v59  ;;  %v13432_v55 = vpop.f32.mrb[35].mxu1 }
 0x144   :  { %v11220_v12 = vrot.slane %v4128_v2, 9  ;;  %v7414_v4 = vmax.f32 %v4127_v22, %v11218_v35  ;;  %v7415_v58 = vmax.f32 %v4126_v3, %v11219_v48  ;;  %v9292_v29 = vrot.slane %v7413_v16, %v12942_v59 }
 0x145   :  { %v7160_v7 = vmax.f32 %v3040_v51, %v10964_v34  ;;  %v8272_v31 = vrot.slane %v7158_v54, %v12942_v59  ;;  %v8276_v49 = vrot.slane %v7159_v37, %v12942_v59  ;;  %v10232_v20 = vsel %vm10207_vm6, %v8268_v50, %v10231_v24 }
 0x146   :  { %v7416_v19 = vmax.f32 %v4128_v2, %v11220_v12  ;;  %v9296_v36 = vrot.slane %v7414_v4, %v12942_v59  ;;  %v9300_v14 = vrot.slane %v7415_v58, %v12942_v59  ;;  %v10456_v34 = vsel %vm10207_vm6, %v9292_v29, %v10455_v38  ;;  %v13453_v12 = vld [vmem:[%s16356_s3] ss:$0 sm:$0xff]  ;;  %v13470_v29 = vpop.f32.mrb[36].mxu0 }
 0x147   :  { %v8280_v48 = vrot.slane %v7160_v7, %v12942_v59  ;;  %v10233_v3 = vsel %vm10209_vm7, %v8272_v31, %v10232_v20  ;;  %v2990_v22 = vcombine.high %v2654_v40, %v2654_v40  ;;  %v2997_v24 = vrot.slane %v2654_v40, %v12796_v43  ;;  %v13466_v31 = vld [vmem:[%s16355_s2] ss:$0 sm:$0xff] }
 0x148   :  { %v10234_v51 = vsel %vm10211_vm8, %v8276_v49, %v10233_v3  ;;  %v9304_v62 = vrot.slane %v7416_v19, %v12942_v59  ;;  %v10457_v35 = vsel %vm10209_vm7, %v9296_v36, %v10456_v34  ;;  %v10447_v2 = vsel %vm10203_vm4, %v9252_v21, %v10446_v33 }
 0x149   :  { %v10235_v54 = vsel %vm10213_vm9, %v8280_v48, %v10234_v51  ;;  %v10458_v37 = vsel %vm10211_vm8, %v9300_v14, %v10457_v35  ;;  %v3004_v7 = vrot.slane %v2990_v22, %v12796_v43  ;;  %v3005_v16 = vcombine.high %v2997_v24, %v2997_v24  ;;  %v13476_v14 = vpop.f32.mrb[37].mxu0 }
 0x14a   :  { %10724 = vst.msk [vmem:[#allocation2 + $0x18] sm:$0xff] %vm10720_vm10, %v10235_v54  ;;  %v10459_v38 = vsel %vm10213_vm9, %v9304_v62, %v10458_v37  ;;  %v10953_v50 = vrot.slane %v2997_v24, 9  ;;  %v2278_v21 = vadd.f32 %v13453_v12, %v13346_v39  ;;  %v16398_v4 = vrot.slane %v13373_v60, %v12942_v59  ;;  %v13472_v39 = vpop.f32.mrb[36].mxu1 }
 0x14b   :  { %10756 = vst.msk [vmem:[#allocation2 + $0x118] sm:$0xff] %vm10720_vm10, %v10459_v38  ;;  %v3006_v40 = vcombine.high %v3004_v7, %v3004_v7  ;;  %v10955_v33 = vrot.slane %v3004_v7, 9  ;;  %v1892_v49 = vmul.f32 %v13466_v31, %v13123_v41  ;;  %v10954_v20 = vrot.slane %v3005_v16, 9 }
 0x14c   :  { %v10224_v58 = vsel %vm10205_vm5, %v16398_v4, %v13395_v61  ;;  %v7149_v19 = vmax.f32 %v2997_v24, %v10953_v50  ;;  %v2534_v36 = vmax.f32 %v2278_v21, 0.0  ;;  %v2020_v60 = vmul.f32 %v13466_v31, %v13125_v44  ;;  %v13489_v44 = vpop.f32.mrb[37].mxu1 }
 0x14d   :  { %v10956_v61 = vrot.slane %v3006_v40, 9  ;;  %v7151_v48 = vmax.f32 %v3004_v7, %v10955_v33  ;;  %v13479_v3 = vadd.f32 %v13453_v12, %v1892_v49  ;;  %v1890_v41 = vmul.f32 %v13466_v31, %v13130_v17 }
 0x14e   :  { %v7150_v34 = vmax.f32 %v3005_v16, %v10954_v20  ;;  %v8236_v22 = vrot.slane %v7149_v19, %v12942_v59  ;;  %v16399_v51 = vmax.f32 %v13311_v23, 0.0  ;;  %v13487_v35 = vadd.f32 %v13453_v12, %v2020_v60 }
 0x14f   :  { %v7152_v24 = vmax.f32 %v3006_v40, %v10956_v61  ;;  %v8244_v54 = vrot.slane %v7151_v48, %v12942_v59  ;;  %v16400_v37 = vrot.slane %v13397_v63, %v12942_v59  ;;  %v2411_v17 = vmax.f32 %v13479_v3, 0.0 }
 0x150   :  { %v2718_v62 = vmax.f32 %v16399_v51, %v2534_v36  ;;  %v8240_v38 = vrot.slane %v7150_v34, %v12942_v59  ;;  %v10225_v23 = vsel %vm10207_vm6, %v8236_v22, %v10224_v58  ;;  %v2539_v40 = vmax.f32 %v13487_v35, 0.0  ;;  %v13518_v34 = vpop.f32.mrb[38].mxu0 }
 0x151   :  { %v10448_v7 = vsel %vm10205_vm5, %v16400_v37, %v10447_v2  ;;  %v8248_v21 = vrot.slane %v7152_v24, %v12942_v59  ;;  %v13503_v33 = vadd.f32 %v13453_v12, %v1890_v41  ;;  %v2018_v63 = vmul.f32 %v13466_v31, %v13132_v18  ;;  %v13528_v37 = vpop.f32.mrb[38].mxu1 }
 0x152   :  { %v4078_v16 = vcombine.high %v2718_v62, %v2718_v62  ;;  %v4085_v50 = vrot.slane %v2718_v62, %v12796_v43  ;;  %v10226_v2 = vsel %vm10209_vm7, %v8240_v38, %v10225_v23  ;;  %v1893_v36 = vmul.f32 %v13466_v31, %v13138_v47  ;;  %16401 = vst [vmem:[#allocation16_spill] sm:$0xff] %v13528_v37 }
 0x153   :  { %v10227_v58 = vsel %vm10211_vm8, %v8244_v54, %v10226_v2  ;;  %v13511_v19 = vadd.f32 %v13453_v12, %v2018_v63  ;;  %v2021_v60 = vmul.f32 %v13466_v31, %v13140_v46  ;;  %v2409_v51 = vmax.f32 %v13503_v33, 0.0 }
 0x154   :  { %v4092_v4 = vrot.slane %v4078_v16, %v12796_v43  ;;  %v4093_v49 = vcombine.high %v4085_v50, %v4085_v50  ;;  %v11209_v20 = vrot.slane %v4085_v50, 9  ;;  %v10228_v61 = vsel %vm10213_vm9, %v8248_v21, %v10227_v58 }
 0x155   :  { %10723 = vst.msk [vmem:[#allocation2 + $0x10] sm:$0xff] %vm10720_vm10, %v10228_v61  ;;  %v2156_v62 = vadd.f32 %v13453_v12, %v1893_v36  ;;  %v13524_v35 = vadd.f32 %v13453_v12, %v2021_v60  ;;  %v1891_v54 = vmul.f32 %v13466_v31, %v13144_v0  ;;  %v2537_v23 = vmax.f32 %v13511_v19, 0.0 }
 0x156   :  { %v4094_v18 = vcombine.high %v4092_v4, %v4092_v4  ;;  %v11210_v48 = vrot.slane %v4093_v49, 9  ;;  %v11211_v41 = vrot.slane %v4092_v4, 9  ;;  %v7405_v22 = vmax.f32 %v4085_v50, %v11209_v20 }
 0x157   :  { %v2412_v16 = vmax.f32 %v2156_v62, 0.0  ;;  %v2019_v50 = vmul.f32 %v13466_v31, %v13146_v53  ;;  %v13537_v2 = vadd.f32 %v13453_v12, %v1891_v54  ;;  %v2024_v20 = vmul.f32 %v13466_v31, %v13184_v52 }
 0x158   :  { %v11212_v47 = vrot.slane %v4094_v18, 9  ;;  %v7406_v24 = vmax.f32 %v4093_v49, %v11210_v48  ;;  %v7407_v46 = vmax.f32 %v4092_v4, %v11211_v41  ;;  %v9260_v38 = vrot.slane %v7405_v22, %v12942_v59 }
 0x159   :  { %v1896_v49 = vmul.f32 %v13466_v31, %v13182_v27  ;;  %v13548_v19 = vadd.f32 %v13453_v12, %v2019_v50  ;;  %v1894_v36 = vmul.f32 %v13466_v31, %v13189_v8  ;;  %v2287_v27 = vadd.f32 %v13453_v12, %v2024_v20  ;;  %v16403_v50 = vld [vmem:[#allocation8_spill] sm:$0xff] }
 0x15a   :  { %v7408_v21 = vmax.f32 %v4094_v18, %v11212_v47  ;;  %v9264_v33 = vrot.slane %v7406_v24, %v12942_v59  ;;  %v9268_v0 = vrot.slane %v7407_v46, %v12942_v59  ;;  %v10449_v4 = vsel %vm10207_vm6, %v9260_v38, %v10448_v7  ;;  %v16402_v47 = vld [vmem:[#allocation7_spill] sm:$0xff] }
 0x15b   :  { %v2159_v61 = vadd.f32 %v13453_v12, %v1896_v49  ;;  %v2157_v18 = vadd.f32 %v13453_v12, %v1894_v36  ;;  %v2022_v48 = vmul.f32 %v13466_v31, %v13191_v30  ;;  %v1897_v41 = vmul.f32 %v13466_v31, %v13195_v10 }
 0x15c   :  { %v9272_v53 = vrot.slane %v7408_v21, %v12942_v59  ;;  %v10450_v58 = vsel %vm10209_vm7, %v9264_v33, %v10449_v4  ;;  %v2543_v22 = vmax.f32 %v2287_v27, 0.0  ;;  %v2025_v62 = vmul.f32 %v13466_v31, %v13197_v28 }
 0x15d   :  { %v10451_v60 = vsel %vm10211_vm8, %v9268_v0, %v10450_v58  ;;  %v2415_v8 = vmax.f32 %v2159_v61, 0.0  ;;  %v1895_v24 = vmul.f32 %v13466_v31, %v16402_v47  ;;  %v2413_v46 = vmax.f32 %v2157_v18, 0.0 }
 0x15e   :  { %v10452_v52 = vsel %vm10213_vm9, %v9272_v53, %v10451_v60  ;;  %v2285_v54 = vadd.f32 %v13453_v12, %v2022_v48  ;;  %v2160_v38 = vadd.f32 %v13453_v12, %v1897_v41  ;;  %v2023_v30 = vmul.f32 %v13466_v31, %v16403_v50  ;;  %v13582_v53 = vpop.f32.mrb[39].mxu0 }
 0x15f   :  { %10755 = vst.msk [vmem:[#allocation2 + $0x110] sm:$0xff] %vm10720_vm10, %v10452_v52  ;;  %v2659_v10 = vmax.f32 %v2411_v17, %v2415_v8  ;;  %v2723_v21 = vmax.f32 %v2539_v40, %v2543_v22  ;;  %v13574_v33 = vadd.f32 %v13453_v12, %v2025_v62  ;;  %v13577_v28 = vadd.f32 %v13453_v12, %v1895_v24  ;;  %v13587_v52 = vpop.f32.mrb[39].mxu1 }
 0x160   :  { %v2657_v0 = vmax.f32 %v2409_v51, %v2413_v46  ;;  %v2541_v4 = vmax.f32 %v2285_v54, 0.0  ;;  %v2416_v49 = vmax.f32 %v2160_v38, 0.0  ;;  %v13580_v20 = vadd.f32 %v13453_v12, %v2023_v30  ;;  %16404 = vst [vmem:[#allocation7_spill] sm:$0xff] %v13582_v53  ;;  %16405 = vst [vmem:[#allocation8_spill] sm:$0xff] %v13587_v52 }
 0x161   :  { %v3075_v58 = vcombine.high %v2659_v10, %v2659_v10  ;;  %v3082_v36 = vrot.slane %v2659_v10, %v12796_v43  ;;  %v4163_v3 = vcombine.high %v2723_v21, %v2723_v21  ;;  %v4170_v17 = vrot.slane %v2723_v21, %v12796_v43 }
 0x162   :  { %v3041_v40 = vcombine.high %v2657_v0, %v2657_v0  ;;  %v3048_v60 = vrot.slane %v2657_v0, %v12796_v43  ;;  %v2721_v61 = vmax.f32 %v2537_v23, %v2541_v4  ;;  %v2660_v27 = vmax.f32 %v2412_v16, %v2416_v49 }
 0x163   :  { %v3089_v51 = vrot.slane %v3075_v58, %v12796_v43  ;;  %v3090_v18 = vcombine.high %v3082_v36, %v3082_v36  ;;  %v10973_v48 = vrot.slane %v3082_v36, 9  ;;  %v4177_v41 = vrot.slane %v4163_v3, %v12796_v43 }
 0x164   :  { %v4178_v8 = vcombine.high %v4170_v17, %v4170_v17  ;;  %v11229_v22 = vrot.slane %v4170_v17, 9  ;;  %v3055_v62 = vrot.slane %v3041_v40, %v12796_v43  ;;  %v3056_v47 = vcombine.high %v3048_v60, %v3048_v60 }
 0x165   :  { %v3091_v24 = vcombine.high %v3089_v51, %v3089_v51  ;;  %v10974_v46 = vrot.slane %v3090_v18, 9  ;;  %v10975_v54 = vrot.slane %v3089_v51, 9  ;;  %v7169_v38 = vmax.f32 %v3082_v36, %v10973_v48 }
 0x166   :  { %v4179_v50 = vcombine.high %v4177_v41, %v4177_v41  ;;  %v11230_v23 = vrot.slane %v4178_v8, 9  ;;  %v11231_v16 = vrot.slane %v4177_v41, 9  ;;  %v7425_v30 = vmax.f32 %v4170_v17, %v11229_v22 }
 0x167   :  { %v10976_v10 = vrot.slane %v3091_v24, 9  ;;  %v7170_v21 = vmax.f32 %v3090_v18, %v10974_v46  ;;  %v7171_v0 = vmax.f32 %v3089_v51, %v10975_v54  ;;  %v8316_v4 = vrot.slane %v7169_v38, %v12942_v59 }
 0x168   :  { %v11232_v49 = vrot.slane %v4179_v50, 9  ;;  %v7426_v58 = vmax.f32 %v4178_v8, %v11230_v23  ;;  %v7427_v3 = vmax.f32 %v4177_v41, %v11231_v16  ;;  %v9340_v7 = vrot.slane %v7425_v30, %v12942_v59 }
 0x169   :  { %v13594_v40 = vmax.f32 %v3091_v24, %v10976_v10  ;;  %v8320_v63 = vrot.slane %v7170_v21, %v12942_v59  ;;  %v8324_v36 = vrot.slane %v7171_v0, %v12942_v59  ;;  %v3057_v48 = vcombine.high %v3055_v62, %v3055_v62 }
 0x16a   :  { %v13598_v52 = vmax.f32 %v4179_v50, %v11232_v49  ;;  %v9344_v17 = vrot.slane %v7426_v58, %v12942_v59  ;;  %v9348_v51 = vrot.slane %v7427_v3, %v12942_v59  ;;  %v10965_v18 = vrot.slane %v3048_v60, 9 }
 0x16b   :  { %v8328_v8 = vrot.slane %v13594_v40, %v12942_v59  ;;  %v10243_v41 = vsel %vm10201_vm3, %v8320_v63, %v8316_v4  ;;  %v10966_v22 = vrot.slane %v3056_v47, 9  ;;  %v10967_v24 = vrot.slane %v3055_v62, 9 }
 0x16c   :  { %v10244_v46 = vsel %vm10203_vm4, %v8324_v36, %v10243_v41  ;;  %v10467_v38 = vsel %vm10201_vm3, %v9344_v17, %v9340_v7  ;;  %v10968_v50 = vrot.slane %v3057_v48, 9  ;;  %v7161_v16 = vmax.f32 %v3048_v60, %v10965_v18  ;;  %v13615_v7 = vpop.f32.mrb[40].mxu0 }
 0x16d   :  { %v10468_v23 = vsel %vm10203_vm4, %v9348_v51, %v10467_v38  ;;  %v7162_v30 = vmax.f32 %v3056_v47, %v10966_v22  ;;  %v7163_v10 = vmax.f32 %v3055_v62, %v10967_v24  ;;  %v4129_v0 = vcombine.high %v2721_v61, %v2721_v61  ;;  %16406 = vst [vmem:[#allocation17_spill] sm:$0xff] %v13615_v7 }
 0x16e   :  { %v7164_v21 = vmax.f32 %v3057_v48, %v10968_v50  ;;  %v4136_v49 = vrot.slane %v2721_v61, %v12796_v43  ;;  %v3092_v63 = vcombine.high %v2660_v27, %v2660_v27  ;;  %v8284_v4 = vrot.slane %v7161_v16, %v12942_v59 }
 0x16f   :  { %v8288_v58 = vrot.slane %v7162_v30, %v12942_v59  ;;  %v8292_v3 = vrot.slane %v7163_v10, %v12942_v59  ;;  %v3099_v40 = vrot.slane %v2660_v27, %v12796_v43  ;;  %v4143_v60 = vrot.slane %v4129_v0, %v12796_v43  ;;  %v13622_v27 = vpop.f32.mrb[40].mxu1 }
 0x170   :  { %v8296_v36 = vrot.slane %v7164_v21, %v12942_v59  ;;  %v4144_v62 = vcombine.high %v4136_v49, %v4136_v49  ;;  %v11221_v47 = vrot.slane %v4136_v49, 9  ;;  %v3106_v61 = vrot.slane %v3092_v63, %v12796_v43  ;;  %16407 = vst [vmem:[#allocation18_spill] sm:$0xff] %v13622_v27 }
 0x171   :  { %v10236_v48 = vsel %vm10201_vm3, %v8288_v58, %v8284_v4  ;;  %v3107_v17 = vcombine.high %v3099_v40, %v3099_v40  ;;  %v10977_v51 = vrot.slane %v3099_v40, 9  ;;  %v4145_v41 = vcombine.high %v4143_v60, %v4143_v60 }
 0x172   :  { %v10237_v18 = vsel %vm10203_vm4, %v8292_v3, %v10236_v48  ;;  %v11222_v22 = vrot.slane %v4144_v62, 9  ;;  %v11223_v24 = vrot.slane %v4143_v60, 9  ;;  %v7417_v38 = vmax.f32 %v4136_v49, %v11221_v47 }
 0x173   :  { %v3108_v50 = vcombine.high %v3106_v61, %v3106_v61  ;;  %v10978_v16 = vrot.slane %v3107_v17, 9  ;;  %v10979_v30 = vrot.slane %v3106_v61, 9  ;;  %v11224_v10 = vrot.slane %v4145_v41, 9 }
 0x174   :  { %v7418_v21 = vmax.f32 %v4144_v62, %v11222_v22  ;;  %v7419_v0 = vmax.f32 %v4143_v60, %v11223_v24  ;;  %v7173_v54 = vmax.f32 %v3099_v40, %v10977_v51  ;;  %v9308_v4 = vrot.slane %v7417_v38, %v12942_v59  ;;  %v13631_v40 = vpop.f32.mrb[41].mxu0  ;;  %v13633_v62 = vpop.f32.mrb[41].mxu1 }
 0x175   :  { %v10980_v63 = vrot.slane %v3108_v50, 9  ;;  %v7174_v58 = vmax.f32 %v3107_v17, %v10978_v16  ;;  %v7175_v7 = vmax.f32 %v3106_v61, %v10979_v30  ;;  %v7420_v53 = vmax.f32 %v4145_v41, %v11224_v10  ;;  %v13645_v24 = vpop.f32.mrb[42].mxu1 }
 0x176   :  { %v9312_v3 = vrot.slane %v7418_v21, %v12942_v59  ;;  %v9316_v48 = vrot.slane %v7419_v0, %v12942_v59  ;;  %v8332_v27 = vrot.slane %v7173_v54, %v12942_v59  ;;  %v10245_v60 = vsel %vm10205_vm5, %v8328_v8, %v10244_v46  ;;  %v13643_v46 = vpop.f32.mrb[42].mxu0 }
 0x177   :  { %v7176_v49 = vmax.f32 %v3108_v50, %v10980_v63  ;;  %v8336_v47 = vrot.slane %v7174_v58, %v12942_v59  ;;  %v8340_v37 = vrot.slane %v7175_v7, %v12942_v59  ;;  %v9320_v61 = vrot.slane %v7420_v53, %v12942_v59 }
 0x178   :  { %v10460_v17 = vsel %vm10201_vm3, %v9312_v3, %v9308_v4  ;;  %v10246_v51 = vsel %vm10207_vm6, %v8332_v27, %v10245_v60  ;;  %v2544_v41 = vmax.f32 %v13574_v33, 0.0  ;;  %v2538_v54 = vmax.f32 %v13548_v19, 0.0  ;;  %v13669_v4 = vpop.f32.mrb[43].mxu1 }
 0x179   :  { %v10461_v22 = vsel %vm10203_vm4, %v9316_v48, %v10460_v17  ;;  %v8344_v7 = vrot.slane %v7176_v49, %v12942_v59  ;;  %v10247_v8 = vsel %vm10209_vm7, %v8336_v47, %v10246_v51  ;;  %v16408_v38 = vmax.f32 %v13524_v35, 0.0 }
 0x17a   :  { %v10248_v53 = vsel %vm10211_vm8, %v8340_v37, %v10247_v8  ;;  %v16409_v33 = vrot.slane %v13598_v52, %v12942_v59  ;;  %v2414_v27 = vmax.f32 %v13577_v28, 0.0  ;;  %v10238_v30 = vsel %vm10205_vm5, %v8296_v36, %v10237_v18  ;;  %v13667_v28 = vpop.f32.mrb[43].mxu0 }
 0x17b   :  { %v2724_v50 = vmax.f32 %v16408_v38, %v2544_v41  ;;  %v10249_v16 = vsel %vm10213_vm9, %v8344_v7, %v10248_v53  ;;  %v2542_v10 = vmax.f32 %v13580_v20, 0.0  ;;  %v1900_v21 = vmul.f32 %v13466_v31, %v13213_v1 }
 0x17c   :  { %v10469_v19 = vsel %vm10205_vm5, %v16409_v33, %v10468_v23  ;;  %10726 = vst.msk [vmem:[#allocation2 + $0x28] sm:$0xff] %vm10720_vm10, %v10249_v16  ;;  %v16410_v52 = vmax.f32 %v13537_v2, 0.0  ;;  %v13665_v23 = vsel %vm10205_vm5, %v9320_v61, %v10461_v22  ;;  %v2028_v1 = vmul.f32 %v13466_v31, %v13215_v45  ;;  %v13688_v33 = vpop.f32.mrb[44].mxu1 }
 0x17d   :  { %v4180_v35 = vcombine.high %v2724_v50, %v2724_v50  ;;  %v4187_v37 = vrot.slane %v2724_v50, %v12796_v43  ;;  %v2722_v36 = vmax.f32 %v2538_v54, %v2542_v10  ;;  %v13672_v20 = vadd.f32 %v13453_v12, %v1900_v21  ;;  %v13686_v50 = vpop.f32.mrb[44].mxu0 }
 0x17e   :  { %v2658_v0 = vmax.f32 %v16410_v52, %v2414_v27  ;;  %v1898_v18 = vmul.f32 %v13466_v31, %v13218_v5  ;;  %v2026_v60 = vmul.f32 %v13466_v31, %v13220_v13  ;;  %v13690_v21 = vpop.f32.mrb[45].mxu0 }
 0x17f   :  { %v4194_v2 = vrot.slane %v4180_v35, %v12796_v43  ;;  %v4195_v63 = vcombine.high %v4187_v37, %v4187_v37  ;;  %v11233_v58 = vrot.slane %v4187_v37, 9  ;;  %v4146_v49 = vcombine.high %v2722_v36, %v2722_v36 }
 0x180   :  { %v3058_v3 = vcombine.high %v2658_v0, %v2658_v0  ;;  %v3065_v48 = vrot.slane %v2658_v0, %v12796_v43  ;;  %v4153_v47 = vrot.slane %v2722_v36, %v12796_v43 }
 0x181   :  { %v4196_v61 = vcombine.high %v4194_v2, %v4194_v2  ;;  %v11234_v17 = vrot.slane %v4195_v63, 9  ;;  %v11235_v51 = vrot.slane %v4194_v2, 9  ;;  %v7429_v45 = vmax.f32 %v4187_v37, %v11233_v58 }
 0x182   :  { %v3072_v41 = vrot.slane %v3058_v3, %v12796_v43  ;;  %v3073_v5 = vcombine.high %v3065_v48, %v3065_v48  ;;  %v10969_v54 = vrot.slane %v3065_v48, 9  ;;  %v4160_v22 = vrot.slane %v4146_v49, %v12796_v43  ;;  %v13696_v3 = vpop.f32.mrb[45].mxu1 }
 0x183   :  { %v11236_v7 = vrot.slane %v4196_v61, 9  ;;  %v7430_v8 = vmax.f32 %v4195_v63, %v11234_v17  ;;  %v7431_v53 = vmax.f32 %v4194_v2, %v11235_v51  ;;  %v9356_v38 = vrot.slane %v7429_v45, %v12942_v59 }
 0x184   :  { %v3074_v13 = vcombine.high %v3072_v41, %v3072_v41  ;;  %v10970_v27 = vrot.slane %v3073_v5, 9  ;;  %v10971_v16 = vrot.slane %v3072_v41, 9  ;;  %v7165_v10 = vmax.f32 %v3065_v48, %v10969_v54 }
 0x185   :  { %v7432_v35 = vmax.f32 %v4196_v61, %v11236_v7  ;;  %v9360_v37 = vrot.slane %v7430_v8, %v12942_v59  ;;  %v9364_v52 = vrot.slane %v7431_v53, %v12942_v59  ;;  %v10470_v0 = vsel %vm10207_vm6, %v9356_v38, %v10469_v19 }
 0x186   :  { %v10972_v36 = vrot.slane %v3074_v13, 9  ;;  %v7166_v2 = vmax.f32 %v3073_v5, %v10970_v27  ;;  %v7167_v63 = vmax.f32 %v3072_v41, %v10971_v16  ;;  %v8300_v58 = vrot.slane %v7165_v10, %v12942_v59 }
 0x187   :  { %v9368_v49 = vrot.slane %v7432_v35, %v12942_v59  ;;  %v10471_v48 = vsel %vm10209_vm7, %v9360_v37, %v10470_v0  ;;  %v4161_v17 = vcombine.high %v4153_v47, %v4153_v47  ;;  %v4162_v51 = vcombine.high %v4160_v22, %v4160_v22 }
 0x188   :  { %v10472_v61 = vsel %vm10211_vm8, %v9364_v52, %v10471_v48  ;;  %v7168_v45 = vmax.f32 %v3074_v13, %v10972_v36  ;;  %v8304_v54 = vrot.slane %v7166_v2, %v12942_v59  ;;  %v8308_v19 = vrot.slane %v7167_v63, %v12942_v59  ;;  %v13712_v2 = vpop.f32.mrb[46].mxu0 }
 0x189   :  { %v10473_v5 = vsel %vm10213_vm9, %v9368_v49, %v10472_v61  ;;  %v10239_v41 = vsel %vm10207_vm6, %v8300_v58, %v10238_v30  ;;  %v11225_v7 = vrot.slane %v4153_v47, 9  ;;  %v11226_v8 = vrot.slane %v4161_v17, 9 }
 0x18a   :  { %10758 = vst.msk [vmem:[#allocation2 + $0x128] sm:$0xff] %vm10720_vm10, %v10473_v5  ;;  %v8312_v53 = vrot.slane %v7168_v45, %v12942_v59  ;;  %v10240_v38 = vsel %vm10209_vm7, %v8304_v54, %v10239_v41  ;;  %v11227_v27 = vrot.slane %v4160_v22, 9  ;;  %v11228_v16 = vrot.slane %v4162_v51, 9 }
 0x18b   :  { %v10241_v13 = vsel %vm10211_vm8, %v8308_v19, %v10240_v38  ;;  %v7421_v10 = vmax.f32 %v4153_v47, %v11225_v7  ;;  %v7422_v35 = vmax.f32 %v4161_v17, %v11226_v8  ;;  %v2291_v37 = vadd.f32 %v13453_v12, %v2028_v1  ;;  %v13723_v17 = vpop.f32.mrb[46].mxu1 }
 0x18c   :  { %v10242_v52 = vsel %vm10213_vm9, %v8312_v53, %v10241_v13  ;;  %v7423_v0 = vmax.f32 %v4160_v22, %v11227_v27  ;;  %v7424_v30 = vmax.f32 %v4162_v51, %v11228_v16  ;;  %v2161_v36 = vadd.f32 %v13453_v12, %v1898_v18  ;;  %v16411_v27 = vld [vmem:[#allocation9_spill] sm:$0xff] }
 0x18d   :  { %10725 = vst.msk [vmem:[#allocation2 + $0x20] sm:$0xff] %vm10720_vm10, %v10242_v52  ;;  %v9324_v63 = vrot.slane %v7421_v10, %v12942_v59  ;;  %v9328_v58 = vrot.slane %v7422_v35, %v12942_v59  ;;  %v2419_v49 = vmax.f32 %v13672_v20, 0.0  ;;  %v2547_v47 = vmax.f32 %v2291_v37, 0.0  ;;  %v16412_v10 = vld [vmem:[#allocation10_spill] sm:$0xff]  ;;  %v16413_v37 = vld [vmem:[#allocation11_spill] sm:$0xff] }
 0x18e   :  { %v9332_v48 = vrot.slane %v7423_v0, %v12942_v59  ;;  %v9336_v1 = vrot.slane %v7424_v30, %v12942_v59  ;;  %v2289_v22 = vadd.f32 %v13453_v12, %v2026_v60  ;;  %v1901_v18 = vmul.f32 %v13466_v31, %v13229_v42 }
 0x18f   :  { %v10463_v51 = vsel %vm10207_vm6, %v9324_v63, %v13665_v23  ;;  %v2417_v61 = vmax.f32 %v2161_v36, 0.0  ;;  %v2029_v45 = vmul.f32 %v13466_v31, %v13231_v9  ;;  %v1899_v20 = vmul.f32 %v13466_v31, %v13236_v11  ;;  %v16414_v36 = vld [vmem:[#allocation12_spill] sm:$0xff] }
 0x190   :  { %v10464_v54 = vsel %vm10209_vm7, %v9328_v58, %v10463_v51  ;;  %v13733_v19 = vadd.f32 %v13453_v12, %v1901_v18  ;;  %v2027_v42 = vmul.f32 %v13466_v31, %v13238_v32  ;;  %v1904_v60 = vmul.f32 %v13466_v31, %v13262_v6  ;;  %v16415_v58 = vld [vmem:[#allocation5_spill] sm:$0xff] }
 0x191   :  { %v10465_v23 = vsel %vm10211_vm8, %v9332_v48, %v10464_v54  ;;  %v13741_v5 = vadd.f32 %v13453_v12, %v2029_v45  ;;  %v13744_v9 = vadd.f32 %v13453_v12, %v1899_v20  ;;  %v2032_v11 = vmul.f32 %v13466_v31, %v13264_v57 }
 0x192   :  { %v10466_v41 = vsel %vm10213_vm9, %v9336_v1, %v10465_v23  ;;  %v2545_v7 = vmax.f32 %v2289_v22, 0.0  ;;  %v13750_v8 = vadd.f32 %v13453_v12, %v2027_v42  ;;  %v2167_v32 = vadd.f32 %v13453_v12, %v1904_v60  ;;  %v16416_v42 = vld [vmem:[#allocation6_spill] sm:$0xff] }
 0x193   :  { %10757 = vst.msk [vmem:[#allocation2 + $0x120] sm:$0xff] %vm10720_vm10, %v10466_v41  ;;  %v2295_v38 = vadd.f32 %v13453_v12, %v2032_v11  ;;  %v1902_v16 = vmul.f32 %v13466_v31, %v16411_v27  ;;  %v2030_v35 = vmul.f32 %v13466_v31, %v16412_v10  ;;  %v1905_v52 = vmul.f32 %v13466_v31, %v16413_v37 }
 0x194   :  { %v2423_v13 = vmax.f32 %v2167_v32, 0.0  ;;  %v2033_v63 = vmul.f32 %v13466_v31, %v16414_v36  ;;  %v1903_v48 = vmul.f32 %v13466_v31, %v16415_v58  ;;  %v13779_v60 = vmul.f32 %v13466_v31, %v16416_v42  ;;  %v13785_v32 = vpop.f32.mrb[47].mxu0 }
 0x195   :  { %v2551_v0 = vmax.f32 %v2295_v38, 0.0  ;;  %v2165_v30 = vadd.f32 %v13453_v12, %v1902_v16  ;;  %v2293_v18 = vadd.f32 %v13453_v12, %v2030_v35  ;;  %v13772_v51 = vadd.f32 %v13453_v12, %v1905_v52  ;;  %16417 = vst [vmem:[#allocation9_spill] sm:$0xff] %v13785_v32  ;;  %v13790_v52 = vpop.f32.mrb[47].mxu1 }
 0x196   :  { %v2663_v22 = vmax.f32 %v2419_v49, %v2423_v13  ;;  %v13775_v54 = vadd.f32 %v13453_v12, %v2033_v63  ;;  %v13783_v49 = vadd.f32 %v13453_v12, %v1903_v48  ;;  %16418 = vst [vmem:[#allocation10_spill] sm:$0xff] %v13790_v52 }
 0x197   :  { %v2727_v45 = vmax.f32 %v2547_v47, %v2551_v0  ;;  %v2421_v20 = vmax.f32 %v2165_v30, 0.0  ;;  %v2549_v41 = vmax.f32 %v2293_v18, 0.0  ;;  %v2424_v16 = vmax.f32 %v13772_v51, 0.0 }
 0x198   :  { %v3143_v23 = vcombine.high %v2663_v22, %v2663_v22  ;;  %v3150_v11 = vrot.slane %v2663_v22, %v12796_v43 }
 0x199   :  { %v4231_v38 = vcombine.high %v2727_v45, %v2727_v45  ;;  %v4238_v47 = vrot.slane %v2727_v45, %v12796_v43  ;;  %v2661_v27 = vmax.f32 %v2417_v61, %v2421_v20  ;;  %v2725_v37 = vmax.f32 %v2545_v7, %v2549_v41 }
 0x19a   :  { %v3157_v13 = vrot.slane %v3143_v23, %v12796_v43  ;;  %v3158_v10 = vcombine.high %v3150_v11, %v3150_v11  ;;  %v10989_v35 = vrot.slane %v3150_v11, 9 }
 0x19b   :  { %v4245_v0 = vrot.slane %v4231_v38, %v12796_v43  ;;  %v4246_v30 = vcombine.high %v4238_v47, %v4238_v47  ;;  %v11245_v36 = vrot.slane %v4238_v47, 9  ;;  %v3109_v63 = vcombine.high %v2661_v27, %v2661_v27 }
 0x19c   :  { %v3159_v58 = vcombine.high %v3157_v13, %v3157_v13  ;;  %v10990_v48 = vrot.slane %v3158_v10, 9  ;;  %v10991_v22 = vrot.slane %v3157_v13, 9  ;;  %v7185_v18 = vmax.f32 %v3150_v11, %v10989_v35 }
 0x19d   :  { %v4247_v45 = vcombine.high %v4245_v0, %v4245_v0  ;;  %v11246_v61 = vrot.slane %v4246_v30, 9  ;;  %v11247_v20 = vrot.slane %v4245_v0, 9  ;;  %v7441_v51 = vmax.f32 %v4238_v47, %v11245_v36 }
 0x19e   :  { %v10992_v42 = vrot.slane %v3159_v58, 9  ;;  %v7186_v23 = vmax.f32 %v3158_v10, %v10990_v48  ;;  %v7187_v1 = vmax.f32 %v3157_v13, %v10991_v22  ;;  %v8380_v41 = vrot.slane %v7185_v18, %v12942_v59 }
 0x19f   :  { %v11248_v57 = vrot.slane %v4247_v45, 9  ;;  %v7442_v38 = vmax.f32 %v4246_v30, %v11246_v61  ;;  %v7443_v53 = vmax.f32 %v4245_v0, %v11247_v20  ;;  %v3116_v11 = vrot.slane %v2661_v27, %v12796_v43 }
 0x1a0   :  { %v7188_v6 = vmax.f32 %v3159_v58, %v10992_v42  ;;  %v8384_v52 = vrot.slane %v7186_v23, %v12942_v59  ;;  %v8388_v32 = vrot.slane %v7187_v1, %v12942_v59  ;;  %v9404_v47 = vrot.slane %v7441_v51, %v12942_v59 }
 0x1a1   :  { %v13798_v35 = vmax.f32 %v4247_v45, %v11248_v57  ;;  %v9408_v13 = vrot.slane %v7442_v38, %v12942_v59  ;;  %v3123_v10 = vrot.slane %v3109_v63, %v12796_v43  ;;  %v9412_v30 = vrot.slane %v7443_v53, %v12942_v59 }
 0x1a2   :  { %v10257_v36 = vsel %vm10201_vm3, %v8384_v52, %v8380_v41  ;;  %v3124_v0 = vcombine.high %v3116_v11, %v3116_v11  ;;  %v10981_v58 = vrot.slane %v3116_v11, 9  ;;  %v8392_v48 = vrot.slane %v7188_v6, %v12942_v59 }
 0x1a3   :  { %v10258_v1 = vsel %vm10203_vm4, %v8388_v32, %v10257_v36  ;;  %v10481_v27 = vsel %vm10201_vm3, %v9408_v13, %v9404_v47  ;;  %v3125_v57 = vcombine.high %v3123_v10, %v3123_v10  ;;  %v9416_v22 = vrot.slane %v13798_v35, %v12942_v59  ;;  %v13816_v13 = vpop.f32.mrb[48].mxu0 }
 0x1a4   :  { %v10982_v18 = vrot.slane %v3124_v0, 9  ;;  %v10983_v45 = vrot.slane %v3123_v10, 9  ;;  %v7177_v61 = vmax.f32 %v3116_v11, %v10981_v58  ;;  %v4197_v20 = vcombine.high %v2725_v37, %v2725_v37 }
 0x1a5   :  { %v10984_v63 = vrot.slane %v3125_v57, 9  ;;  %v4204_v52 = vrot.slane %v2725_v37, %v12796_v43  ;;  %v16419_v53 = vmax.f32 %v13733_v19, 0.0  ;;  %v10482_v6 = vsel %vm10203_vm4, %v9412_v30, %v10481_v27 }
 0x1a6   :  { %v7178_v42 = vmax.f32 %v3124_v0, %v10982_v18  ;;  %v7179_v32 = vmax.f32 %v3123_v10, %v10983_v45  ;;  %v8348_v23 = vrot.slane %v7177_v61, %v12942_v59  ;;  %v4211_v38 = vrot.slane %v4197_v20, %v12796_v43  ;;  %v13824_v45 = vpop.f32.mrb[48].mxu1 }
 0x1a7   :  { %v2664_v51 = vmax.f32 %v16419_v53, %v2424_v16  ;;  %v7180_v41 = vmax.f32 %v3125_v57, %v10984_v63  ;;  %v4212_v35 = vcombine.high %v4204_v52, %v4204_v52  ;;  %v11237_v47 = vrot.slane %v4204_v52, 9  ;;  %16420 = vst [vmem:[#allocation11_spill] sm:$0xff] %v13824_v45 }
 0x1a8   :  { %v8352_v11 = vrot.slane %v7178_v42, %v12942_v59  ;;  %v10259_v19 = vsel %vm10205_vm5, %v8392_v48, %v10258_v1  ;;  %v8356_v16 = vrot.slane %v7179_v32, %v12942_v59  ;;  %v4213_v30 = vcombine.high %v4211_v38, %v4211_v38 }
 0x1a9   :  { %v3160_v36 = vcombine.high %v2664_v51, %v2664_v51  ;;  %v3167_v37 = vrot.slane %v2664_v51, %v12796_v43  ;;  %v11238_v10 = vrot.slane %v4212_v35, 9  ;;  %v11239_v0 = vrot.slane %v4211_v38, 9 }
 0x1aa   :  { %v8360_v58 = vrot.slane %v7180_v41, %v12942_v59  ;;  %v7433_v27 = vmax.f32 %v4204_v52, %v11237_v47  ;;  %v10250_v61 = vsel %vm10201_vm3, %v8352_v11, %v8348_v23  ;;  %v11240_v63 = vrot.slane %v4213_v30, 9 }
 0x1ab   :  { %v3174_v57 = vrot.slane %v3160_v36, %v12796_v43  ;;  %v3175_v18 = vcombine.high %v3167_v37, %v3167_v37  ;;  %v7434_v20 = vmax.f32 %v4212_v35, %v11238_v10  ;;  %v7435_v53 = vmax.f32 %v4211_v38, %v11239_v0 }
 0x1ac   :  { %v9372_v48 = vrot.slane %v7433_v27, %v12942_v59  ;;  %v10993_v51 = vrot.slane %v3167_v37, 9  ;;  %v13828_v32 = vmax.f32 %v4213_v30, %v11240_v63  ;;  %v16421_v23 = vmax.f32 %v13775_v54, 0.0  ;;  %v13840_v27 = vpop.f32.mrb[49].mxu0  ;;  %v13842_v63 = vpop.f32.mrb[49].mxu1 }
 0x1ad   :  { %v3176_v1 = vcombine.high %v3174_v57, %v3174_v57  ;;  %v10994_v42 = vrot.slane %v3175_v18, 9  ;;  %v9376_v41 = vrot.slane %v7434_v20, %v12942_v59  ;;  %v9380_v52 = vrot.slane %v7435_v53, %v12942_v59 }
 0x1ae   :  { %v10995_v47 = vrot.slane %v3174_v57, 9  ;;  %v7189_v7 = vmax.f32 %v3167_v37, %v10993_v51  ;;  %v16422_v35 = vmax.f32 %v13741_v5, 0.0  ;;  %v10251_v11 = vsel %vm10203_vm4, %v8356_v16, %v10250_v61 }
 0x1af   :  { %v10996_v36 = vrot.slane %v3176_v1, 9  ;;  %v7190_v45 = vmax.f32 %v3175_v18, %v10994_v42  ;;  %v9384_v10 = vrot.slane %v13828_v32, %v12942_v59  ;;  %v10474_v30 = vsel %vm10201_vm3, %v9376_v41, %v9372_v48  ;;  %v13854_v48 = vpop.f32.mrb[50].mxu1  ;;  %v13921_v32 = vld [vmem:[%s16355_s2] ss:$0 sm:$0xff] }
 0x1b0   :  { %v2728_v38 = vmax.f32 %v16422_v35, %v16421_v23  ;;  %v7191_v0 = vmax.f32 %v3174_v57, %v10995_v47  ;;  %v13845_v37 = vsel %vm10203_vm4, %v9380_v52, %v10474_v30  ;;  %v8396_v54 = vrot.slane %v7189_v7, %v12942_v59  ;;  %v13852_v57 = vpop.f32.mrb[50].mxu0 }
 0x1b1   :  { %v7192_v18 = vmax.f32 %v3176_v1, %v10996_v36  ;;  %v10483_v5 = vsel %vm10205_vm5, %v9416_v22, %v10482_v6  ;;  %v8400_v16 = vrot.slane %v7190_v45, %v12942_v59  ;;  %v2422_v53 = vmax.f32 %v13783_v49, 0.0  ;;  %v13867_v35 = vpop.f32.mrb[51].mxu0 }
 0x1b2   :  { %v4248_v61 = vcombine.high %v2728_v38, %v2728_v38  ;;  %v4255_v20 = vrot.slane %v2728_v38, %v12796_v43  ;;  %v8404_v51 = vrot.slane %v7191_v0, %v12942_v59  ;;  %v10260_v1 = vsel %vm10207_vm6, %v8396_v54, %v10259_v19  ;;  %v13869_v19 = vpop.f32.mrb[51].mxu1 }
 0x1b3   :  { %v8408_v42 = vrot.slane %v7192_v18, %v12942_v59  ;;  %v2294_v7 = vadd.f32 %v13453_v12, %v13779_v60  ;;  %v10261_v22 = vsel %vm10209_vm7, %v8400_v16, %v10260_v1  ;;  %v16423_v52 = vmax.f32 %v13744_v9, 0.0 }
 0x1b4   :  { %v4262_v6 = vrot.slane %v4248_v61, %v12796_v43  ;;  %v4263_v45 = vcombine.high %v4255_v20, %v4255_v20  ;;  %v11249_v41 = vrot.slane %v4255_v20, 9  ;;  %v10262_v49 = vsel %vm10211_vm8, %v8404_v51, %v10261_v22 }
 0x1b5   :  { %v2662_v47 = vmax.f32 %v16423_v52, %v2422_v53  ;;  %v10252_v36 = vsel %vm10205_vm5, %v8360_v58, %v10251_v11  ;;  %v2550_v23 = vmax.f32 %v2294_v7, 0.0  ;;  %v10263_v12 = vsel %vm10213_vm9, %v8408_v42, %v10262_v49 }
 0x1b6   :  { %v4264_v60 = vcombine.high %v4262_v6, %v4262_v6  ;;  %v11250_v38 = vrot.slane %v4263_v45, 9  ;;  %v11251_v30 = vrot.slane %v4262_v6, 9  ;;  %10728 = vst.msk [vmem:[#allocation2 + $0x38] sm:$0xff] %vm10720_vm10, %v10263_v12  ;;  %v7445_v0 = vmax.f32 %v4255_v20, %v11249_v41 }
 0x1b7   :  { %v3126_v18 = vcombine.high %v2662_v47, %v2662_v47  ;;  %v3133_v54 = vrot.slane %v2662_v47, %v12796_v43  ;;  %v16424_v9 = vmax.f32 %v13750_v8, 0.0  ;;  %v1908_v53 = vmul.f32 %v13466_v31, %v13375_v56  ;;  %v13883_v47 = vpop.f32.mrb[52].mxu0  ;;  %v13885_v56 = vpop.f32.mrb[52].mxu1 }
 0x1b8   :  { %v11252_v58 = vrot.slane %v4264_v60, 9  ;;  %v7446_v11 = vmax.f32 %v4263_v45, %v11250_v38  ;;  %v7447_v61 = vmax.f32 %v4262_v6, %v11251_v30  ;;  %v9420_v51 = vrot.slane %v7445_v0, %v12942_v59  ;;  %v13890_v38 = vpop.f32.mrb[53].mxu0 }
 0x1b9   :  { %v2726_v16 = vmax.f32 %v16424_v9, %v2550_v23  ;;  %v3140_v42 = vrot.slane %v3126_v18, %v12796_v43  ;;  %v3141_v1 = vcombine.high %v3133_v54, %v3133_v54  ;;  %v10985_v7 = vrot.slane %v3133_v54, 9 }
 0x1ba   :  { %v7448_v22 = vmax.f32 %v4264_v60, %v11252_v58  ;;  %v9424_v20 = vrot.slane %v7446_v11, %v12942_v59  ;;  %v9428_v41 = vrot.slane %v7447_v61, %v12942_v59  ;;  %v10484_v8 = vsel %vm10207_vm6, %v9420_v51, %v10483_v5  ;;  %v13896_v51 = vpop.f32.mrb[53].mxu1 }
 0x1bb   :  { %v4214_v49 = vcombine.high %v2726_v16, %v2726_v16  ;;  %v3142_v52 = vcombine.high %v3140_v42, %v3140_v42  ;;  %v10986_v45 = vrot.slane %v3141_v1, 9  ;;  %v10987_v6 = vrot.slane %v3140_v42, 9  ;;  %16425 = vst [vmem:[#allocation12_spill] sm:$0xff] %v13896_v51 }
 0x1bc   :  { %v9432_v31 = vrot.slane %v7448_v22, %v12942_v59  ;;  %v10485_v23 = vsel %vm10209_vm7, %v9424_v20, %v10484_v8  ;;  %v7181_v12 = vmax.f32 %v3133_v54, %v10985_v7  ;;  %v4221_v60 = vrot.slane %v2726_v16, %v12796_v43 }
 0x1bd   :  { %v10486_v30 = vsel %vm10211_vm8, %v9428_v41, %v10485_v23  ;;  %v10988_v0 = vrot.slane %v3142_v52, 9  ;;  %v7182_v5 = vmax.f32 %v3141_v1, %v10986_v45  ;;  %v7183_v18 = vmax.f32 %v3140_v42, %v10987_v6 }
 0x1be   :  { %v10487_v9 = vsel %vm10213_vm9, %v9432_v31, %v10486_v30  ;;  %v8364_v58 = vrot.slane %v7181_v12, %v12942_v59  ;;  %v4228_v11 = vrot.slane %v4214_v49, %v12796_v43  ;;  %v4229_v61 = vcombine.high %v4221_v60, %v4221_v60 }
 0x1bf   :  { %10760 = vst.msk [vmem:[#allocation2 + $0x138] sm:$0xff] %vm10720_vm10, %v10487_v9  ;;  %v7184_v54 = vmax.f32 %v3142_v52, %v10988_v0  ;;  %v8368_v16 = vrot.slane %v7182_v5, %v12942_v59  ;;  %v8372_v7 = vrot.slane %v7183_v18, %v12942_v59  ;;  %v11241_v22 = vrot.slane %v4221_v60, 9  ;;  %v13915_v0 = vld [vmem:[%s16356_s3] ss:$0 sm:$0xff] }
 0x1c0   :  { %v10253_v1 = vsel %vm10207_vm6, %v8364_v58, %v10252_v36  ;;  %v4230_v42 = vcombine.high %v4228_v11, %v4228_v11  ;;  %v11242_v20 = vrot.slane %v4229_v61, 9  ;;  %v11243_v41 = vrot.slane %v4228_v11, 9  ;;  %v16427_v58 = vld [vmem:[#allocation14_spill] sm:$0xff] }
 0x1c1   :  { %v8376_v8 = vrot.slane %v7184_v54, %v12942_v59  ;;  %v10254_v49 = vsel %vm10209_vm7, %v8368_v16, %v10253_v1  ;;  %v7437_v45 = vmax.f32 %v4221_v60, %v11241_v22  ;;  %v10476_v52 = vsel %vm10205_vm5, %v9384_v10, %v13845_v37  ;;  %v16426_v10 = vld [vmem:[#allocation13_spill] sm:$0xff]  ;;  %v16429_v16 = vld [vmem:[#allocation15_spill] sm:$0xff] }
 0x1c2   :  { %v10255_v6 = vsel %vm10211_vm8, %v8372_v7, %v10254_v49  ;;  %v11244_v31 = vrot.slane %v4230_v42, 9  ;;  %v7438_v23 = vmax.f32 %v4229_v61, %v11242_v20  ;;  %v7439_v12 = vmax.f32 %v4228_v11, %v11243_v41  ;;  %v13930_v61 = vpop.f32.mrb[54].mxu0 }
 0x1c3   :  { %v10256_v36 = vsel %vm10213_vm9, %v8376_v8, %v10255_v6  ;;  %v9388_v30 = vrot.slane %v7437_v45, %v12942_v59  ;;  %v2171_v60 = vadd.f32 %v13915_v0, %v1908_v53  ;;  %v2036_v37 = vmul.f32 %v13921_v32, %v16426_v10  ;;  %16428 = vst [vmem:[#allocation5_spill] sm:$0xff] %v13930_v61  ;;  %v13943_v8 = vpop.f32.mrb[54].mxu1 }
 0x1c4   :  { %10727 = vst.msk [vmem:[#allocation2 + $0x30] sm:$0xff] %vm10720_vm10, %v10256_v36  ;;  %v7440_v5 = vmax.f32 %v4230_v42, %v11244_v31  ;;  %v9392_v18 = vrot.slane %v7438_v23, %v12942_v59  ;;  %v9396_v9 = vrot.slane %v7439_v12, %v12942_v59  ;;  %v1906_v11 = vmul.f32 %v13921_v32, %v16427_v58 }
 0x1c5   :  { %v10477_v53 = vsel %vm10207_vm6, %v9388_v30, %v10476_v52  ;;  %v2299_v54 = vadd.f32 %v13915_v0, %v2036_v37  ;;  %v2034_v7 = vmul.f32 %v13921_v32, %v16429_v16  ;;  %v1909_v22 = vmul.f32 %v13921_v32, %v13422_v25  ;;  %16430 = vst [vmem:[#allocation6_spill] sm:$0xff] %v13943_v8 }
 0x1c6   :  { %v9400_v1 = vrot.slane %v7440_v5, %v12942_v59  ;;  %v10478_v42 = vsel %vm10209_vm7, %v9392_v18, %v10477_v53  ;;  %v2169_v20 = vadd.f32 %v13915_v0, %v1906_v11  ;;  %v2037_v41 = vmul.f32 %v13921_v32, %v13424_v26  ;;  %v16431_v53 = vld [vmem:[#allocation16_spill] sm:$0xff] }
 0x1c7   :  { %v10479_v49 = vsel %vm10211_vm8, %v9396_v9, %v10478_v42  ;;  %v2427_v45 = vmax.f32 %v2171_v60, 0.0  ;;  %v2297_v52 = vadd.f32 %v13915_v0, %v2034_v7  ;;  %v2172_v6 = vadd.f32 %v13915_v0, %v1909_v22  ;;  %v16432_v42 = vld [vmem:[#allocation7_spill] sm:$0xff] }
 0x1c8   :  { %v10480_v25 = vsel %vm10213_vm9, %v9400_v1, %v10479_v49  ;;  %v2555_v31 = vmax.f32 %v2299_v54, 0.0  ;;  %v13950_v23 = vadd.f32 %v13915_v0, %v2037_v41  ;;  %v1907_v12 = vmul.f32 %v13921_v32, %v13427_v15 }
 0x1c9   :  { %10759 = vst.msk [vmem:[#allocation2 + $0x130] sm:$0xff] %vm10720_vm10, %v10480_v25  ;;  %v2425_v26 = vmax.f32 %v2169_v20, 0.0  ;;  %v2553_v36 = vmax.f32 %v2297_v52, 0.0  ;;  %v2035_v30 = vmul.f32 %v13921_v32, %v13432_v55  ;;  %v1912_v60 = vmul.f32 %v13921_v32, %v13470_v29 }
 0x1ca   :  { %v2428_v10 = vmax.f32 %v2172_v6, 0.0  ;;  %v13960_v37 = vadd.f32 %v13915_v0, %v1907_v12  ;;  %v2040_v5 = vmul.f32 %v13921_v32, %v13472_v39  ;;  %v1910_v15 = vmul.f32 %v13921_v32, %v13476_v14 }
 0x1cb   :  { %v13967_v18 = vadd.f32 %v13915_v0, %v2035_v30  ;;  %v2175_v9 = vadd.f32 %v13915_v0, %v1912_v60  ;;  %v2038_v55 = vmul.f32 %v13921_v32, %v13489_v44  ;;  %v1913_v29 = vmul.f32 %v13921_v32, %v13518_v34  ;;  %v16433_v60 = vld [vmem:[#allocation8_spill] sm:$0xff] }
 0x1cc   :  { %v2303_v11 = vadd.f32 %v13915_v0, %v2040_v5  ;;  %v2173_v39 = vadd.f32 %v13915_v0, %v1910_v15  ;;  %v2041_v14 = vmul.f32 %v13921_v32, %v16431_v53  ;;  %v1911_v20 = vmul.f32 %v13921_v32, %v16432_v42  ;;  %v13993_v15 = vpop.f32.mrb[55].mxu0 }
 0x1cd   :  { %v2431_v16 = vmax.f32 %v2175_v9, 0.0  ;;  %v2301_v7 = vadd.f32 %v13915_v0, %v2038_v55  ;;  %v2176_v22 = vadd.f32 %v13915_v0, %v1913_v29  ;;  %v13991_v5 = vmul.f32 %v13921_v32, %v16433_v60  ;;  %16434 = vst [vmem:[#allocation13_spill] sm:$0xff] %v13993_v15 }
 0x1ce   :  { %v2559_v44 = vmax.f32 %v2303_v11, 0.0  ;;  %v2429_v1 = vmax.f32 %v2173_v39, 0.0  ;;  %v13983_v34 = vadd.f32 %v13915_v0, %v2041_v14 }
 0x1cf   :  { %v2667_v49 = vmax.f32 %v2427_v45, %v2431_v16  ;;  %v2557_v52 = vmax.f32 %v2301_v7, 0.0  ;;  %v2432_v6 = vmax.f32 %v2176_v22, 0.0 }
 0x1d0   :  { %v2731_v25 = vmax.f32 %v2555_v31, %v2559_v44  ;;  %v2665_v12 = vmax.f32 %v2425_v26, %v2429_v1  ;;  %v14000_v31 = vadd.f32 %v13915_v0, %v1911_v20  ;;  %v14002_v26 = vpop.f32.mrb[55].mxu1 }
 0x1d1   :  { %v3211_v9 = vcombine.high %v2667_v49, %v2667_v49  ;;  %v3218_v55 = vrot.slane %v2667_v49, %v12796_v43  ;;  %v2729_v29 = vmax.f32 %v2553_v36, %v2557_v52  ;;  %v13996_v11 = vmax.f32 %v2428_v10, %v2432_v6  ;;  %16435 = vst [vmem:[#allocation14_spill] sm:$0xff] %v14002_v26 }
 0x1d2   :  { %v4299_v39 = vcombine.high %v2731_v25, %v2731_v25  ;;  %v4306_v45 = vrot.slane %v2731_v25, %v12796_v43  ;;  %v3177_v53 = vcombine.high %v2665_v12, %v2665_v12  ;;  %v3184_v22 = vrot.slane %v2665_v12, %v12796_v43 }
 0x1d3   :  { %v3225_v14 = vrot.slane %v3211_v9, %v12796_v43  ;;  %v3226_v16 = vcombine.high %v3218_v55, %v3218_v55  ;;  %v11005_v7 = vrot.slane %v3218_v55, 9  ;;  %v4265_v30 = vcombine.high %v2729_v29, %v2729_v29 }
 0x1d4   :  { %v4313_v44 = vrot.slane %v4299_v39, %v12796_v43  ;;  %v4314_v36 = vcombine.high %v4306_v45, %v4306_v45  ;;  %v11261_v10 = vrot.slane %v4306_v45, 9  ;;  %v3191_v1 = vrot.slane %v3177_v53, %v12796_v43 }
 0x1d5   :  { %v3227_v42 = vcombine.high %v3225_v14, %v3225_v14  ;;  %v11006_v49 = vrot.slane %v3226_v16, 9  ;;  %v11007_v52 = vrot.slane %v3225_v14, 9  ;;  %v7201_v6 = vmax.f32 %v3218_v55, %v11005_v7 }
 0x1d6   :  { %v4315_v20 = vcombine.high %v4313_v44, %v4313_v44  ;;  %v11262_v25 = vrot.slane %v4314_v36, 9  ;;  %v11263_v60 = vrot.slane %v4313_v44, 9  ;;  %v7457_v41 = vmax.f32 %v4306_v45, %v11261_v10 }
 0x1d7   :  { %v11008_v54 = vrot.slane %v3227_v42, 9  ;;  %v7202_v9 = vmax.f32 %v3226_v16, %v11006_v49  ;;  %v7203_v58 = vmax.f32 %v3225_v14, %v11007_v52  ;;  %v8444_v12 = vrot.slane %v7201_v6, %v12942_v59 }
 0x1d8   :  { %v11264_v26 = vrot.slane %v4315_v20, 9  ;;  %v7458_v39 = vmax.f32 %v4314_v36, %v11262_v25  ;;  %v7459_v15 = vmax.f32 %v4313_v44, %v11263_v60  ;;  %v3192_v51 = vcombine.high %v3184_v22, %v3184_v22 }
 0x1d9   :  { %v7204_v8 = vmax.f32 %v3227_v42, %v11008_v54  ;;  %v8448_v53 = vrot.slane %v7202_v9, %v12942_v59  ;;  %v8452_v61 = vrot.slane %v7203_v58, %v12942_v59  ;;  %v9468_v7 = vrot.slane %v7457_v41, %v12942_v59 }
 0x1da   :  { %v14011_v55 = vmax.f32 %v4315_v20, %v11264_v26  ;;  %v9472_v45 = vrot.slane %v7458_v39, %v12942_v59  ;;  %v3193_v16 = vcombine.high %v3191_v1, %v3191_v1  ;;  %v9476_v10 = vrot.slane %v7459_v15, %v12942_v59  ;;  %v14030_v39 = vpop.f32.mrb[56].mxu0 }
 0x1db   :  { %v10271_v14 = vsel %vm10201_vm3, %v8448_v53, %v8444_v12  ;;  %v10997_v49 = vrot.slane %v3184_v22, 9  ;;  %v10998_v36 = vrot.slane %v3192_v51, 9  ;;  %v8456_v54 = vrot.slane %v7204_v8, %v12942_v59  ;;  %16436 = vst [vmem:[#allocation15_spill] sm:$0xff] %v14030_v39 }
 0x1dc   :  { %v10272_v44 = vsel %vm10203_vm4, %v8452_v61, %v10271_v14  ;;  %v9480_v58 = vrot.slane %v14011_v55, %v12942_v59  ;;  %v10999_v26 = vrot.slane %v3191_v1, 9  ;;  %v10495_v42 = vsel %vm10201_vm3, %v9472_v45, %v9468_v7 }
 0x1dd   :  { %v11000_v41 = vrot.slane %v3193_v16, 9  ;;  %v7193_v52 = vmax.f32 %v3184_v22, %v10997_v49  ;;  %v7194_v6 = vmax.f32 %v3192_v51, %v10998_v36  ;;  %v4272_v25 = vrot.slane %v2729_v29, %v12796_v43 }
 0x1de   :  { %v7195_v20 = vmax.f32 %v3191_v1, %v10999_v26  ;;  %v4279_v15 = vrot.slane %v4265_v30, %v12796_v43  ;;  %v3228_v60 = vcombine.high %v13996_v11, %v13996_v11  ;;  %v3235_v12 = vrot.slane %v13996_v11, %v12796_v43  ;;  %v14037_v11 = vpop.f32.mrb[56].mxu1 }
 0x1df   :  { %v7196_v8 = vmax.f32 %v3193_v16, %v11000_v41  ;;  %v8412_v61 = vrot.slane %v7193_v52, %v12942_v59  ;;  %v8416_v9 = vrot.slane %v7194_v6, %v12942_v59  ;;  %v4280_v22 = vcombine.high %v4272_v25, %v4272_v25  ;;  %16437 = vst [vmem:[#allocation16_spill] sm:$0xff] %v14037_v11 }
 0x1e0   :  { %v8420_v51 = vrot.slane %v7195_v20, %v12942_v59  ;;  %v4281_v1 = vcombine.high %v4279_v15, %v4279_v15  ;;  %v11253_v29 = vrot.slane %v4272_v25, 9  ;;  %v10496_v30 = vsel %vm10203_vm4, %v9476_v10, %v10495_v42 }
 0x1e1   :  { %v10264_v53 = vsel %vm10201_vm3, %v8416_v9, %v8412_v61  ;;  %v11255_v55 = vrot.slane %v4279_v15, 9  ;;  %v3242_v7 = vrot.slane %v3228_v60, %v12796_v43  ;;  %v8424_v45 = vrot.slane %v7196_v8, %v12942_v59 }
 0x1e2   :  { %v11254_v16 = vrot.slane %v4280_v22, 9  ;;  %v11256_v14 = vrot.slane %v4281_v1, 9  ;;  %v7449_v49 = vmax.f32 %v4272_v25, %v11253_v29  ;;  %v3243_v26 = vcombine.high %v3235_v12, %v3235_v12 }
 0x1e3   :  { %v7451_v36 = vmax.f32 %v4279_v15, %v11255_v55  ;;  %v3244_v41 = vcombine.high %v3242_v7, %v3242_v7  ;;  %v11009_v52 = vrot.slane %v3235_v12, 9  ;;  %v10265_v6 = vsel %vm10203_vm4, %v8420_v51, %v10264_v53 }
 0x1e4   :  { %v7450_v20 = vmax.f32 %v4280_v22, %v11254_v16  ;;  %v14040_v10 = vmax.f32 %v4281_v1, %v11256_v14  ;;  %v11011_v42 = vrot.slane %v3242_v7, 9  ;;  %v11010_v60 = vrot.slane %v3243_v26, 9  ;;  %v14051_v16 = vpop.f32.mrb[57].mxu0  ;;  %v14053_v14 = vpop.f32.mrb[57].mxu1 }
 0x1e5   :  { %v9444_v61 = vrot.slane %v7451_v36, %v12942_v59  ;;  %v11012_v9 = vrot.slane %v3244_v41, 9  ;;  %v7205_v8 = vmax.f32 %v3235_v12, %v11009_v52  ;;  %v9436_v39 = vrot.slane %v7449_v49, %v12942_v59 }
 0x1e6   :  { %v9440_v25 = vrot.slane %v7450_v20, %v12942_v59  ;;  %v7207_v29 = vmax.f32 %v3242_v7, %v11011_v42  ;;  %v10273_v15 = vsel %vm10205_vm5, %v8456_v54, %v10272_v44  ;;  %v7206_v55 = vmax.f32 %v3243_v26, %v11010_v60  ;;  %v14066_v26 = vpop.f32.mrb[58].mxu0 }
 0x1e7   :  { %v7208_v11 = vmax.f32 %v3244_v41, %v11012_v9  ;;  %v8460_v51 = vrot.slane %v7205_v8, %v12942_v59  ;;  %v16438_v22 = vmax.f32 %v13983_v34, 0.0  ;;  %v16439_v1 = vmax.f32 %v13950_v23, 0.0  ;;  %v14068_v41 = vpop.f32.mrb[58].mxu1 }
 0x1e8   :  { %v10488_v7 = vsel %vm10201_vm3, %v9440_v25, %v9436_v39  ;;  %v8468_v54 = vrot.slane %v7207_v29, %v12942_v59  ;;  %v2430_v44 = vmax.f32 %v14000_v31, 0.0  ;;  %v8464_v34 = vrot.slane %v7206_v55, %v12942_v59 }
 0x1e9   :  { %v2732_v53 = vmax.f32 %v16439_v1, %v16438_v22  ;;  %v14061_v49 = vsel %vm10203_vm4, %v9444_v61, %v10488_v7  ;;  %v10274_v23 = vsel %vm10207_vm6, %v8460_v51, %v10273_v15  ;;  %v10497_v36 = vsel %vm10205_vm5, %v9480_v58, %v10496_v30  ;;  %v16441_v58 = vld [vmem:[#allocation17_spill] sm:$0xff]  ;;  %v14082_v15 = vpop.f32.mrb[59].mxu0 }
 0x1ea   :  { %v8472_v52 = vrot.slane %v7208_v11, %v12942_v59  ;;  %v16440_v31 = vmax.f32 %v13960_v37, 0.0  ;;  %v10275_v61 = vsel %vm10209_vm7, %v8464_v34, %v10274_v23  ;;  %v10266_v60 = vsel %vm10205_vm5, %v8424_v45, %v10265_v6  ;;  %v14084_v37 = vpop.f32.mrb[59].mxu1 }
 0x1eb   :  { %v4316_v39 = vcombine.high %v2732_v53, %v2732_v53  ;;  %v4323_v20 = vrot.slane %v2732_v53, %v12796_v43  ;;  %v2302_v9 = vadd.f32 %v13915_v0, %v13991_v5  ;;  %v1916_v30 = vmul.f32 %v13921_v32, %v16441_v58 }
 0x1ec   :  { %v2666_v42 = vmax.f32 %v16440_v31, %v2430_v44  ;;  %v10276_v8 = vsel %vm10211_vm8, %v8468_v54, %v10275_v61  ;;  %v16442_v34 = vmax.f32 %v13967_v18, 0.0  ;;  %v14098_v18 = vpop.f32.mrb[60].mxu1 }
 0x1ed   :  { %v4330_v11 = vrot.slane %v4316_v39, %v12796_v43  ;;  %v4331_v25 = vcombine.high %v4323_v20, %v4323_v20  ;;  %v11265_v29 = vrot.slane %v4323_v20, 9  ;;  %v10277_v55 = vsel %vm10213_vm9, %v8472_v52, %v10276_v8 }
 0x1ee   :  { %v3194_v51 = vcombine.high %v2666_v42, %v2666_v42  ;;  %v3201_v45 = vrot.slane %v2666_v42, %v12796_v43  ;;  %v2558_v6 = vmax.f32 %v2302_v9, 0.0  ;;  %10730 = vst.msk [vmem:[#allocation2 + $0x48] sm:$0xff] %vm10720_vm10, %v10277_v55 }
 0x1ef   :  { %v4332_v5 = vcombine.high %v4330_v11, %v4330_v11  ;;  %v11266_v22 = vrot.slane %v4331_v25, 9  ;;  %v11267_v1 = vrot.slane %v4330_v11, 9  ;;  %v7461_v53 = vmax.f32 %v4323_v20, %v11265_v29 }
 0x1f0   :  { %v3208_v7 = vrot.slane %v3194_v51, %v12796_v43  ;;  %v3209_v54 = vcombine.high %v3201_v45, %v3201_v45  ;;  %v11001_v44 = vrot.slane %v3201_v45, 9  ;;  %v2730_v23 = vmax.f32 %v16442_v34, %v2558_v6  ;;  %v14096_v51 = vpop.f32.mrb[60].mxu0 }
 0x1f1   :  { %v11268_v39 = vrot.slane %v4332_v5, 9  ;;  %v7462_v31 = vmax.f32 %v4331_v25, %v11266_v22  ;;  %v7463_v52 = vmax.f32 %v4330_v11, %v11267_v1  ;;  %v9484_v61 = vrot.slane %v7461_v53, %v12942_v59  ;;  %v14101_v1 = vpop.f32.mrb[61].mxu0 }
 0x1f2   :  { %v3210_v42 = vcombine.high %v3208_v7, %v3208_v7  ;;  %v11002_v9 = vrot.slane %v3209_v54, 9  ;;  %v11003_v58 = vrot.slane %v3208_v7, 9  ;;  %v7197_v8 = vmax.f32 %v3201_v45, %v11001_v44 }
 0x1f3   :  { %v7464_v55 = vmax.f32 %v4332_v5, %v11268_v39  ;;  %v9488_v12 = vrot.slane %v7462_v31, %v12942_v59  ;;  %v9492_v20 = vrot.slane %v7463_v52, %v12942_v59  ;;  %v10498_v29 = vsel %vm10207_vm6, %v9484_v61, %v10497_v36 }
 0x1f4   :  { %v11004_v6 = vrot.slane %v3210_v42, 9  ;;  %v7198_v25 = vmax.f32 %v3209_v54, %v11002_v9  ;;  %v7199_v11 = vmax.f32 %v3208_v7, %v11003_v58  ;;  %v8428_v22 = vrot.slane %v7197_v8, %v12942_v59  ;;  %v14109_v54 = vpop.f32.mrb[61].mxu1 }
 0x1f5   :  { %v9496_v45 = vrot.slane %v7464_v55, %v12942_v59  ;;  %v10499_v5 = vsel %vm10209_vm7, %v9488_v12, %v10498_v29  ;;  %v4282_v53 = vcombine.high %v2730_v23, %v2730_v23  ;;  %v4289_v44 = vrot.slane %v2730_v23, %v12796_v43 }
 0x1f6   :  { %v10500_v36 = vsel %vm10211_vm8, %v9492_v20, %v10499_v5  ;;  %v7200_v34 = vmax.f32 %v3210_v42, %v11004_v6  ;;  %v8432_v39 = vrot.slane %v7198_v25, %v12942_v59  ;;  %v8436_v31 = vrot.slane %v7199_v11, %v12942_v59 }
 0x1f7   :  { %v10501_v7 = vsel %vm10213_vm9, %v9496_v45, %v10500_v36  ;;  %v10267_v52 = vsel %vm10207_vm6, %v8428_v22, %v10266_v60  ;;  %v4296_v61 = vrot.slane %v4282_v53, %v12796_v43  ;;  %v4297_v9 = vcombine.high %v4289_v44, %v4289_v44  ;;  %v16444_v22 = vld [vmem:[#allocation18_spill] sm:$0xff] }
 0x1f8   :  { %10762 = vst.msk [vmem:[#allocation2 + $0x148] sm:$0xff] %vm10720_vm10, %v10501_v7  ;;  %v8440_v12 = vrot.slane %v7200_v34, %v12942_v59  ;;  %v10268_v23 = vsel %vm10209_vm7, %v8432_v39, %v10267_v52  ;;  %v11257_v42 = vrot.slane %v4289_v44, 9  ;;  %v14118_v58 = vadd.f32 %v13915_v0, %v1916_v30  ;;  %v14138_v39 = vpop.f32.mrb[62].mxu0 }
 0x1f9   :  { %v10269_v8 = vsel %vm10211_vm8, %v8436_v31, %v10268_v23  ;;  %v4298_v55 = vcombine.high %v4296_v61, %v4296_v61  ;;  %v11258_v20 = vrot.slane %v4297_v9, 9  ;;  %v11259_v29 = vrot.slane %v4296_v61, 9 }
 0x1fa   :  { %v10270_v60 = vsel %vm10213_vm9, %v8440_v12, %v10269_v8  ;;  %v7453_v6 = vmax.f32 %v4289_v44, %v11257_v42  ;;  %v16443_v25 = vrot.slane %v14040_v10, %v12942_v59  ;;  %v2044_v45 = vmul.f32 %v13921_v32, %v16444_v22 }
 0x1fb   :  { %10729 = vst.msk [vmem:[#allocation2 + $0x40] sm:$0xff] %vm10720_vm10, %v10270_v60  ;;  %v11260_v30 = vrot.slane %v4298_v55, 9  ;;  %v7454_v5 = vmax.f32 %v4297_v9, %v11258_v20  ;;  %v7455_v53 = vmax.f32 %v4296_v61, %v11259_v29  ;;  %v1914_v36 = vmul.f32 %v13921_v32, %v13631_v40 }
 0x1fc   :  { %v10490_v11 = vsel %vm10205_vm5, %v16443_v25, %v14061_v49  ;;  %v9452_v34 = vrot.slane %v7453_v6, %v12942_v59  ;;  %v2307_v44 = vadd.f32 %v13915_v0, %v2044_v45  ;;  %v2042_v10 = vmul.f32 %v13921_v32, %v13633_v62  ;;  %v14146_v62 = vpop.f32.mrb[62].mxu1 }
 0x1fd   :  { %v1917_v49 = vmul.f32 %v13921_v32, %v13643_v46  ;;  %v7456_v31 = vmax.f32 %v4298_v55, %v11260_v30  ;;  %v9456_v7 = vrot.slane %v7454_v5, %v12942_v59  ;;  %v2435_v52 = vmax.f32 %v14118_v58, 0.0 }
 0x1fe   :  { %v2177_v61 = vadd.f32 %v13915_v0, %v1914_v36  ;;  %v9460_v40 = vrot.slane %v7455_v53, %v12942_v59  ;;  %v10491_v9 = vsel %vm10207_vm6, %v9452_v34, %v10490_v11  ;;  %v2563_v12 = vmax.f32 %v2307_v44, 0.0 }
 0x1ff   :  { %v2305_v23 = vadd.f32 %v13915_v0, %v2042_v10  ;;  %v9464_v46 = vrot.slane %v7456_v31, %v12942_v59  ;;  %v10492_v42 = vsel %vm10209_vm7, %v9456_v7, %v10491_v9  ;;  %v2180_v8 = vadd.f32 %v13915_v0, %v1917_v49 }
 0x200   :  { %v2045_v58 = vmul.f32 %v13921_v32, %v13645_v24  ;;  %v10493_v55 = vsel %vm10211_vm8, %v9460_v40, %v10492_v42  ;;  %v2433_v20 = vmax.f32 %v2177_v61, 0.0  ;;  %v1915_v60 = vmul.f32 %v13921_v32, %v13667_v28 }
 0x201   :  { %v2561_v29 = vmax.f32 %v2305_v23, 0.0  ;;  %v10494_v6 = vsel %vm10213_vm9, %v9464_v46, %v10493_v55  ;;  %v2043_v11 = vmul.f32 %v13921_v32, %v13669_v4  ;;  %v1920_v22 = vmul.f32 %v13921_v32, %v13686_v50 }
 0x202   :  { %v14158_v25 = vadd.f32 %v13915_v0, %v2045_v58  ;;  %10761 = vst.msk [vmem:[#allocation2 + $0x140] sm:$0xff] %vm10720_vm10, %v10494_v6  ;;  %v14166_v24 = vadd.f32 %v13915_v0, %v1915_v60  ;;  %v2048_v45 = vmul.f32 %v13921_v32, %v13688_v33  ;;  %v1918_v28 = vmul.f32 %v13921_v32, %v13690_v21  ;;  %v16446_v60 = vld [vmem:[#allocation10_spill] sm:$0xff] }
 0x203   :  { %v2046_v30 = vmul.f32 %v13921_v32, %v13696_v3  ;;  %v2436_v5 = vmax.f32 %v2180_v8, 0.0  ;;  %v14175_v4 = vadd.f32 %v13915_v0, %v2043_v11  ;;  %v2183_v50 = vadd.f32 %v13915_v0, %v1920_v22 }
 0x204   :  { %v1921_v53 = vmul.f32 %v13921_v32, %v13712_v2  ;;  %v2311_v34 = vadd.f32 %v13915_v0, %v2048_v45  ;;  %v2181_v33 = vadd.f32 %v13915_v0, %v1918_v28  ;;  %v2049_v49 = vmul.f32 %v13921_v32, %v13723_v17  ;;  %v16445_v2 = vld [vmem:[#allocation9_spill] sm:$0xff]  ;;  %v14198_v17 = vpop.f32.mrb[63].mxu0 }
 0x205   :  { %v2309_v21 = vadd.f32 %v13915_v0, %v2046_v30  ;;  %v2439_v3 = vmax.f32 %v2183_v50, 0.0  ;;  %v1919_v40 = vmul.f32 %v13921_v32, %v16445_v2  ;;  %v14196_v6 = vmul.f32 %v13921_v32, %v16446_v60  ;;  %16447 = vst [vmem:[#allocation7_spill] sm:$0xff] %v14198_v17 }
 0x206   :  { %v2184_v10 = vadd.f32 %v13915_v0, %v1921_v53  ;;  %v2567_v31 = vmax.f32 %v2311_v34, 0.0  ;;  %v2437_v7 = vmax.f32 %v2181_v33, 0.0  ;;  %v14192_v42 = vadd.f32 %v13915_v0, %v2049_v49 }
 0x207   :  { %v2565_v61 = vmax.f32 %v2309_v21, 0.0  ;;  %v2671_v23 = vmax.f32 %v2435_v52, %v2439_v3  ;;  %v14204_v52 = vadd.f32 %v13915_v0, %v1919_v40 }
 0x208   :  { %v2440_v46 = vmax.f32 %v2184_v10, 0.0  ;;  %v2735_v8 = vmax.f32 %v2563_v12, %v2567_v31  ;;  %v2669_v58 = vmax.f32 %v2433_v20, %v2437_v7 }
 0x209   :  { %v2733_v55 = vmax.f32 %v2561_v29, %v2565_v61  ;;  %v3279_v11 = vcombine.high %v2671_v23, %v2671_v23  ;;  %v3286_v22 = vrot.slane %v2671_v23, %v12796_v43  ;;  %v14208_v29 = vpop.f32.mrb[63].mxu1 }
 0x20a   :  { %v14201_v45 = vmax.f32 %v2436_v5, %v2440_v46  ;;  %v4367_v28 = vcombine.high %v2735_v8, %v2735_v8  ;;  %v4374_v30 = vrot.slane %v2735_v8, %v12796_v43  ;;  %v3245_v12 = vcombine.high %v2669_v58, %v2669_v58  ;;  %16448 = vst [vmem:[#allocation8_spill] sm:$0xff] %v14208_v29 }
 0x20b   :  { %v3293_v50 = vrot.slane %v3279_v11, %v12796_v43  ;;  %v3294_v53 = vcombine.high %v3286_v22, %v3286_v22  ;;  %v11021_v34 = vrot.slane %v3286_v22, 9  ;;  %v3252_v33 = vrot.slane %v2669_v58, %v12796_v43 }
 0x20c   :  { %v4381_v5 = vrot.slane %v4367_v28, %v12796_v43  ;;  %v4382_v21 = vcombine.high %v4374_v30, %v4374_v30  ;;  %v11277_v3 = vrot.slane %v4374_v30, 9  ;;  %v3259_v10 = vrot.slane %v3245_v12, %v12796_v43 }
 0x20d   :  { %v3295_v49 = vcombine.high %v3293_v50, %v3293_v50  ;;  %v11022_v31 = vrot.slane %v3294_v53, 9  ;;  %v11023_v7 = vrot.slane %v3293_v50, 9  ;;  %v7217_v61 = vmax.f32 %v3286_v22, %v11021_v34 }
 0x20e   :  { %v4383_v2 = vcombine.high %v4381_v5, %v4381_v5  ;;  %v11278_v40 = vrot.slane %v4382_v21, 9  ;;  %v11279_v23 = vrot.slane %v4381_v5, 9  ;;  %v7473_v46 = vmax.f32 %v4374_v30, %v11277_v3 }
 0x20f   :  { %v11024_v8 = vrot.slane %v3295_v49, 9  ;;  %v7218_v60 = vmax.f32 %v3294_v53, %v11022_v31  ;;  %v7219_v11 = vmax.f32 %v3293_v50, %v11023_v7  ;;  %v4333_v9 = vcombine.high %v2733_v55, %v2733_v55 }
 0x210   :  { %v8508_v58 = vrot.slane %v7217_v61, %v12942_v59  ;;  %v11280_v44 = vrot.slane %v4383_v2, 9  ;;  %v7474_v28 = vmax.f32 %v4382_v21, %v11278_v40  ;;  %v7475_v36 = vmax.f32 %v4381_v5, %v11279_v23 }
 0x211   :  { %v7220_v20 = vmax.f32 %v3295_v49, %v11024_v8  ;;  %v8512_v12 = vrot.slane %v7218_v60, %v12942_v59  ;;  %v8516_v29 = vrot.slane %v7219_v11, %v12942_v59  ;;  %v3260_v17 = vcombine.high %v3252_v33, %v3252_v33 }
 0x212   :  { %v14217_v22 = vmax.f32 %v4383_v2, %v11280_v44  ;;  %v9532_v34 = vrot.slane %v7473_v46, %v12942_v59  ;;  %v9536_v30 = vrot.slane %v7474_v28, %v12942_v59  ;;  %v3261_v53 = vcombine.high %v3259_v10, %v3259_v10  ;;  %v14236_v28 = vpop.f32.mrb[64].mxu0 }
 0x213   :  { %v10285_v50 = vsel %vm10201_vm3, %v8512_v12, %v8508_v58  ;;  %v9540_v3 = vrot.slane %v7475_v36, %v12942_v59  ;;  %v11013_v31 = vrot.slane %v3252_v33, 9  ;;  %v11014_v21 = vrot.slane %v3260_v17, 9  ;;  %16449 = vst [vmem:[#allocation17_spill] sm:$0xff] %v14236_v28 }
 0x214   :  { %v8520_v5 = vrot.slane %v7220_v20, %v12942_v59  ;;  %v10286_v49 = vsel %vm10203_vm4, %v8516_v29, %v10285_v50  ;;  %v9544_v7 = vrot.slane %v14217_v22, %v12942_v59  ;;  %v11015_v44 = vrot.slane %v3259_v10, 9 }
 0x215   :  { %v10509_v61 = vsel %vm10201_vm3, %v9536_v30, %v9532_v34  ;;  %v11016_v2 = vrot.slane %v3261_v53, 9  ;;  %v7209_v40 = vmax.f32 %v3252_v33, %v11013_v31  ;;  %v7210_v23 = vmax.f32 %v3260_v17, %v11014_v21 }
 0x216   :  { %v7211_v46 = vmax.f32 %v3259_v10, %v11015_v44  ;;  %v4340_v8 = vrot.slane %v2733_v55, %v12796_v43  ;;  %v4347_v36 = vrot.slane %v4333_v9, %v12796_v43  ;;  %v3296_v60 = vcombine.high %v14201_v45, %v14201_v45 }
 0x217   :  { %v7212_v20 = vmax.f32 %v3261_v53, %v11016_v2  ;;  %v8476_v29 = vrot.slane %v7209_v40, %v12942_v59  ;;  %v8480_v11 = vrot.slane %v7210_v23, %v12942_v59  ;;  %v3303_v58 = vrot.slane %v14201_v45, %v12796_v43  ;;  %v14243_v45 = vpop.f32.mrb[64].mxu1 }
 0x218   :  { %v8484_v17 = vrot.slane %v7211_v46, %v12942_v59  ;;  %v4348_v33 = vcombine.high %v4340_v8, %v4340_v8  ;;  %v4349_v10 = vcombine.high %v4347_v36, %v4347_v36  ;;  %v11269_v55 = vrot.slane %v4340_v8, 9  ;;  %16450 = vst [vmem:[#allocation18_spill] sm:$0xff] %v14243_v45 }
 0x219   :  { %v10510_v9 = vsel %vm10203_vm4, %v9540_v3, %v10509_v61  ;;  %v10278_v12 = vsel %vm10201_vm3, %v8480_v11, %v8476_v29  ;;  %v11271_v22 = vrot.slane %v4347_v36, 9  ;;  %v3310_v34 = vrot.slane %v3296_v60, %v12796_v43 }
 0x21a   :  { %v8488_v30 = vrot.slane %v7212_v20, %v12942_v59  ;;  %v11270_v53 = vrot.slane %v4348_v33, 9  ;;  %v11272_v50 = vrot.slane %v4349_v10, 9  ;;  %v7465_v31 = vmax.f32 %v4340_v8, %v11269_v55 }
 0x21b   :  { %v7467_v21 = vmax.f32 %v4347_v36, %v11271_v22  ;;  %v3311_v44 = vcombine.high %v3303_v58, %v3303_v58  ;;  %v3312_v2 = vcombine.high %v3310_v34, %v3310_v34  ;;  %v11025_v40 = vrot.slane %v3303_v58, 9 }
 0x21c   :  { %v10279_v23 = vsel %vm10203_vm4, %v8484_v17, %v10278_v12  ;;  %v7466_v46 = vmax.f32 %v4348_v33, %v11270_v53  ;;  %v14246_v3 = vmax.f32 %v4349_v10, %v11272_v50  ;;  %v11027_v61 = vrot.slane %v3310_v34, 9  ;;  %v14257_v53 = vpop.f32.mrb[65].mxu0  ;;  %v14259_v50 = vpop.f32.mrb[65].mxu1 }
 0x21d   :  { %v9508_v29 = vrot.slane %v7467_v21, %v12942_v59  ;;  %v11026_v60 = vrot.slane %v3311_v44, 9  ;;  %v11028_v11 = vrot.slane %v3312_v2, 9  ;;  %v7221_v20 = vmax.f32 %v3303_v58, %v11025_v40 }
 0x21e   :  { %v9500_v28 = vrot.slane %v7465_v31, %v12942_v59  ;;  %v9504_v8 = vrot.slane %v7466_v46, %v12942_v59  ;;  %v7223_v55 = vmax.f32 %v3310_v34, %v11027_v61  ;;  %v10287_v36 = vsel %vm10205_vm5, %v8520_v5, %v10286_v49 }
 0x21f   :  { %v7222_v22 = vmax.f32 %v3311_v44, %v11026_v60  ;;  %v7224_v45 = vmax.f32 %v3312_v2, %v11028_v11  ;;  %v8524_v17 = vrot.slane %v7221_v20, %v12942_v59  ;;  %v16451_v33 = vmax.f32 %v14192_v42, 0.0  ;;  %v14272_v44 = vpop.f32.mrb[66].mxu0  ;;  %v14274_v2 = vpop.f32.mrb[66].mxu1 }
 0x220   :  { %v16452_v10 = vmax.f32 %v14158_v25, 0.0  ;;  %v9512_v58 = vrot.slane %v14246_v3, %v12942_v59  ;;  %v10502_v34 = vsel %vm10201_vm3, %v9504_v8, %v9500_v28  ;;  %v8532_v5 = vrot.slane %v7223_v55, %v12942_v59  ;;  %v14288_v55 = vpop.f32.mrb[67].mxu0 }
 0x221   :  { %v2438_v49 = vmax.f32 %v14204_v52, 0.0  ;;  %v14267_v31 = vsel %vm10203_vm4, %v9508_v29, %v10502_v34  ;;  %v8528_v42 = vrot.slane %v7222_v22, %v12942_v59  ;;  %v10288_v25 = vsel %vm10207_vm6, %v8524_v17, %v10287_v36 }
 0x222   :  { %v2736_v12 = vmax.f32 %v16452_v10, %v16451_v33  ;;  %v10511_v21 = vsel %vm10205_vm5, %v9544_v7, %v10510_v9  ;;  %v8536_v40 = vrot.slane %v7224_v45, %v12942_v59  ;;  %v16453_v52 = vmax.f32 %v14166_v24, 0.0  ;;  %v14290_v24 = vpop.f32.mrb[67].mxu1 }
 0x223   :  { %v10289_v29 = vsel %vm10209_vm7, %v8528_v42, %v10288_v25  ;;  %v10280_v60 = vsel %vm10205_vm5, %v8488_v30, %v10279_v23  ;;  %v2310_v11 = vadd.f32 %v13915_v0, %v14196_v6  ;;  %v1924_v7 = vmul.f32 %v13921_v32, %v13816_v13 }
 0x224   :  { %v4384_v28 = vcombine.high %v2736_v12, %v2736_v12  ;;  %v4391_v46 = vrot.slane %v2736_v12, %v12796_v43  ;;  %v2670_v61 = vmax.f32 %v16453_v52, %v2438_v49  ;;  %v10290_v9 = vsel %vm10211_vm8, %v8532_v5, %v10289_v29 }
 0x225   :  { %v10291_v36 = vsel %vm10213_vm9, %v8536_v40, %v10290_v9  ;;  %v2566_v23 = vmax.f32 %v2310_v11, 0.0  ;;  %v16454_v5 = vmax.f32 %v14175_v4, 0.0  ;;  %v14304_v4 = vpop.f32.mrb[68].mxu1  ;;  %v2050_v3 = vmul.f32 %v13921_v32, %v13842_v63 }
 0x226   :  { %v4398_v45 = vrot.slane %v4384_v28, %v12796_v43  ;;  %v4399_v20 = vcombine.high %v4391_v46, %v4391_v46  ;;  %v11281_v8 = vrot.slane %v4391_v46, 9  ;;  %v3262_v22 = vcombine.high %v2670_v61, %v2670_v61  ;;  %10732 = vst.msk [vmem:[#allocation2 + $0x58] sm:$0xff] %vm10720_vm10, %v10291_v36 }
 0x227   :  { %v3269_v30 = vrot.slane %v2670_v61, %v12796_v43  ;;  %v2734_v49 = vmax.f32 %v16454_v5, %v2566_v23 }
 0x228   :  { %v4400_v6 = vcombine.high %v4398_v45, %v4398_v45  ;;  %v11282_v13 = vrot.slane %v4399_v20, 9  ;;  %v11283_v17 = vrot.slane %v4398_v45, 9  ;;  %v7477_v33 = vmax.f32 %v4391_v46, %v11281_v8 }
 0x229   :  { %v3276_v10 = vrot.slane %v3262_v22, %v12796_v43  ;;  %v3277_v12 = vcombine.high %v3269_v30, %v3269_v30  ;;  %v11017_v34 = vrot.slane %v3269_v30, 9  ;;  %v14302_v22 = vpop.f32.mrb[68].mxu0 }
 0x22a   :  { %v11284_v42 = vrot.slane %v4400_v6, 9  ;;  %v7478_v25 = vmax.f32 %v4399_v20, %v11282_v13  ;;  %v7479_v40 = vmax.f32 %v4398_v45, %v11283_v17  ;;  %v9548_v28 = vrot.slane %v7477_v33, %v12942_v59  ;;  %v14307_v17 = vpop.f32.mrb[69].mxu0 }
 0x22b   :  { %v3278_v52 = vcombine.high %v3276_v10, %v3276_v10  ;;  %v11018_v61 = vrot.slane %v3277_v12, 9  ;;  %v11019_v29 = vrot.slane %v3276_v10, 9  ;;  %v7213_v11 = vmax.f32 %v3269_v30, %v11017_v34 }
 0x22c   :  { %v7480_v9 = vmax.f32 %v4400_v6, %v11284_v42  ;;  %v9552_v36 = vrot.slane %v7478_v25, %v12942_v59  ;;  %v9556_v46 = vrot.slane %v7479_v40, %v12942_v59  ;;  %v10512_v8 = vsel %vm10207_vm6, %v9548_v28, %v10511_v21 }
 0x22d   :  { %v11020_v23 = vrot.slane %v3278_v52, 9  ;;  %v7214_v20 = vmax.f32 %v3277_v12, %v11018_v61  ;;  %v7215_v45 = vmax.f32 %v3276_v10, %v11019_v29  ;;  %v8492_v13 = vrot.slane %v7213_v11, %v12942_v59  ;;  %v14315_v12 = vpop.f32.mrb[69].mxu1 }
 0x22e   :  { %v9560_v30 = vrot.slane %v7480_v9, %v12942_v59  ;;  %v10513_v6 = vsel %vm10209_vm7, %v9552_v36, %v10512_v8  ;;  %v4350_v33 = vcombine.high %v2734_v49, %v2734_v49  ;;  %v4357_v34 = vrot.slane %v2734_v49, %v12796_v43  ;;  %v14352_v63 = vpop.f32.mrb[70].mxu1 }
 0x22f   :  { %v10514_v21 = vsel %vm10211_vm8, %v9556_v46, %v10513_v6  ;;  %v7216_v5 = vmax.f32 %v3278_v52, %v11020_v23  ;;  %v8496_v42 = vrot.slane %v7214_v20, %v12942_v59  ;;  %v8500_v25 = vrot.slane %v7215_v45, %v12942_v59  ;;  %v16455_v45 = vld [vmem:[#allocation11_spill] sm:$0xff]  ;;  %16457 = vst [vmem:[#allocation10_spill] sm:$0xff] %v14352_v63 }
 0x230   :  { %v10515_v10 = vsel %vm10213_vm9, %v9560_v30, %v10514_v21  ;;  %v10281_v40 = vsel %vm10207_vm6, %v8492_v13, %v10280_v60  ;;  %v4364_v28 = vrot.slane %v4350_v33, %v12796_v43  ;;  %v4365_v61 = vcombine.high %v4357_v34, %v4357_v34 }
 0x231   :  { %10764 = vst.msk [vmem:[#allocation2 + $0x158] sm:$0xff] %vm10720_vm10, %v10515_v10  ;;  %v8504_v49 = vrot.slane %v7216_v5, %v12942_v59  ;;  %v10282_v29 = vsel %vm10209_vm7, %v8496_v42, %v10281_v40  ;;  %v11273_v52 = vrot.slane %v4357_v34, 9  ;;  %v14324_v11 = vadd.f32 %v13915_v0, %v1924_v7 }
 0x232   :  { %v10283_v9 = vsel %vm10211_vm8, %v8500_v25, %v10282_v29  ;;  %v4366_v36 = vcombine.high %v4364_v28, %v4364_v28  ;;  %v11274_v46 = vrot.slane %v4365_v61, 9  ;;  %v11275_v8 = vrot.slane %v4364_v28, 9 }
 0x233   :  { %v10284_v60 = vsel %vm10213_vm9, %v8504_v49, %v10283_v9  ;;  %v7469_v23 = vmax.f32 %v4357_v34, %v11273_v52  ;;  %v10504_v20 = vsel %vm10205_vm5, %v9512_v58, %v14267_v31  ;;  %v2052_v13 = vmul.f32 %v13921_v32, %v16455_v45  ;;  %v14344_v31 = vpop.f32.mrb[70].mxu0 }
 0x234   :  { %10731 = vst.msk [vmem:[#allocation2 + $0x50] sm:$0xff] %vm10720_vm10, %v10284_v60  ;;  %v11276_v7 = vrot.slane %v4366_v36, 9  ;;  %v7470_v30 = vmax.f32 %v4365_v61, %v11274_v46  ;;  %v7471_v6 = vmax.f32 %v4364_v28, %v11275_v8  ;;  %v1922_v33 = vmul.f32 %v13921_v32, %v13840_v27  ;;  %16456 = vst [vmem:[#allocation9_spill] sm:$0xff] %v14344_v31 }
 0x235   :  { %v9516_v21 = vrot.slane %v7469_v23, %v12942_v59  ;;  %v2315_v34 = vadd.f32 %v13915_v0, %v2052_v13  ;;  %v1925_v58 = vmul.f32 %v13921_v32, %v13852_v57  ;;  %v2443_v25 = vmax.f32 %v14324_v11, 0.0  ;;  %v14381_v13 = vld [vmem:[%s16355_s2] ss:$0 sm:$0xff] }
 0x236   :  { %v7472_v5 = vmax.f32 %v4366_v36, %v11276_v7  ;;  %v9520_v42 = vrot.slane %v7470_v30, %v12942_v59  ;;  %v2185_v10 = vadd.f32 %v13915_v0, %v1922_v33  ;;  %v9524_v27 = vrot.slane %v7471_v6, %v12942_v59 }
 0x237   :  { %v10505_v40 = vsel %vm10207_vm6, %v9516_v21, %v10504_v20  ;;  %v2571_v28 = vmax.f32 %v2315_v34, 0.0  ;;  %v2313_v61 = vadd.f32 %v13915_v0, %v2050_v3  ;;  %v2188_v29 = vadd.f32 %v13915_v0, %v1925_v58 }
 0x238   :  { %v9528_v57 = vrot.slane %v7472_v5, %v12942_v59  ;;  %v10506_v49 = vsel %vm10209_vm7, %v9520_v42, %v10505_v40  ;;  %v2053_v52 = vmul.f32 %v13921_v32, %v13854_v48  ;;  %v2441_v9 = vmax.f32 %v2185_v10, 0.0  ;;  %v16460_v42 = vld [vmem:[#allocation6_spill] sm:$0xff] }
 0x239   :  { %v10507_v11 = vsel %vm10211_vm8, %v9524_v27, %v10506_v49  ;;  %v2569_v36 = vmax.f32 %v2313_v61, 0.0  ;;  %v1923_v46 = vmul.f32 %v13921_v32, %v13867_v35  ;;  %v2051_v23 = vmul.f32 %v13921_v32, %v13869_v19  ;;  %v16458_v19 = vld [vmem:[#allocation12_spill] sm:$0xff] }
 0x23a   :  { %v10508_v8 = vsel %vm10213_vm9, %v9528_v57, %v10507_v11  ;;  %v14364_v60 = vadd.f32 %v13915_v0, %v2053_v52  ;;  %v1928_v20 = vmul.f32 %v13921_v32, %v13883_v47  ;;  %v2056_v45 = vmul.f32 %v13921_v32, %v13885_v56  ;;  %v16461_v57 = vld [vmem:[#allocation13_spill] sm:$0xff] }
 0x23b   :  { %10763 = vst.msk [vmem:[#allocation2 + $0x150] sm:$0xff] %vm10720_vm10, %v10508_v8  ;;  %v14372_v48 = vadd.f32 %v13915_v0, %v1923_v46  ;;  %v1926_v35 = vmul.f32 %v13921_v32, %v13890_v38  ;;  %v2054_v7 = vmul.f32 %v14381_v13, %v16458_v19  ;;  %v2444_v47 = vmax.f32 %v2188_v29, 0.0  ;;  %v14388_v0 = vld [vmem:[%s16356_s3] ss:$0 sm:$0xff]  ;;  %v14414_v19 = vpop.f32.mrb[71].mxu0 }
 0x23c   :  { %v14391_v30 = vadd.f32 %v14388_v0, %v2051_v23  ;;  %v2191_v56 = vadd.f32 %v14388_v0, %v1928_v20  ;;  %v16459_v38 = vld [vmem:[#allocation5_spill] sm:$0xff]  ;;  %v2319_v33 = vadd.f32 %v14388_v0, %v2056_v45  ;;  %v2057_v10 = vmul.f32 %v14381_v13, %v16460_v42  ;;  %v16462_v45 = vld [vmem:[#allocation14_spill] sm:$0xff]  ;;  %16463 = vst [vmem:[#allocation11_spill] sm:$0xff] %v14414_v19 }
 0x23d   :  { %v1929_v32 = vmul.f32 %v14381_v13, %v16459_v38  ;;  %v2189_v21 = vadd.f32 %v14388_v0, %v1926_v35  ;;  %v2317_v34 = vadd.f32 %v14388_v0, %v2054_v7  ;;  %v1927_v49 = vmul.f32 %v14381_v13, %v16461_v57 }
 0x23e   :  { %v2447_v58 = vmax.f32 %v2191_v56, 0.0  ;;  %v2575_v27 = vmax.f32 %v2319_v33, 0.0  ;;  %v14408_v46 = vadd.f32 %v14388_v0, %v2057_v10  ;;  %v14412_v35 = vmul.f32 %v14381_v13, %v16462_v45 }
 0x23f   :  { %v2192_v5 = vadd.f32 %v14388_v0, %v1929_v32  ;;  %v2445_v40 = vmax.f32 %v2189_v21, 0.0  ;;  %v2573_v61 = vmax.f32 %v2317_v34, 0.0 }
 0x240   :  { %v2675_v52 = vmax.f32 %v2443_v25, %v2447_v58  ;;  %v2739_v8 = vmax.f32 %v2571_v28, %v2575_v27  ;;  %v14420_v25 = vadd.f32 %v14388_v0, %v1927_v49 }
 0x241   :  { %v2448_v11 = vmax.f32 %v2192_v5, 0.0  ;;  %v2673_v23 = vmax.f32 %v2441_v9, %v2445_v40  ;;  %v2737_v20 = vmax.f32 %v2569_v36, %v2573_v61  ;;  %v14424_v36 = vpop.f32.mrb[71].mxu1 }
 0x242   :  { %v3347_v7 = vcombine.high %v2675_v52, %v2675_v52  ;;  %v3354_v56 = vrot.slane %v2675_v52, %v12796_v43  ;;  %v4435_v32 = vcombine.high %v2739_v8, %v2739_v8  ;;  %v4442_v33 = vrot.slane %v2739_v8, %v12796_v43  ;;  %16464 = vst [vmem:[#allocation12_spill] sm:$0xff] %v14424_v36 }
 0x243   :  { %v14417_v38 = vmax.f32 %v2444_v47, %v2448_v11  ;;  %v3313_v28 = vcombine.high %v2673_v23, %v2673_v23  ;;  %v3320_v5 = vrot.slane %v2673_v23, %v12796_v43  ;;  %v4401_v6 = vcombine.high %v2737_v20, %v2737_v20 }
 0x244   :  { %v3361_v21 = vrot.slane %v3347_v7, %v12796_v43  ;;  %v3362_v34 = vcombine.high %v3354_v56, %v3354_v56  ;;  %v11037_v58 = vrot.slane %v3354_v56, 9  ;;  %v4449_v47 = vrot.slane %v4435_v32, %v12796_v43 }
 0x245   :  { %v4450_v42 = vcombine.high %v4442_v33, %v4442_v33  ;;  %v11293_v10 = vrot.slane %v4442_v33, 9  ;;  %v3327_v27 = vrot.slane %v3313_v28, %v12796_v43  ;;  %v3328_v31 = vcombine.high %v3320_v5, %v3320_v5 }
 0x246   :  { %v3363_v40 = vcombine.high %v3361_v21, %v3361_v21  ;;  %v11038_v61 = vrot.slane %v3362_v34, 9  ;;  %v11039_v57 = vrot.slane %v3361_v21, 9  ;;  %v7233_v49 = vmax.f32 %v3354_v56, %v11037_v58 }
 0x247   :  { %v4451_v52 = vcombine.high %v4449_v47, %v4449_v47  ;;  %v11294_v11 = vrot.slane %v4450_v42, 9  ;;  %v11295_v8 = vrot.slane %v4449_v47, 9  ;;  %v7489_v45 = vmax.f32 %v4442_v33, %v11293_v10 }
 0x248   :  { %v11040_v29 = vrot.slane %v3363_v40, 9  ;;  %v7234_v7 = vmax.f32 %v3362_v34, %v11038_v61  ;;  %v7235_v3 = vmax.f32 %v3361_v21, %v11039_v57  ;;  %v8572_v23 = vrot.slane %v7233_v49, %v12942_v59 }
 0x249   :  { %v11296_v9 = vrot.slane %v4451_v52, 9  ;;  %v7490_v32 = vmax.f32 %v4450_v42, %v11294_v11  ;;  %v7491_v36 = vmax.f32 %v4449_v47, %v11295_v8  ;;  %v9596_v58 = vrot.slane %v7489_v45, %v12942_v59 }
 0x24a   :  { %v7236_v19 = vmax.f32 %v3363_v40, %v11040_v29  ;;  %v8576_v28 = vrot.slane %v7234_v7, %v12942_v59  ;;  %v8580_v63 = vrot.slane %v7235_v3, %v12942_v59  ;;  %v3329_v34 = vcombine.high %v3327_v27, %v3327_v27 }
 0x24b   :  { %v14433_v56 = vmax.f32 %v4451_v52, %v11296_v9  ;;  %v9600_v33 = vrot.slane %v7490_v32, %v12942_v59  ;;  %v9604_v10 = vrot.slane %v7491_v36, %v12942_v59  ;;  %v11029_v61 = vrot.slane %v3320_v5, 9  ;;  %v14452_v32 = vpop.f32.mrb[72].mxu0 }
 0x24c   :  { %v10299_v21 = vsel %vm10201_vm3, %v8576_v28, %v8572_v23  ;;  %v11030_v42 = vrot.slane %v3328_v31, 9  ;;  %v8584_v29 = vrot.slane %v7236_v19, %v12942_v59  ;;  %v11031_v9 = vrot.slane %v3327_v27, 9  ;;  %16465 = vst [vmem:[#allocation5_spill] sm:$0xff] %v14452_v32 }
 0x24d   :  { %v10300_v47 = vsel %vm10203_vm4, %v8580_v63, %v10299_v21  ;;  %v9608_v3 = vrot.slane %v14433_v56, %v12942_v59  ;;  %v10523_v40 = vsel %vm10201_vm3, %v9600_v33, %v9596_v58  ;;  %v11032_v57 = vrot.slane %v3329_v34, 9 }
 0x24e   :  { %v7225_v49 = vmax.f32 %v3320_v5, %v11029_v61  ;;  %v7226_v52 = vmax.f32 %v3328_v31, %v11030_v42  ;;  %v7227_v11 = vmax.f32 %v3327_v27, %v11031_v9  ;;  %v4408_v8 = vrot.slane %v2737_v20, %v12796_v43 }
 0x24f   :  { %v4415_v36 = vrot.slane %v4401_v6, %v12796_v43  ;;  %v3364_v45 = vcombine.high %v14417_v38, %v14417_v38  ;;  %v7228_v19 = vmax.f32 %v3329_v34, %v11032_v57  ;;  %v3371_v23 = vrot.slane %v14417_v38, %v12796_v43  ;;  %v14459_v38 = vpop.f32.mrb[72].mxu1 }
 0x250   :  { %v8540_v63 = vrot.slane %v7225_v49, %v12942_v59  ;;  %v8544_v7 = vrot.slane %v7226_v52, %v12942_v59  ;;  %v8548_v31 = vrot.slane %v7227_v11, %v12942_v59  ;;  %v4416_v5 = vcombine.high %v4408_v8, %v4408_v8  ;;  %16466 = vst [vmem:[#allocation6_spill] sm:$0xff] %v14459_v38 }
 0x251   :  { %v4417_v27 = vcombine.high %v4415_v36, %v4415_v36  ;;  %v11285_v20 = vrot.slane %v4408_v8, 9  ;;  %v10524_v6 = vsel %vm10203_vm4, %v9604_v10, %v10523_v40  ;;  %v11287_v56 = vrot.slane %v4415_v36, 9 }
 0x252   :  { %v10292_v28 = vsel %vm10201_vm3, %v8544_v7, %v8540_v63  ;;  %v3378_v58 = vrot.slane %v3364_v45, %v12796_v43  ;;  %v8552_v33 = vrot.slane %v7228_v19, %v12942_v59  ;;  %v11286_v34 = vrot.slane %v4416_v5, 9 }
 0x253   :  { %v11288_v21 = vrot.slane %v4417_v27, 9  ;;  %v7481_v61 = vmax.f32 %v4408_v8, %v11285_v20  ;;  %v7483_v42 = vmax.f32 %v4415_v36, %v11287_v56  ;;  %v3379_v9 = vcombine.high %v3371_v23, %v3371_v23 }
 0x254   :  { %v3380_v57 = vcombine.high %v3378_v58, %v3378_v58  ;;  %v11041_v49 = vrot.slane %v3371_v23, 9  ;;  %v10293_v52 = vsel %vm10203_vm4, %v8548_v31, %v10292_v28  ;;  %v7482_v11 = vmax.f32 %v4416_v5, %v11286_v34  ;;  %v14473_v34 = vpop.f32.mrb[73].mxu0 }
 0x255   :  { %v14462_v10 = vmax.f32 %v4417_v27, %v11288_v21  ;;  %v11043_v40 = vrot.slane %v3378_v58, 9  ;;  %v9572_v63 = vrot.slane %v7483_v42, %v12942_v59  ;;  %v11042_v45 = vrot.slane %v3379_v9, 9  ;;  %v14475_v21 = vpop.f32.mrb[73].mxu1 }
 0x256   :  { %v11044_v7 = vrot.slane %v3380_v57, 9  ;;  %v7237_v19 = vmax.f32 %v3371_v23, %v11041_v49  ;;  %v9564_v32 = vrot.slane %v7481_v61, %v12942_v59  ;;  %v9568_v8 = vrot.slane %v7482_v11, %v12942_v59 }
 0x257   :  { %v7239_v20 = vmax.f32 %v3378_v58, %v11043_v40  ;;  %v10301_v36 = vsel %vm10205_vm5, %v8584_v29, %v10300_v47  ;;  %v7238_v56 = vmax.f32 %v3379_v9, %v11042_v45  ;;  %v16467_v5 = vmax.f32 %v14408_v46, 0.0  ;;  %v14488_v9 = vpop.f32.mrb[74].mxu0 }
 0x258   :  { %v7240_v38 = vmax.f32 %v3380_v57, %v11044_v7  ;;  %v8588_v31 = vrot.slane %v7237_v19, %v12942_v59  ;;  %v16468_v27 = vmax.f32 %v14364_v60, 0.0  ;;  %v10516_v58 = vsel %vm10201_vm3, %v9568_v8, %v9564_v32  ;;  %v14490_v57 = vpop.f32.mrb[74].mxu1 }
 0x259   :  { %v8596_v29 = vrot.slane %v7239_v20, %v12942_v59  ;;  %v2446_v47 = vmax.f32 %v14420_v25, 0.0  ;;  %v14483_v61 = vsel %vm10203_vm4, %v9572_v63, %v10516_v58  ;;  %v8592_v46 = vrot.slane %v7238_v56, %v12942_v59 }
 0x25a   :  { %v2740_v28 = vmax.f32 %v16468_v27, %v16467_v5  ;;  %v10302_v60 = vsel %vm10207_vm6, %v8588_v31, %v10301_v36  ;;  %v10525_v42 = vsel %vm10205_vm5, %v9608_v3, %v10524_v6  ;;  %v8600_v49 = vrot.slane %v7240_v38, %v12942_v59  ;;  %v16470_v3 = vld [vmem:[#allocation15_spill] sm:$0xff]  ;;  %v14504_v36 = vpop.f32.mrb[75].mxu0 }
 0x25b   :  { %v16469_v25 = vmax.f32 %v14372_v48, 0.0  ;;  %v10303_v63 = vsel %vm10209_vm7, %v8592_v46, %v10302_v60  ;;  %v10294_v45 = vsel %vm10205_vm5, %v8552_v33, %v10293_v52  ;;  %v2318_v7 = vadd.f32 %v14388_v0, %v14412_v35  ;;  %v14506_v48 = vpop.f32.mrb[75].mxu1 }
 0x25c   :  { %v4452_v32 = vcombine.high %v2740_v28, %v2740_v28  ;;  %v4459_v11 = vrot.slane %v2740_v28, %v12796_v43  ;;  %v1932_v6 = vmul.f32 %v14381_v13, %v16470_v3  ;;  %v10304_v19 = vsel %vm10211_vm8, %v8596_v29, %v10303_v63 }
 0x25d   :  { %v2674_v40 = vmax.f32 %v16469_v25, %v2446_v47  ;;  %v10305_v56 = vsel %vm10213_vm9, %v8600_v49, %v10304_v19  ;;  %v2574_v52 = vmax.f32 %v2318_v7, 0.0  ;;  %v16471_v46 = vmax.f32 %v14391_v30, 0.0  ;;  %v14520_v30 = vpop.f32.mrb[76].mxu1 }
 0x25e   :  { %v4466_v38 = vrot.slane %v4452_v32, %v12796_v43  ;;  %v4467_v8 = vcombine.high %v4459_v11, %v4459_v11  ;;  %v11297_v20 = vrot.slane %v4459_v11, 9  ;;  %10734 = vst.msk [vmem:[#allocation2 + $0x68] sm:$0xff] %vm10720_vm10, %v10305_v56 }
 0x25f   :  { %v3330_v31 = vcombine.high %v2674_v40, %v2674_v40  ;;  %v3337_v33 = vrot.slane %v2674_v40, %v12796_v43  ;;  %v2738_v60 = vmax.f32 %v16471_v46, %v2574_v52 }
 0x260   :  { %v4468_v35 = vcombine.high %v4466_v38, %v4466_v38  ;;  %v11298_v5 = vrot.slane %v4467_v8, 9  ;;  %v11299_v27 = vrot.slane %v4466_v38, 9  ;;  %v7493_v28 = vmax.f32 %v4459_v11, %v11297_v20 }
 0x261   :  { %v3344_v58 = vrot.slane %v3330_v31, %v12796_v43  ;;  %v3345_v29 = vcombine.high %v3337_v33, %v3337_v33  ;;  %v11033_v47 = vrot.slane %v3337_v33, 9  ;;  %v14518_v31 = vpop.f32.mrb[76].mxu0 }
 0x262   :  { %v11300_v32 = vrot.slane %v4468_v35, 9  ;;  %v7494_v25 = vmax.f32 %v4467_v8, %v11298_v5  ;;  %v7495_v49 = vmax.f32 %v4466_v38, %v11299_v27  ;;  %v9612_v63 = vrot.slane %v7493_v28, %v12942_v59  ;;  %v14523_v27 = vpop.f32.mrb[77].mxu0 }
 0x263   :  { %v3346_v40 = vcombine.high %v3344_v58, %v3344_v58  ;;  %v11034_v7 = vrot.slane %v3345_v29, 9  ;;  %v11035_v3 = vrot.slane %v3344_v58, 9  ;;  %v7229_v19 = vmax.f32 %v3337_v33, %v11033_v47 }
 0x264   :  { %v7496_v56 = vmax.f32 %v4468_v35, %v11300_v32  ;;  %v9616_v23 = vrot.slane %v7494_v25, %v12942_v59  ;;  %v9620_v11 = vrot.slane %v7495_v49, %v12942_v59  ;;  %v10526_v20 = vsel %vm10207_vm6, %v9612_v63, %v10525_v42 }
 0x265   :  { %v11036_v52 = vrot.slane %v3346_v40, 9  ;;  %v7230_v8 = vmax.f32 %v3345_v29, %v11034_v7  ;;  %v7231_v38 = vmax.f32 %v3344_v58, %v11035_v3  ;;  %v8556_v5 = vrot.slane %v7229_v19, %v12942_v59  ;;  %v14531_v29 = vpop.f32.mrb[77].mxu1 }
 0x266   :  { %v9624_v33 = vrot.slane %v7496_v56, %v12942_v59  ;;  %v10527_v35 = vsel %vm10209_vm7, %v9616_v23, %v10526_v20  ;;  %v4418_v28 = vcombine.high %v2738_v60, %v2738_v60  ;;  %v4425_v47 = vrot.slane %v2738_v60, %v12796_v43 }
 0x267   :  { %v10528_v42 = vsel %vm10211_vm8, %v9620_v11, %v10527_v35  ;;  %v7232_v46 = vmax.f32 %v3346_v40, %v11036_v52  ;;  %v8560_v32 = vrot.slane %v7230_v8, %v12942_v59  ;;  %v8564_v25 = vrot.slane %v7231_v38, %v12942_v59 }
 0x268   :  { %v10529_v58 = vsel %vm10213_vm9, %v9624_v33, %v10528_v42  ;;  %v10295_v49 = vsel %vm10207_vm6, %v8556_v5, %v10294_v45  ;;  %v4432_v63 = vrot.slane %v4418_v28, %v12796_v43  ;;  %v4433_v7 = vcombine.high %v4425_v47, %v4425_v47  ;;  %v16473_v5 = vld [vmem:[#allocation16_spill] sm:$0xff] }
 0x269   :  { %10766 = vst.msk [vmem:[#allocation2 + $0x168] sm:$0xff] %vm10720_vm10, %v10529_v58  ;;  %v8568_v23 = vrot.slane %v7232_v46, %v12942_v59  ;;  %v10296_v60 = vsel %vm10209_vm7, %v8560_v32, %v10295_v49  ;;  %v11289_v40 = vrot.slane %v4425_v47, 9  ;;  %v14540_v3 = vadd.f32 %v14388_v0, %v1932_v6  ;;  %v14560_v32 = vpop.f32.mrb[78].mxu0 }
 0x26a   :  { %v10297_v19 = vsel %vm10211_vm8, %v8564_v25, %v10296_v60  ;;  %v4434_v56 = vcombine.high %v4432_v63, %v4432_v63  ;;  %v11290_v11 = vrot.slane %v4433_v7, 9  ;;  %v11291_v20 = vrot.slane %v4432_v63, 9 }
 0x26b   :  { %v10298_v45 = vsel %vm10213_vm9, %v8568_v23, %v10297_v19  ;;  %v7485_v52 = vmax.f32 %v4425_v47, %v11289_v40  ;;  %v16472_v8 = vrot.slane %v14462_v10, %v12942_v59  ;;  %v2060_v33 = vmul.f32 %v14381_v13, %v16473_v5 }
 0x26c   :  { %10733 = vst.msk [vmem:[#allocation2 + $0x60] sm:$0xff] %vm10720_vm10, %v10298_v45  ;;  %v11292_v6 = vrot.slane %v4434_v56, 9  ;;  %v7486_v35 = vmax.f32 %v4433_v7, %v11290_v11  ;;  %v7487_v28 = vmax.f32 %v4432_v63, %v11291_v20  ;;  %v1930_v42 = vmul.f32 %v14381_v13, %v14051_v16 }
 0x26d   :  { %v10518_v38 = vsel %vm10205_vm5, %v16472_v8, %v14483_v61  ;;  %v9580_v46 = vrot.slane %v7485_v52, %v12942_v59  ;;  %v2323_v47 = vadd.f32 %v14388_v0, %v2060_v33  ;;  %v2058_v10 = vmul.f32 %v14381_v13, %v14053_v14  ;;  %v14568_v14 = vpop.f32.mrb[78].mxu1 }
 0x26e   :  { %v1933_v61 = vmul.f32 %v14381_v13, %v14066_v26  ;;  %v7488_v25 = vmax.f32 %v4434_v56, %v11292_v6  ;;  %v9584_v58 = vrot.slane %v7486_v35, %v12942_v59  ;;  %v2451_v49 = vmax.f32 %v14540_v3, 0.0 }
 0x26f   :  { %v2193_v63 = vadd.f32 %v14388_v0, %v1930_v42  ;;  %v9588_v16 = vrot.slane %v7487_v28, %v12942_v59  ;;  %v10519_v7 = vsel %vm10207_vm6, %v9580_v46, %v10518_v38  ;;  %v2579_v23 = vmax.f32 %v2323_v47, 0.0 }
 0x270   :  { %v2321_v60 = vadd.f32 %v14388_v0, %v2058_v10  ;;  %v9592_v26 = vrot.slane %v7488_v25, %v12942_v59  ;;  %v10520_v40 = vsel %vm10209_vm7, %v9584_v58, %v10519_v7  ;;  %v2196_v19 = vadd.f32 %v14388_v0, %v1933_v61 }
 0x271   :  { %v2061_v3 = vmul.f32 %v14381_v13, %v14068_v41  ;;  %v10521_v56 = vsel %vm10211_vm8, %v9588_v16, %v10520_v40  ;;  %v2449_v11 = vmax.f32 %v2193_v63, 0.0  ;;  %v1931_v45 = vmul.f32 %v14381_v13, %v14082_v15 }
 0x272   :  { %v2577_v20 = vmax.f32 %v2321_v60, 0.0  ;;  %v10522_v52 = vsel %vm10213_vm9, %v9592_v26, %v10521_v56  ;;  %v2059_v38 = vmul.f32 %v14381_v13, %v14084_v37  ;;  %v1936_v5 = vmul.f32 %v14381_v13, %v14096_v51 }
 0x273   :  { %v14580_v8 = vadd.f32 %v14388_v0, %v2061_v3  ;;  %10765 = vst.msk [vmem:[#allocation2 + $0x160] sm:$0xff] %vm10720_vm10, %v10522_v52  ;;  %v14588_v41 = vadd.f32 %v14388_v0, %v1931_v45  ;;  %v2064_v33 = vmul.f32 %v14381_v13, %v14098_v18  ;;  %v1934_v15 = vmul.f32 %v14381_v13, %v14101_v1  ;;  %v16475_v45 = vld [vmem:[#allocation8_spill] sm:$0xff] }
 0x274   :  { %v2062_v6 = vmul.f32 %v14381_v13, %v14109_v54  ;;  %v2452_v35 = vmax.f32 %v2196_v19, 0.0  ;;  %v14597_v37 = vadd.f32 %v14388_v0, %v2059_v38  ;;  %v2199_v51 = vadd.f32 %v14388_v0, %v1936_v5 }
 0x275   :  { %v1937_v28 = vmul.f32 %v14381_v13, %v14138_v39  ;;  %v2327_v46 = vadd.f32 %v14388_v0, %v2064_v33  ;;  %v2197_v18 = vadd.f32 %v14388_v0, %v1934_v15  ;;  %v2065_v61 = vmul.f32 %v14381_v13, %v14146_v62  ;;  %v16474_v39 = vld [vmem:[#allocation7_spill] sm:$0xff]  ;;  %v14620_v62 = vpop.f32.mrb[79].mxu0 }
 0x276   :  { %v2325_v1 = vadd.f32 %v14388_v0, %v2062_v6  ;;  %v2455_v54 = vmax.f32 %v2199_v51, 0.0  ;;  %v1935_v16 = vmul.f32 %v14381_v13, %v16474_v39  ;;  %v14618_v52 = vmul.f32 %v14381_v13, %v16475_v45  ;;  %16476 = vst [vmem:[#allocation13_spill] sm:$0xff] %v14620_v62 }
 0x277   :  { %v2200_v10 = vadd.f32 %v14388_v0, %v1937_v28  ;;  %v2583_v25 = vmax.f32 %v2327_v46, 0.0  ;;  %v2453_v58 = vmax.f32 %v2197_v18, 0.0  ;;  %v14614_v40 = vadd.f32 %v14388_v0, %v2065_v61 }
 0x278   :  { %v2581_v63 = vmax.f32 %v2325_v1, 0.0  ;;  %v2679_v60 = vmax.f32 %v2451_v49, %v2455_v54  ;;  %v14626_v49 = vadd.f32 %v14388_v0, %v1935_v16 }
 0x279   :  { %v2456_v26 = vmax.f32 %v2200_v10, 0.0  ;;  %v2743_v19 = vmax.f32 %v2579_v23, %v2583_v25  ;;  %v2677_v3 = vmax.f32 %v2449_v11, %v2453_v58 }
 0x27a   :  { %v2741_v56 = vmax.f32 %v2577_v20, %v2581_v63  ;;  %v3415_v38 = vcombine.high %v2679_v60, %v2679_v60  ;;  %v3422_v5 = vrot.slane %v2679_v60, %v12796_v43  ;;  %v14630_v20 = vpop.f32.mrb[79].mxu1 }
 0x27b   :  { %v14623_v33 = vmax.f32 %v2452_v35, %v2456_v26  ;;  %v4503_v15 = vcombine.high %v2743_v19, %v2743_v19  ;;  %v4510_v6 = vrot.slane %v2743_v19, %v12796_v43  ;;  %v3381_v23 = vcombine.high %v2677_v3, %v2677_v3  ;;  %16477 = vst [vmem:[#allocation14_spill] sm:$0xff] %v14630_v20 }
 0x27c   :  { %v3429_v51 = vrot.slane %v3415_v38, %v12796_v43  ;;  %v3430_v28 = vcombine.high %v3422_v5, %v3422_v5  ;;  %v11053_v46 = vrot.slane %v3422_v5, 9  ;;  %v3388_v18 = vrot.slane %v2677_v3, %v12796_v43 }
 0x27d   :  { %v4517_v35 = vrot.slane %v4503_v15, %v12796_v43  ;;  %v4518_v1 = vcombine.high %v4510_v6, %v4510_v6  ;;  %v11309_v54 = vrot.slane %v4510_v6, 9  ;;  %v3395_v10 = vrot.slane %v3381_v23, %v12796_v43 }
 0x27e   :  { %v3431_v61 = vcombine.high %v3429_v51, %v3429_v51  ;;  %v11054_v25 = vrot.slane %v3430_v28, 9  ;;  %v11055_v58 = vrot.slane %v3429_v51, 9  ;;  %v7249_v63 = vmax.f32 %v3422_v5, %v11053_v46 }
 0x27f   :  { %v4519_v39 = vcombine.high %v4517_v35, %v4517_v35  ;;  %v11310_v16 = vrot.slane %v4518_v1, 9  ;;  %v11311_v60 = vrot.slane %v4517_v35, 9  ;;  %v7505_v26 = vmax.f32 %v4510_v6, %v11309_v54 }
 0x280   :  { %v11056_v19 = vrot.slane %v3431_v61, 9  ;;  %v7250_v45 = vmax.f32 %v3430_v28, %v11054_v25  ;;  %v7251_v38 = vmax.f32 %v3429_v51, %v11055_v58  ;;  %v4469_v7 = vcombine.high %v2741_v56, %v2741_v56 }
 0x281   :  { %v8636_v3 = vrot.slane %v7249_v63, %v12942_v59  ;;  %v11312_v47 = vrot.slane %v4519_v39, 9  ;;  %v7506_v15 = vmax.f32 %v4518_v1, %v11310_v16  ;;  %v7507_v42 = vmax.f32 %v4517_v35, %v11311_v60 }
 0x282   :  { %v7252_v11 = vmax.f32 %v3431_v61, %v11056_v19  ;;  %v8640_v23 = vrot.slane %v7250_v45, %v12942_v59  ;;  %v8644_v20 = vrot.slane %v7251_v38, %v12942_v59  ;;  %v3396_v62 = vcombine.high %v3388_v18, %v3388_v18 }
 0x283   :  { %v14639_v5 = vmax.f32 %v4519_v39, %v11312_v47  ;;  %v9660_v46 = vrot.slane %v7505_v26, %v12942_v59  ;;  %v9664_v6 = vrot.slane %v7506_v15, %v12942_v59  ;;  %v3397_v28 = vcombine.high %v3395_v10, %v3395_v10  ;;  %v14658_v15 = vpop.f32.mrb[80].mxu0 }
 0x284   :  { %v10313_v51 = vsel %vm10201_vm3, %v8640_v23, %v8636_v3  ;;  %v9668_v54 = vrot.slane %v7507_v42, %v12942_v59  ;;  %v11045_v25 = vrot.slane %v3388_v18, 9  ;;  %v11046_v1 = vrot.slane %v3396_v62, 9  ;;  %16478 = vst [vmem:[#allocation15_spill] sm:$0xff] %v14658_v15 }
 0x285   :  { %v8648_v35 = vrot.slane %v7252_v11, %v12942_v59  ;;  %v10314_v61 = vsel %vm10203_vm4, %v8644_v20, %v10313_v51  ;;  %v9672_v58 = vrot.slane %v14639_v5, %v12942_v59  ;;  %v11047_v47 = vrot.slane %v3395_v10, 9 }
 0x286   :  { %v10537_v63 = vsel %vm10201_vm3, %v9664_v6, %v9660_v46  ;;  %v11048_v39 = vrot.slane %v3397_v28, 9  ;;  %v7241_v16 = vmax.f32 %v3388_v18, %v11045_v25  ;;  %v7242_v60 = vmax.f32 %v3396_v62, %v11046_v1 }
 0x287   :  { %v7243_v26 = vmax.f32 %v3395_v10, %v11047_v47  ;;  %v4476_v19 = vrot.slane %v2741_v56, %v12796_v43  ;;  %v4483_v42 = vrot.slane %v4469_v7, %v12796_v43  ;;  %v3432_v45 = vcombine.high %v14623_v33, %v14623_v33 }
 0x288   :  { %v7244_v11 = vmax.f32 %v3397_v28, %v11048_v39  ;;  %v8604_v20 = vrot.slane %v7241_v16, %v12942_v59  ;;  %v8608_v38 = vrot.slane %v7242_v60, %v12942_v59  ;;  %v3439_v3 = vrot.slane %v14623_v33, %v12796_v43  ;;  %v14665_v33 = vpop.f32.mrb[80].mxu1 }
 0x289   :  { %v8612_v62 = vrot.slane %v7243_v26, %v12942_v59  ;;  %v4484_v18 = vcombine.high %v4476_v19, %v4476_v19  ;;  %v4485_v10 = vcombine.high %v4483_v42, %v4483_v42  ;;  %v11301_v56 = vrot.slane %v4476_v19, 9  ;;  %16479 = vst [vmem:[#allocation16_spill] sm:$0xff] %v14665_v33 }
 0x28a   :  { %v10538_v7 = vsel %vm10203_vm4, %v9668_v54, %v10537_v63  ;;  %v10306_v23 = vsel %vm10201_vm3, %v8608_v38, %v8604_v20  ;;  %v11303_v5 = vrot.slane %v4483_v42, 9  ;;  %v3446_v46 = vrot.slane %v3432_v45, %v12796_v43 }
 0x28b   :  { %v8616_v6 = vrot.slane %v7244_v11, %v12942_v59  ;;  %v11302_v28 = vrot.slane %v4484_v18, 9  ;;  %v11304_v51 = vrot.slane %v4485_v10, 9  ;;  %v7497_v25 = vmax.f32 %v4476_v19, %v11301_v56 }
 0x28c   :  { %v7499_v1 = vmax.f32 %v4483_v42, %v11303_v5  ;;  %v3447_v47 = vcombine.high %v3439_v3, %v3439_v3  ;;  %v3448_v39 = vcombine.high %v3446_v46, %v3446_v46  ;;  %v11057_v16 = vrot.slane %v3439_v3, 9 }
 0x28d   :  { %v10307_v60 = vsel %vm10203_vm4, %v8612_v62, %v10306_v23  ;;  %v7498_v26 = vmax.f32 %v4484_v18, %v11302_v28  ;;  %v14668_v54 = vmax.f32 %v4485_v10, %v11304_v51  ;;  %v11059_v63 = vrot.slane %v3446_v46, 9  ;;  %v14679_v28 = vpop.f32.mrb[81].mxu0  ;;  %v14681_v51 = vpop.f32.mrb[81].mxu1 }
 0x28e   :  { %v9636_v20 = vrot.slane %v7499_v1, %v12942_v59  ;;  %v11058_v45 = vrot.slane %v3447_v47, 9  ;;  %v11060_v38 = vrot.slane %v3448_v39, 9  ;;  %v7253_v11 = vmax.f32 %v3439_v3, %v11057_v16 }
 0x28f   :  { %v9628_v15 = vrot.slane %v7497_v25, %v12942_v59  ;;  %v9632_v19 = vrot.slane %v7498_v26, %v12942_v59  ;;  %v7255_v56 = vmax.f32 %v3446_v46, %v11059_v63  ;;  %v10315_v42 = vsel %vm10205_vm5, %v8648_v35, %v10314_v61 }
 0x290   :  { %v7254_v5 = vmax.f32 %v3447_v47, %v11058_v45  ;;  %v7256_v33 = vmax.f32 %v3448_v39, %v11060_v38  ;;  %v8652_v62 = vrot.slane %v7253_v11, %v12942_v59  ;;  %v16480_v18 = vmax.f32 %v14614_v40, 0.0  ;;  %v14694_v47 = vpop.f32.mrb[82].mxu0  ;;  %v14696_v39 = vpop.f32.mrb[82].mxu1 }
 0x291   :  { %v16481_v10 = vmax.f32 %v14580_v8, 0.0  ;;  %v10530_v46 = vsel %vm10201_vm3, %v9632_v19, %v9628_v15  ;;  %v8660_v35 = vrot.slane %v7255_v56, %v12942_v59  ;;  %v2454_v61 = vmax.f32 %v14626_v49, 0.0 }
 0x292   :  { %v14689_v25 = vsel %vm10203_vm4, %v9636_v20, %v10530_v46  ;;  %v8656_v40 = vrot.slane %v7254_v5, %v12942_v59  ;;  %v10316_v8 = vsel %vm10207_vm6, %v8652_v62, %v10315_v42  ;;  %v10539_v1 = vsel %vm10205_vm5, %v9672_v58, %v10538_v7  ;;  %v16483_v58 = vld [vmem:[#allocation17_spill] sm:$0xff]  ;;  %v14710_v42 = vpop.f32.mrb[83].mxu0 }
 0x293   :  { %v2744_v23 = vmax.f32 %v16481_v10, %v16480_v18  ;;  %v8664_v16 = vrot.slane %v7256_v33, %v12942_v59  ;;  %v16482_v49 = vmax.f32 %v14588_v41, 0.0  ;;  %v10308_v45 = vsel %vm10205_vm5, %v8616_v6, %v10307_v60  ;;  %v14712_v41 = vpop.f32.mrb[83].mxu1 }
 0x294   :  { %v10317_v20 = vsel %vm10209_vm7, %v8656_v40, %v10316_v8  ;;  %v2326_v38 = vadd.f32 %v14388_v0, %v14618_v52  ;;  %v1940_v7 = vmul.f32 %v14381_v13, %v16483_v58  ;;  %v16484_v40 = vmax.f32 %v14597_v37, 0.0  ;;  %v14726_v37 = vpop.f32.mrb[84].mxu1 }
 0x295   :  { %v4520_v15 = vcombine.high %v2744_v23, %v2744_v23  ;;  %v4527_v26 = vrot.slane %v2744_v23, %v12796_v43  ;;  %v2678_v63 = vmax.f32 %v16482_v49, %v2454_v61  ;;  %v10318_v11 = vsel %vm10211_vm8, %v8660_v35, %v10317_v20 }
 0x296   :  { %v10319_v5 = vsel %vm10213_vm9, %v8664_v16, %v10318_v11  ;;  %v2582_v60 = vmax.f32 %v2326_v38, 0.0 }
 0x297   :  { %v4534_v33 = vrot.slane %v4520_v15, %v12796_v43  ;;  %v4535_v19 = vcombine.high %v4527_v26, %v4527_v26  ;;  %v11313_v56 = vrot.slane %v4527_v26, 9  ;;  %v3398_v62 = vcombine.high %v2678_v63, %v2678_v63  ;;  %10736 = vst.msk [vmem:[#allocation2 + $0x78] sm:$0xff] %vm10720_vm10, %v10319_v5 }
 0x298   :  { %v3405_v6 = vrot.slane %v2678_v63, %v12796_v43  ;;  %v2742_v8 = vmax.f32 %v16484_v40, %v2582_v60 }
 0x299   :  { %v4536_v52 = vcombine.high %v4534_v33, %v4534_v33  ;;  %v11314_v18 = vrot.slane %v4535_v19, 9  ;;  %v11315_v10 = vrot.slane %v4534_v33, 9  ;;  %v7509_v23 = vmax.f32 %v4527_v26, %v11313_v56 }
 0x29a   :  { %v3412_v46 = vrot.slane %v3398_v62, %v12796_v43  ;;  %v3413_v35 = vcombine.high %v3405_v6, %v3405_v6  ;;  %v11049_v61 = vrot.slane %v3405_v6, 9  ;;  %v14724_v62 = vpop.f32.mrb[84].mxu0 }
 0x29b   :  { %v11316_v15 = vrot.slane %v4536_v52, 9  ;;  %v7510_v49 = vmax.f32 %v4535_v19, %v11314_v18  ;;  %v7511_v16 = vmax.f32 %v4534_v33, %v11315_v10  ;;  %v9676_v20 = vrot.slane %v7509_v23, %v12942_v59  ;;  %v14729_v10 = vpop.f32.mrb[85].mxu0 }
 0x29c   :  { %v3414_v63 = vcombine.high %v3412_v46, %v3412_v46  ;;  %v11050_v38 = vrot.slane %v3413_v35, 9  ;;  %v11051_v58 = vrot.slane %v3412_v46, 9  ;;  %v7245_v11 = vmax.f32 %v3405_v6, %v11049_v61 }
 0x29d   :  { %v7512_v5 = vmax.f32 %v4536_v52, %v11316_v15  ;;  %v9680_v3 = vrot.slane %v7510_v49, %v12942_v59  ;;  %v9684_v26 = vrot.slane %v7511_v16, %v12942_v59  ;;  %v10540_v56 = vsel %vm10207_vm6, %v9676_v20, %v10539_v1 }
 0x29e   :  { %v11052_v60 = vrot.slane %v3414_v63, 9  ;;  %v7246_v19 = vmax.f32 %v3413_v35, %v11050_v38  ;;  %v7247_v33 = vmax.f32 %v3412_v46, %v11051_v58  ;;  %v8620_v18 = vrot.slane %v7245_v11, %v12942_v59  ;;  %v14737_v35 = vpop.f32.mrb[85].mxu1 }
 0x29f   :  { %v9688_v6 = vrot.slane %v7512_v5, %v12942_v59  ;;  %v10541_v52 = vsel %vm10209_vm7, %v9680_v3, %v10540_v56  ;;  %v4486_v23 = vcombine.high %v2742_v8, %v2742_v8  ;;  %v4493_v61 = vrot.slane %v2742_v8, %v12796_v43 }
 0x2a0   :  { %v10542_v1 = vsel %vm10211_vm8, %v9684_v26, %v10541_v52  ;;  %v7248_v40 = vmax.f32 %v3414_v63, %v11052_v60  ;;  %v8624_v15 = vrot.slane %v7246_v19, %v12942_v59  ;;  %v8628_v49 = vrot.slane %v7247_v33, %v12942_v59 }
 0x2a1   :  { %v10543_v46 = vsel %vm10213_vm9, %v9688_v6, %v10542_v1  ;;  %v10309_v16 = vsel %vm10207_vm6, %v8620_v18, %v10308_v45  ;;  %v4500_v20 = vrot.slane %v4486_v23, %v12796_v43  ;;  %v4501_v38 = vcombine.high %v4493_v61, %v4493_v61  ;;  %v16486_v18 = vld [vmem:[#allocation18_spill] sm:$0xff] }
 0x2a2   :  { %10768 = vst.msk [vmem:[#allocation2 + $0x178] sm:$0xff] %vm10720_vm10, %v10543_v46  ;;  %v8632_v3 = vrot.slane %v7248_v40, %v12942_v59  ;;  %v10310_v8 = vsel %vm10209_vm7, %v8624_v15, %v10309_v16  ;;  %v11305_v63 = vrot.slane %v4493_v61, 9  ;;  %v14746_v58 = vadd.f32 %v14388_v0, %v1940_v7  ;;  %v14766_v15 = vpop.f32.mrb[86].mxu0 }
 0x2a3   :  { %v10311_v11 = vsel %vm10211_vm8, %v8628_v49, %v10310_v8  ;;  %v4502_v5 = vcombine.high %v4500_v20, %v4500_v20  ;;  %v11306_v26 = vrot.slane %v4501_v38, 9  ;;  %v11307_v56 = vrot.slane %v4500_v20, 9 }
 0x2a4   :  { %v10312_v45 = vsel %vm10213_vm9, %v8632_v3, %v10311_v11  ;;  %v7501_v60 = vmax.f32 %v4493_v61, %v11305_v63  ;;  %v16485_v19 = vrot.slane %v14668_v54, %v12942_v59  ;;  %v2068_v6 = vmul.f32 %v14381_v13, %v16486_v18 }
 0x2a5   :  { %10735 = vst.msk [vmem:[#allocation2 + $0x70] sm:$0xff] %vm10720_vm10, %v10312_v45  ;;  %v11308_v7 = vrot.slane %v4502_v5, 9  ;;  %v7502_v52 = vmax.f32 %v4501_v38, %v11306_v26  ;;  %v7503_v23 = vmax.f32 %v4500_v20, %v11307_v56  ;;  %v1938_v1 = vmul.f32 %v14381_v13, %v14257_v53 }
 0x2a6   :  { %v10532_v33 = vsel %vm10205_vm5, %v16485_v19, %v14689_v25  ;;  %v9644_v40 = vrot.slane %v7501_v60, %v12942_v59  ;;  %v2331_v61 = vadd.f32 %v14388_v0, %v2068_v6  ;;  %v2066_v54 = vmul.f32 %v14381_v13, %v14259_v50  ;;  %v14774_v50 = vpop.f32.mrb[86].mxu1 }
 0x2a7   :  { %v1941_v25 = vmul.f32 %v14381_v13, %v14272_v44  ;;  %v7504_v49 = vmax.f32 %v4502_v5, %v11308_v7  ;;  %v9648_v46 = vrot.slane %v7502_v52, %v12942_v59  ;;  %v2459_v16 = vmax.f32 %v14746_v58, 0.0 }
 0x2a8   :  { %v2201_v20 = vadd.f32 %v14388_v0, %v1938_v1  ;;  %v9652_v53 = vrot.slane %v7503_v23, %v12942_v59  ;;  %v10533_v38 = vsel %vm10207_vm6, %v9644_v40, %v10532_v33  ;;  %v2587_v3 = vmax.f32 %v2331_v61, 0.0  ;;  %v16487_v23 = vld [vmem:[#allocation9_spill] sm:$0xff] }
 0x2a9   :  { %v2329_v8 = vadd.f32 %v14388_v0, %v2066_v54  ;;  %v9656_v44 = vrot.slane %v7504_v49, %v12942_v59  ;;  %v10534_v63 = vsel %vm10209_vm7, %v9648_v46, %v10533_v38  ;;  %v2204_v11 = vadd.f32 %v14388_v0, %v1941_v25  ;;  %v16488_v49 = vld [vmem:[#allocation10_spill] sm:$0xff] }
 0x2aa   :  { %v2069_v58 = vmul.f32 %v14381_v13, %v14274_v2  ;;  %v10535_v5 = vsel %vm10211_vm8, %v9652_v53, %v10534_v63  ;;  %v2457_v26 = vmax.f32 %v2201_v20, 0.0  ;;  %v1939_v45 = vmul.f32 %v14381_v13, %v14288_v55 }
 0x2ab   :  { %v2585_v56 = vmax.f32 %v2329_v8, 0.0  ;;  %v10536_v60 = vsel %vm10213_vm9, %v9656_v44, %v10535_v5  ;;  %v2067_v33 = vmul.f32 %v14381_v13, %v14290_v24  ;;  %v1944_v18 = vmul.f32 %v14381_v13, %v14302_v22  ;;  %v16489_v8 = vld [vmem:[#allocation11_spill] sm:$0xff] }
 0x2ac   :  { %v14786_v19 = vadd.f32 %v14388_v0, %v2069_v58  ;;  %10767 = vst.msk [vmem:[#allocation2 + $0x170] sm:$0xff] %vm10720_vm10, %v10536_v60  ;;  %v14794_v2 = vadd.f32 %v14388_v0, %v1939_v45  ;;  %v2072_v6 = vmul.f32 %v14381_v13, %v14304_v4  ;;  %v1942_v55 = vmul.f32 %v14381_v13, %v14307_v17 }
 0x2ad   :  { %v2070_v7 = vmul.f32 %v14381_v13, %v14315_v12  ;;  %v2460_v52 = vmax.f32 %v2204_v11, 0.0  ;;  %v14803_v24 = vadd.f32 %v14388_v0, %v2067_v33  ;;  %v2207_v22 = vadd.f32 %v14388_v0, %v1944_v18  ;;  %v16490_v18 = vld [vmem:[#allocation12_spill] sm:$0xff] }
 0x2ae   :  { %v1945_v1 = vmul.f32 %v14381_v13, %v16487_v23  ;;  %v2335_v61 = vadd.f32 %v14388_v0, %v2072_v6  ;;  %v2205_v4 = vadd.f32 %v14388_v0, %v1942_v55  ;;  %v2073_v46 = vmul.f32 %v14381_v13, %v16488_v49  ;;  %v14826_v55 = vpop.f32.mrb[87].mxu0 }
 0x2af   :  { %v2333_v17 = vadd.f32 %v14388_v0, %v2070_v7  ;;  %v2463_v12 = vmax.f32 %v2207_v22, 0.0  ;;  %v1943_v44 = vmul.f32 %v14381_v13, %v16489_v8  ;;  %v14824_v6 = vmul.f32 %v14381_v13, %v16490_v18  ;;  %16491 = vst [vmem:[#allocation7_spill] sm:$0xff] %v14826_v55 }
 0x2b0   :  { %v2208_v25 = vadd.f32 %v14388_v0, %v1945_v1  ;;  %v2591_v20 = vmax.f32 %v2335_v61, 0.0  ;;  %v2461_v53 = vmax.f32 %v2205_v4, 0.0  ;;  %v14820_v5 = vadd.f32 %v14388_v0, %v2073_v46 }
 0x2b1   :  { %v2589_v38 = vmax.f32 %v2333_v17, 0.0  ;;  %v2683_v11 = vmax.f32 %v2459_v16, %v2463_v12  ;;  %v14832_v16 = vadd.f32 %v14388_v0, %v1943_v44 }
 0x2b2   :  { %v2464_v58 = vmax.f32 %v2208_v25, 0.0  ;;  %v2747_v45 = vmax.f32 %v2587_v3, %v2591_v20  ;;  %v2681_v60 = vmax.f32 %v2457_v26, %v2461_v53 }
 0x2b3   :  { %v2745_v33 = vmax.f32 %v2585_v56, %v2589_v38  ;;  %v3483_v7 = vcombine.high %v2683_v11, %v2683_v11  ;;  %v3490_v22 = vrot.slane %v2683_v11, %v12796_v43  ;;  %v14836_v56 = vpop.f32.mrb[87].mxu1 }
 0x2b4   :  { %v14829_v23 = vmax.f32 %v2460_v52, %v2464_v58  ;;  %v4571_v1 = vcombine.high %v2747_v45, %v2747_v45  ;;  %v4578_v61 = vrot.slane %v2747_v45, %v12796_v43  ;;  %v3449_v3 = vcombine.high %v2681_v60, %v2681_v60  ;;  %16492 = vst [vmem:[#allocation8_spill] sm:$0xff] %v14836_v56 }
 0x2b5   :  { %v3497_v13 = vrot.slane %v3483_v7, %v12796_v43  ;;  %v3498_v4 = vcombine.high %v3490_v22, %v3490_v22  ;;  %v11069_v17 = vrot.slane %v3490_v22, 9  ;;  %v3456_v12 = vrot.slane %v2681_v60, %v12796_v43 }
 0x2b6   :  { %v4585_v52 = vrot.slane %v4571_v1, %v12796_v43  ;;  %v4586_v25 = vcombine.high %v4578_v61, %v4578_v61  ;;  %v11325_v49 = vrot.slane %v4578_v61, 9  ;;  %v3463_v0 = vrot.slane %v3449_v3, %v12796_v43 }
 0x2b7   :  { %v3499_v46 = vcombine.high %v3497_v13, %v3497_v13  ;;  %v11070_v20 = vrot.slane %v3498_v4, 9  ;;  %v11071_v53 = vrot.slane %v3497_v13, 9  ;;  %v7265_v38 = vmax.f32 %v3490_v22, %v11069_v17 }
 0x2b8   :  { %v4587_v8 = vcombine.high %v4585_v52, %v4585_v52  ;;  %v11326_v44 = vrot.slane %v4586_v25, 9  ;;  %v11327_v11 = vrot.slane %v4585_v52, 9  ;;  %v7521_v58 = vmax.f32 %v4578_v61, %v11325_v49 }
 0x2b9   :  { %v11072_v45 = vrot.slane %v3499_v46, 9  ;;  %v7266_v18 = vmax.f32 %v3498_v4, %v11070_v20  ;;  %v7267_v7 = vmax.f32 %v3497_v13, %v11071_v53  ;;  %v4537_v63 = vcombine.high %v2745_v33, %v2745_v33 }
 0x2ba   :  { %v8700_v60 = vrot.slane %v7265_v38, %v12942_v59  ;;  %v11328_v54 = vrot.slane %v4587_v8, 9  ;;  %v7522_v1 = vmax.f32 %v4586_v25, %v11326_v44  ;;  %v7523_v40 = vmax.f32 %v4585_v52, %v11327_v11 }
 0x2bb   :  { %v7268_v26 = vmax.f32 %v3499_v46, %v11072_v45  ;;  %v8704_v3 = vrot.slane %v7266_v18, %v12942_v59  ;;  %v8708_v56 = vrot.slane %v7267_v7, %v12942_v59  ;;  %v3464_v55 = vcombine.high %v3456_v12, %v3456_v12 }
 0x2bc   :  { %v14845_v22 = vmax.f32 %v4587_v8, %v11328_v54  ;;  %v9724_v17 = vrot.slane %v7521_v58, %v12942_v59  ;;  %v9728_v61 = vrot.slane %v7522_v1, %v12942_v59  ;;  %v3465_v4 = vcombine.high %v3463_v0, %v3463_v0  ;;  %v14864_v1 = vpop.f32.mrb[88].mxu0 }
 0x2bd   :  { %v10327_v13 = vsel %vm10201_vm3, %v8704_v3, %v8700_v60  ;;  %v9732_v49 = vrot.slane %v7523_v40, %v12942_v59  ;;  %v11061_v20 = vrot.slane %v3456_v12, 9  ;;  %v11062_v25 = vrot.slane %v3464_v55, 9  ;;  %16493 = vst [vmem:[#allocation17_spill] sm:$0xff] %v14864_v1 }
 0x2be   :  { %v8712_v52 = vrot.slane %v7268_v26, %v12942_v59  ;;  %v10328_v46 = vsel %vm10203_vm4, %v8708_v56, %v10327_v13  ;;  %v9736_v53 = vrot.slane %v14845_v22, %v12942_v59  ;;  %v11063_v54 = vrot.slane %v3463_v0, 9 }
 0x2bf   :  { %v10551_v38 = vsel %vm10201_vm3, %v9728_v61, %v9724_v17  ;;  %v11064_v8 = vrot.slane %v3465_v4, 9  ;;  %v7257_v44 = vmax.f32 %v3456_v12, %v11061_v20  ;;  %v7258_v11 = vmax.f32 %v3464_v55, %v11062_v25 }
 0x2c0   :  { %v7259_v58 = vmax.f32 %v3463_v0, %v11063_v54  ;;  %v4544_v45 = vrot.slane %v2745_v33, %v12796_v43  ;;  %v4551_v40 = vrot.slane %v4537_v63, %v12796_v43  ;;  %v3500_v18 = vcombine.high %v14829_v23, %v14829_v23 }
 0x2c1   :  { %v7260_v26 = vmax.f32 %v3465_v4, %v11064_v8  ;;  %v8668_v56 = vrot.slane %v7257_v44, %v12942_v59  ;;  %v8672_v7 = vrot.slane %v7258_v11, %v12942_v59  ;;  %v3507_v60 = vrot.slane %v14829_v23, %v12796_v43  ;;  %v14871_v23 = vpop.f32.mrb[88].mxu1 }
 0x2c2   :  { %v8676_v55 = vrot.slane %v7259_v58, %v12942_v59  ;;  %v4552_v12 = vcombine.high %v4544_v45, %v4544_v45  ;;  %v4553_v0 = vcombine.high %v4551_v40, %v4551_v40  ;;  %v11317_v33 = vrot.slane %v4544_v45, 9  ;;  %16494 = vst [vmem:[#allocation18_spill] sm:$0xff] %v14871_v23 }
 0x2c3   :  { %v10552_v63 = vsel %vm10203_vm4, %v9732_v49, %v10551_v38  ;;  %v10320_v3 = vsel %vm10201_vm3, %v8672_v7, %v8668_v56  ;;  %v11319_v22 = vrot.slane %v4551_v40, 9  ;;  %v3514_v17 = vrot.slane %v3500_v18, %v12796_v43 }
 0x2c4   :  { %v8680_v61 = vrot.slane %v7260_v26, %v12942_v59  ;;  %v11318_v4 = vrot.slane %v4552_v12, 9  ;;  %v11320_v13 = vrot.slane %v4553_v0, 9  ;;  %v7513_v20 = vmax.f32 %v4544_v45, %v11317_v33 }
 0x2c5   :  { %v7515_v25 = vmax.f32 %v4551_v40, %v11319_v22  ;;  %v3515_v54 = vcombine.high %v3507_v60, %v3507_v60  ;;  %v3516_v8 = vcombine.high %v3514_v17, %v3514_v17  ;;  %v11073_v44 = vrot.slane %v3507_v60, 9 }
 0x2c6   :  { %v10321_v11 = vsel %vm10203_vm4, %v8676_v55, %v10320_v3  ;;  %v7514_v58 = vmax.f32 %v4552_v12, %v11318_v4  ;;  %v14874_v49 = vmax.f32 %v4553_v0, %v11320_v13  ;;  %v11075_v38 = vrot.slane %v3514_v17, 9  ;;  %v14885_v4 = vpop.f32.mrb[89].mxu0  ;;  %v14887_v13 = vpop.f32.mrb[89].mxu1 }
 0x2c7   :  { %v9700_v56 = vrot.slane %v7515_v25, %v12942_v59  ;;  %v11074_v18 = vrot.slane %v3515_v54, 9  ;;  %v11076_v7 = vrot.slane %v3516_v8, 9  ;;  %v7269_v26 = vmax.f32 %v3507_v60, %v11073_v44 }
 0x2c8   :  { %v9692_v1 = vrot.slane %v7513_v20, %v12942_v59  ;;  %v9696_v45 = vrot.slane %v7514_v58, %v12942_v59  ;;  %v7271_v33 = vmax.f32 %v3514_v17, %v11075_v38  ;;  %v10329_v40 = vsel %vm10205_vm5, %v8712_v52, %v10328_v46 }
 0x2c9   :  { %v7270_v22 = vmax.f32 %v3515_v54, %v11074_v18  ;;  %v7272_v23 = vmax.f32 %v3516_v8, %v11076_v7  ;;  %v8716_v55 = vrot.slane %v7269_v26, %v12942_v59  ;;  %v16495_v12 = vmax.f32 %v14820_v5, 0.0  ;;  %v14900_v54 = vpop.f32.mrb[90].mxu0  ;;  %v14902_v8 = vpop.f32.mrb[90].mxu1  ;;  %v16498_v7 = vld [vmem:[#allocation5_spill] sm:$0xff] }
 0x2ca   :  { %v16496_v0 = vmax.f32 %v14786_v19, 0.0  ;;  %v10544_v17 = vsel %vm10201_vm3, %v9696_v45, %v9692_v1  ;;  %v8724_v52 = vrot.slane %v7271_v33, %v12942_v59  ;;  %v2462_v46 = vmax.f32 %v14832_v16, 0.0  ;;  %v14926_v33 = vpop.f32.mrb[91].mxu0 }
 0x2cb   :  { %v14895_v20 = vsel %vm10203_vm4, %v9700_v56, %v10544_v17  ;;  %v8720_v5 = vrot.slane %v7270_v22, %v12942_v59  ;;  %v10330_v19 = vsel %vm10207_vm6, %v8716_v55, %v10329_v40  ;;  %v10553_v25 = vsel %vm10205_vm5, %v9736_v53, %v10552_v63  ;;  %v14913_v53 = vld [vmem:[%s16356_s3] ss:$0 sm:$0xff]  ;;  %16499 = vst [vmem:[#allocation9_spill] sm:$0xff] %v14926_v33  ;;  %v14928_v40 = vpop.f32.mrb[91].mxu1 }
 0x2cc   :  { %v2748_v3 = vmax.f32 %v16496_v0, %v16495_v12  ;;  %v8728_v44 = vrot.slane %v7272_v23, %v12942_v59  ;;  %v16497_v16 = vmax.f32 %v14794_v2, 0.0  ;;  %v10322_v18 = vsel %vm10205_vm5, %v8680_v61, %v10321_v11  ;;  %v14920_v23 = vld [vmem:[%s16355_s2] ss:$0 sm:$0xff]  ;;  %16500 = vst [vmem:[#allocation10_spill] sm:$0xff] %v14928_v40 }
 0x2cd   :  { %v10331_v56 = vsel %vm10209_vm7, %v8720_v5, %v10330_v19  ;;  %v2334_v63 = vadd.f32 %v14913_v53, %v14824_v6  ;;  %v1948_v2 = vmul.f32 %v14920_v23, %v16498_v7 }
 0x2ce   :  { %v4588_v1 = vcombine.high %v2748_v3, %v2748_v3  ;;  %v4595_v58 = vrot.slane %v2748_v3, %v12796_v43  ;;  %v2682_v38 = vmax.f32 %v16497_v16, %v2462_v46  ;;  %v10332_v26 = vsel %vm10211_vm8, %v8724_v52, %v10331_v56 }
 0x2cf   :  { %v10333_v6 = vsel %vm10213_vm9, %v8728_v44, %v10332_v26  ;;  %v2590_v12 = vmax.f32 %v2334_v63, 0.0 }
 0x2d0   :  { %v4602_v61 = vrot.slane %v4588_v1, %v12796_v43  ;;  %v4603_v11 = vcombine.high %v4595_v58, %v4595_v58  ;;  %v11329_v45 = vrot.slane %v4595_v58, 9  ;;  %v3466_v22 = vcombine.high %v2682_v38, %v2682_v38  ;;  %10738 = vst.msk [vmem:[#allocation2 + $0x88] sm:$0xff] %vm10720_vm10, %v10333_v6 }
 0x2d1   :  { %v3473_v55 = vrot.slane %v2682_v38, %v12796_v43  ;;  %v16501_v1 = vmax.f32 %v14803_v24, 0.0  ;;  %v14942_v24 = vpop.f32.mrb[92].mxu1 }
 0x2d2   :  { %v4604_v0 = vcombine.high %v4602_v61, %v4602_v61  ;;  %v11330_v3 = vrot.slane %v4603_v11, 9  ;;  %v11331_v17 = vrot.slane %v4602_v61, 9  ;;  %v7525_v52 = vmax.f32 %v4595_v58, %v11329_v45 }
 0x2d3   :  { %v3480_v46 = vrot.slane %v3466_v22, %v12796_v43  ;;  %v3481_v5 = vcombine.high %v3473_v55, %v3473_v55  ;;  %v11065_v19 = vrot.slane %v3473_v55, 9  ;;  %v2746_v16 = vmax.f32 %v16501_v1, %v2590_v12  ;;  %v14940_v22 = vpop.f32.mrb[92].mxu0 }
 0x2d4   :  { %v11332_v56 = vrot.slane %v4604_v0, 9  ;;  %v7526_v7 = vmax.f32 %v4603_v11, %v11330_v3  ;;  %v7527_v44 = vmax.f32 %v4602_v61, %v11331_v17  ;;  %v9740_v26 = vrot.slane %v7525_v52, %v12942_v59  ;;  %v14945_v17 = vpop.f32.mrb[93].mxu0 }
 0x2d5   :  { %v3482_v38 = vcombine.high %v3480_v46, %v3480_v46  ;;  %v11066_v63 = vrot.slane %v3481_v5, 9  ;;  %v11067_v60 = vrot.slane %v3480_v46, 9  ;;  %v7261_v6 = vmax.f32 %v3473_v55, %v11065_v19 }
 0x2d6   :  { %v7528_v40 = vmax.f32 %v4604_v0, %v11332_v56  ;;  %v9744_v33 = vrot.slane %v7526_v7, %v12942_v59  ;;  %v9748_v58 = vrot.slane %v7527_v44, %v12942_v59  ;;  %v10554_v45 = vsel %vm10207_vm6, %v9740_v26, %v10553_v25 }
 0x2d7   :  { %v11068_v12 = vrot.slane %v3482_v38, 9  ;;  %v7262_v11 = vmax.f32 %v3481_v5, %v11066_v63  ;;  %v7263_v61 = vmax.f32 %v3480_v46, %v11067_v60  ;;  %v8684_v3 = vrot.slane %v7261_v6, %v12942_v59  ;;  %v14953_v5 = vpop.f32.mrb[93].mxu1 }
 0x2d8   :  { %v9752_v55 = vrot.slane %v7528_v40, %v12942_v59  ;;  %v10555_v0 = vsel %vm10209_vm7, %v9744_v33, %v10554_v45  ;;  %v4554_v52 = vcombine.high %v2746_v16, %v2746_v16  ;;  %v4561_v19 = vrot.slane %v2746_v16, %v12796_v43 }
 0x2d9   :  { %v10556_v25 = vsel %vm10211_vm8, %v9748_v58, %v10555_v0  ;;  %v7264_v1 = vmax.f32 %v3482_v38, %v11068_v12  ;;  %v8688_v56 = vrot.slane %v7262_v11, %v12942_v59  ;;  %v8692_v7 = vrot.slane %v7263_v61, %v12942_v59 }
 0x2da   :  { %v10557_v60 = vsel %vm10213_vm9, %v9752_v55, %v10556_v25  ;;  %v10323_v46 = vsel %vm10207_vm6, %v8684_v3, %v10322_v18  ;;  %v4568_v40 = vrot.slane %v4554_v52, %v12796_v43  ;;  %v4569_v44 = vcombine.high %v4561_v19, %v4561_v19  ;;  %v16503_v3 = vld [vmem:[#allocation6_spill] sm:$0xff] }
 0x2db   :  { %10770 = vst.msk [vmem:[#allocation2 + $0x188] sm:$0xff] %vm10720_vm10, %v10557_v60  ;;  %v8696_v33 = vrot.slane %v7264_v1, %v12942_v59  ;;  %v10324_v16 = vsel %vm10209_vm7, %v8688_v56, %v10323_v46  ;;  %v11321_v26 = vrot.slane %v4561_v19, 9  ;;  %v14962_v38 = vadd.f32 %v14913_v53, %v1948_v2  ;;  %v14982_v56 = vpop.f32.mrb[94].mxu0 }
 0x2dc   :  { %v10325_v63 = vsel %vm10211_vm8, %v8692_v7, %v10324_v16  ;;  %v4570_v6 = vcombine.high %v4568_v40, %v4568_v40  ;;  %v11322_v58 = vrot.slane %v4569_v44, 9  ;;  %v11323_v45 = vrot.slane %v4568_v40, 9 }
 0x2dd   :  { %v10326_v18 = vsel %vm10213_vm9, %v8696_v33, %v10325_v63  ;;  %v7517_v12 = vmax.f32 %v4561_v19, %v11321_v26  ;;  %v16502_v11 = vrot.slane %v14874_v49, %v12942_v59  ;;  %v2076_v55 = vmul.f32 %v14920_v23, %v16503_v3 }
 0x2de   :  { %10737 = vst.msk [vmem:[#allocation2 + $0x80] sm:$0xff] %vm10720_vm10, %v10326_v18  ;;  %v11324_v2 = vrot.slane %v4570_v6, 9  ;;  %v7518_v0 = vmax.f32 %v4569_v44, %v11322_v58  ;;  %v7519_v52 = vmax.f32 %v4568_v40, %v11323_v45  ;;  %v1946_v25 = vmul.f32 %v14920_v23, %v14473_v34 }
 0x2df   :  { %v10546_v61 = vsel %vm10205_vm5, %v16502_v11, %v14895_v20  ;;  %v9708_v1 = vrot.slane %v7517_v12, %v12942_v59  ;;  %v2339_v19 = vadd.f32 %v14913_v53, %v2076_v55  ;;  %v2074_v49 = vmul.f32 %v14920_v23, %v14475_v21  ;;  %v14990_v21 = vpop.f32.mrb[94].mxu1 }
 0x2e0   :  { %v1949_v20 = vmul.f32 %v14920_v23, %v14488_v9  ;;  %v7520_v7 = vmax.f32 %v4570_v6, %v11324_v2  ;;  %v9712_v60 = vrot.slane %v7518_v0, %v12942_v59  ;;  %v2467_v46 = vmax.f32 %v14962_v38, 0.0 }
 0x2e1   :  { %v2209_v40 = vadd.f32 %v14913_v53, %v1946_v25  ;;  %v9716_v34 = vrot.slane %v7519_v52, %v12942_v59  ;;  %v10547_v44 = vsel %vm10207_vm6, %v9708_v1, %v10546_v61  ;;  %v2595_v33 = vmax.f32 %v2339_v19, 0.0 }
 0x2e2   :  { %v2337_v16 = vadd.f32 %v14913_v53, %v2074_v49  ;;  %v9720_v9 = vrot.slane %v7520_v7, %v12942_v59  ;;  %v10548_v26 = vsel %vm10209_vm7, %v9712_v60, %v10547_v44  ;;  %v2212_v63 = vadd.f32 %v14913_v53, %v1949_v20 }
 0x2e3   :  { %v2077_v38 = vmul.f32 %v14920_v23, %v14490_v57  ;;  %v10549_v6 = vsel %vm10211_vm8, %v9716_v34, %v10548_v26  ;;  %v2465_v58 = vmax.f32 %v2209_v40, 0.0  ;;  %v1947_v18 = vmul.f32 %v14920_v23, %v14504_v36 }
 0x2e4   :  { %v2593_v45 = vmax.f32 %v2337_v16, 0.0  ;;  %v10550_v12 = vsel %vm10213_vm9, %v9720_v9, %v10549_v6  ;;  %v2075_v61 = vmul.f32 %v14920_v23, %v14506_v48  ;;  %v1952_v3 = vmul.f32 %v14920_v23, %v14518_v31 }
 0x2e5   :  { %v15002_v11 = vadd.f32 %v14913_v53, %v2077_v38  ;;  %10769 = vst.msk [vmem:[#allocation2 + $0x180] sm:$0xff] %vm10720_vm10, %v10550_v12  ;;  %v15010_v57 = vadd.f32 %v14913_v53, %v1947_v18  ;;  %v2080_v55 = vmul.f32 %v14920_v23, %v14520_v30  ;;  %v1950_v36 = vmul.f32 %v14920_v23, %v14523_v27  ;;  %v16505_v18 = vld [vmem:[#allocation14_spill] sm:$0xff] }
 0x2e6   :  { %v2078_v2 = vmul.f32 %v14920_v23, %v14531_v29  ;;  %v2468_v0 = vmax.f32 %v2212_v63, 0.0  ;;  %v15019_v48 = vadd.f32 %v14913_v53, %v2075_v61  ;;  %v2215_v31 = vadd.f32 %v14913_v53, %v1952_v3 }
 0x2e7   :  { %v1953_v52 = vmul.f32 %v14920_v23, %v14560_v32  ;;  %v2343_v1 = vadd.f32 %v14913_v53, %v2080_v55  ;;  %v2213_v30 = vadd.f32 %v14913_v53, %v1950_v36  ;;  %v2081_v20 = vmul.f32 %v14920_v23, %v14568_v14  ;;  %v16504_v32 = vld [vmem:[#allocation13_spill] sm:$0xff]  ;;  %v15042_v14 = vpop.f32.mrb[95].mxu0 }
 0x2e8   :  { %v2341_v27 = vadd.f32 %v14913_v53, %v2078_v2  ;;  %v2471_v29 = vmax.f32 %v2215_v31, 0.0  ;;  %v1951_v34 = vmul.f32 %v14920_v23, %v16504_v32  ;;  %v15040_v12 = vmul.f32 %v14920_v23, %v16505_v18  ;;  %16506 = vst [vmem:[#allocation11_spill] sm:$0xff] %v15042_v14 }
 0x2e9   :  { %v2216_v49 = vadd.f32 %v14913_v53, %v1953_v52  ;;  %v2599_v7 = vmax.f32 %v2343_v1, 0.0  ;;  %v2469_v60 = vmax.f32 %v2213_v30, 0.0  ;;  %v15036_v26 = vadd.f32 %v14913_v53, %v2081_v20 }
 0x2ea   :  { %v2597_v40 = vmax.f32 %v2341_v27, 0.0  ;;  %v2687_v16 = vmax.f32 %v2467_v46, %v2471_v29  ;;  %v15048_v46 = vadd.f32 %v14913_v53, %v1951_v34 }
 0x2eb   :  { %v2472_v9 = vmax.f32 %v2216_v49, 0.0  ;;  %v2751_v63 = vmax.f32 %v2595_v33, %v2599_v7  ;;  %v2685_v38 = vmax.f32 %v2465_v58, %v2469_v60 }
 0x2ec   :  { %v2749_v6 = vmax.f32 %v2593_v45, %v2597_v40  ;;  %v3551_v61 = vcombine.high %v2687_v16, %v2687_v16  ;;  %v3558_v3 = vrot.slane %v2687_v16, %v12796_v43  ;;  %v15052_v45 = vpop.f32.mrb[95].mxu1 }
 0x2ed   :  { %v15045_v55 = vmax.f32 %v2468_v0, %v2472_v9  ;;  %v4639_v36 = vcombine.high %v2751_v63, %v2751_v63  ;;  %v4646_v2 = vrot.slane %v2751_v63, %v12796_v43  ;;  %v3517_v33 = vcombine.high %v2685_v38, %v2685_v38  ;;  %16507 = vst [vmem:[#allocation12_spill] sm:$0xff] %v15052_v45 }
 0x2ee   :  { %v3565_v31 = vrot.slane %v3551_v61, %v12796_v43  ;;  %v3566_v52 = vcombine.high %v3558_v3, %v3558_v3  ;;  %v11085_v1 = vrot.slane %v3558_v3, 9  ;;  %v3524_v30 = vrot.slane %v2685_v38, %v12796_v43 }
 0x2ef   :  { %v4653_v0 = vrot.slane %v4639_v36, %v12796_v43  ;;  %v4654_v27 = vcombine.high %v4646_v2, %v4646_v2  ;;  %v11341_v29 = vrot.slane %v4646_v2, 9  ;;  %v3531_v49 = vrot.slane %v3517_v33, %v12796_v43 }
 0x2f0   :  { %v3567_v20 = vcombine.high %v3565_v31, %v3565_v31  ;;  %v11086_v7 = vrot.slane %v3566_v52, 9  ;;  %v11087_v60 = vrot.slane %v3565_v31, 9  ;;  %v7281_v40 = vmax.f32 %v3558_v3, %v11085_v1 }
 0x2f1   :  { %v4655_v32 = vcombine.high %v4653_v0, %v4653_v0  ;;  %v11342_v34 = vrot.slane %v4654_v27, 9  ;;  %v11343_v16 = vrot.slane %v4653_v0, 9  ;;  %v7537_v9 = vmax.f32 %v4646_v2, %v11341_v29 }
 0x2f2   :  { %v11088_v63 = vrot.slane %v3567_v20, 9  ;;  %v7282_v18 = vmax.f32 %v3566_v52, %v11086_v7  ;;  %v7283_v61 = vmax.f32 %v3565_v31, %v11087_v60  ;;  %v4605_v44 = vcombine.high %v2749_v6, %v2749_v6 }
 0x2f3   :  { %v8764_v38 = vrot.slane %v7281_v40, %v12942_v59  ;;  %v11344_v19 = vrot.slane %v4655_v32, 9  ;;  %v7538_v36 = vmax.f32 %v4654_v27, %v11342_v34  ;;  %v7539_v25 = vmax.f32 %v4653_v0, %v11343_v16 }
 0x2f4   :  { %v7284_v58 = vmax.f32 %v3567_v20, %v11088_v63  ;;  %v8768_v33 = vrot.slane %v7282_v18, %v12942_v59  ;;  %v8772_v45 = vrot.slane %v7283_v61, %v12942_v59  ;;  %v3532_v14 = vcombine.high %v3524_v30, %v3524_v30 }
 0x2f5   :  { %v15061_v3 = vmax.f32 %v4655_v32, %v11344_v19  ;;  %v9788_v1 = vrot.slane %v7537_v9, %v12942_v59  ;;  %v9792_v2 = vrot.slane %v7538_v36, %v12942_v59  ;;  %v3533_v52 = vcombine.high %v3531_v49, %v3531_v49  ;;  %v15080_v36 = vpop.f32.mrb[96].mxu0 }
 0x2f6   :  { %v10341_v31 = vsel %vm10201_vm3, %v8768_v33, %v8764_v38  ;;  %v9796_v29 = vrot.slane %v7539_v25, %v12942_v59  ;;  %v11077_v7 = vrot.slane %v3524_v30, 9  ;;  %v11078_v27 = vrot.slane %v3532_v14, 9  ;;  %16508 = vst [vmem:[#allocation5_spill] sm:$0xff] %v15080_v36 }
 0x2f7   :  { %v8776_v0 = vrot.slane %v7284_v58, %v12942_v59  ;;  %v10342_v20 = vsel %vm10203_vm4, %v8772_v45, %v10341_v31  ;;  %v9800_v60 = vrot.slane %v15061_v3, %v12942_v59  ;;  %v11079_v19 = vrot.slane %v3531_v49, 9 }
 0x2f8   :  { %v10565_v40 = vsel %vm10201_vm3, %v9792_v2, %v9788_v1  ;;  %v11080_v32 = vrot.slane %v3533_v52, 9  ;;  %v7273_v34 = vmax.f32 %v3524_v30, %v11077_v7  ;;  %v7274_v16 = vmax.f32 %v3532_v14, %v11078_v27 }
 0x2f9   :  { %v7275_v9 = vmax.f32 %v3531_v49, %v11079_v19  ;;  %v4612_v63 = vrot.slane %v2749_v6, %v12796_v43  ;;  %v4619_v25 = vrot.slane %v4605_v44, %v12796_v43  ;;  %v3568_v18 = vcombine.high %v15045_v55, %v15045_v55 }
 0x2fa   :  { %v7276_v58 = vmax.f32 %v3533_v52, %v11080_v32  ;;  %v8732_v45 = vrot.slane %v7273_v34, %v12942_v59  ;;  %v8736_v61 = vrot.slane %v7274_v16, %v12942_v59  ;;  %v3575_v38 = vrot.slane %v15045_v55, %v12796_v43  ;;  %v15087_v55 = vpop.f32.mrb[96].mxu1 }
 0x2fb   :  { %v8740_v14 = vrot.slane %v7275_v9, %v12942_v59  ;;  %v4620_v30 = vcombine.high %v4612_v63, %v4612_v63  ;;  %v4621_v49 = vcombine.high %v4619_v25, %v4619_v25  ;;  %v11333_v6 = vrot.slane %v4612_v63, 9  ;;  %16509 = vst [vmem:[#allocation6_spill] sm:$0xff] %v15087_v55 }
 0x2fc   :  { %v10566_v44 = vsel %vm10203_vm4, %v9796_v29, %v10565_v40  ;;  %v10334_v33 = vsel %vm10201_vm3, %v8736_v61, %v8732_v45  ;;  %v11335_v3 = vrot.slane %v4619_v25, 9  ;;  %v3582_v1 = vrot.slane %v3568_v18, %v12796_v43 }
 0x2fd   :  { %v8744_v2 = vrot.slane %v7276_v58, %v12942_v59  ;;  %v11334_v52 = vrot.slane %v4620_v30, 9  ;;  %v11336_v31 = vrot.slane %v4621_v49, 9  ;;  %v7529_v7 = vmax.f32 %v4612_v63, %v11333_v6 }
 0x2fe   :  { %v7531_v27 = vmax.f32 %v4619_v25, %v11335_v3  ;;  %v3583_v19 = vcombine.high %v3575_v38, %v3575_v38  ;;  %v3584_v32 = vcombine.high %v3582_v1, %v3582_v1  ;;  %v11089_v34 = vrot.slane %v3575_v38, 9 }
 0x2ff   :  { %v10335_v16 = vsel %vm10203_vm4, %v8740_v14, %v10334_v33  ;;  %v7530_v9 = vmax.f32 %v4620_v30, %v11334_v52  ;;  %v15090_v29 = vmax.f32 %v4621_v49, %v11336_v31  ;;  %v11091_v40 = vrot.slane %v3582_v1, 9  ;;  %v15101_v52 = vpop.f32.mrb[97].mxu0  ;;  %v15103_v31 = vpop.f32.mrb[97].mxu1 }
 0x300   :  { %v9764_v45 = vrot.slane %v7531_v27, %v12942_v59  ;;  %v11090_v18 = vrot.slane %v3583_v19, 9  ;;  %v11092_v61 = vrot.slane %v3584_v32, 9  ;;  %v7285_v58 = vmax.f32 %v3575_v38, %v11089_v34 }
 0x301   :  { %v9756_v36 = vrot.slane %v7529_v7, %v12942_v59  ;;  %v9760_v63 = vrot.slane %v7530_v9, %v12942_v59  ;;  %v7287_v6 = vmax.f32 %v3582_v1, %v11091_v40  ;;  %v10343_v25 = vsel %vm10205_vm5, %v8776_v0, %v10342_v20 }
 0x302   :  { %v7286_v3 = vmax.f32 %v3583_v19, %v11090_v18  ;;  %v7288_v55 = vmax.f32 %v3584_v32, %v11092_v61  ;;  %v8780_v14 = vrot.slane %v7285_v58, %v12942_v59  ;;  %v16510_v30 = vmax.f32 %v15036_v26, 0.0  ;;  %v15116_v19 = vpop.f32.mrb[98].mxu0  ;;  %v15118_v32 = vpop.f32.mrb[98].mxu1 }
 0x303   :  { %v16511_v49 = vmax.f32 %v15002_v11, 0.0  ;;  %v10558_v1 = vsel %vm10201_vm3, %v9760_v63, %v9756_v36  ;;  %v8788_v0 = vrot.slane %v7287_v6, %v12942_v59  ;;  %v2470_v20 = vmax.f32 %v15048_v46, 0.0 }
 0x304   :  { %v15111_v7 = vsel %vm10203_vm4, %v9764_v45, %v10558_v1  ;;  %v8784_v26 = vrot.slane %v7286_v3, %v12942_v59  ;;  %v10344_v11 = vsel %vm10207_vm6, %v8780_v14, %v10343_v25  ;;  %v10567_v27 = vsel %vm10205_vm5, %v9800_v60, %v10566_v44  ;;  %v16513_v60 = vld [vmem:[#allocation15_spill] sm:$0xff]  ;;  %v15132_v25 = vpop.f32.mrb[99].mxu0 }
 0x305   :  { %v2752_v33 = vmax.f32 %v16511_v49, %v16510_v30  ;;  %v8792_v34 = vrot.slane %v7288_v55, %v12942_v59  ;;  %v16512_v46 = vmax.f32 %v15010_v57, 0.0  ;;  %v10336_v18 = vsel %vm10205_vm5, %v8744_v2, %v10335_v16  ;;  %v15134_v57 = vpop.f32.mrb[99].mxu1 }
 0x306   :  { %v10345_v45 = vsel %vm10209_vm7, %v8784_v26, %v10344_v11  ;;  %v2342_v61 = vadd.f32 %v14913_v53, %v15040_v12  ;;  %v1956_v44 = vmul.f32 %v14920_v23, %v16513_v60  ;;  %v16514_v26 = vmax.f32 %v15019_v48, 0.0  ;;  %v15148_v48 = vpop.f32.mrb[100].mxu1 }
 0x307   :  { %v4656_v36 = vcombine.high %v2752_v33, %v2752_v33  ;;  %v4663_v9 = vrot.slane %v2752_v33, %v12796_v43  ;;  %v2686_v40 = vmax.f32 %v16512_v46, %v2470_v20  ;;  %v10346_v58 = vsel %vm10211_vm8, %v8788_v0, %v10345_v45 }
 0x308   :  { %v10347_v3 = vsel %vm10213_vm9, %v8792_v34, %v10346_v58  ;;  %v2598_v16 = vmax.f32 %v2342_v61, 0.0 }
 0x309   :  { %v4670_v55 = vrot.slane %v4656_v36, %v12796_v43  ;;  %v4671_v63 = vcombine.high %v4663_v9, %v4663_v9  ;;  %v11345_v6 = vrot.slane %v4663_v9, 9  ;;  %v3534_v14 = vcombine.high %v2686_v40, %v2686_v40  ;;  %10740 = vst.msk [vmem:[#allocation2 + $0x98] sm:$0xff] %vm10720_vm10, %v10347_v3 }
 0x30a   :  { %v3541_v2 = vrot.slane %v2686_v40, %v12796_v43  ;;  %v2750_v11 = vmax.f32 %v16514_v26, %v2598_v16 }
 0x30b   :  { %v4672_v12 = vcombine.high %v4670_v55, %v4670_v55  ;;  %v11346_v30 = vrot.slane %v4671_v63, 9  ;;  %v11347_v49 = vrot.slane %v4670_v55, 9  ;;  %v7541_v33 = vmax.f32 %v4663_v9, %v11345_v6 }
 0x30c   :  { %v3548_v1 = vrot.slane %v3534_v14, %v12796_v43  ;;  %v3549_v0 = vcombine.high %v3541_v2, %v3541_v2  ;;  %v11081_v20 = vrot.slane %v3541_v2, 9  ;;  %v15146_v14 = vpop.f32.mrb[100].mxu0 }
 0x30d   :  { %v11348_v36 = vrot.slane %v4672_v12, 9  ;;  %v7542_v46 = vmax.f32 %v4671_v63, %v11346_v30  ;;  %v7543_v34 = vmax.f32 %v4670_v55, %v11347_v49  ;;  %v9804_v45 = vrot.slane %v7541_v33, %v12942_v59  ;;  %v15151_v49 = vpop.f32.mrb[101].mxu0 }
 0x30e   :  { %v3550_v40 = vcombine.high %v3548_v1, %v3548_v1  ;;  %v11082_v61 = vrot.slane %v3549_v0, 9  ;;  %v11083_v60 = vrot.slane %v3548_v1, 9  ;;  %v7277_v58 = vmax.f32 %v3541_v2, %v11081_v20 }
 0x30f   :  { %v7544_v3 = vmax.f32 %v4672_v12, %v11348_v36  ;;  %v9808_v38 = vrot.slane %v7542_v46, %v12942_v59  ;;  %v9812_v9 = vrot.slane %v7543_v34, %v12942_v59  ;;  %v10568_v6 = vsel %vm10207_vm6, %v9804_v45, %v10567_v27 }
 0x310   :  { %v11084_v16 = vrot.slane %v3550_v40, 9  ;;  %v7278_v63 = vmax.f32 %v3549_v0, %v11082_v61  ;;  %v7279_v55 = vmax.f32 %v3548_v1, %v11083_v60  ;;  %v8748_v30 = vrot.slane %v7277_v58, %v12942_v59  ;;  %v15159_v0 = vpop.f32.mrb[101].mxu1 }
 0x311   :  { %v9816_v2 = vrot.slane %v7544_v3, %v12942_v59  ;;  %v10569_v12 = vsel %vm10209_vm7, %v9808_v38, %v10568_v6  ;;  %v4622_v33 = vcombine.high %v2750_v11, %v2750_v11  ;;  %v4629_v20 = vrot.slane %v2750_v11, %v12796_v43 }
 0x312   :  { %v10570_v27 = vsel %vm10211_vm8, %v9812_v9, %v10569_v12  ;;  %v7280_v26 = vmax.f32 %v3550_v40, %v11084_v16  ;;  %v8752_v36 = vrot.slane %v7278_v63, %v12942_v59  ;;  %v8756_v46 = vrot.slane %v7279_v55, %v12942_v59 }
 0x313   :  { %v10571_v1 = vsel %vm10213_vm9, %v9816_v2, %v10570_v27  ;;  %v10337_v34 = vsel %vm10207_vm6, %v8748_v30, %v10336_v18  ;;  %v4636_v45 = vrot.slane %v4622_v33, %v12796_v43  ;;  %v4637_v61 = vcombine.high %v4629_v20, %v4629_v20  ;;  %v16516_v30 = vld [vmem:[#allocation16_spill] sm:$0xff] }
 0x314   :  { %10772 = vst.msk [vmem:[#allocation2 + $0x198] sm:$0xff] %vm10720_vm10, %v10571_v1  ;;  %v8760_v38 = vrot.slane %v7280_v26, %v12942_v59  ;;  %v10338_v11 = vsel %vm10209_vm7, %v8752_v36, %v10337_v34  ;;  %v11337_v40 = vrot.slane %v4629_v20, 9  ;;  %v15168_v60 = vadd.f32 %v14913_v53, %v1956_v44  ;;  %v15188_v36 = vpop.f32.mrb[102].mxu0 }
 0x315   :  { %v10339_v58 = vsel %vm10211_vm8, %v8756_v46, %v10338_v11  ;;  %v4638_v3 = vcombine.high %v4636_v45, %v4636_v45  ;;  %v11338_v9 = vrot.slane %v4637_v61, 9  ;;  %v11339_v6 = vrot.slane %v4636_v45, 9 }
 0x316   :  { %v10340_v18 = vsel %vm10213_vm9, %v8760_v38, %v10339_v58  ;;  %v7533_v16 = vmax.f32 %v4629_v20, %v11337_v40  ;;  %v16515_v63 = vrot.slane %v15090_v29, %v12942_v59  ;;  %v2084_v2 = vmul.f32 %v14920_v23, %v16516_v30 }
 0x317   :  { %10739 = vst.msk [vmem:[#allocation2 + $0x90] sm:$0xff] %vm10720_vm10, %v10340_v18  ;;  %v11340_v44 = vrot.slane %v4638_v3, 9  ;;  %v7534_v12 = vmax.f32 %v4637_v61, %v11338_v9  ;;  %v7535_v33 = vmax.f32 %v4636_v45, %v11339_v6  ;;  %v1954_v27 = vmul.f32 %v14920_v23, %v14679_v28 }
 0x318   :  { %v10560_v55 = vsel %vm10205_vm5, %v16515_v63, %v15111_v7  ;;  %v9772_v26 = vrot.slane %v7533_v16, %v12942_v59  ;;  %v2347_v20 = vadd.f32 %v14913_v53, %v2084_v2  ;;  %v2082_v29 = vmul.f32 %v14920_v23, %v14681_v51  ;;  %v15196_v51 = vpop.f32.mrb[102].mxu1 }
 0x319   :  { %v1957_v7 = vmul.f32 %v14920_v23, %v14694_v47  ;;  %v7536_v46 = vmax.f32 %v4638_v3, %v11340_v44  ;;  %v9776_v1 = vrot.slane %v7534_v12, %v12942_v59  ;;  %v2475_v34 = vmax.f32 %v15168_v60, 0.0 }
 0x31a   :  { %v2217_v45 = vadd.f32 %v14913_v53, %v1954_v27  ;;  %v9780_v28 = vrot.slane %v7535_v33, %v12942_v59  ;;  %v10561_v61 = vsel %vm10207_vm6, %v9772_v26, %v10560_v55  ;;  %v2603_v38 = vmax.f32 %v2347_v20, 0.0 }
 0x31b   :  { %v2345_v11 = vadd.f32 %v14913_v53, %v2082_v29  ;;  %v9784_v47 = vrot.slane %v7536_v46, %v12942_v59  ;;  %v10562_v40 = vsel %vm10209_vm7, %v9776_v1, %v10561_v61  ;;  %v2220_v58 = vadd.f32 %v14913_v53, %v1957_v7 }
 0x31c   :  { %v2085_v60 = vmul.f32 %v14920_v23, %v14696_v39  ;;  %v10563_v3 = vsel %vm10211_vm8, %v9780_v28, %v10562_v40  ;;  %v2473_v9 = vmax.f32 %v2217_v45, 0.0  ;;  %v1955_v18 = vmul.f32 %v14920_v23, %v14710_v42 }
 0x31d   :  { %v2601_v6 = vmax.f32 %v2345_v11, 0.0  ;;  %v10564_v16 = vsel %vm10213_vm9, %v9784_v47, %v10563_v3  ;;  %v2083_v55 = vmul.f32 %v14920_v23, %v14712_v41  ;;  %v1960_v30 = vmul.f32 %v14920_v23, %v14724_v62 }
 0x31e   :  { %v15208_v63 = vadd.f32 %v14913_v53, %v2085_v60  ;;  %10771 = vst.msk [vmem:[#allocation2 + $0x190] sm:$0xff] %vm10720_vm10, %v10564_v16  ;;  %v15216_v39 = vadd.f32 %v14913_v53, %v1955_v18  ;;  %v2088_v2 = vmul.f32 %v14920_v23, %v14726_v37  ;;  %v1958_v42 = vmul.f32 %v14920_v23, %v14729_v10  ;;  %v16518_v18 = vld [vmem:[#allocation8_spill] sm:$0xff] }
 0x31f   :  { %v2086_v44 = vmul.f32 %v14920_v23, %v14737_v35  ;;  %v2476_v12 = vmax.f32 %v2220_v58, 0.0  ;;  %v15225_v41 = vadd.f32 %v14913_v53, %v2083_v55  ;;  %v2223_v62 = vadd.f32 %v14913_v53, %v1960_v30 }
 0x320   :  { %v1961_v33 = vmul.f32 %v14920_v23, %v14766_v15  ;;  %v2351_v26 = vadd.f32 %v14913_v53, %v2088_v2  ;;  %v2221_v37 = vadd.f32 %v14913_v53, %v1958_v42  ;;  %v2089_v7 = vmul.f32 %v14920_v23, %v14774_v50  ;;  %v16517_v15 = vld [vmem:[#allocation7_spill] sm:$0xff]  ;;  %v15248_v50 = vpop.f32.mrb[103].mxu0 }
 0x321   :  { %v2349_v10 = vadd.f32 %v14913_v53, %v2086_v44  ;;  %v2479_v35 = vmax.f32 %v2223_v62, 0.0  ;;  %v1959_v28 = vmul.f32 %v14920_v23, %v16517_v15  ;;  %v15246_v16 = vmul.f32 %v14920_v23, %v16518_v18  ;;  %16519 = vst [vmem:[#allocation13_spill] sm:$0xff] %v15248_v50 }
 0x322   :  { %v2224_v29 = vadd.f32 %v14913_v53, %v1961_v33  ;;  %v2607_v46 = vmax.f32 %v2351_v26, 0.0  ;;  %v2477_v1 = vmax.f32 %v2221_v37, 0.0  ;;  %v15242_v40 = vadd.f32 %v14913_v53, %v2089_v7 }
 0x323   :  { %v2605_v45 = vmax.f32 %v2349_v10, 0.0  ;;  %v2691_v11 = vmax.f32 %v2475_v34, %v2479_v35  ;;  %v15254_v34 = vadd.f32 %v14913_v53, %v1959_v28 }
 0x324   :  { %v2480_v47 = vmax.f32 %v2224_v29, 0.0  ;;  %v2755_v58 = vmax.f32 %v2603_v38, %v2607_v46  ;;  %v2689_v60 = vmax.f32 %v2473_v9, %v2477_v1 }
 0x325   :  { %v2753_v3 = vmax.f32 %v2601_v6, %v2605_v45  ;;  %v3619_v55 = vcombine.high %v2691_v11, %v2691_v11  ;;  %v3626_v30 = vrot.slane %v2691_v11, %v12796_v43  ;;  %v15258_v6 = vpop.f32.mrb[103].mxu1 }
 0x326   :  { %v15251_v2 = vmax.f32 %v2476_v12, %v2480_v47  ;;  %v4707_v42 = vcombine.high %v2755_v58, %v2755_v58  ;;  %v4714_v44 = vrot.slane %v2755_v58, %v12796_v43  ;;  %v3585_v38 = vcombine.high %v2689_v60, %v2689_v60  ;;  %16520 = vst [vmem:[#allocation14_spill] sm:$0xff] %v15258_v6 }
 0x327   :  { %v3633_v62 = vrot.slane %v3619_v55, %v12796_v43  ;;  %v3634_v33 = vcombine.high %v3626_v30, %v3626_v30  ;;  %v11101_v26 = vrot.slane %v3626_v30, 9  ;;  %v3592_v37 = vrot.slane %v2689_v60, %v12796_v43 }
 0x328   :  { %v4721_v12 = vrot.slane %v4707_v42, %v12796_v43  ;;  %v4722_v10 = vcombine.high %v4714_v44, %v4714_v44  ;;  %v11357_v35 = vrot.slane %v4714_v44, 9  ;;  %v3599_v29 = vrot.slane %v3585_v38, %v12796_v43 }
 0x329   :  { %v3635_v7 = vcombine.high %v3633_v62, %v3633_v62  ;;  %v11102_v46 = vrot.slane %v3634_v33, 9  ;;  %v11103_v1 = vrot.slane %v3633_v62, 9  ;;  %v7297_v45 = vmax.f32 %v3626_v30, %v11101_v26 }
 0x32a   :  { %v4723_v15 = vcombine.high %v4721_v12, %v4721_v12  ;;  %v11358_v28 = vrot.slane %v4722_v10, 9  ;;  %v11359_v11 = vrot.slane %v4721_v12, 9  ;;  %v7553_v47 = vmax.f32 %v4714_v44, %v11357_v35 }
 0x32b   :  { %v11104_v58 = vrot.slane %v3635_v7, 9  ;;  %v7298_v18 = vmax.f32 %v3634_v33, %v11102_v46  ;;  %v7299_v55 = vmax.f32 %v3633_v62, %v11103_v1  ;;  %v4673_v61 = vcombine.high %v2753_v3, %v2753_v3 }
 0x32c   :  { %v8828_v60 = vrot.slane %v7297_v45, %v12942_v59  ;;  %v11360_v20 = vrot.slane %v4723_v15, 9  ;;  %v7554_v42 = vmax.f32 %v4722_v10, %v11358_v28  ;;  %v7555_v27 = vmax.f32 %v4721_v12, %v11359_v11 }
 0x32d   :  { %v7300_v9 = vmax.f32 %v3635_v7, %v11104_v58  ;;  %v8832_v38 = vrot.slane %v7298_v18, %v12942_v59  ;;  %v8836_v6 = vrot.slane %v7299_v55, %v12942_v59  ;;  %v3600_v50 = vcombine.high %v3592_v37, %v3592_v37 }
 0x32e   :  { %v15267_v30 = vmax.f32 %v4723_v15, %v11360_v20  ;;  %v9852_v26 = vrot.slane %v7553_v47, %v12942_v59  ;;  %v9856_v44 = vrot.slane %v7554_v42, %v12942_v59  ;;  %v3601_v33 = vcombine.high %v3599_v29, %v3599_v29  ;;  %v15286_v42 = vpop.f32.mrb[104].mxu0 }
 0x32f   :  { %v10355_v62 = vsel %vm10201_vm3, %v8832_v38, %v8828_v60  ;;  %v9860_v35 = vrot.slane %v7555_v27, %v12942_v59  ;;  %v11093_v46 = vrot.slane %v3592_v37, 9  ;;  %v11094_v10 = vrot.slane %v3600_v50, 9  ;;  %16521 = vst [vmem:[#allocation15_spill] sm:$0xff] %v15286_v42 }
 0x330   :  { %v8840_v12 = vrot.slane %v7300_v9, %v12942_v59  ;;  %v10356_v7 = vsel %vm10203_vm4, %v8836_v6, %v10355_v62  ;;  %v9864_v1 = vrot.slane %v15267_v30, %v12942_v59  ;;  %v11095_v20 = vrot.slane %v3599_v29, 9 }
 0x331   :  { %v10579_v45 = vsel %vm10201_vm3, %v9856_v44, %v9852_v26  ;;  %v11096_v15 = vrot.slane %v3601_v33, 9  ;;  %v7289_v28 = vmax.f32 %v3592_v37, %v11093_v46  ;;  %v7290_v11 = vmax.f32 %v3600_v50, %v11094_v10 }
 0x332   :  { %v7291_v47 = vmax.f32 %v3599_v29, %v11095_v20  ;;  %v4680_v58 = vrot.slane %v2753_v3, %v12796_v43  ;;  %v4687_v27 = vrot.slane %v4673_v61, %v12796_v43  ;;  %v3636_v18 = vcombine.high %v15251_v2, %v15251_v2 }
 0x333   :  { %v7292_v9 = vmax.f32 %v3601_v33, %v11096_v15  ;;  %v8796_v6 = vrot.slane %v7289_v28, %v12942_v59  ;;  %v8800_v55 = vrot.slane %v7290_v11, %v12942_v59  ;;  %v3643_v60 = vrot.slane %v15251_v2, %v12796_v43  ;;  %v15293_v2 = vpop.f32.mrb[104].mxu1 }
 0x334   :  { %v8804_v50 = vrot.slane %v7291_v47, %v12942_v59  ;;  %v4688_v37 = vcombine.high %v4680_v58, %v4680_v58  ;;  %v4689_v29 = vcombine.high %v4687_v27, %v4687_v27  ;;  %v11349_v3 = vrot.slane %v4680_v58, 9  ;;  %16522 = vst [vmem:[#allocation16_spill] sm:$0xff] %v15293_v2 }
 0x335   :  { %v10580_v61 = vsel %vm10203_vm4, %v9860_v35, %v10579_v45  ;;  %v10348_v38 = vsel %vm10201_vm3, %v8800_v55, %v8796_v6  ;;  %v11351_v30 = vrot.slane %v4687_v27, 9  ;;  %v3650_v26 = vrot.slane %v3636_v18, %v12796_v43 }
 0x336   :  { %v8808_v44 = vrot.slane %v7292_v9, %v12942_v59  ;;  %v11350_v33 = vrot.slane %v4688_v37, 9  ;;  %v11352_v62 = vrot.slane %v4689_v29, 9  ;;  %v7545_v46 = vmax.f32 %v4680_v58, %v11349_v3 }
 0x337   :  { %v7547_v10 = vmax.f32 %v4687_v27, %v11351_v30  ;;  %v3651_v20 = vcombine.high %v3643_v60, %v3643_v60  ;;  %v3652_v15 = vcombine.high %v3650_v26, %v3650_v26  ;;  %v11105_v28 = vrot.slane %v3643_v60, 9 }
 0x338   :  { %v10349_v11 = vsel %vm10203_vm4, %v8804_v50, %v10348_v38  ;;  %v7546_v47 = vmax.f32 %v4688_v37, %v11350_v33  ;;  %v15296_v35 = vmax.f32 %v4689_v29, %v11352_v62  ;;  %v11107_v45 = vrot.slane %v3650_v26, 9  ;;  %v15307_v33 = vpop.f32.mrb[105].mxu0  ;;  %v15309_v62 = vpop.f32.mrb[105].mxu1 }
 0x339   :  { %v9828_v6 = vrot.slane %v7547_v10, %v12942_v59  ;;  %v11106_v18 = vrot.slane %v3651_v20, 9  ;;  %v11108_v55 = vrot.slane %v3652_v15, 9  ;;  %v7301_v9 = vmax.f32 %v3643_v60, %v11105_v28 }
 0x33a   :  { %v9820_v42 = vrot.slane %v7545_v46, %v12942_v59  ;;  %v9824_v58 = vrot.slane %v7546_v47, %v12942_v59  ;;  %v7303_v3 = vmax.f32 %v3650_v26, %v11107_v45  ;;  %v10357_v27 = vsel %vm10205_vm5, %v8840_v12, %v10356_v7 }
 0x33b   :  { %v7302_v30 = vmax.f32 %v3651_v20, %v11106_v18  ;;  %v7304_v2 = vmax.f32 %v3652_v15, %v11108_v55  ;;  %v8844_v50 = vrot.slane %v7301_v9, %v12942_v59  ;;  %v16523_v37 = vmax.f32 %v15242_v40, 0.0  ;;  %v15322_v20 = vpop.f32.mrb[106].mxu0  ;;  %v15324_v15 = vpop.f32.mrb[106].mxu1 }
 0x33c   :  { %v16524_v29 = vmax.f32 %v15208_v63, 0.0  ;;  %v9832_v60 = vrot.slane %v15296_v35, %v12942_v59  ;;  %v10572_v26 = vsel %vm10201_vm3, %v9824_v58, %v9820_v42  ;;  %v8852_v12 = vrot.slane %v7303_v3, %v12942_v59 }
 0x33d   :  { %v2478_v7 = vmax.f32 %v15254_v34, 0.0  ;;  %v15317_v46 = vsel %vm10203_vm4, %v9828_v6, %v10572_v26  ;;  %v8848_v40 = vrot.slane %v7302_v30, %v12942_v59  ;;  %v10358_v63 = vsel %vm10207_vm6, %v8844_v50, %v10357_v27  ;;  %v15338_v27 = vpop.f32.mrb[107].mxu0 }
 0x33e   :  { %v2756_v38 = vmax.f32 %v16524_v29, %v16523_v37  ;;  %v10581_v10 = vsel %vm10205_vm5, %v9864_v1, %v10580_v61  ;;  %v8856_v28 = vrot.slane %v7304_v2, %v12942_v59  ;;  %v16525_v34 = vmax.f32 %v15216_v39, 0.0  ;;  %v16526_v1 = vld [vmem:[#allocation17_spill] sm:$0xff]  ;;  %v15340_v39 = vpop.f32.mrb[107].mxu1 }
 0x33f   :  { %v10359_v6 = vsel %vm10209_vm7, %v8848_v40, %v10358_v63  ;;  %v10350_v18 = vsel %vm10205_vm5, %v8808_v44, %v10349_v11  ;;  %v2350_v55 = vadd.f32 %v14913_v53, %v15246_v16  ;;  %v1964_v61 = vmul.f32 %v14920_v23, %v16526_v1 }
 0x340   :  { %v4724_v42 = vcombine.high %v2756_v38, %v2756_v38  ;;  %v4731_v47 = vrot.slane %v2756_v38, %v12796_v43  ;;  %v2690_v45 = vmax.f32 %v16525_v34, %v2478_v7  ;;  %v10360_v9 = vsel %vm10211_vm8, %v8852_v12, %v10359_v6 }
 0x341   :  { %v10361_v30 = vsel %vm10213_vm9, %v8856_v28, %v10360_v9  ;;  %v2606_v11 = vmax.f32 %v2350_v55, 0.0  ;;  %v16527_v12 = vmax.f32 %v15225_v41, 0.0  ;;  %v15354_v41 = vpop.f32.mrb[108].mxu1 }
 0x342   :  { %v4738_v2 = vrot.slane %v4724_v42, %v12796_v43  ;;  %v4739_v58 = vcombine.high %v4731_v47, %v4731_v47  ;;  %v11361_v3 = vrot.slane %v4731_v47, 9  ;;  %v3602_v50 = vcombine.high %v2690_v45, %v2690_v45  ;;  %10742 = vst.msk [vmem:[#allocation2 + $0xa8] sm:$0xff] %vm10720_vm10, %v10361_v30  ;;  %v15352_v30 = vpop.f32.mrb[108].mxu0 }
 0x343   :  { %v3609_v44 = vrot.slane %v2690_v45, %v12796_v43  ;;  %v2754_v7 = vmax.f32 %v16527_v12, %v2606_v11 }
 0x344   :  { %v4740_v53 = vcombine.high %v4738_v2, %v4738_v2  ;;  %v11362_v23 = vrot.slane %v4739_v58, 9  ;;  %v11363_v16 = vrot.slane %v4738_v2, 9  ;;  %v7557_v37 = vmax.f32 %v4731_v47, %v11361_v3 }
 0x345   :  { %v3616_v29 = vrot.slane %v3602_v50, %v12796_v43  ;;  %v3617_v38 = vcombine.high %v3609_v44, %v3609_v44  ;;  %v11097_v26 = vrot.slane %v3609_v44, 9 }
 0x346   :  { %v11364_v40 = vrot.slane %v4740_v53, 9  ;;  %v7558_v63 = vmax.f32 %v4739_v58, %v11362_v23  ;;  %v7559_v28 = vmax.f32 %v4738_v2, %v11363_v16  ;;  %v9868_v42 = vrot.slane %v7557_v37, %v12942_v59  ;;  %v15357_v23 = vpop.f32.mrb[109].mxu0 }
 0x347   :  { %v3618_v34 = vcombine.high %v3616_v29, %v3616_v29  ;;  %v11098_v45 = vrot.slane %v3617_v38, 9  ;;  %v11099_v6 = vrot.slane %v3616_v29, 9  ;;  %v7293_v55 = vmax.f32 %v3609_v44, %v11097_v26 }
 0x348   :  { %v7560_v1 = vmax.f32 %v4740_v53, %v11364_v40  ;;  %v9872_v9 = vrot.slane %v7558_v63, %v12942_v59  ;;  %v9876_v47 = vrot.slane %v7559_v28, %v12942_v59  ;;  %v10582_v3 = vsel %vm10207_vm6, %v9868_v42, %v10581_v10 }
 0x349   :  { %v11100_v50 = vrot.slane %v3618_v34, 9  ;;  %v7294_v58 = vmax.f32 %v3617_v38, %v11098_v45  ;;  %v7295_v2 = vmax.f32 %v3616_v29, %v11099_v6  ;;  %v8812_v11 = vrot.slane %v7293_v55, %v12942_v59  ;;  %v15365_v38 = vpop.f32.mrb[109].mxu1  ;;  %v15376_v6 = vld [vmem:[%s16356_s3] ss:$0 sm:$0xff] }
 0x34a   :  { %v9880_v44 = vrot.slane %v7560_v1, %v12942_v59  ;;  %v10583_v53 = vsel %vm10209_vm7, %v9872_v9, %v10582_v3  ;;  %v4690_v16 = vcombine.high %v2754_v7, %v2754_v7  ;;  %v4697_v37 = vrot.slane %v2754_v7, %v12796_v43 }
 0x34b   :  { %v10584_v10 = vsel %vm10211_vm8, %v9876_v47, %v10583_v53  ;;  %v7296_v26 = vmax.f32 %v3618_v34, %v11100_v50  ;;  %v8816_v12 = vrot.slane %v7294_v58, %v12942_v59  ;;  %v8820_v40 = vrot.slane %v7295_v2, %v12942_v59  ;;  %v15391_v2 = vld [vmem:[%s16355_s2] ss:$0 sm:$0xff] }
 0x34c   :  { %v10585_v29 = vsel %vm10213_vm9, %v9880_v44, %v10584_v10  ;;  %v10351_v63 = vsel %vm10207_vm6, %v8812_v11, %v10350_v18  ;;  %v4704_v28 = vrot.slane %v4690_v16, %v12796_v43  ;;  %v4705_v42 = vcombine.high %v4697_v37, %v4697_v37 }
 0x34d   :  { %10774 = vst.msk [vmem:[#allocation2 + $0x1a8] sm:$0xff] %vm10720_vm10, %v10585_v29  ;;  %v8824_v7 = vrot.slane %v7296_v26, %v12942_v59  ;;  %v10352_v45 = vsel %vm10209_vm7, %v8816_v12, %v10351_v63  ;;  %v11353_v34 = vrot.slane %v4697_v37, 9  ;;  %v15379_v55 = vadd.f32 %v15376_v6, %v1964_v61  ;;  %v16528_v61 = vld [vmem:[#allocation18_spill] sm:$0xff]  ;;  %v15404_v26 = vpop.f32.mrb[110].mxu0 }
 0x34e   :  { %v10353_v18 = vsel %vm10211_vm8, %v8820_v40, %v10352_v45  ;;  %v4706_v1 = vcombine.high %v4704_v28, %v4704_v28  ;;  %v11354_v9 = vrot.slane %v4705_v42, 9  ;;  %v11355_v47 = vrot.slane %v4704_v28, 9  ;;  %16529 = vst [vmem:[#allocation7_spill] sm:$0xff] %v15404_v26 }
 0x34f   :  { %v10354_v3 = vsel %vm10213_vm9, %v8824_v7, %v10353_v18  ;;  %v7549_v50 = vmax.f32 %v4697_v37, %v11353_v34  ;;  %v10574_v58 = vsel %vm10205_vm5, %v9832_v60, %v15317_v46  ;;  %v2092_v11 = vmul.f32 %v15391_v2, %v16528_v61  ;;  %v16532_v61 = vld [vmem:[#allocation10_spill] sm:$0xff] }
 0x350   :  { %10741 = vst.msk [vmem:[#allocation2 + $0xa0] sm:$0xff] %vm10720_vm10, %v10354_v3  ;;  %v11356_v44 = vrot.slane %v4706_v1, 9  ;;  %v7550_v53 = vmax.f32 %v4705_v42, %v11354_v9  ;;  %v7551_v16 = vmax.f32 %v4704_v28, %v11355_v47  ;;  %v1962_v37 = vmul.f32 %v15391_v2, %v14885_v4  ;;  %v16531_v47 = vld [vmem:[#allocation9_spill] sm:$0xff] }
 0x351   :  { %v9836_v35 = vrot.slane %v7549_v50, %v12942_v59  ;;  %v2355_v60 = vadd.f32 %v15376_v6, %v2092_v11  ;;  %v2090_v46 = vmul.f32 %v15391_v2, %v14887_v13  ;;  %v1965_v10 = vmul.f32 %v15391_v2, %v14900_v54  ;;  %v15412_v13 = vpop.f32.mrb[110].mxu1 }
 0x352   :  { %v7552_v12 = vmax.f32 %v4706_v1, %v11356_v44  ;;  %v9840_v40 = vrot.slane %v7550_v53, %v12942_v59  ;;  %v2483_v29 = vmax.f32 %v15379_v55, 0.0  ;;  %v2225_v63 = vadd.f32 %v15376_v6, %v1962_v37  ;;  %16530 = vst [vmem:[#allocation8_spill] sm:$0xff] %v15412_v13 }
 0x353   :  { %v9844_v4 = vrot.slane %v7551_v16, %v12942_v59  ;;  %v10575_v28 = vsel %vm10207_vm6, %v9836_v35, %v10574_v58  ;;  %v2611_v42 = vmax.f32 %v2355_v60, 0.0  ;;  %v2353_v7 = vadd.f32 %v15376_v6, %v2090_v46 }
 0x354   :  { %v9848_v54 = vrot.slane %v7552_v12, %v12942_v59  ;;  %v10576_v45 = vsel %vm10209_vm7, %v9840_v40, %v10575_v28  ;;  %v2228_v34 = vadd.f32 %v15376_v6, %v1965_v10  ;;  %v2093_v55 = vmul.f32 %v15391_v2, %v14902_v8 }
 0x355   :  { %v10577_v18 = vsel %vm10211_vm8, %v9844_v4, %v10576_v45  ;;  %v2481_v1 = vmax.f32 %v2225_v63, 0.0  ;;  %v2609_v9 = vmax.f32 %v2353_v7, 0.0  ;;  %v1963_v3 = vmul.f32 %v15391_v2, %v16531_v47 }
 0x356   :  { %v10578_v50 = vsel %vm10213_vm9, %v9848_v54, %v10577_v18  ;;  %v15424_v58 = vadd.f32 %v15376_v6, %v2093_v55  ;;  %v2091_v11 = vmul.f32 %v15391_v2, %v16532_v61  ;;  %v1968_v44 = vmul.f32 %v15391_v2, %v14940_v22 }
 0x357   :  { %10773 = vst.msk [vmem:[#allocation2 + $0x1a0] sm:$0xff] %vm10720_vm10, %v10578_v50  ;;  %v15432_v8 = vadd.f32 %v15376_v6, %v1963_v3  ;;  %v2096_v53 = vmul.f32 %v15391_v2, %v14942_v24  ;;  %v1966_v16 = vmul.f32 %v15391_v2, %v14945_v17  ;;  %v2094_v37 = vmul.f32 %v15391_v2, %v14953_v5 }
 0x358   :  { %v2484_v35 = vmax.f32 %v2228_v34, 0.0  ;;  %v15441_v60 = vadd.f32 %v15376_v6, %v2091_v11  ;;  %v2231_v22 = vadd.f32 %v15376_v6, %v1968_v44  ;;  %v1969_v46 = vmul.f32 %v15391_v2, %v14982_v56  ;;  %v16533_v56 = vld [vmem:[#allocation11_spill] sm:$0xff]  ;;  %v16534_v11 = vld [vmem:[#allocation12_spill] sm:$0xff] }
 0x359   :  { %v2359_v12 = vadd.f32 %v15376_v6, %v2096_v53  ;;  %v2229_v24 = vadd.f32 %v15376_v6, %v1966_v16  ;;  %v2357_v17 = vadd.f32 %v15376_v6, %v2094_v37  ;;  %v2097_v4 = vmul.f32 %v15391_v2, %v14990_v21  ;;  %v15464_v21 = vpop.f32.mrb[111].mxu0 }
 0x35a   :  { %v2487_v5 = vmax.f32 %v2231_v22, 0.0  ;;  %v2232_v63 = vadd.f32 %v15376_v6, %v1969_v46  ;;  %v1967_v45 = vmul.f32 %v15391_v2, %v16533_v56  ;;  %v15462_v44 = vmul.f32 %v15391_v2, %v16534_v11  ;;  %16535 = vst [vmem:[#allocation17_spill] sm:$0xff] %v15464_v21 }
 0x35b   :  { %v2615_v28 = vmax.f32 %v2359_v12, 0.0  ;;  %v2485_v7 = vmax.f32 %v2229_v24, 0.0  ;;  %v2613_v54 = vmax.f32 %v2357_v17, 0.0  ;;  %v15458_v47 = vadd.f32 %v15376_v6, %v2097_v4 }
 0x35c   :  { %v2695_v55 = vmax.f32 %v2483_v29, %v2487_v5  ;;  %v2488_v18 = vmax.f32 %v2232_v63, 0.0  ;;  %v15470_v29 = vadd.f32 %v15376_v6, %v1967_v45 }
 0x35d   :  { %v2759_v3 = vmax.f32 %v2611_v42, %v2615_v28  ;;  %v2693_v50 = vmax.f32 %v2481_v1, %v2485_v7  ;;  %v2757_v61 = vmax.f32 %v2609_v9, %v2613_v54  ;;  %v15474_v9 = vpop.f32.mrb[111].mxu1 }
 0x35e   :  { %v3687_v53 = vcombine.high %v2695_v55, %v2695_v55  ;;  %v3694_v16 = vrot.slane %v2695_v55, %v12796_v43  ;;  %v15467_v37 = vmax.f32 %v2484_v35, %v2488_v18  ;;  %16536 = vst [vmem:[#allocation18_spill] sm:$0xff] %v15474_v9 }
 0x35f   :  { %v4775_v22 = vcombine.high %v2759_v3, %v2759_v3  ;;  %v4782_v46 = vrot.slane %v2759_v3, %v12796_v43  ;;  %v3653_v42 = vcombine.high %v2693_v50, %v2693_v50  ;;  %v3660_v5 = vrot.slane %v2693_v50, %v12796_v43 }
 0x360   :  { %v3701_v12 = vrot.slane %v3687_v53, %v12796_v43  ;;  %v3702_v24 = vcombine.high %v3694_v16, %v3694_v16  ;;  %v11117_v17 = vrot.slane %v3694_v16, 9  ;;  %v4741_v10 = vcombine.high %v2757_v61, %v2757_v61 }
 0x361   :  { %v4789_v35 = vrot.slane %v4775_v22, %v12796_v43  ;;  %v4790_v63 = vcombine.high %v4782_v46, %v4782_v46  ;;  %v11373_v4 = vrot.slane %v4782_v46, 9  ;;  %v3667_v28 = vrot.slane %v3653_v42, %v12796_v43 }
 0x362   :  { %v3703_v7 = vcombine.high %v3701_v12, %v3701_v12  ;;  %v11118_v54 = vrot.slane %v3702_v24, 9  ;;  %v11119_v56 = vrot.slane %v3701_v12, 9  ;;  %v7313_v45 = vmax.f32 %v3694_v16, %v11117_v17 }
 0x363   :  { %v4791_v55 = vcombine.high %v4789_v35, %v4789_v35  ;;  %v11374_v18 = vrot.slane %v4790_v63, 9  ;;  %v11375_v3 = vrot.slane %v4789_v35, 9  ;;  %v7569_v11 = vmax.f32 %v4782_v46, %v11373_v4 }
 0x364   :  { %v11120_v34 = vrot.slane %v3703_v7, 9  ;;  %v7314_v53 = vmax.f32 %v3702_v24, %v11118_v54  ;;  %v7315_v40 = vmax.f32 %v3701_v12, %v11119_v56  ;;  %v8892_v50 = vrot.slane %v7313_v45, %v12942_v59 }
 0x365   :  { %v11376_v1 = vrot.slane %v4791_v55, 9  ;;  %v7570_v22 = vmax.f32 %v4790_v63, %v11374_v18  ;;  %v7571_v9 = vmax.f32 %v4789_v35, %v11375_v3  ;;  %v3668_v26 = vcombine.high %v3660_v5, %v3660_v5 }
 0x366   :  { %v7316_v21 = vmax.f32 %v3703_v7, %v11120_v34  ;;  %v8896_v42 = vrot.slane %v7314_v53, %v12942_v59  ;;  %v8900_v13 = vrot.slane %v7315_v40, %v12942_v59  ;;  %v9916_v17 = vrot.slane %v7569_v11, %v12942_v59 }
 0x367   :  { %v15483_v16 = vmax.f32 %v4791_v55, %v11376_v1  ;;  %v9920_v46 = vrot.slane %v7570_v22, %v12942_v59  ;;  %v3669_v24 = vcombine.high %v3667_v28, %v3667_v28  ;;  %v9924_v4 = vrot.slane %v7571_v9, %v12942_v59  ;;  %v15502_v22 = vpop.f32.mrb[112].mxu0 }
 0x368   :  { %v10369_v12 = vsel %vm10201_vm3, %v8896_v42, %v8892_v50  ;;  %v11109_v54 = vrot.slane %v3660_v5, 9  ;;  %v11110_v63 = vrot.slane %v3668_v26, 9  ;;  %v8904_v34 = vrot.slane %v7316_v21, %v12942_v59  ;;  %16537 = vst [vmem:[#allocation9_spill] sm:$0xff] %v15502_v22 }
 0x369   :  { %v10370_v35 = vsel %vm10203_vm4, %v8900_v13, %v10369_v12  ;;  %v9928_v40 = vrot.slane %v15483_v16, %v12942_v59  ;;  %v11111_v1 = vrot.slane %v3667_v28, 9  ;;  %v10593_v7 = vsel %vm10201_vm3, %v9920_v46, %v9916_v17 }
 0x36a   :  { %v11112_v56 = vrot.slane %v3669_v24, 9  ;;  %v7305_v45 = vmax.f32 %v3660_v5, %v11109_v54  ;;  %v7306_v55 = vmax.f32 %v3668_v26, %v11110_v63  ;;  %v4748_v3 = vrot.slane %v2757_v61, %v12796_v43 }
 0x36b   :  { %v7307_v18 = vmax.f32 %v3667_v28, %v11111_v1  ;;  %v4755_v9 = vrot.slane %v4741_v10, %v12796_v43  ;;  %v3704_v11 = vcombine.high %v15467_v37, %v15467_v37  ;;  %v3711_v50 = vrot.slane %v15467_v37, %v12796_v43  ;;  %v15509_v37 = vpop.f32.mrb[112].mxu1 }
 0x36c   :  { %v7308_v21 = vmax.f32 %v3669_v24, %v11112_v56  ;;  %v8860_v13 = vrot.slane %v7305_v45, %v12942_v59  ;;  %v8864_v53 = vrot.slane %v7306_v55, %v12942_v59  ;;  %v4756_v5 = vcombine.high %v4748_v3, %v4748_v3  ;;  %16538 = vst [vmem:[#allocation10_spill] sm:$0xff] %v15509_v37 }
 0x36d   :  { %v8868_v26 = vrot.slane %v7307_v18, %v12942_v59  ;;  %v4757_v28 = vcombine.high %v4755_v9, %v4755_v9  ;;  %v11365_v61 = vrot.slane %v4748_v3, 9  ;;  %v10594_v10 = vsel %vm10203_vm4, %v9924_v4, %v10593_v7 }
 0x36e   :  { %v10362_v42 = vsel %vm10201_vm3, %v8864_v53, %v8860_v13  ;;  %v11367_v16 = vrot.slane %v4755_v9, 9  ;;  %v3718_v17 = vrot.slane %v3704_v11, %v12796_v43  ;;  %v8872_v46 = vrot.slane %v7308_v21, %v12942_v59 }
 0x36f   :  { %v11366_v24 = vrot.slane %v4756_v5, 9  ;;  %v11368_v12 = vrot.slane %v4757_v28, 9  ;;  %v7561_v54 = vmax.f32 %v4748_v3, %v11365_v61  ;;  %v3719_v1 = vcombine.high %v3711_v50, %v3711_v50 }
 0x370   :  { %v7563_v63 = vmax.f32 %v4755_v9, %v11367_v16  ;;  %v3720_v56 = vcombine.high %v3718_v17, %v3718_v17  ;;  %v11121_v45 = vrot.slane %v3711_v50, 9  ;;  %v10363_v55 = vsel %vm10203_vm4, %v8868_v26, %v10362_v42 }
 0x371   :  { %v7562_v18 = vmax.f32 %v4756_v5, %v11366_v24  ;;  %v15512_v4 = vmax.f32 %v4757_v28, %v11368_v12  ;;  %v11123_v7 = vrot.slane %v3718_v17, 9  ;;  %v11122_v11 = vrot.slane %v3719_v1, 9  ;;  %v15523_v24 = vpop.f32.mrb[113].mxu0  ;;  %v15525_v12 = vpop.f32.mrb[113].mxu1 }
 0x372   :  { %v9892_v13 = vrot.slane %v7563_v63, %v12942_v59  ;;  %v11124_v53 = vrot.slane %v3720_v56, 9  ;;  %v7317_v21 = vmax.f32 %v3711_v50, %v11121_v45  ;;  %v9884_v22 = vrot.slane %v7561_v54, %v12942_v59 }
 0x373   :  { %v9888_v3 = vrot.slane %v7562_v18, %v12942_v59  ;;  %v7319_v61 = vmax.f32 %v3718_v17, %v11123_v7  ;;  %v10371_v9 = vsel %vm10205_vm5, %v8904_v34, %v10370_v35  ;;  %v7318_v16 = vmax.f32 %v3719_v1, %v11122_v11  ;;  %v15538_v1 = vpop.f32.mrb[114].mxu0 }
 0x374   :  { %v7320_v37 = vmax.f32 %v3720_v56, %v11124_v53  ;;  %v8908_v26 = vrot.slane %v7317_v21, %v12942_v59  ;;  %v16539_v5 = vmax.f32 %v15458_v47, 0.0  ;;  %v16540_v28 = vmax.f32 %v15424_v58, 0.0  ;;  %v15540_v56 = vpop.f32.mrb[114].mxu1 }
 0x375   :  { %v10586_v17 = vsel %vm10201_vm3, %v9888_v3, %v9884_v22  ;;  %v8916_v34 = vrot.slane %v7319_v61, %v12942_v59  ;;  %v2486_v35 = vmax.f32 %v15470_v29, 0.0  ;;  %v8912_v47 = vrot.slane %v7318_v16, %v12942_v59 }
 0x376   :  { %v2760_v42 = vmax.f32 %v16540_v28, %v16539_v5  ;;  %v15533_v54 = vsel %vm10203_vm4, %v9892_v13, %v10586_v17  ;;  %v10372_v58 = vsel %vm10207_vm6, %v8908_v26, %v10371_v9  ;;  %v10595_v63 = vsel %vm10205_vm5, %v9928_v40, %v10594_v10  ;;  %v16542_v40 = vld [vmem:[#allocation5_spill] sm:$0xff]  ;;  %v15554_v9 = vpop.f32.mrb[115].mxu0 }
 0x377   :  { %v8920_v45 = vrot.slane %v7320_v37, %v12942_v59  ;;  %v16541_v29 = vmax.f32 %v15432_v8, 0.0  ;;  %v10373_v13 = vsel %vm10209_vm7, %v8912_v47, %v10372_v58  ;;  %v10364_v11 = vsel %vm10205_vm5, %v8872_v46, %v10363_v55  ;;  %v15556_v8 = vpop.f32.mrb[115].mxu1 }
 0x378   :  { %v4792_v22 = vcombine.high %v2760_v42, %v2760_v42  ;;  %v4799_v18 = vrot.slane %v2760_v42, %v12796_v43  ;;  %v2358_v53 = vadd.f32 %v15376_v6, %v15462_v44  ;;  %v1972_v10 = vmul.f32 %v15391_v2, %v16542_v40 }
 0x379   :  { %v2694_v7 = vmax.f32 %v16541_v29, %v2486_v35  ;;  %v10374_v21 = vsel %vm10211_vm8, %v8916_v34, %v10373_v13  ;;  %v16543_v47 = vmax.f32 %v15441_v60, 0.0  ;;  %v15570_v60 = vpop.f32.mrb[116].mxu1 }
 0x37a   :  { %v4806_v37 = vrot.slane %v4792_v22, %v12796_v43  ;;  %v4807_v3 = vcombine.high %v4799_v18, %v4799_v18  ;;  %v11377_v61 = vrot.slane %v4799_v18, 9  ;;  %v10375_v16 = vsel %vm10213_vm9, %v8920_v45, %v10374_v21 }
 0x37b   :  { %v3670_v26 = vcombine.high %v2694_v7, %v2694_v7  ;;  %v3677_v46 = vrot.slane %v2694_v7, %v12796_v43  ;;  %v2614_v55 = vmax.f32 %v2358_v53, 0.0  ;;  %10744 = vst.msk [vmem:[#allocation2 + $0xb8] sm:$0xff] %vm10720_vm10, %v10375_v16 }
 0x37c   :  { %v4808_v44 = vcombine.high %v4806_v37, %v4806_v37  ;;  %v11378_v5 = vrot.slane %v4807_v3, 9  ;;  %v11379_v28 = vrot.slane %v4806_v37, 9  ;;  %v7573_v42 = vmax.f32 %v4799_v18, %v11377_v61 }
 0x37d   :  { %v3684_v17 = vrot.slane %v3670_v26, %v12796_v43  ;;  %v3685_v34 = vcombine.high %v3677_v46, %v3677_v46  ;;  %v11113_v35 = vrot.slane %v3677_v46, 9  ;;  %v2758_v58 = vmax.f32 %v16543_v47, %v2614_v55  ;;  %v15568_v26 = vpop.f32.mrb[116].mxu0 }
 0x37e   :  { %v11380_v22 = vrot.slane %v4808_v44, 9  ;;  %v7574_v29 = vmax.f32 %v4807_v3, %v11378_v5  ;;  %v7575_v45 = vmax.f32 %v4806_v37, %v11379_v28  ;;  %v9932_v13 = vrot.slane %v7573_v42, %v12942_v59  ;;  %v15573_v28 = vpop.f32.mrb[117].mxu0 }
 0x37f   :  { %v3686_v7 = vcombine.high %v3684_v17, %v3684_v17  ;;  %v11114_v53 = vrot.slane %v3685_v34, 9  ;;  %v11115_v40 = vrot.slane %v3684_v17, 9  ;;  %v7309_v21 = vmax.f32 %v3677_v46, %v11113_v35 }
 0x380   :  { %v7576_v16 = vmax.f32 %v4808_v44, %v11380_v22  ;;  %v9936_v50 = vrot.slane %v7574_v29, %v12942_v59  ;;  %v9940_v18 = vrot.slane %v7575_v45, %v12942_v59  ;;  %v10596_v61 = vsel %vm10207_vm6, %v9932_v13, %v10595_v63 }
 0x381   :  { %v11116_v55 = vrot.slane %v3686_v7, 9  ;;  %v7310_v3 = vmax.f32 %v3685_v34, %v11114_v53  ;;  %v7311_v37 = vmax.f32 %v3684_v17, %v11115_v40  ;;  %v8876_v5 = vrot.slane %v7309_v21, %v12942_v59  ;;  %v15581_v34 = vpop.f32.mrb[117].mxu1 }
 0x382   :  { %v9944_v46 = vrot.slane %v7576_v16, %v12942_v59  ;;  %v10597_v44 = vsel %vm10209_vm7, %v9936_v50, %v10596_v61  ;;  %v4758_v42 = vcombine.high %v2758_v58, %v2758_v58  ;;  %v4765_v35 = vrot.slane %v2758_v58, %v12796_v43 }
 0x383   :  { %v10598_v63 = vsel %vm10211_vm8, %v9940_v18, %v10597_v44  ;;  %v7312_v47 = vmax.f32 %v3686_v7, %v11116_v55  ;;  %v8880_v22 = vrot.slane %v7310_v3, %v12942_v59  ;;  %v8884_v29 = vrot.slane %v7311_v37, %v12942_v59 }
 0x384   :  { %v10599_v17 = vsel %vm10213_vm9, %v9944_v46, %v10598_v63  ;;  %v10365_v45 = vsel %vm10207_vm6, %v8876_v5, %v10364_v11  ;;  %v4772_v13 = vrot.slane %v4758_v42, %v12796_v43  ;;  %v4773_v53 = vcombine.high %v4765_v35, %v4765_v35  ;;  %v16545_v5 = vld [vmem:[#allocation6_spill] sm:$0xff] }
 0x385   :  { %10776 = vst.msk [vmem:[#allocation2 + $0x1b8] sm:$0xff] %vm10720_vm10, %v10599_v17  ;;  %v8888_v50 = vrot.slane %v7312_v47, %v12942_v59  ;;  %v10366_v58 = vsel %vm10209_vm7, %v8880_v22, %v10365_v45  ;;  %v11369_v7 = vrot.slane %v4765_v35, 9  ;;  %v15590_v40 = vadd.f32 %v15376_v6, %v1972_v10  ;;  %v15610_v22 = vpop.f32.mrb[118].mxu0 }
 0x386   :  { %v10367_v21 = vsel %vm10211_vm8, %v8884_v29, %v10366_v58  ;;  %v4774_v16 = vcombine.high %v4772_v13, %v4772_v13  ;;  %v11370_v18 = vrot.slane %v4773_v53, 9  ;;  %v11371_v61 = vrot.slane %v4772_v13, 9 }
 0x387   :  { %v10368_v11 = vsel %vm10213_vm9, %v8888_v50, %v10367_v21  ;;  %v7565_v55 = vmax.f32 %v4765_v35, %v11369_v7  ;;  %v16544_v3 = vrot.slane %v15512_v4, %v12942_v59  ;;  %v2100_v46 = vmul.f32 %v15391_v2, %v16545_v5 }
 0x388   :  { %10743 = vst.msk [vmem:[#allocation2 + $0xb0] sm:$0xff] %vm10720_vm10, %v10368_v11  ;;  %v11372_v10 = vrot.slane %v4774_v16, 9  ;;  %v7566_v44 = vmax.f32 %v4773_v53, %v11370_v18  ;;  %v7567_v42 = vmax.f32 %v4772_v13, %v11371_v61  ;;  %v1970_v63 = vmul.f32 %v15391_v2, %v15101_v52 }
 0x389   :  { %v10588_v37 = vsel %vm10205_vm5, %v16544_v3, %v15533_v54  ;;  %v9900_v47 = vrot.slane %v7565_v55, %v12942_v59  ;;  %v2363_v35 = vadd.f32 %v15376_v6, %v2100_v46  ;;  %v2098_v4 = vmul.f32 %v15391_v2, %v15103_v31  ;;  %v15618_v31 = vpop.f32.mrb[118].mxu1 }
 0x38a   :  { %v1973_v54 = vmul.f32 %v15391_v2, %v15116_v19  ;;  %v7568_v29 = vmax.f32 %v4774_v16, %v11372_v10  ;;  %v9904_v17 = vrot.slane %v7566_v44, %v12942_v59  ;;  %v2491_v45 = vmax.f32 %v15590_v40, 0.0 }
 0x38b   :  { %v2233_v13 = vadd.f32 %v15376_v6, %v1970_v63  ;;  %v9908_v52 = vrot.slane %v7567_v42, %v12942_v59  ;;  %v10589_v53 = vsel %vm10207_vm6, %v9900_v47, %v10588_v37  ;;  %v2619_v50 = vmax.f32 %v2363_v35, 0.0 }
 0x38c   :  { %v2361_v58 = vadd.f32 %v15376_v6, %v2098_v4  ;;  %v9912_v19 = vrot.slane %v7568_v29, %v12942_v59  ;;  %v10590_v7 = vsel %vm10209_vm7, %v9904_v17, %v10589_v53  ;;  %v2236_v21 = vadd.f32 %v15376_v6, %v1973_v54 }
 0x38d   :  { %v2101_v40 = vmul.f32 %v15391_v2, %v15118_v32  ;;  %v10591_v16 = vsel %vm10211_vm8, %v9908_v52, %v10590_v7  ;;  %v2489_v18 = vmax.f32 %v2233_v13, 0.0  ;;  %v1971_v11 = vmul.f32 %v15391_v2, %v15132_v25 }
 0x38e   :  { %v2617_v61 = vmax.f32 %v2361_v58, 0.0  ;;  %v10592_v55 = vsel %vm10213_vm9, %v9912_v19, %v10591_v16  ;;  %v2099_v37 = vmul.f32 %v15391_v2, %v15134_v57  ;;  %v1976_v5 = vmul.f32 %v15391_v2, %v15146_v14 }
 0x38f   :  { %v15630_v3 = vadd.f32 %v15376_v6, %v2101_v40  ;;  %10775 = vst.msk [vmem:[#allocation2 + $0x1b0] sm:$0xff] %vm10720_vm10, %v10592_v55  ;;  %v15638_v32 = vadd.f32 %v15376_v6, %v1971_v11  ;;  %v2104_v46 = vmul.f32 %v15391_v2, %v15148_v48  ;;  %v1974_v25 = vmul.f32 %v15391_v2, %v15151_v49  ;;  %v16547_v11 = vld [vmem:[#allocation14_spill] sm:$0xff] }
 0x390   :  { %v2102_v10 = vmul.f32 %v15391_v2, %v15159_v0  ;;  %v2492_v44 = vmax.f32 %v2236_v21, 0.0  ;;  %v15647_v57 = vadd.f32 %v15376_v6, %v2099_v37  ;;  %v2239_v14 = vadd.f32 %v15376_v6, %v1976_v5 }
 0x391   :  { %v1977_v42 = vmul.f32 %v15391_v2, %v15188_v36  ;;  %v2367_v47 = vadd.f32 %v15376_v6, %v2104_v46  ;;  %v2237_v48 = vadd.f32 %v15376_v6, %v1974_v25  ;;  %v2105_v54 = vmul.f32 %v15391_v2, %v15196_v51  ;;  %v16546_v36 = vld [vmem:[#allocation13_spill] sm:$0xff]  ;;  %v15670_v51 = vpop.f32.mrb[119].mxu0 }
 0x392   :  { %v2365_v49 = vadd.f32 %v15376_v6, %v2102_v10  ;;  %v2495_v0 = vmax.f32 %v2239_v14, 0.0  ;;  %v1975_v52 = vmul.f32 %v15391_v2, %v16546_v36  ;;  %v15668_v55 = vmul.f32 %v15391_v2, %v16547_v11  ;;  %16548 = vst [vmem:[#allocation11_spill] sm:$0xff] %v15670_v51 }
 0x393   :  { %v2240_v4 = vadd.f32 %v15376_v6, %v1977_v42  ;;  %v2623_v29 = vmax.f32 %v2367_v47, 0.0  ;;  %v2493_v17 = vmax.f32 %v2237_v48, 0.0  ;;  %v15664_v7 = vadd.f32 %v15376_v6, %v2105_v54 }
 0x394   :  { %v2621_v13 = vmax.f32 %v2365_v49, 0.0  ;;  %v2699_v58 = vmax.f32 %v2491_v45, %v2495_v0  ;;  %v15676_v45 = vadd.f32 %v15376_v6, %v1975_v52 }
 0x395   :  { %v2496_v19 = vmax.f32 %v2240_v4, 0.0  ;;  %v2763_v21 = vmax.f32 %v2619_v50, %v2623_v29  ;;  %v2697_v40 = vmax.f32 %v2489_v18, %v2493_v17 }
 0x396   :  { %v2761_v16 = vmax.f32 %v2617_v61, %v2621_v13  ;;  %v3755_v37 = vcombine.high %v2699_v58, %v2699_v58  ;;  %v3762_v5 = vrot.slane %v2699_v58, %v12796_v43  ;;  %v15680_v61 = vpop.f32.mrb[119].mxu1 }
 0x397   :  { %v15673_v46 = vmax.f32 %v2492_v44, %v2496_v19  ;;  %v4843_v25 = vcombine.high %v2763_v21, %v2763_v21  ;;  %v4850_v10 = vrot.slane %v2763_v21, %v12796_v43  ;;  %v3721_v50 = vcombine.high %v2697_v40, %v2697_v40  ;;  %16549 = vst [vmem:[#allocation12_spill] sm:$0xff] %v15680_v61 }
 0x398   :  { %v3769_v14 = vrot.slane %v3755_v37, %v12796_v43  ;;  %v3770_v42 = vcombine.high %v3762_v5, %v3762_v5  ;;  %v11133_v47 = vrot.slane %v3762_v5, 9  ;;  %v3728_v48 = vrot.slane %v2697_v40, %v12796_v43 }
 0x399   :  { %v4857_v44 = vrot.slane %v4843_v25, %v12796_v43  ;;  %v4858_v49 = vcombine.high %v4850_v10, %v4850_v10  ;;  %v11389_v0 = vrot.slane %v4850_v10, 9  ;;  %v3735_v4 = vrot.slane %v3721_v50, %v12796_v43 }
 0x39a   :  { %v3771_v54 = vcombine.high %v3769_v14, %v3769_v14  ;;  %v11134_v29 = vrot.slane %v3770_v42, 9  ;;  %v11135_v17 = vrot.slane %v3769_v14, 9  ;;  %v7329_v13 = vmax.f32 %v3762_v5, %v11133_v47 }
 0x39b   :  { %v4859_v36 = vcombine.high %v4857_v44, %v4857_v44  ;;  %v11390_v52 = vrot.slane %v4858_v49, 9  ;;  %v11391_v58 = vrot.slane %v4857_v44, 9  ;;  %v7585_v19 = vmax.f32 %v4850_v10, %v11389_v0 }
 0x39c   :  { %v11136_v21 = vrot.slane %v3771_v54, 9  ;;  %v7330_v11 = vmax.f32 %v3770_v42, %v11134_v29  ;;  %v7331_v37 = vmax.f32 %v3769_v14, %v11135_v17  ;;  %v4809_v53 = vcombine.high %v2761_v16, %v2761_v16 }
 0x39d   :  { %v8956_v40 = vrot.slane %v7329_v13, %v12942_v59  ;;  %v11392_v35 = vrot.slane %v4859_v36, 9  ;;  %v7586_v25 = vmax.f32 %v4858_v49, %v11390_v52  ;;  %v7587_v63 = vmax.f32 %v4857_v44, %v11391_v58 }
 0x39e   :  { %v7332_v18 = vmax.f32 %v3771_v54, %v11136_v21  ;;  %v8960_v50 = vrot.slane %v7330_v11, %v12942_v59  ;;  %v8964_v61 = vrot.slane %v7331_v37, %v12942_v59  ;;  %v3736_v51 = vcombine.high %v3728_v48, %v3728_v48 }
 0x39f   :  { %v15689_v5 = vmax.f32 %v4859_v36, %v11392_v35  ;;  %v9980_v47 = vrot.slane %v7585_v19, %v12942_v59  ;;  %v9984_v10 = vrot.slane %v7586_v25, %v12942_v59  ;;  %v3737_v42 = vcombine.high %v3735_v4, %v3735_v4  ;;  %v15708_v25 = vpop.f32.mrb[120].mxu0 }
 0x3a0   :  { %v10383_v14 = vsel %vm10201_vm3, %v8960_v50, %v8956_v40  ;;  %v9988_v0 = vrot.slane %v7587_v63, %v12942_v59  ;;  %v11125_v29 = vrot.slane %v3728_v48, 9  ;;  %v11126_v49 = vrot.slane %v3736_v51, 9  ;;  %16550 = vst [vmem:[#allocation5_spill] sm:$0xff] %v15708_v25 }
 0x3a1   :  { %v8968_v44 = vrot.slane %v7332_v18, %v12942_v59  ;;  %v10384_v54 = vsel %vm10203_vm4, %v8964_v61, %v10383_v14  ;;  %v9992_v17 = vrot.slane %v15689_v5, %v12942_v59  ;;  %v11127_v35 = vrot.slane %v3735_v4, 9 }
 0x3a2   :  { %v10607_v13 = vsel %vm10201_vm3, %v9984_v10, %v9980_v47  ;;  %v11128_v36 = vrot.slane %v3737_v42, 9  ;;  %v7321_v52 = vmax.f32 %v3728_v48, %v11125_v29  ;;  %v7322_v58 = vmax.f32 %v3736_v51, %v11126_v49 }
 0x3a3   :  { %v7323_v19 = vmax.f32 %v3735_v4, %v11127_v35  ;;  %v4816_v21 = vrot.slane %v2761_v16, %v12796_v43  ;;  %v4823_v63 = vrot.slane %v4809_v53, %v12796_v43  ;;  %v3772_v11 = vcombine.high %v15673_v46, %v15673_v46 }
 0x3a4   :  { %v7324_v18 = vmax.f32 %v3737_v42, %v11128_v36  ;;  %v8924_v61 = vrot.slane %v7321_v52, %v12942_v59  ;;  %v8928_v37 = vrot.slane %v7322_v58, %v12942_v59  ;;  %v3779_v40 = vrot.slane %v15673_v46, %v12796_v43  ;;  %v15715_v46 = vpop.f32.mrb[120].mxu1 }
 0x3a5   :  { %v8932_v51 = vrot.slane %v7323_v19, %v12942_v59  ;;  %v4824_v48 = vcombine.high %v4816_v21, %v4816_v21  ;;  %v4825_v4 = vcombine.high %v4823_v63, %v4823_v63  ;;  %v11381_v16 = vrot.slane %v4816_v21, 9  ;;  %16551 = vst [vmem:[#allocation6_spill] sm:$0xff] %v15715_v46 }
 0x3a6   :  { %v10608_v53 = vsel %vm10203_vm4, %v9988_v0, %v10607_v13  ;;  %v10376_v50 = vsel %vm10201_vm3, %v8928_v37, %v8924_v61  ;;  %v11383_v5 = vrot.slane %v4823_v63, 9  ;;  %v3786_v47 = vrot.slane %v3772_v11, %v12796_v43 }
 0x3a7   :  { %v8936_v10 = vrot.slane %v7324_v18, %v12942_v59  ;;  %v11382_v42 = vrot.slane %v4824_v48, 9  ;;  %v11384_v14 = vrot.slane %v4825_v4, 9  ;;  %v7577_v29 = vmax.f32 %v4816_v21, %v11381_v16 }
 0x3a8   :  { %v7579_v49 = vmax.f32 %v4823_v63, %v11383_v5  ;;  %v3787_v35 = vcombine.high %v3779_v40, %v3779_v40  ;;  %v3788_v36 = vcombine.high %v3786_v47, %v3786_v47  ;;  %v11137_v52 = vrot.slane %v3779_v40, 9 }
 0x3a9   :  { %v10377_v58 = vsel %vm10203_vm4, %v8932_v51, %v10376_v50  ;;  %v7578_v19 = vmax.f32 %v4824_v48, %v11382_v42  ;;  %v15718_v0 = vmax.f32 %v4825_v4, %v11384_v14  ;;  %v11139_v13 = vrot.slane %v3786_v47, 9  ;;  %v15729_v42 = vpop.f32.mrb[121].mxu0  ;;  %v15731_v14 = vpop.f32.mrb[121].mxu1 }
 0x3aa   :  { %v9956_v61 = vrot.slane %v7579_v49, %v12942_v59  ;;  %v11138_v11 = vrot.slane %v3787_v35, 9  ;;  %v11140_v37 = vrot.slane %v3788_v36, 9  ;;  %v7333_v18 = vmax.f32 %v3779_v40, %v11137_v52 }
 0x3ab   :  { %v9948_v25 = vrot.slane %v7577_v29, %v12942_v59  ;;  %v9952_v21 = vrot.slane %v7578_v19, %v12942_v59  ;;  %v7335_v16 = vmax.f32 %v3786_v47, %v11139_v13  ;;  %v10385_v63 = vsel %vm10205_vm5, %v8968_v44, %v10384_v54 }
 0x3ac   :  { %v7334_v5 = vmax.f32 %v3787_v35, %v11138_v11  ;;  %v7336_v46 = vmax.f32 %v3788_v36, %v11140_v37  ;;  %v8972_v51 = vrot.slane %v7333_v18, %v12942_v59  ;;  %v16552_v48 = vmax.f32 %v15664_v7, 0.0  ;;  %v15744_v35 = vpop.f32.mrb[122].mxu0  ;;  %v15746_v36 = vpop.f32.mrb[122].mxu1 }
 0x3ad   :  { %v16553_v4 = vmax.f32 %v15630_v3, 0.0  ;;  %v10600_v47 = vsel %vm10201_vm3, %v9952_v21, %v9948_v25  ;;  %v8980_v44 = vrot.slane %v7335_v16, %v12942_v59  ;;  %v2494_v54 = vmax.f32 %v15676_v45, 0.0 }
 0x3ae   :  { %v15739_v29 = vsel %vm10203_vm4, %v9956_v61, %v10600_v47  ;;  %v8976_v7 = vrot.slane %v7334_v5, %v12942_v59  ;;  %v10386_v3 = vsel %vm10207_vm6, %v8972_v51, %v10385_v63  ;;  %v10609_v49 = vsel %vm10205_vm5, %v9992_v17, %v10608_v53  ;;  %v16555_v17 = vld [vmem:[#allocation15_spill] sm:$0xff]  ;;  %v15760_v63 = vpop.f32.mrb[123].mxu0 }
 0x3af   :  { %v2764_v50 = vmax.f32 %v16553_v4, %v16552_v48  ;;  %v8984_v52 = vrot.slane %v7336_v46, %v12942_v59  ;;  %v16554_v45 = vmax.f32 %v15638_v32, 0.0  ;;  %v10378_v11 = vsel %vm10205_vm5, %v8936_v10, %v10377_v58  ;;  %v15762_v32 = vpop.f32.mrb[123].mxu1 }
 0x3b0   :  { %v10387_v61 = vsel %vm10209_vm7, %v8976_v7, %v10386_v3  ;;  %v2366_v37 = vadd.f32 %v15376_v6, %v15668_v55  ;;  %v1980_v53 = vmul.f32 %v15391_v2, %v16555_v17  ;;  %v16556_v7 = vmax.f32 %v15647_v57, 0.0  ;;  %v15776_v57 = vpop.f32.mrb[124].mxu1 }
 0x3b1   :  { %v4860_v25 = vcombine.high %v2764_v50, %v2764_v50  ;;  %v4867_v19 = vrot.slane %v2764_v50, %v12796_v43  ;;  %v2698_v13 = vmax.f32 %v16554_v45, %v2494_v54  ;;  %v10388_v18 = vsel %vm10211_vm8, %v8980_v44, %v10387_v61 }
 0x3b2   :  { %v10389_v5 = vsel %vm10213_vm9, %v8984_v52, %v10388_v18  ;;  %v2622_v58 = vmax.f32 %v2366_v37, 0.0 }
 0x3b3   :  { %v4874_v46 = vrot.slane %v4860_v25, %v12796_v43  ;;  %v4875_v21 = vcombine.high %v4867_v19, %v4867_v19  ;;  %v11393_v16 = vrot.slane %v4867_v19, 9  ;;  %v3738_v51 = vcombine.high %v2698_v13, %v2698_v13  ;;  %10746 = vst.msk [vmem:[#allocation2 + $0xc8] sm:$0xff] %vm10720_vm10, %v10389_v5 }
 0x3b4   :  { %v3745_v10 = vrot.slane %v2698_v13, %v12796_v43  ;;  %v2762_v3 = vmax.f32 %v16556_v7, %v2622_v58 }
 0x3b5   :  { %v4876_v55 = vcombine.high %v4874_v46, %v4874_v46  ;;  %v11394_v48 = vrot.slane %v4875_v21, 9  ;;  %v11395_v4 = vrot.slane %v4874_v46, 9  ;;  %v7589_v50 = vmax.f32 %v4867_v19, %v11393_v16 }
 0x3b6   :  { %v3752_v47 = vrot.slane %v3738_v51, %v12796_v43  ;;  %v3753_v44 = vcombine.high %v3745_v10, %v3745_v10  ;;  %v11129_v54 = vrot.slane %v3745_v10, 9  ;;  %v15774_v51 = vpop.f32.mrb[124].mxu0 }
 0x3b7   :  { %v11396_v25 = vrot.slane %v4876_v55, 9  ;;  %v7590_v45 = vmax.f32 %v4875_v21, %v11394_v48  ;;  %v7591_v52 = vmax.f32 %v4874_v46, %v11395_v4  ;;  %v9996_v61 = vrot.slane %v7589_v50, %v12942_v59  ;;  %v15779_v4 = vpop.f32.mrb[125].mxu0 }
 0x3b8   :  { %v3754_v13 = vcombine.high %v3752_v47, %v3752_v47  ;;  %v11130_v37 = vrot.slane %v3753_v44, 9  ;;  %v11131_v17 = vrot.slane %v3752_v47, 9  ;;  %v7325_v18 = vmax.f32 %v3745_v10, %v11129_v54 }
 0x3b9   :  { %v7592_v5 = vmax.f32 %v4876_v55, %v11396_v25  ;;  %v10000_v40 = vrot.slane %v7590_v45, %v12942_v59  ;;  %v10004_v19 = vrot.slane %v7591_v52, %v12942_v59  ;;  %v10610_v16 = vsel %vm10207_vm6, %v9996_v61, %v10609_v49 }
 0x3ba   :  { %v11132_v58 = vrot.slane %v3754_v13, 9  ;;  %v7326_v21 = vmax.f32 %v3753_v44, %v11130_v37  ;;  %v7327_v46 = vmax.f32 %v3752_v47, %v11131_v17  ;;  %v8940_v48 = vrot.slane %v7325_v18, %v12942_v59  ;;  %v15787_v44 = vpop.f32.mrb[125].mxu1 }
 0x3bb   :  { %v10008_v10 = vrot.slane %v7592_v5, %v12942_v59  ;;  %v10611_v55 = vsel %vm10209_vm7, %v10000_v40, %v10610_v16  ;;  %v4826_v50 = vcombine.high %v2762_v3, %v2762_v3  ;;  %v4833_v54 = vrot.slane %v2762_v3, %v12796_v43 }
 0x3bc   :  { %v10612_v49 = vsel %vm10211_vm8, %v10004_v19, %v10611_v55  ;;  %v7328_v7 = vmax.f32 %v3754_v13, %v11132_v58  ;;  %v8944_v25 = vrot.slane %v7326_v21, %v12942_v59  ;;  %v8948_v45 = vrot.slane %v7327_v46, %v12942_v59 }
 0x3bd   :  { %v10613_v47 = vsel %vm10213_vm9, %v10008_v10, %v10612_v49  ;;  %v10379_v52 = vsel %vm10207_vm6, %v8940_v48, %v10378_v11  ;;  %v4840_v61 = vrot.slane %v4826_v50, %v12796_v43  ;;  %v4841_v37 = vcombine.high %v4833_v54, %v4833_v54  ;;  %v16558_v48 = vld [vmem:[#allocation16_spill] sm:$0xff] }
 0x3be   :  { %10778 = vst.msk [vmem:[#allocation2 + $0x1c8] sm:$0xff] %vm10720_vm10, %v10613_v47  ;;  %v8952_v40 = vrot.slane %v7328_v7, %v12942_v59  ;;  %v10380_v3 = vsel %vm10209_vm7, %v8944_v25, %v10379_v52  ;;  %v11385_v13 = vrot.slane %v4833_v54, 9  ;;  %v15796_v17 = vadd.f32 %v15376_v6, %v1980_v53  ;;  %v15816_v25 = vpop.f32.mrb[126].mxu0 }
 0x3bf   :  { %v10381_v18 = vsel %vm10211_vm8, %v8948_v45, %v10380_v3  ;;  %v4842_v5 = vcombine.high %v4840_v61, %v4840_v61  ;;  %v11386_v19 = vrot.slane %v4841_v37, 9  ;;  %v11387_v16 = vrot.slane %v4840_v61, 9  ;;  %16559 = vst [vmem:[#allocation13_spill] sm:$0xff] %v15816_v25 }
 0x3c0   :  { %v10382_v11 = vsel %vm10213_vm9, %v8952_v40, %v10381_v18  ;;  %v7581_v58 = vmax.f32 %v4833_v54, %v11385_v13  ;;  %v16557_v21 = vrot.slane %v15718_v0, %v12942_v59  ;;  %v2108_v10 = vmul.f32 %v15391_v2, %v16558_v48  ;;  %v15854_v48 = vld [vmem:[%s16355_s2] ss:$0 sm:$0xff] }
 0x3c1   :  { %10745 = vst.msk [vmem:[#allocation2 + $0xc0] sm:$0xff] %vm10720_vm10, %v10382_v11  ;;  %v11388_v53 = vrot.slane %v4842_v5, 9  ;;  %v7582_v55 = vmax.f32 %v4841_v37, %v11386_v19  ;;  %v7583_v50 = vmax.f32 %v4840_v61, %v11387_v16  ;;  %v1978_v49 = vmul.f32 %v15391_v2, %v15307_v33 }
 0x3c2   :  { %v10602_v46 = vsel %vm10205_vm5, %v16557_v21, %v15739_v29  ;;  %v9964_v7 = vrot.slane %v7581_v58, %v12942_v59  ;;  %v2371_v54 = vadd.f32 %v15376_v6, %v2108_v10  ;;  %v2106_v0 = vmul.f32 %v15391_v2, %v15309_v62  ;;  %v15824_v62 = vpop.f32.mrb[126].mxu1  ;;  %v15838_v21 = vld [vmem:[%s16356_s3] ss:$0 sm:$0xff] }
 0x3c3   :  { %v1981_v29 = vmul.f32 %v15391_v2, %v15322_v20  ;;  %v7584_v45 = vmax.f32 %v4842_v5, %v11388_v53  ;;  %v9968_v47 = vrot.slane %v7582_v55, %v12942_v59  ;;  %v2499_v52 = vmax.f32 %v15796_v17, 0.0  ;;  %16560 = vst [vmem:[#allocation14_spill] sm:$0xff] %v15824_v62 }
 0x3c4   :  { %v2241_v61 = vadd.f32 %v15376_v6, %v1978_v49  ;;  %v9972_v33 = vrot.slane %v7583_v50, %v12942_v59  ;;  %v10603_v37 = vsel %vm10207_vm6, %v9964_v7, %v10602_v46  ;;  %v2627_v40 = vmax.f32 %v2371_v54, 0.0  ;;  %v16561_v50 = vld [vmem:[#allocation7_spill] sm:$0xff] }
 0x3c5   :  { %v2369_v3 = vadd.f32 %v15376_v6, %v2106_v0  ;;  %v9976_v20 = vrot.slane %v7584_v45, %v12942_v59  ;;  %v10604_v13 = vsel %vm10209_vm7, %v9968_v47, %v10603_v37  ;;  %v2244_v18 = vadd.f32 %v15376_v6, %v1981_v29  ;;  %v16562_v45 = vld [vmem:[#allocation8_spill] sm:$0xff] }
 0x3c6   :  { %v2109_v17 = vmul.f32 %v15391_v2, %v15324_v15  ;;  %v10605_v5 = vsel %vm10211_vm8, %v9972_v33, %v10604_v13  ;;  %v2497_v19 = vmax.f32 %v2241_v61, 0.0  ;;  %v1979_v11 = vmul.f32 %v15391_v2, %v15338_v27 }
 0x3c7   :  { %v2625_v16 = vmax.f32 %v2369_v3, 0.0  ;;  %v10606_v58 = vsel %vm10213_vm9, %v9976_v20, %v10605_v5  ;;  %v2107_v15 = vmul.f32 %v15391_v2, %v15340_v39  ;;  %v1984_v6 = vmul.f32 %v15391_v2, %v15352_v30  ;;  %v16563_v3 = vld [vmem:[#allocation17_spill] sm:$0xff] }
 0x3c8   :  { %v15841_v46 = vadd.f32 %v15838_v21, %v2109_v17  ;;  %10777 = vst.msk [vmem:[#allocation2 + $0x1c0] sm:$0xff] %vm10720_vm10, %v10606_v58  ;;  %v15849_v27 = vadd.f32 %v15838_v21, %v1979_v11  ;;  %v2112_v10 = vmul.f32 %v15854_v48, %v15354_v41  ;;  %v1982_v53 = vmul.f32 %v15854_v48, %v15357_v23 }
 0x3c9   :  { %v2110_v39 = vmul.f32 %v15854_v48, %v15365_v38  ;;  %v2500_v30 = vmax.f32 %v2244_v18, 0.0  ;;  %v15863_v2 = vadd.f32 %v15838_v21, %v2107_v15  ;;  %v2247_v55 = vadd.f32 %v15838_v21, %v1984_v6  ;;  %v16564_v6 = vld [vmem:[#allocation18_spill] sm:$0xff] }
 0x3ca   :  { %v1985_v49 = vmul.f32 %v15854_v48, %v16561_v50  ;;  %v2375_v54 = vadd.f32 %v15838_v21, %v2112_v10  ;;  %v2245_v41 = vadd.f32 %v15838_v21, %v1982_v53  ;;  %v2113_v47 = vmul.f32 %v15854_v48, %v16562_v45  ;;  %v15886_v53 = vpop.f32.mrb[127].mxu0 }
 0x3cb   :  { %v2373_v23 = vadd.f32 %v15838_v21, %v2110_v39  ;;  %v2503_v38 = vmax.f32 %v2247_v55, 0.0  ;;  %v1983_v20 = vmul.f32 %v15854_v48, %v16563_v3  ;;  %v15884_v10 = vmul.f32 %v15854_v48, %v16564_v6  ;;  %16565 = vst [vmem:[#allocation15_spill] sm:$0xff] %v15886_v53 }
 0x3cc   :  { %v2248_v29 = vadd.f32 %v15838_v21, %v1985_v49  ;;  %v2631_v61 = vmax.f32 %v2375_v54, 0.0  ;;  %v2501_v33 = vmax.f32 %v2245_v41, 0.0  ;;  %v15880_v5 = vadd.f32 %v15838_v21, %v2113_v47 }
 0x3cd   :  { %v2629_v37 = vmax.f32 %v2373_v23, 0.0  ;;  %v2703_v18 = vmax.f32 %v2499_v52, %v2503_v38  ;;  %v15892_v52 = vadd.f32 %v15838_v21, %v1983_v20 }
 0x3ce   :  { %v2504_v17 = vmax.f32 %v2248_v29, 0.0  ;;  %v2767_v11 = vmax.f32 %v2627_v40, %v2631_v61  ;;  %v2701_v58 = vmax.f32 %v2497_v19, %v2501_v33 }
 0x3cf   :  { %v2765_v15 = vmax.f32 %v2625_v16, %v2629_v37  ;;  %v3823_v39 = vcombine.high %v2703_v18, %v2703_v18  ;;  %v3830_v55 = vrot.slane %v2703_v18, %v12796_v43  ;;  %v15896_v16 = vpop.f32.mrb[127].mxu1 }
 0x3d0   :  { %v15889_v50 = vmax.f32 %v2500_v30, %v2504_v17  ;;  %v4911_v49 = vcombine.high %v2767_v11, %v2767_v11  ;;  %v4918_v54 = vrot.slane %v2767_v11, %v12796_v43  ;;  %v3789_v40 = vcombine.high %v2701_v58, %v2701_v58  ;;  %16566 = vst [vmem:[#allocation16_spill] sm:$0xff] %v15896_v16 }
 0x3d1   :  { %v3837_v41 = vrot.slane %v3823_v39, %v12796_v43  ;;  %v3838_v23 = vcombine.high %v3830_v55, %v3830_v55  ;;  %v11149_v38 = vrot.slane %v3830_v55, 9  ;;  %v3796_v29 = vrot.slane %v2701_v58, %v12796_v43 }
 0x3d2   :  { %v4925_v30 = vrot.slane %v4911_v49, %v12796_v43  ;;  %v4926_v45 = vcombine.high %v4918_v54, %v4918_v54  ;;  %v11405_v47 = vrot.slane %v4918_v54, 9  ;;  %v3803_v61 = vrot.slane %v3789_v40, %v12796_v43 }
 0x3d3   :  { %v3839_v33 = vcombine.high %v3837_v41, %v3837_v41  ;;  %v11150_v37 = vrot.slane %v3838_v23, 9  ;;  %v11151_v3 = vrot.slane %v3837_v41, 9  ;;  %v7345_v20 = vmax.f32 %v3830_v55, %v11149_v38 }
 0x3d4   :  { %v4927_v18 = vcombine.high %v4925_v30, %v4925_v30  ;;  %v11406_v17 = vrot.slane %v4926_v45, 9  ;;  %v11407_v11 = vrot.slane %v4925_v30, 9  ;;  %v7601_v6 = vmax.f32 %v4918_v54, %v11405_v47 }
 0x3d5   :  { %v11152_v13 = vrot.slane %v3839_v33, 9  ;;  %v7346_v39 = vmax.f32 %v3838_v23, %v11150_v37  ;;  %v7347_v0 = vmax.f32 %v3837_v41, %v11151_v3  ;;  %v4877_v7 = vcombine.high %v2765_v15, %v2765_v15 }
 0x3d6   :  { %v9020_v58 = vrot.slane %v7345_v20, %v12942_v59  ;;  %v11408_v19 = vrot.slane %v4927_v18, 9  ;;  %v7602_v49 = vmax.f32 %v4926_v45, %v11406_v17  ;;  %v7603_v16 = vmax.f32 %v4925_v30, %v11407_v11 }
 0x3d7   :  { %v7348_v53 = vmax.f32 %v3839_v33, %v11152_v13  ;;  %v9024_v40 = vrot.slane %v7346_v39, %v12942_v59  ;;  %v9028_v62 = vrot.slane %v7347_v0, %v12942_v59  ;;  %v3804_v25 = vcombine.high %v3796_v29, %v3796_v29 }
 0x3d8   :  { %v15905_v55 = vmax.f32 %v4927_v18, %v11408_v19  ;;  %v10044_v38 = vrot.slane %v7601_v6, %v12942_v59  ;;  %v10048_v54 = vrot.slane %v7602_v49, %v12942_v59  ;;  %v3805_v23 = vcombine.high %v3803_v61, %v3803_v61 }
 0x3d9   :  { %v10397_v41 = vsel %vm10201_vm3, %v9024_v40, %v9020_v58  ;;  %v10052_v47 = vrot.slane %v7603_v16, %v12942_v59  ;;  %v11141_v37 = vrot.slane %v3796_v29, 9  ;;  %v11142_v45 = vrot.slane %v3804_v25, 9 }
 0x3da   :  { %v9032_v13 = vrot.slane %v7348_v53, %v12942_v59  ;;  %v10398_v30 = vsel %vm10203_vm4, %v9028_v62, %v10397_v41  ;;  %v10056_v0 = vrot.slane %v15905_v55, %v12942_v59  ;;  %v11143_v19 = vrot.slane %v3803_v61, 9 }
 0x3db   :  { %v10621_v33 = vsel %vm10201_vm3, %v10048_v54, %v10044_v38  ;;  %v11144_v3 = vrot.slane %v3805_v23, 9  ;;  %v7337_v20 = vmax.f32 %v3796_v29, %v11141_v37  ;;  %v7338_v18 = vmax.f32 %v3804_v25, %v11142_v45 }
 0x3dc   :  { %v7339_v17 = vmax.f32 %v3803_v61, %v11143_v19  ;;  %v4884_v11 = vrot.slane %v2765_v15, %v12796_v43  ;;  %v4891_v16 = vrot.slane %v4877_v7, %v12796_v43  ;;  %v3840_v6 = vcombine.high %v15889_v50, %v15889_v50 }
 0x3dd   :  { %v7340_v53 = vmax.f32 %v3805_v23, %v11144_v3  ;;  %v8988_v62 = vrot.slane %v7337_v20, %v12942_v59  ;;  %v8992_v39 = vrot.slane %v7338_v18, %v12942_v59  ;;  %v3847_v58 = vrot.slane %v15889_v50, %v12796_v43 }
 0x3de   :  { %v8996_v49 = vrot.slane %v7339_v17, %v12942_v59  ;;  %v4892_v29 = vcombine.high %v4884_v11, %v4884_v11  ;;  %v4893_v25 = vcombine.high %v4891_v16, %v4891_v16  ;;  %v11397_v61 = vrot.slane %v4884_v11, 9 }
 0x3df   :  { %v10622_v15 = vsel %vm10203_vm4, %v10052_v47, %v10621_v33  ;;  %v10390_v7 = vsel %vm10201_vm3, %v8992_v39, %v8988_v62  ;;  %v11399_v40 = vrot.slane %v4891_v16, 9  ;;  %v3854_v55 = vrot.slane %v3840_v6, %v12796_v43 }
 0x3e0   :  { %v9000_v38 = vrot.slane %v7340_v53, %v12942_v59  ;;  %v11398_v54 = vrot.slane %v4892_v29, 9  ;;  %v11400_v23 = vrot.slane %v4893_v25, 9  ;;  %v7593_v41 = vmax.f32 %v4884_v11, %v11397_v61 }
 0x3e1   :  { %v7595_v37 = vmax.f32 %v4891_v16, %v11399_v40  ;;  %v3855_v45 = vcombine.high %v3847_v58, %v3847_v58  ;;  %v3856_v50 = vcombine.high %v3854_v55, %v3854_v55  ;;  %v11153_v19 = vrot.slane %v3847_v58, 9 }
 0x3e2   :  { %v10391_v3 = vsel %vm10203_vm4, %v8996_v49, %v10390_v7  ;;  %v7594_v20 = vmax.f32 %v4892_v29, %v11398_v54  ;;  %v15930_v18 = vmax.f32 %v4893_v25, %v11400_v23  ;;  %v11155_v47 = vrot.slane %v3854_v55, 9 }
 0x3e3   :  { %v10020_v33 = vrot.slane %v7595_v37, %v12942_v59  ;;  %v11154_v17 = vrot.slane %v3855_v45, 9  ;;  %v11156_v62 = vrot.slane %v3856_v50, 9  ;;  %v7349_v6 = vmax.f32 %v3847_v58, %v11153_v19 }
 0x3e4   :  { %v10012_v53 = vrot.slane %v7593_v41, %v12942_v59  ;;  %v10016_v39 = vrot.slane %v7594_v20, %v12942_v59  ;;  %v7351_v11 = vmax.f32 %v3854_v55, %v11155_v47  ;;  %v10399_v16 = vsel %vm10205_vm5, %v9032_v13, %v10398_v30 }
 0x3e5   :  { %v7350_v61 = vmax.f32 %v3855_v45, %v11154_v17  ;;  %v7352_v40 = vmax.f32 %v3856_v50, %v11156_v62  ;;  %v9036_v49 = vrot.slane %v7349_v6, %v12942_v59  ;;  %v16567_v29 = vmax.f32 %v15880_v5, 0.0 }
 0x3e6   :  { %v16568_v25 = vmax.f32 %v15841_v46, 0.0  ;;  %v10024_v54 = vrot.slane %v15930_v18, %v12942_v59  ;;  %v10614_v58 = vsel %vm10201_vm3, %v10016_v39, %v10012_v53  ;;  %v9044_v23 = vrot.slane %v7351_v11, %v12942_v59 }
 0x3e7   :  { %v2502_v55 = vmax.f32 %v15892_v52, 0.0  ;;  %v15947_v13 = vsel %vm10203_vm4, %v10020_v33, %v10614_v58  ;;  %v9040_v30 = vrot.slane %v7350_v61, %v12942_v59  ;;  %v10400_v41 = vsel %vm10207_vm6, %v9036_v49, %v10399_v16  ;;  %v16570_v33 = vld [vmem:[#allocation9_spill] sm:$0xff] }
 0x3e8   :  { %v2768_v7 = vmax.f32 %v16568_v25, %v16567_v29  ;;  %v10623_v5 = vsel %vm10205_vm5, %v10056_v0, %v10622_v15  ;;  %v9048_v46 = vrot.slane %v7352_v40, %v12942_v59  ;;  %v16569_v50 = vmax.f32 %v15849_v27, 0.0 }
 0x3e9   :  { %v10401_v20 = vsel %vm10209_vm7, %v9040_v30, %v10400_v41  ;;  %v10392_v52 = vsel %vm10205_vm5, %v9000_v38, %v10391_v3  ;;  %v2374_v47 = vadd.f32 %v15838_v21, %v15884_v10  ;;  %v1988_v17 = vmul.f32 %v15854_v48, %v16570_v33 }
 0x3ea   :  { %v4928_v37 = vcombine.high %v2768_v7, %v2768_v7  ;;  %v4935_v45 = vrot.slane %v2768_v7, %v12796_v43  ;;  %v2702_v19 = vmax.f32 %v16569_v50, %v2502_v55  ;;  %v10402_v0 = vsel %vm10211_vm8, %v9044_v23, %v10401_v20 }
 0x3eb   :  { %v10403_v53 = vsel %vm10213_vm9, %v9048_v46, %v10402_v0  ;;  %v2630_v11 = vmax.f32 %v2374_v47, 0.0  ;;  %v16571_v29 = vmax.f32 %v15863_v2, 0.0  ;;  %v2114_v18 = vmul.f32 %v15854_v48, %v15525_v12 }
 0x3ec   :  { %v4942_v15 = vrot.slane %v4928_v37, %v12796_v43  ;;  %v4943_v62 = vcombine.high %v4935_v45, %v4935_v45  ;;  %v11409_v6 = vrot.slane %v4935_v45, 9  ;;  %v3806_v27 = vcombine.high %v2702_v19, %v2702_v19  ;;  %10748 = vst.msk [vmem:[#allocation2 + $0xd8] sm:$0xff] %vm10720_vm10, %v10403_v53 }
 0x3ed   :  { %v3813_v39 = vrot.slane %v2702_v19, %v12796_v43  ;;  %v2766_v25 = vmax.f32 %v16571_v29, %v2630_v11  ;;  %v2251_v29 = vadd.f32 %v15838_v21, %v1988_v17 }
 0x3ee   :  { %v4944_v38 = vcombine.high %v4942_v15, %v4942_v15  ;;  %v11410_v3 = vrot.slane %v4943_v62, 9  ;;  %v11411_v10 = vrot.slane %v4942_v15, 9  ;;  %v7605_v16 = vmax.f32 %v4935_v45, %v11409_v6 }
 0x3ef   :  { %v3820_v61 = vrot.slane %v3806_v27, %v12796_v43  ;;  %v3821_v40 = vcombine.high %v3813_v39, %v3813_v39  ;;  %v11145_v49 = vrot.slane %v3813_v39, 9  ;;  %v4894_v6 = vcombine.high %v2766_v25, %v2766_v25 }
 0x3f0   :  { %v11412_v7 = vrot.slane %v4944_v38, 9  ;;  %v7606_v58 = vmax.f32 %v4943_v62, %v11410_v3  ;;  %v7607_v23 = vmax.f32 %v4942_v15, %v11411_v10  ;;  %v10060_v55 = vrot.slane %v7605_v16, %v12942_v59 }
 0x3f1   :  { %v3822_v30 = vcombine.high %v3820_v61, %v3820_v61  ;;  %v11146_v41 = vrot.slane %v3821_v40, 9  ;;  %v11147_v46 = vrot.slane %v3820_v61, 9  ;;  %v7341_v37 = vmax.f32 %v3813_v39, %v11145_v49 }
 0x3f2   :  { %v7608_v50 = vmax.f32 %v4944_v38, %v11412_v7  ;;  %v10064_v19 = vrot.slane %v7606_v58, %v12942_v59  ;;  %v10068_v45 = vrot.slane %v7607_v23, %v12942_v59  ;;  %v10624_v20 = vsel %vm10207_vm6, %v10060_v55, %v10623_v5 }
 0x3f3   :  { %v11148_v47 = vrot.slane %v3822_v30, 9  ;;  %v7342_v33 = vmax.f32 %v3821_v40, %v11146_v41  ;;  %v7343_v2 = vmax.f32 %v3820_v61, %v11147_v46  ;;  %v9004_v0 = vrot.slane %v7341_v37, %v12942_v59  ;;  %v16572_v41 = vld [vmem:[#allocation10_spill] sm:$0xff] }
 0x3f4   :  { %v10072_v15 = vrot.slane %v7608_v50, %v12942_v59  ;;  %v10625_v62 = vsel %vm10209_vm7, %v10064_v19, %v10624_v20  ;;  %v4901_v53 = vrot.slane %v2766_v25, %v12796_v43  ;;  %v4908_v10 = vrot.slane %v4894_v6, %v12796_v43 }
 0x3f5   :  { %v10626_v27 = vsel %vm10211_vm8, %v10068_v45, %v10625_v62  ;;  %v7344_v39 = vmax.f32 %v3822_v30, %v11148_v47  ;;  %v9008_v11 = vrot.slane %v7342_v33, %v12942_v59  ;;  %v9012_v38 = vrot.slane %v7343_v2, %v12942_v59 }
 0x3f6   :  { %v10627_v5 = vsel %vm10213_vm9, %v10072_v15, %v10626_v27  ;;  %v10393_v3 = vsel %vm10207_vm6, %v9004_v0, %v10392_v52  ;;  %v4909_v16 = vcombine.high %v4901_v53, %v4901_v53  ;;  %v11401_v49 = vrot.slane %v4901_v53, 9 }
 0x3f7   :  { %10780 = vst.msk [vmem:[#allocation2 + $0x1d8] sm:$0xff] %vm10720_vm10, %v10627_v5  ;;  %v9016_v61 = vrot.slane %v7344_v39, %v12942_v59  ;;  %v10394_v40 = vsel %vm10209_vm7, %v9008_v11, %v10393_v3  ;;  %v4910_v7 = vcombine.high %v4908_v10, %v4908_v10  ;;  %v11403_v23 = vrot.slane %v4908_v10, 9 }
 0x3f8   :  { %v10395_v25 = vsel %vm10211_vm8, %v9012_v38, %v10394_v40  ;;  %v11402_v58 = vrot.slane %v4909_v16, 9  ;;  %v7597_v52 = vmax.f32 %v4901_v53, %v11401_v49  ;;  %v10616_v30 = vsel %vm10205_vm5, %v10024_v54, %v15947_v13 }
 0x3f9   :  { %v10396_v55 = vsel %vm10213_vm9, %v9016_v61, %v10395_v25  ;;  %v2116_v46 = vmul.f32 %v15854_v48, %v16572_v41  ;;  %v11404_v17 = vrot.slane %v4910_v7, 9  ;;  %v7599_v50 = vmax.f32 %v4908_v10, %v11403_v23 }
 0x3fa   :  { %10747 = vst.msk [vmem:[#allocation2 + $0xd0] sm:$0xff] %vm10720_vm10, %v10396_v55  ;;  %v7598_v37 = vmax.f32 %v4909_v16, %v11402_v58  ;;  %v1986_v19 = vmul.f32 %v15854_v48, %v15523_v24  ;;  %v10028_v45 = vrot.slane %v7597_v52, %v12942_v59  ;;  %v1989_v54 = vmul.f32 %v15854_v48, %v15538_v1 }
 0x3fb   :  { %v2379_v20 = vadd.f32 %v15838_v21, %v2116_v46  ;;  %v7600_v13 = vmax.f32 %v4910_v7, %v11404_v17  ;;  %v2507_v33 = vmax.f32 %v2251_v29, 0.0  ;;  %v10036_v0 = vrot.slane %v7599_v50, %v12942_v59 }
 0x3fc   :  { %v10032_v47 = vrot.slane %v7598_v37, %v12942_v59  ;;  %v2249_v2 = vadd.f32 %v15838_v21, %v1986_v19  ;;  %v10617_v24 = vsel %vm10207_vm6, %v10028_v45, %v10616_v30  ;;  %v2377_v62 = vadd.f32 %v15838_v21, %v2114_v18 }
 0x3fd   :  { %v2635_v15 = vmax.f32 %v2379_v20, 0.0  ;;  %v10040_v6 = vrot.slane %v7600_v13, %v12942_v59  ;;  %v2252_v53 = vadd.f32 %v15838_v21, %v1989_v54  ;;  %v2117_v1 = vmul.f32 %v15854_v48, %v15540_v56  ;;  %v16574_v54 = vld [vmem:[#allocation12_spill] sm:$0xff] }
 0x3fe   :  { %v10618_v12 = vsel %vm10209_vm7, %v10032_v47, %v10617_v24  ;;  %v2505_v39 = vmax.f32 %v2249_v2, 0.0  ;;  %v2633_v11 = vmax.f32 %v2377_v62, 0.0  ;;  %v1987_v38 = vmul.f32 %v15854_v48, %v15554_v9 }
 0x3ff   :  { %v10619_v27 = vsel %vm10211_vm8, %v10036_v0, %v10618_v12  ;;  %v16021_v3 = vadd.f32 %v15838_v21, %v2117_v1  ;;  %v2115_v10 = vmul.f32 %v15854_v48, %v15556_v8  ;;  %v1992_v16 = vmul.f32 %v15854_v48, %v15568_v26 }
 0x400   :  { %v10620_v5 = vsel %vm10213_vm9, %v10040_v6, %v10619_v27  ;;  %v16029_v56 = vadd.f32 %v15838_v21, %v1987_v38  ;;  %v2120_v61 = vmul.f32 %v15854_v48, %v15570_v60  ;;  %v1990_v9 = vmul.f32 %v15854_v48, %v15573_v28 }
 0x401   :  { %10779 = vst.msk [vmem:[#allocation2 + $0x1d0] sm:$0xff] %vm10720_vm10, %v10620_v5  ;;  %v2118_v40 = vmul.f32 %v15854_v48, %v15581_v34  ;;  %v2508_v49 = vmax.f32 %v2252_v53, 0.0  ;;  %v16038_v8 = vadd.f32 %v15838_v21, %v2115_v10  ;;  %v2255_v26 = vadd.f32 %v15838_v21, %v1992_v16 }
 0x402   :  { %v1993_v29 = vmul.f32 %v15854_v48, %v15610_v22  ;;  %v2636_v25 = vmax.f32 %v16021_v3, 0.0  ;;  %v2383_v7 = vadd.f32 %v15838_v21, %v2120_v61  ;;  %v2253_v60 = vadd.f32 %v15838_v21, %v1990_v9  ;;  %v16573_v22 = vld [vmem:[#allocation11_spill] sm:$0xff] }
 0x403   :  { %v2381_v28 = vadd.f32 %v15838_v21, %v2118_v40  ;;  %v2506_v58 = vmax.f32 %v16029_v56, 0.0  ;;  %v2511_v34 = vmax.f32 %v2255_v26, 0.0  ;;  %v2121_v55 = vmul.f32 %v15854_v48, %v15618_v31 }
 0x404   :  { %v2256_v23 = vadd.f32 %v15838_v21, %v1993_v29  ;;  %v2639_v52 = vmax.f32 %v2383_v7, 0.0  ;;  %v2509_v30 = vmax.f32 %v2253_v60, 0.0  ;;  %v1991_v46 = vmul.f32 %v15854_v48, %v16573_v22 }
 0x405   :  { %v2637_v41 = vmax.f32 %v2381_v28, 0.0  ;;  %v2634_v17 = vmax.f32 %v16038_v8, 0.0  ;;  %v2707_v37 = vmax.f32 %v2507_v33, %v2511_v34  ;;  %v16055_v19 = vadd.f32 %v15838_v21, %v2121_v55 }
 0x406   :  { %v2512_v50 = vmax.f32 %v2256_v23, 0.0  ;;  %v2771_v45 = vmax.f32 %v2635_v15, %v2639_v52  ;;  %v2705_v20 = vmax.f32 %v2505_v39, %v2509_v30  ;;  %v16059_v13 = vmul.f32 %v15854_v48, %v16574_v54 }
 0x407   :  { %v2769_v18 = vmax.f32 %v2633_v11, %v2637_v41  ;;  %v3891_v31 = vcombine.high %v2707_v37, %v2707_v37  ;;  %v3898_v47 = vrot.slane %v2707_v37, %v12796_v43  ;;  %v16065_v0 = vadd.f32 %v15838_v21, %v1991_v46 }
 0x408   :  { %v16062_v2 = vmax.f32 %v2508_v49, %v2512_v50  ;;  %v4979_v33 = vcombine.high %v2771_v45, %v2771_v45  ;;  %v4986_v24 = vrot.slane %v2771_v45, %v12796_v43  ;;  %v3857_v62 = vcombine.high %v2705_v20, %v2705_v20 }
 0x409   :  { %v2640_v15 = vmax.f32 %v16055_v19, 0.0  ;;  %v3905_v6 = vrot.slane %v3891_v31, %v12796_v43  ;;  %v3906_v12 = vcombine.high %v3898_v47, %v3898_v47  ;;  %v11165_v53 = vrot.slane %v3898_v47, 9 }
 0x40a   :  { %v3864_v1 = vrot.slane %v2705_v20, %v12796_v43  ;;  %v4993_v27 = vrot.slane %v4979_v33, %v12796_v43  ;;  %v4994_v39 = vcombine.high %v4986_v24, %v4986_v24  ;;  %v11421_v11 = vrot.slane %v4986_v24, 9 }
 0x40b   :  { %v3871_v38 = vrot.slane %v3857_v62, %v12796_v43  ;;  %v3907_v5 = vcombine.high %v3905_v6, %v3905_v6  ;;  %v11166_v10 = vrot.slane %v3906_v12, 9  ;;  %v11167_v16 = vrot.slane %v3905_v6, 9 }
 0x40c   :  { %v7361_v61 = vmax.f32 %v3898_v47, %v11165_v53  ;;  %v4995_v9 = vcombine.high %v4993_v27, %v4993_v27  ;;  %v11422_v40 = vrot.slane %v4994_v39, 9  ;;  %v11423_v49 = vrot.slane %v4993_v27, 9 }
 0x40d   :  { %v7617_v26 = vmax.f32 %v4986_v24, %v11421_v11  ;;  %v11168_v29 = vrot.slane %v3907_v5, 9  ;;  %v7362_v7 = vmax.f32 %v3906_v12, %v11166_v10  ;;  %v7363_v60 = vmax.f32 %v3905_v6, %v11167_v16 }
 0x40e   :  { %v4945_v28 = vcombine.high %v2769_v18, %v2769_v18  ;;  %v9084_v34 = vrot.slane %v7361_v61, %v12942_v59  ;;  %v11424_v23 = vrot.slane %v4995_v9, 9  ;;  %v7618_v55 = vmax.f32 %v4994_v39, %v11422_v40 }
 0x40f   :  { %v7619_v52 = vmax.f32 %v4993_v27, %v11423_v49  ;;  %v7364_v30 = vmax.f32 %v3907_v5, %v11168_v29  ;;  %v9088_v41 = vrot.slane %v7362_v7, %v12942_v59  ;;  %v9092_v22 = vrot.slane %v7363_v60, %v12942_v59 }
 0x410   :  { %v3872_v46 = vcombine.high %v3864_v1, %v3864_v1  ;;  %v16076_v37 = vmax.f32 %v4995_v9, %v11424_v23  ;;  %v10108_v50 = vrot.slane %v7617_v26, %v12942_v59  ;;  %v10112_v45 = vrot.slane %v7618_v55, %v12942_v59 }
 0x411   :  { %v3873_v20 = vcombine.high %v3871_v38, %v3871_v38  ;;  %v10411_v54 = vsel %vm10201_vm3, %v9088_v41, %v9084_v34  ;;  %v10116_v31 = vrot.slane %v7619_v52, %v12942_v59  ;;  %v11157_v47 = vrot.slane %v3864_v1, 9 }
 0x412   :  { %v11158_v33 = vrot.slane %v3872_v46, 9  ;;  %v9096_v24 = vrot.slane %v7364_v30, %v12942_v59  ;;  %v10412_v62 = vsel %vm10203_vm4, %v9092_v22, %v10411_v54  ;;  %v10120_v6 = vrot.slane %v16076_v37, %v12942_v59 }
 0x413   :  { %v11159_v12 = vrot.slane %v3871_v38, 9  ;;  %v10635_v53 = vsel %vm10201_vm3, %v10112_v45, %v10108_v50  ;;  %v11160_v27 = vrot.slane %v3873_v20, 9  ;;  %v7353_v39 = vmax.f32 %v3864_v1, %v11157_v47 }
 0x414   :  { %v7354_v11 = vmax.f32 %v3872_v46, %v11158_v33  ;;  %v4952_v10 = vrot.slane %v2769_v18, %v12796_v43  ;;  %v4959_v16 = vrot.slane %v4945_v28, %v12796_v43  ;;  %v3908_v61 = vcombine.high %v16062_v2, %v16062_v2 }
 0x415   :  { %v7355_v5 = vmax.f32 %v3871_v38, %v11159_v12  ;;  %v7356_v9 = vmax.f32 %v3873_v20, %v11160_v27  ;;  %v9052_v40 = vrot.slane %v7353_v39, %v12942_v59  ;;  %v3915_v26 = vrot.slane %v16062_v2, %v12796_v43 }
 0x416   :  { %v9056_v49 = vrot.slane %v7354_v11, %v12942_v59  ;;  %v4960_v1 = vcombine.high %v4952_v10, %v4952_v10  ;;  %v4961_v7 = vcombine.high %v4959_v16, %v4959_v16  ;;  %v11413_v38 = vrot.slane %v4952_v10, 9 }
 0x417   :  { %v9060_v29 = vrot.slane %v7355_v5, %v12942_v59  ;;  %v10636_v18 = vsel %vm10203_vm4, %v10116_v31, %v10635_v53  ;;  %v11415_v28 = vrot.slane %v4959_v16, 9  ;;  %v3922_v34 = vrot.slane %v3908_v61, %v12796_v43 }
 0x418   :  { %v10404_v60 = vsel %vm10201_vm3, %v9056_v49, %v9052_v40  ;;  %v9064_v23 = vrot.slane %v7356_v9, %v12942_v59  ;;  %v11414_v55 = vrot.slane %v4960_v1, 9  ;;  %v11416_v52 = vrot.slane %v4961_v7, 9 }
 0x419   :  { %v7609_v30 = vmax.f32 %v4952_v10, %v11413_v38  ;;  %v7611_v41 = vmax.f32 %v4959_v16, %v11415_v28  ;;  %v3923_v22 = vcombine.high %v3915_v26, %v3915_v26  ;;  %v3924_v2 = vcombine.high %v3922_v34, %v3922_v34  ;;  %v16575_v38 = vld [vmem:[#allocation5_spill] sm:$0xff] }
 0x41a   :  { %v11169_v46 = vrot.slane %v3915_v26, 9  ;;  %v10405_v37 = vsel %vm10203_vm4, %v9060_v29, %v10404_v60  ;;  %v7610_v50 = vmax.f32 %v4960_v1, %v11414_v55  ;;  %v16101_v45 = vmax.f32 %v4961_v7, %v11416_v52 }
 0x41b   :  { %v11171_v20 = vrot.slane %v3922_v34, 9  ;;  %v10084_v54 = vrot.slane %v7611_v41, %v12942_v59  ;;  %v11170_v31 = vrot.slane %v3923_v22, 9  ;;  %v11172_v47 = vrot.slane %v3924_v2, 9 }
 0x41c   :  { %v7365_v33 = vmax.f32 %v3915_v26, %v11169_v46  ;;  %v10076_v12 = vrot.slane %v7609_v30, %v12942_v59  ;;  %v10080_v53 = vrot.slane %v7610_v50, %v12942_v59  ;;  %v10413_v39 = vsel %vm10205_vm5, %v9096_v24, %v10412_v62 }
 0x41d   :  { %v7367_v27 = vmax.f32 %v3922_v34, %v11171_v20  ;;  %v7366_v11 = vmax.f32 %v3923_v22, %v11170_v31  ;;  %v7368_v5 = vmax.f32 %v3924_v2, %v11172_v47  ;;  %v2772_v16 = vmax.f32 %v2636_v25, %v2640_v15 }
 0x41e   :  { %v9100_v10 = vrot.slane %v7365_v33, %v12942_v59  ;;  %v10088_v61 = vrot.slane %v16101_v45, %v12942_v59  ;;  %v10628_v9 = vsel %vm10201_vm3, %v10080_v53, %v10076_v12  ;;  %v2510_v49 = vmax.f32 %v16065_v0, 0.0 }
 0x41f   :  { %v9108_v40 = vrot.slane %v7367_v27, %v12942_v59  ;;  %v10629_v24 = vsel %vm10203_vm4, %v10084_v54, %v10628_v9  ;;  %v9104_v62 = vrot.slane %v7366_v11, %v12942_v59  ;;  %v10637_v19 = vsel %vm10205_vm5, %v10120_v6, %v10636_v18 }
 0x420   :  { %v10414_v26 = vsel %vm10207_vm6, %v9100_v10, %v10413_v39  ;;  %v9112_v3 = vrot.slane %v7368_v5, %v12942_v59  ;;  %v4996_v25 = vcombine.high %v2772_v16, %v2772_v16  ;;  %v5003_v15 = vrot.slane %v2772_v16, %v12796_v43 }
 0x421   :  { %v2706_v29 = vmax.f32 %v2506_v58, %v2510_v49  ;;  %v10415_v1 = vsel %vm10209_vm7, %v9104_v62, %v10414_v26  ;;  %v10406_v0 = vsel %vm10205_vm5, %v9064_v23, %v10405_v37  ;;  %v2382_v7 = vadd.f32 %v15838_v21, %v16059_v13 }
 0x422   :  { %v1996_v60 = vmul.f32 %v15854_v48, %v16575_v38  ;;  %v10416_v6 = vsel %vm10211_vm8, %v9108_v40, %v10415_v1  ;;  %v5010_v18 = vrot.slane %v4996_v25, %v12796_v43  ;;  %v5011_v28 = vcombine.high %v5003_v15, %v5003_v15 }
 0x423   :  { %v11425_v34 = vrot.slane %v5003_v15, 9  ;;  %v10417_v55 = vsel %vm10213_vm9, %v9112_v3, %v10416_v6  ;;  %v3874_v56 = vcombine.high %v2706_v29, %v2706_v29  ;;  %v3881_v58 = vrot.slane %v2706_v29, %v12796_v43 }
 0x424   :  { %v2638_v52 = vmax.f32 %v2382_v7, 0.0  ;;  %10750 = vst.msk [vmem:[#allocation2 + $0xe8] sm:$0xff] %vm10720_vm10, %v10417_v55  ;;  %v5012_v23 = vcombine.high %v5010_v18, %v5010_v18  ;;  %v11426_v30 = vrot.slane %v5011_v28, 9  ;;  %v11427_v13 = vrot.slane %v5010_v18, 9 }
 0x425   :  { %v7621_v41 = vmax.f32 %v5003_v15, %v11425_v34  ;;  %v3888_v22 = vrot.slane %v3874_v56, %v12796_v43  ;;  %v3889_v2 = vcombine.high %v3881_v58, %v3881_v58  ;;  %v11161_v46 = vrot.slane %v3881_v58, 9 }
 0x426   :  { %v2770_v37 = vmax.f32 %v2634_v17, %v2638_v52  ;;  %v11428_v50 = vrot.slane %v5012_v23, 9  ;;  %v7622_v20 = vmax.f32 %v5011_v28, %v11426_v30  ;;  %v7623_v54 = vmax.f32 %v5010_v18, %v11427_v13  ;;  %v16576_v30 = vld [vmem:[#allocation6_spill] sm:$0xff] }
 0x427   :  { %v10124_v31 = vrot.slane %v7621_v41, %v12942_v59  ;;  %v3890_v47 = vcombine.high %v3888_v22, %v3888_v22  ;;  %v11162_v33 = vrot.slane %v3889_v2, 9  ;;  %v11163_v12 = vrot.slane %v3888_v22, 9 }
 0x428   :  { %v7357_v53 = vmax.f32 %v3881_v58, %v11161_v46  ;;  %v7624_v27 = vmax.f32 %v5012_v23, %v11428_v50  ;;  %v10128_v39 = vrot.slane %v7622_v20, %v12942_v59  ;;  %v10132_v11 = vrot.slane %v7623_v54, %v12942_v59 }
 0x429   :  { %v10638_v5 = vsel %vm10207_vm6, %v10124_v31, %v10637_v19  ;;  %v11164_v10 = vrot.slane %v3890_v47, 9  ;;  %v7358_v16 = vmax.f32 %v3889_v2, %v11162_v33  ;;  %v7359_v8 = vmax.f32 %v3888_v22, %v11163_v12 }
 0x42a   :  { %v9068_v17 = vrot.slane %v7357_v53, %v12942_v59  ;;  %v10136_v9 = vrot.slane %v7624_v27, %v12942_v59  ;;  %v10639_v40 = vsel %vm10209_vm7, %v10128_v39, %v10638_v5  ;;  %v4962_v49 = vcombine.high %v2770_v37, %v2770_v37 }
 0x42b   :  { %v4969_v62 = vrot.slane %v2770_v37, %v12796_v43  ;;  %v10640_v26 = vsel %vm10211_vm8, %v10132_v11, %v10639_v40  ;;  %v7360_v3 = vmax.f32 %v3890_v47, %v11164_v10  ;;  %v9072_v25 = vrot.slane %v7358_v16, %v12942_v59  ;;  %v16577_v40 = vld [vmem:[#allocation13_spill] sm:$0xff] }
 0x42c   :  { %v9076_v15 = vrot.slane %v7359_v8, %v12942_v59  ;;  %v10641_v19 = vsel %vm10213_vm9, %v10136_v9, %v10640_v26  ;;  %v10407_v29 = vsel %vm10207_vm6, %v9068_v17, %v10406_v0  ;;  %v4976_v1 = vrot.slane %v4962_v49, %v12796_v43 }
 0x42d   :  { %v4977_v7 = vcombine.high %v4969_v62, %v4969_v62  ;;  %10782 = vst.msk [vmem:[#allocation2 + $0x1e8] sm:$0xff] %vm10720_vm10, %v10641_v19  ;;  %v9080_v38 = vrot.slane %v7360_v3, %v12942_v59  ;;  %v10408_v6 = vsel %vm10209_vm7, %v9072_v25, %v10407_v29  ;;  %v11417_v18 = vrot.slane %v4969_v62, 9 }
 0x42e   :  { %v10630_v28 = vsel %vm10205_vm5, %v10088_v61, %v10629_v24  ;;  %v10409_v34 = vsel %vm10211_vm8, %v9076_v15, %v10408_v6  ;;  %v4978_v55 = vcombine.high %v4976_v1, %v4976_v1  ;;  %v11419_v0 = vrot.slane %v4976_v1, 9  ;;  %v16578_v15 = vld [vmem:[#allocation14_spill] sm:$0xff] }
 0x42f   :  { %v11418_v56 = vrot.slane %v4977_v7, 9  ;;  %v10410_v58 = vsel %vm10213_vm9, %v9080_v38, %v10409_v34  ;;  %v7613_v52 = vmax.f32 %v4969_v62, %v11417_v18  ;;  %v2259_v23 = vadd.f32 %v15838_v21, %v1996_v60 }
 0x430   :  { %v2124_v13 = vmul.f32 %v15854_v48, %v16576_v30  ;;  %10749 = vst.msk [vmem:[#allocation2 + $0xe0] sm:$0xff] %vm10720_vm10, %v10410_v58  ;;  %v11420_v41 = vrot.slane %v4978_v55, 9  ;;  %v7615_v45 = vmax.f32 %v4976_v1, %v11419_v0  ;;  %v1994_v61 = vmul.f32 %v15854_v48, %v15729_v42  ;;  %v16579_v58 = vld [vmem:[#allocation15_spill] sm:$0xff] }
 0x431   :  { %v7614_v22 = vmax.f32 %v4977_v7, %v11418_v56  ;;  %v10092_v24 = vrot.slane %v7613_v52, %v12942_v59  ;;  %v2122_v46 = vmul.f32 %v15854_v48, %v15731_v14  ;;  %v1997_v60 = vmul.f32 %v15854_v48, %v15744_v35 }
 0x432   :  { %v2387_v2 = vadd.f32 %v15838_v21, %v2124_v13  ;;  %v7616_v37 = vmax.f32 %v4978_v55, %v11420_v41  ;;  %v2257_v20 = vadd.f32 %v15838_v21, %v1994_v61  ;;  %v10100_v54 = vrot.slane %v7615_v45, %v12942_v59 }
 0x433   :  { %v10096_v50 = vrot.slane %v7614_v22, %v12942_v59  ;;  %v10631_v31 = vsel %vm10207_vm6, %v10092_v24, %v10630_v28  ;;  %v2515_v42 = vmax.f32 %v2259_v23, 0.0  ;;  %v2125_v14 = vmul.f32 %v15854_v48, %v15746_v36  ;;  %v16580_v24 = vld [vmem:[#allocation16_spill] sm:$0xff] }
 0x434   :  { %v10104_v47 = vrot.slane %v7616_v37, %v12942_v59  ;;  %v2643_v12 = vmax.f32 %v2387_v2, 0.0  ;;  %v2385_v53 = vadd.f32 %v15838_v21, %v2122_v46  ;;  %v2260_v27 = vadd.f32 %v15838_v21, %v1997_v60 }
 0x435   :  { %v10632_v33 = vsel %vm10209_vm7, %v10096_v50, %v10631_v31  ;;  %v1995_v39 = vmul.f32 %v15854_v48, %v15760_v63  ;;  %v2513_v5 = vmax.f32 %v2257_v20, 0.0  ;;  %v2123_v10 = vmul.f32 %v15854_v48, %v15762_v32 }
 0x436   :  { %v10633_v35 = vsel %vm10211_vm8, %v10100_v54, %v10632_v33  ;;  %v2000_v16 = vmul.f32 %v15854_v48, %v15774_v51  ;;  %v16194_v36 = vadd.f32 %v15838_v21, %v2125_v14  ;;  %v2128_v8 = vmul.f32 %v15854_v48, %v15776_v57 }
 0x437   :  { %v10634_v11 = vsel %vm10213_vm9, %v10104_v47, %v10633_v35  ;;  %v1998_v63 = vmul.f32 %v15854_v48, %v15779_v4  ;;  %v2126_v17 = vmul.f32 %v15854_v48, %v15787_v44  ;;  %v16203_v9 = vadd.f32 %v15838_v21, %v1995_v39 }
 0x438   :  { %10781 = vst.msk [vmem:[#allocation2 + $0x1e0] sm:$0xff] %vm10720_vm10, %v10634_v11  ;;  %v16206_v32 = vadd.f32 %v15838_v21, %v2123_v10  ;;  %v2263_v51 = vadd.f32 %v15838_v21, %v2000_v16  ;;  %v2001_v49 = vmul.f32 %v15854_v48, %v16577_v40  ;;  %v2641_v62 = vmax.f32 %v2385_v53, 0.0 }
 0x439   :  { %v2391_v57 = vadd.f32 %v15838_v21, %v2128_v8  ;;  %v2261_v26 = vadd.f32 %v15838_v21, %v1998_v63  ;;  %v2389_v4 = vadd.f32 %v15838_v21, %v2126_v17  ;;  %v2516_v3 = vmax.f32 %v2260_v27, 0.0 }
 0x43a   :  { %v2519_v44 = vmax.f32 %v2263_v51, 0.0  ;;  %v2264_v25 = vadd.f32 %v15838_v21, %v2001_v49  ;;  %v2129_v19 = vmul.f32 %v15854_v48, %v16578_v15  ;;  %v2644_v29 = vmax.f32 %v16194_v36, 0.0 }
 0x43b   :  { %v2647_v1 = vmax.f32 %v2391_v57, 0.0  ;;  %v2517_v7 = vmax.f32 %v2261_v26, 0.0  ;;  %v2645_v38 = vmax.f32 %v2389_v4, 0.0  ;;  %v2514_v6 = vmax.f32 %v16203_v9, 0.0 }
 0x43c   :  { %v2642_v18 = vmax.f32 %v16206_v32, 0.0  ;;  %v2711_v28 = vmax.f32 %v2515_v42, %v2519_v44  ;;  %v2520_v34 = vmax.f32 %v2264_v25, 0.0  ;;  %v1999_v52 = vmul.f32 %v15854_v48, %v16579_v58 }
 0x43d   :  { %v2775_v55 = vmax.f32 %v2643_v12, %v2647_v1  ;;  %v2709_v56 = vmax.f32 %v2513_v5, %v2517_v7  ;;  %v2773_v0 = vmax.f32 %v2641_v62, %v2645_v38  ;;  %v16226_v41 = vadd.f32 %v15838_v21, %v2129_v19 }
 0x43e   :  { %v3959_v23 = vcombine.high %v2711_v28, %v2711_v28  ;;  %v3966_v30 = vrot.slane %v2711_v28, %v12796_v43  ;;  %v16223_v13 = vmax.f32 %v2516_v3, %v2520_v34  ;;  %v16231_v2 = vmul.f32 %v15854_v48, %v16580_v24 }
 0x43f   :  { %v5047_v22 = vcombine.high %v2775_v55, %v2775_v55  ;;  %v5054_v45 = vrot.slane %v2775_v55, %v12796_v43  ;;  %v3925_v61 = vcombine.high %v2709_v56, %v2709_v56  ;;  %v3932_v50 = vrot.slane %v2709_v56, %v12796_v43 }
 0x440   :  { %v3973_v46 = vrot.slane %v3959_v23, %v12796_v43  ;;  %v3974_v60 = vcombine.high %v3966_v30, %v3966_v30  ;;  %v11181_v37 = vrot.slane %v3966_v30, 9  ;;  %v16238_v10 = vadd.f32 %v15838_v21, %v1999_v52 }
 0x441   :  { %v5061_v20 = vrot.slane %v5047_v22, %v12796_v43  ;;  %v5062_v54 = vcombine.high %v5054_v45, %v5054_v45  ;;  %v11437_v31 = vrot.slane %v5054_v45, 9  ;;  %v3939_v42 = vrot.slane %v3925_v61, %v12796_v43 }
 0x442   :  { %v3975_v47 = vcombine.high %v3973_v46, %v3973_v46  ;;  %v11182_v33 = vrot.slane %v3974_v60, 9  ;;  %v11183_v12 = vrot.slane %v3973_v46, 9  ;;  %v7377_v14 = vmax.f32 %v3966_v30, %v11181_v37 }
 0x443   :  { %v5063_v35 = vcombine.high %v5061_v20, %v5061_v20  ;;  %v11438_v53 = vrot.slane %v5062_v54, 9  ;;  %v11439_v48 = vrot.slane %v5061_v20, 9  ;;  %v7633_v27 = vmax.f32 %v5054_v45, %v11437_v31 }
 0x444   :  { %v11184_v39 = vrot.slane %v3975_v47, 9  ;;  %v7378_v11 = vmax.f32 %v3974_v60, %v11182_v33  ;;  %v7379_v5 = vmax.f32 %v3973_v46, %v11183_v12  ;;  %v2648_v17 = vmax.f32 %v16226_v41, 0.0 }
 0x445   :  { %v11440_v16 = vrot.slane %v5063_v35, 9  ;;  %v7634_v8 = vmax.f32 %v5062_v54, %v11438_v53  ;;  %v7635_v63 = vmax.f32 %v5061_v20, %v11439_v48  ;;  %v3940_v49 = vcombine.high %v3932_v50, %v3932_v50 }
 0x446   :  { %v7380_v51 = vmax.f32 %v3975_v47, %v11184_v39  ;;  %v9152_v40 = vrot.slane %v7378_v11, %v12942_v59  ;;  %v5013_v62 = vcombine.high %v2773_v0, %v2773_v0  ;;  %v9148_v57 = vrot.slane %v7377_v14, %v12942_v59 }
 0x447   :  { %v10172_v26 = vrot.slane %v7633_v27, %v12942_v59  ;;  %v10176_v4 = vrot.slane %v7634_v8, %v12942_v59  ;;  %v3941_v3 = vcombine.high %v3939_v42, %v3939_v42  ;;  %v9156_v21 = vrot.slane %v7379_v5, %v12942_v59 }
 0x448   :  { %v16246_v44 = vmax.f32 %v5063_v35, %v11440_v16  ;;  %v11173_v25 = vrot.slane %v3932_v50, 9  ;;  %v11174_v15 = vrot.slane %v3940_v49, 9  ;;  %v9160_v19 = vrot.slane %v7380_v51, %v12942_v59 }
 0x449   :  { %v10425_v1 = vsel %vm10201_vm3, %v9152_v40, %v9148_v57  ;;  %v10180_v7 = vrot.slane %v7635_v63, %v12942_v59  ;;  %v11175_v38 = vrot.slane %v3939_v42, 9  ;;  %v10649_v28 = vsel %vm10201_vm3, %v10176_v4, %v10172_v26 }
 0x44a   :  { %v11176_v34 = vrot.slane %v3941_v3, 9  ;;  %v7369_v55 = vmax.f32 %v3932_v50, %v11173_v25  ;;  %v7370_v56 = vmax.f32 %v3940_v49, %v11174_v15  ;;  %v5020_v52 = vrot.slane %v2773_v0, %v12796_v43 }
 0x44b   :  { %v7371_v58 = vmax.f32 %v3939_v42, %v11175_v38  ;;  %v5027_v23 = vrot.slane %v5013_v62, %v12796_v43  ;;  %v3976_v30 = vcombine.high %v16223_v13, %v16223_v13  ;;  %v10426_v41 = vsel %vm10203_vm4, %v9156_v21, %v10425_v1 }
 0x44c   :  { %v10184_v22 = vrot.slane %v16246_v44, %v12942_v59  ;;  %v7372_v45 = vmax.f32 %v3941_v3, %v11176_v34  ;;  %v3983_v61 = vrot.slane %v16223_v13, %v12796_v43  ;;  %v10650_v24 = vsel %vm10203_vm4, %v10180_v7, %v10649_v28 }
 0x44d   :  { %v5028_v46 = vcombine.high %v5020_v52, %v5020_v52  ;;  %v5029_v60 = vcombine.high %v5027_v23, %v5027_v23  ;;  %v11429_v37 = vrot.slane %v5020_v52, 9  ;;  %v9116_v0 = vrot.slane %v7369_v55, %v12942_v59  ;;  %v11858_v55 = vld [vmem:[%s16356_s3] ss:$0 sm:$0xff]  ;;  %s11885_s3 = smov [#allocation2]  }
 0x44e   :  { %v9120_v50 = vrot.slane %v7370_v56, %v12942_v59  ;;  %v11431_v20 = vrot.slane %v5027_v23, 9  ;;  %v3990_v54 = vrot.slane %v3976_v30, %v12796_v43  ;;  %v9124_v31 = vrot.slane %v7371_v58, %v12942_v59  ;;  %s10790_s19 = sshll.u32 %s11885_s3, 4  ;;  %s10791_s19 = int_to_ptr.vmem [resolvable:$true] %s10790_s19 }
 0x44f   :  { %v11430_v42 = vrot.slane %v5028_v46, 9  ;;  %v11432_v47 = vrot.slane %v5029_v60, 9  ;;  %v7625_v33 = vmax.f32 %v5020_v52, %v11429_v37  ;;  %v9128_v12 = vrot.slane %v7372_v45, %v12942_v59  ;;  %s11859_s20 = scalar_lea.vmem %s10791_s19, 8192  ;;  %p11864_p1 = scmp.lt.s32.totalorder %s10791_s19, %s10791_s19 }
 0x450   :  { %v3991_v13 = vcombine.high %v3983_v61, %v3983_v61  ;;  %v3992_v14 = vcombine.high %v3990_v54, %v3990_v54  ;;  %v11185_v35 = vrot.slane %v3983_v61, 9  ;;  %v16267_v48 = vmax.f32 %v5027_v23, %v11431_v20  ;;  %p11860_p0 = scmp.ne.s32.totalorder %s10791_s19, %s11859_s20  ;;  %p11865_p2 = scmp.lt.s32.totalorder %s11859_s20, %s11859_s20 }
 0x451   :  { %v7626_v53 = vmax.f32 %v5028_v46, %v11430_v42  ;;  %v16269_v27 = vmax.f32 %v5029_v60, %v11432_v47  ;;  %v11187_v39 = vrot.slane %v3990_v54, 9  ;;  %v10418_v11 = vsel %vm10201_vm3, %v9120_v50, %v9116_v0 }
 0x452   :  { %v11186_v5 = vrot.slane %v3991_v13, 9  ;;  %v11188_v16 = vrot.slane %v3992_v14, 9  ;;  %v7381_v8 = vmax.f32 %v3983_v61, %v11185_v35  ;;  %v10140_v63 = vrot.slane %v7625_v33, %v12942_v59  ;;  %p11866_p3 = por %p11865_p2, %p11864_p1 }
 0x453   :  { %v10144_v51 = vrot.slane %v7626_v53, %v12942_v59  ;;  %v7383_v40 = vmax.f32 %v3990_v54, %v11187_v39  ;;  %v10427_v49 = vsel %vm10205_vm5, %v9160_v19, %v10426_v41  ;;  %v2776_v4 = vmax.f32 %v2644_v29, %v2648_v17 }
 0x454   :  { %v7382_v62 = vmax.f32 %v3991_v13, %v11186_v5  ;;  %v7384_v57 = vmax.f32 %v3992_v14, %v11188_v16  ;;  %v9164_v26 = vrot.slane %v7381_v8, %v12942_v59  ;;  %v10419_v3 = vsel %vm10203_vm4, %v9124_v31, %v10418_v11  ;;  %p11867_p4 = pnand %p11866_p3, %p11860_p0 }
 0x455   :  { %v10148_v21 = vrot.slane %v16267_v48, %v12942_v59  ;;  %v10152_v44 = vrot.slane %v16269_v27, %v12942_v59  ;;  %v2518_v25 = vmax.f32 %v16238_v10, 0.0  ;;  %v10642_v15 = vsel %vm10201_vm3, %v10144_v51, %v10140_v63 }
 0x456   :  { %v9168_v19 = vrot.slane %v7382_v62, %v12942_v59  ;;  %v9172_v1 = vrot.slane %v7383_v40, %v12942_v59  ;;  %v10428_v7 = vsel %vm10207_vm6, %v9164_v26, %v10427_v49  ;;  %v5064_v36 = vcombine.high %v2776_v4, %v2776_v4 }
 0x457   :  { %v5071_v29 = vrot.slane %v2776_v4, %v12796_v43  ;;  %v10651_v17 = vsel %vm10205_vm5, %v10184_v22, %v10650_v24  ;;  %v2710_v38 = vmax.f32 %v2514_v6, %v2518_v25  ;;  %v9176_v28 = vrot.slane %v7384_v57, %v12942_v59 }
 0x458   :  { %v10429_v10 = vsel %vm10209_vm7, %v9168_v19, %v10428_v7  ;;  %v10420_v34 = vsel %vm10205_vm5, %v9128_v12, %v10419_v3  ;;  %v2390_v56 = vadd.f32 %v11858_v55, %v16231_v2  ;;  %v5078_v52 = vrot.slane %v5064_v36, %v12796_v43 }
 0x459   :  { %v10430_v58 = vsel %vm10211_vm8, %v9172_v1, %v10429_v10  ;;  %v5079_v23 = vcombine.high %v5071_v29, %v5071_v29  ;;  %v11441_v30 = vrot.slane %v5071_v29, 9  ;;  %v3942_v6 = vcombine.high %v2710_v38, %v2710_v38 }
 0x45a   :  { %v10431_v9 = vsel %vm10213_vm9, %v9176_v28, %v10430_v58  ;;  %v3949_v41 = vrot.slane %v2710_v38, %v12796_v43  ;;  %v2646_v22 = vmax.f32 %v2390_v56, 0.0  ;;  %v5080_v45 = vcombine.high %v5078_v52, %v5078_v52 }
 0x45b   :  { %10752 = vst.msk [vmem:[#allocation2 + $0xf8] sm:$0xff] %vm10720_vm10, %v10431_v9  ;;  %v11442_v61 = vrot.slane %v5079_v23, 9  ;;  %v11443_v24 = vrot.slane %v5078_v52, 9  ;;  %v7637_v46 = vmax.f32 %v5071_v29, %v11441_v30  ;;  %v3956_v2 = vrot.slane %v3942_v6, %v12796_v43 }
 0x45c   :  { %v3957_v60 = vcombine.high %v3949_v41, %v3949_v41  ;;  %v11177_v37 = vrot.slane %v3949_v41, 9  ;;  %v2774_v0 = vmax.f32 %v2642_v18, %v2646_v22  ;;  %v11444_v50 = vrot.slane %v5080_v45, 9 }
 0x45d   :  { %v7638_v20 = vmax.f32 %v5079_v23, %v11442_v61  ;;  %v7639_v54 = vmax.f32 %v5078_v52, %v11443_v24  ;;  %v10188_v31 = vrot.slane %v7637_v46, %v12942_v59  ;;  %v3958_v42 = vcombine.high %v3956_v2, %v3956_v2 }
 0x45e   :  { %v11178_v47 = vrot.slane %v3957_v60, 9  ;;  %v11179_v33 = vrot.slane %v3956_v2, 9  ;;  %v7373_v12 = vmax.f32 %v3949_v41, %v11177_v37  ;;  %v7640_v13 = vmax.f32 %v5080_v45, %v11444_v50 }
 0x45f   :  { %v10192_v14 = vrot.slane %v7638_v20, %v12942_v59  ;;  %v10196_v35 = vrot.slane %v7639_v54, %v12942_v59  ;;  %v10652_v53 = vsel %vm10207_vm6, %v10188_v31, %v10651_v17  ;;  %v11180_v48 = vrot.slane %v3958_v42, 9 }
 0x460   :  { %v7374_v39 = vmax.f32 %v3957_v60, %v11178_v47  ;;  %v7375_v32 = vmax.f32 %v3956_v2, %v11179_v33  ;;  %v9132_v18 = vrot.slane %v7373_v12, %v12942_v59  ;;  %v10200_v11 = vrot.slane %v7640_v13, %v12942_v59 }
 0x461   :  { %v10653_v5 = vsel %vm10209_vm7, %v10192_v14, %v10652_v53  ;;  %v5030_v16 = vcombine.high %v2774_v0, %v2774_v0  ;;  %v5037_v8 = vrot.slane %v2774_v0, %v12796_v43  ;;  %v7376_v51 = vmax.f32 %v3958_v42, %v11180_v48 }
 0x462   :  { %v10654_v63 = vsel %vm10211_vm8, %v10196_v35, %v10653_v5  ;;  %v9136_v40 = vrot.slane %v7374_v39, %v12942_v59  ;;  %v9140_v49 = vrot.slane %v7375_v32, %v12942_v59  ;;  %v10421_v57 = vsel %vm10207_vm6, %v9132_v18, %v10420_v34 }
 0x463   :  { %v10655_v62 = vsel %vm10213_vm9, %v10200_v11, %v10654_v63  ;;  %v5044_v26 = vrot.slane %v5030_v16, %v12796_v43  ;;  %v5045_v4 = vcombine.high %v5037_v8, %v5037_v8  ;;  %v10643_v3 = vsel %vm10203_vm4, %v10148_v21, %v10642_v15 }
 0x464   :  { %10784 = vst.msk [vmem:[#allocation2 + $0x1f8] sm:$0xff] %vm10720_vm10, %v10655_v62  ;;  %v9144_v25 = vrot.slane %v7376_v51, %v12942_v59  ;;  %v10422_v19 = vsel %vm10209_vm7, %v9136_v40, %v10421_v57  ;;  %v11433_v1 = vrot.slane %v5037_v8, 9  ;;  %v10644_v15 = vsel %vm10205_vm5, %v10152_v44, %v10643_v3 }
 0x465   :  { %v10423_v7 = vsel %vm10211_vm8, %v9140_v49, %v10422_v19  ;;  %v5046_v36 = vcombine.high %v5044_v26, %v5044_v26  ;;  %v11434_v29 = vrot.slane %v5045_v4, 9  ;;  %v11435_v17 = vrot.slane %v5044_v26, 9 }
 0x466   :  { %v10424_v38 = vsel %vm10213_vm9, %v9144_v25, %v10423_v7  ;;  %v7629_v28 = vmax.f32 %v5037_v8, %v11433_v1 }
 0x467   :  { %10751 = vst.msk [vmem:[#allocation2 + $0xf0] sm:$0xff] %vm10720_vm10, %v10424_v38  ;;  %v11436_v43 = vrot.slane %v5046_v36, 9  ;;  %v7630_v10 = vmax.f32 %v5045_v4, %v11434_v29  ;;  %v7631_v21 = vmax.f32 %v5044_v26, %v11435_v17 }
 0x468   :  { %v10156_v34 = vrot.slane %v7629_v28, %v12942_v59 }
 0x469   :  { %v7632_v55 = vmax.f32 %v5046_v36, %v11436_v43  ;;  %v10160_v56 = vrot.slane %v7630_v10, %v12942_v59  ;;  %v10164_v58 = vrot.slane %v7631_v21, %v12942_v59 }
 0x46a   :  { %v10645_v52 = vsel %vm10207_vm6, %v10156_v34, %v10644_v15 }
 0x46b   :  { %v10168_v23 = vrot.slane %v7632_v55, %v12942_v59  ;;  %v10646_v30 = vsel %vm10209_vm7, %v10160_v56, %v10645_v52 }
 0x46c   :  { %v10647_v9 = vsel %vm10211_vm8, %v10164_v58, %v10646_v30 }
 0x46d   :  { %v10648_v27 = vsel %vm10213_vm9, %v10168_v23, %v10647_v9 }
 0x46e   :  { %10783 = vst.msk [vmem:[#allocation2 + $0x1f0] sm:$0xff] %vm10720_vm10, %v10648_v27 }
 0x46f   :  { %11870 = shalt.err (!%p11867_p4)
}
 0x470   :  { %s11871_s22 = scalar_lea.hbm %s16357_s4, 8192 }
 0x471   :  { %p11872_p5 = scmp.ne.s32.totalorder %s16357_s4, %s11871_s22  ;;  %p11875_p6 = scmp.lt.u32.totalorder %s11871_s22, %s16357_s4 }
 0x473   :  { %p11877_p7 = pnand %p11875_p6, %p11872_p5 }
 0x475   :  { %11880 = shalt.err (!%p11877_p7)
}
 0x476   :  { %s11886_s26 = smov 128   ;;  %s11887_s27 = smov 8  }
 0x477   :  { %10796 = dma.vmem_to_hbm [thread:$0]  %s10791_s19, 8192, %s16357_s4, [#allocation3], %s11886_s26, %s11886_s26, %s11887_s27  }
 0x478   :  { %11881 = dma.done.wait [#allocation3], 8192  }
 0x479   :  { %11882 = vsyncadd [#allocation3], 4294959104 }
 0x47a   :  { %10800 = vsyncpa [#allocation3], 1 }

</bundles_post_ra>
